<compile_context>
chip_gen: v5e
topology: v5e:2x2
jax: 0.10.0
libtpu: 0.0.40
codegen_flags: <defaults>
</compile_context>

<pallas_src>
import math

import jax
import jax.numpy as jnp
from jax.experimental import pallas as pl
from jax.experimental.pallas import tpu as pltpu

# ---------------- constants / dims ----------------
MIN_NORM = 1e-15
PROJ_EPS = 4e-3          # hgcn PoincareBall eps[float32]
LN_EPS   = 1e-5          # torch_geometric LayerNorm eps
N_NODES  = 32
N_GRAPHS = 2
NODES_PER_GRAPH = N_NODES // N_GRAPHS
B_PAD    = 8             # graph (batch) dim padded to one sublane tile

IN_X, IN_EXTRA = 10, 5
HYP_IN   = IN_X + IN_EXTRA          # 15  (HypLinear in_features)
EMB      = 128                      # embedding_dim / HypLinear out_features
HIDDEN   = 32                       # hidden_channels == m_dim
EDGE_ATTR_DIM = 4
OUT_DIM  = 4
N_LAYERS = 1

HYP_IN_PAD    = 128
EDGE_IN_REAL  = 2 * EMB + EMB + 1   # [x_i, x_j, edge_attr, rel_dist] = 385
EDGE_HID_REAL = 2 * EDGE_IN_REAL    # 770
EDGE_HID_PAD  = 896
M_PAD         = 128                 # m_dim (32) / output padded to one lane tile
NODE_IN_REAL  = EMB + HIDDEN        # 160
NODE_IN_PAD   = 2 * EMB             # 256
NODE_HID      = 2 * EMB             # 256


# ---------------- small math helpers (usable inside kernels) ----------------
def _silu(x):
    return x * jax.nn.sigmoid(x)


def _artanh(x):
    x = jnp.clip(x, -1.0 + 1e-7, 1.0 - 1e-7)
    return 0.5 * (jnp.log1p(x) - jnp.log1p(-x))


def _rownorm(x):
    return jnp.maximum(jnp.sqrt(jnp.sum(x * x, axis=-1, keepdims=True)), MIN_NORM)


# ---------------- the fused Pallas kernel ----------------
def hegnn_fused_kernel(
        # data
        xc_ref, pos_ref, ea_ref, src_ref, dst_ref, dstr_ref, bat_ref, tss_ref,
        # weights
        hypwT_ref, eew_ref, eeb_ref,
        ew1_ref, ew1d_ref, eb1_ref, ew2_ref, eb2_ref,
        nw1_ref, nb1_ref, nw2_ref, nb2_ref,
        ffw1_ref, ffb1_ref, lnw_ref, lnb_ref, ffw2_ref, ffb2_ref,
        linw_ref, linb_ref,
        # output
        out_ref):
    f32 = jnp.float32
    bf16 = jnp.bfloat16
    n = xc_ref.shape[0]
    e = ea_ref.shape[0]
    emb = hypwT_ref.shape[1]
    maxn = 1.0 - PROJ_EPS

    # ---------- 1. hyperbolic node embedding (PoincareBall, c=1) ----------
    # proj_tan0 (identity) -> expmap0 -> proj -> mobius_matvec (HypLinear, no
    # bias) -> proj -> logmap0.  Norm math in f32; divides on the EUP.
    xin = xc_ref[...]                                            # [N, 128] (15 real cols)
    un = _rownorm(xin)
    g = jnp.tanh(un) * xin * pl.reciprocal(un, approx=True)      # expmap0
    gn = _rownorm(g)
    g = jnp.where(gn > maxn, g * (maxn * pl.reciprocal(gn, approx=True)), g)   # proj
    xn = _rownorm(g)
    mx = jnp.dot(g, hypwT_ref[...], preferred_element_type=f32)  # mobius_matvec (f32; tiny)
    mxn = _rownorm(mx)
    res = (jnp.tanh(mxn * pl.reciprocal(xn, approx=True) * _artanh(xn))
           * mx * pl.reciprocal(mxn, approx=True))
    zero_row = jnp.sum(jnp.abs(mx), axis=-1, keepdims=True) < MIN_NORM
    res = jnp.where(zero_row, 0.0, res)
    rn = _rownorm(res)
    res = jnp.where(rn > maxn, res * (maxn * pl.reciprocal(rn, approx=True)), res)  # proj
    pn = _rownorm(res)
    feats = _artanh(pn) * pl.reciprocal(pn, approx=True) * res   # logmap0 -> [N, 128] f32

    # ---------- 2. edge_attr embedding ----------
    # TODO(synk): edgeEncoder class is not in the reference file -> single Linear(4, EMB).
    e_emb = jnp.dot(ea_ref[...].astype(bf16), eew_ref[...],
                    preferred_element_type=f32) + eeb_ref[...]   # [E, 128]

    # ---------- 3. in-kernel gathers via one-hot incidence matmuls ----------
    nid_e = jax.lax.broadcasted_iota(jnp.int32, (e, n), 1)
    oh_src = (nid_e == src_ref[...]).astype(f32)                 # [E, N], 1 at edge_index[0]
    oh_dst = (nid_e == dst_ref[...]).astype(f32)                 # [E, N], 1 at edge_index[1]
    feats_dst = jnp.dot(oh_dst, feats, preferred_element_type=f32)   # x_i = feats[edge_index[1]]
    feats_src = jnp.dot(oh_src, feats, preferred_element_type=f32)   # x_j = feats[edge_index[0]]
    rel = jnp.dot(oh_src - oh_dst, pos_ref[...],
                  preferred_element_type=f32)                    # pos[src] - pos[dst]
    rel_dist = jnp.sum(rel * rel, axis=-1, keepdims=True)        # [E, 1]

    # ---------- 4. EGNN edge MLP (split weight row-blocks, no concat) ----------
    h1 = (jnp.dot(feats_dst.astype(bf16), ew1_ref[0:emb, :], preferred_element_type=f32)
          + jnp.dot(feats_src.astype(bf16), ew1_ref[emb:2 * emb, :], preferred_element_type=f32)
          + jnp.dot(e_emb.astype(bf16), ew1_ref[2 * emb:3 * emb, :], preferred_element_type=f32)
          + rel_dist * ew1d_ref[...]
          + eb1_ref[...])                                        # [E, 896] (770 real)
    h1 = _silu(h1)
    m_ij = _silu(jnp.dot(h1.astype(bf16), ew2_ref[...],
                         preferred_element_type=f32) + eb2_ref[...])   # [E, 128] (32 real)
    # TODO(synk): reference edge-update MLP unknown; updated edge_attr unused for n_layers=1.

    # ---------- 5. message aggregation (scatter-add as [N,E] @ [E,M] matmul) ----------
    nid_n = jax.lax.broadcasted_iota(jnp.int32, (n, e), 0)
    oh_agg = (nid_n == dstr_ref[...]).astype(f32)                # [N, E]
    m_agg = jnp.dot(oh_agg, m_ij, preferred_element_type=f32)    # [N, 128]

    # ---------- 6. EGNN node MLP + residual (split weight row-blocks) ----------
    nh = _silu(jnp.dot(feats.astype(bf16), nw1_ref[0:emb, :], preferred_element_type=f32)
               + jnp.dot(m_agg.astype(bf16), nw1_ref[emb:2 * emb, :], preferred_element_type=f32)
               + nb1_ref[...])                                   # [N, 256]
    node_out = (jnp.dot(nh.astype(bf16), nw2_ref[...], preferred_element_type=f32)
                + nb2_ref[...] + feats)                          # [N, 128]

    # ---------- 7. expmap0 over cat([coors, feats]) (joint norm) ----------
    # coors update is dead for n_layers == 1 -> never emitted to HBM.
    p = pos_ref[...]
    nrm = jnp.maximum(
        jnp.sqrt(jnp.sum(p * p, axis=-1, keepdims=True)
                 + jnp.sum(node_out * node_out, axis=-1, keepdims=True)), MIN_NORM)
    f = node_out * (jnp.tanh(nrm) * pl.reciprocal(nrm, approx=True))

    # ---------- 8. FiLM time modulation (scale/shift gathered by batch one-hot) ----------
    b_pad = tss_ref.shape[0]
    gid = jax.lax.broadcasted_iota(jnp.int32, (n, b_pad), 1)
    b_oh = (gid == bat_ref[...]).astype(f32)                     # [N, B_PAD]
    ss = jnp.dot(b_oh, tss_ref[...], preferred_element_type=f32)  # [N, 2*EMB]
    f = f * (ss[:, :emb] + 1.0) + ss[:, emb:]

    # ---------- 9. ff block: Linear -> SiLU -> graph-mode LayerNorm -> Linear ----------
    # NOTE: in the reference, torch_geometric LayerNorm is inside nn.Sequential
    # so it receives batch=None -> statistics over ALL nodes & features.
    h = _silu(jnp.dot(f.astype(bf16), ffw1_ref[...], preferred_element_type=f32) + ffb1_ref[...])
    mu = jnp.mean(h)
    hc = h - mu
    std = jnp.sqrt(jnp.mean(hc * hc))
    hn = hc * (1.0 / (std + LN_EPS))
    hn = hn * lnw_ref[...] + lnb_ref[...]
    f = jnp.dot(hn.astype(bf16), ffw2_ref[...], preferred_element_type=f32) + ffb2_ref[...]

    # ---------- 10. final Linear(EMB, OUT_DIM), lane-dense padded output ----------
    out_ref[...] = jnp.dot(f, linw_ref[...], preferred_element_type=f32) + linb_ref[...]


# ---------------- parameter construction (deterministic) ----------------
def pad_cols(a, to):
    p = to - a.shape[-1]
    return a if p == 0 else jnp.pad(a, ((0, 0), (0, p)))


def embed_pad(w, rows, cols):
    out = jnp.zeros((rows, cols), jnp.float32)
    return out.at[:w.shape[0], :w.shape[1]].set(w)


def init_linear(key, fan_in, fan_out):
    k1, k2 = jax.random.split(key)
    w = jax.random.normal(k1, (fan_in, fan_out), jnp.float32) / jnp.sqrt(float(fan_in))
    b = 0.01 * jax.random.normal(k2, (fan_out,), jnp.float32)
    return w, b


def make_params(key):
    ks = list(jax.random.split(key, 16))
    p = {}
    # time_mlp: Linear(1, HIDDEN) -> SiLU -> Linear(HIDDEN, EMB)   (tiny -> XLA)
    p['time_w1'], p['time_b1'] = init_linear(ks[0], 1, HIDDEN)
    p['time_w2'], p['time_b2'] = init_linear(ks[1], HIDDEN, EMB)
    # time_mlp_list[0]: SiLU -> Linear(EMB, 2*EMB)                 (tiny -> XLA)
    p['tml_w'], p['tml_b'] = init_linear(ks[2], EMB, 2 * EMB)
    # HypLinear weight [out=128, in=15], use_bias=False -> padded W^T (f32)
    hyp_w = jax.random.normal(ks[3], (EMB, HYP_IN), jnp.float32) * math.sqrt(2.0 / (EMB + HYP_IN))
    p['hyp_wT'] = embed_pad(hyp_w.T, HYP_IN_PAD, EMB)
    # edge embedding (edgeEncoder approximation): Linear(4, EMB)
    w, b = init_linear(ks[4], EDGE_ATTR_DIM, EMB)
    p['ee_w'] = embed_pad(w, 128, EMB).astype(jnp.bfloat16)
    p['ee_b'] = b[None, :]
    # EGNN edge MLP: Linear(385, 770) -> SiLU -> Linear(770, 32) -> SiLU
    w, b = init_linear(ks[5], EDGE_IN_REAL, EDGE_HID_REAL)
    w1_pad = jnp.zeros((3 * EMB, EDGE_HID_PAD), jnp.float32)
    w1_pad = w1_pad.at[:, :EDGE_HID_REAL].set(w[:3 * EMB])        # rows: x_i | x_j | e_attr
    p['e_w1'] = w1_pad.astype(jnp.bfloat16)                       # [384, 896] bf16
    p['e_w1d'] = embed_pad(w[3 * EMB:3 * EMB + 1], 1, EDGE_HID_PAD)   # rel_dist row, f32
    p['e_b1'] = embed_pad(b[None, :], 1, EDGE_HID_PAD)
    w, b = init_linear(ks[6], EDGE_HID_REAL, HIDDEN)
    p['e_w2'] = embed_pad(w, EDGE_HID_PAD, M_PAD).astype(jnp.bfloat16)   # [896, 128] bf16
    p['e_b2'] = embed_pad(b[None, :], 1, M_PAD)
    # EGNN node MLP: Linear(160, 256) -> SiLU -> Linear(256, 128), residual
    w, b = init_linear(ks[7], NODE_IN_REAL, NODE_HID)
    w_pad = jnp.zeros((NODE_IN_PAD, NODE_HID), jnp.float32)
    w_pad = w_pad.at[:EMB, :].set(w[:EMB])                        # feats block
    w_pad = w_pad.at[EMB:EMB + HIDDEN, :].set(w[EMB:])            # m_agg block (32 real rows)
    p['n_w1'] = w_pad.astype(jnp.bfloat16)                        # [256, 256] bf16
    p['n_b1'] = b[None, :]
    w, b = init_linear(ks[8], NODE_HID, EMB)
    p['n_w2'] = w.astype(jnp.bfloat16)
    p['n_b2'] = b[None, :]
    # ff block: Linear(EMB, EMB) -> (Dropout p=0) -> SiLU -> LayerNorm -> Linear(EMB, EMB)
    w, b = init_linear(ks[9], EMB, EMB)
    p['ff_w1'] = w.astype(jnp.bfloat16)
    p['ff_b1'] = b[None, :]
    p['ln_w'] = jnp.ones((1, EMB), jnp.float32)
    p['ln_b'] = jnp.zeros((1, EMB), jnp.float32)
    w, b = init_linear(ks[10], EMB, EMB)
    p['ff_w2'] = w.astype(jnp.bfloat16)
    p['ff_b2'] = b[None, :]
    # final lin: Linear(EMB, OUT_DIM) -> padded lane-dense weight (f32 for output accuracy)
    w, b = init_linear(ks[11], EMB, OUT_DIM)
    p['lin_w'] = embed_pad(w, EMB, M_PAD)
    p['lin_b'] = embed_pad(b[None, :], 1, M_PAD)
    return p


# ---------------- forward ----------------
def hegnn_forward(params, x, pos, extra_x, edge_index, edge_attr, batch, time):
    # TODO(synk): the fused kernel implements exactly one EGNN layer + pre/post
    # (n_layers=1 in the reference config); multi-layer would keep feats/corr in
    # VMEM scratch across an "arbitrary" grid axis.
    assert N_LAYERS == 1
    n = x.shape[0]

    # --- tiny [B, *] time MLPs: 2-row matmuls, kept in plain XLA glue ---
    t = _silu(jnp.dot(time, params['time_w1']) + params['time_b1'])
    t = jnp.dot(t, params['time_w2']) + params['time_b2']                   # [B, EMB]
    time_emb = jnp.dot(_silu(t), params['tml_w']) + params['tml_b']         # [B, 2*EMB]
    tss = jnp.zeros((B_PAD, 2 * EMB), jnp.float32).at[:time_emb.shape[0]].set(time_emb)

    # --- one-time layout plumbing (all tiny, done once per call) ---
    xc   = pad_cols(jnp.concatenate([x, extra_x], axis=1), HYP_IN_PAD)      # [N, 128]
    posp = pad_cols(pos, 128)                                               # [N, 128]
    eap  = pad_cols(edge_attr, 128)                                         # [E, 128]
    ei = edge_index.astype(jnp.int32)
    src_col = ei[0][:, None]                                                # [E, 1]
    dst_col = ei[1][:, None]                                                # [E, 1]
    dst_row = ei[1][None, :]                                                # [1, E]
    batc = batch.astype(jnp.int32)[:, None]                                 # [N, 1]

    args = (xc, posp, eap, src_col, dst_col, dst_row, batc, tss,
            params['hyp_wT'], params['ee_w'], params['ee_b'],
            params['e_w1'], params['e_w1d'], params['e_b1'],
            params['e_w2'], params['e_b2'],
            params['n_w1'], params['n_b1'], params['n_w2'], params['n_b2'],
            params['ff_w1'], params['ff_b1'], params['ln_w'], params['ln_b'],
            params['ff_w2'], params['ff_b2'],
            params['lin_w'], params['lin_b'])

    vspec = pl.BlockSpec(memory_space=pltpu.MemorySpace.VMEM)
    # Single fused invocation; at N=32/E=64 everything (<2 MiB) fits VMEM on
    # v5e/v6e/v7x.  (For large graphs: add an edge-tile grid axis marked
    # "parallel" for v7x's 2 TensorCores and budget vmem_limit_bytes.)
    out_pad = pl.pallas_call(
        hegnn_fused_kernel,
        out_shape=jax.ShapeDtypeStruct((n, M_PAD), jnp.float32),
        in_specs=[vspec] * len(args),
        out_specs=vspec,
    )(*args)
    return out_pad[:, :OUT_DIM]


# ---------------- example data / main ----------------
def ring_edges(nodes_per_graph, n_graphs):
    rows, cols = [], []
    for g in range(n_graphs):
        off = g * nodes_per_graph
        for i in range(nodes_per_graph):
            rows += [off + i, off + i]
            cols += [off + (i + 1) % nodes_per_graph, off + (i - 1) % nodes_per_graph]
    return jnp.array([rows, cols], dtype=jnp.int32)


if __name__ == "__main__":
    key = jax.random.PRNGKey(0)
    k_dat, k_par = jax.random.split(key)
    kd = list(jax.random.split(k_dat, 6))

    x       = jax.random.normal(kd[0], (N_NODES, IN_X), jnp.float32)
    extra_x = jax.random.normal(kd[1], (N_NODES, IN_EXTRA), jnp.float32)
    pos     = jax.random.normal(kd[2], (N_NODES, 3), jnp.float32)
    edge_index = ring_edges(NODES_PER_GRAPH, N_GRAPHS)                      # [2, 64]
    edge_attr  = jax.random.normal(kd[3], (edge_index.shape[1], EDGE_ATTR_DIM), jnp.float32)
    batch   = jnp.repeat(jnp.arange(N_GRAPHS, dtype=jnp.int32), NODES_PER_GRAPH)
    time_in = jax.random.uniform(kd[4], (N_GRAPHS, 1), jnp.float32)

    params = make_params(k_par)

    fwd = jax.jit(hegnn_forward)
    out = jax.block_until_ready(fwd(params, x, pos, extra_x, edge_index, edge_attr, batch, time_in))
    assert out.shape == (N_NODES, OUT_DIM)
    assert bool(jnp.all(jnp.isfinite(out)))
    print("KERNEL_OK")
</pallas_src>

<mosaic_0001>
module attributes {stable_mosaic.version = 11 : i64} {
  func.func @hegnn_fused_kernel(%arg0: memref<32x128xf32, #tpu.memory_space<vmem>>, %arg1: memref<32x128xf32, #tpu.memory_space<vmem>>, %arg2: memref<64x128xf32, #tpu.memory_space<vmem>>, %arg3: memref<64x1xi32, #tpu.memory_space<vmem>>, %arg4: memref<64x1xi32, #tpu.memory_space<vmem>>, %arg5: memref<1x64xi32, #tpu.memory_space<vmem>>, %arg6: memref<32x1xi32, #tpu.memory_space<vmem>>, %arg7: memref<8x256xf32, #tpu.memory_space<vmem>>, %arg8: memref<128x128xf32, #tpu.memory_space<vmem>>, %arg9: memref<128x128xbf16, #tpu.memory_space<vmem>>, %arg10: memref<1x128xf32, #tpu.memory_space<vmem>>, %arg11: memref<384x896xbf16, #tpu.memory_space<vmem>>, %arg12: memref<1x896xf32, #tpu.memory_space<vmem>>, %arg13: memref<1x896xf32, #tpu.memory_space<vmem>>, %arg14: memref<896x128xbf16, #tpu.memory_space<vmem>>, %arg15: memref<1x128xf32, #tpu.memory_space<vmem>>, %arg16: memref<256x256xbf16, #tpu.memory_space<vmem>>, %arg17: memref<1x256xf32, #tpu.memory_space<vmem>>, %arg18: memref<256x128xbf16, #tpu.memory_space<vmem>>, %arg19: memref<1x128xf32, #tpu.memory_space<vmem>>, %arg20: memref<128x128xbf16, #tpu.memory_space<vmem>>, %arg21: memref<1x128xf32, #tpu.memory_space<vmem>>, %arg22: memref<1x128xf32, #tpu.memory_space<vmem>>, %arg23: memref<1x128xf32, #tpu.memory_space<vmem>>, %arg24: memref<128x128xbf16, #tpu.memory_space<vmem>>, %arg25: memref<1x128xf32, #tpu.memory_space<vmem>>, %arg26: memref<128x128xf32, #tpu.memory_space<vmem>>, %arg27: memref<1x128xf32, #tpu.memory_space<vmem>>, %arg28: memref<32x128xf32, #tpu.memory_space<vmem>>) attributes {dimension_semantics = [], scalar_prefetch = 0 : i64, scratch_operands = 0 : i64, tpu.core_type = #tpu.core_type<tc>} {
    %c0 = arith.constant 0 : index
    %c0_0 = arith.constant 0 : index
    %0 = vector.load %arg0[%c0, %c0_0] : memref<32x128xf32, #tpu.memory_space<vmem>>, vector<32x128xf32>
    %1 = arith.mulf %0, %0 : vector<32x128xf32>
    %cst = arith.constant dense<0.000000e+00> : vector<32xf32>
    %2 = vector.multi_reduction <add>, %1, %cst [1] : vector<32x128xf32> to vector<32xf32>
    %3 = vector.shape_cast %2 : vector<32xf32> to vector<32x1xf32>
    %4 = math.sqrt %3 : vector<32x1xf32>
    %cst_1 = arith.constant 1.000000e-15 : f32
    %5 = vector.broadcast %cst_1 : f32 to vector<32x1xf32>
    %6 = arith.maximumf %4, %5 : vector<32x1xf32>
    %7 = math.tanh %6 : vector<32x1xf32>
    %8 = vector.broadcast %7 : vector<32x1xf32> to vector<32x128xf32>
    %9 = arith.mulf %8, %0 : vector<32x128xf32>
    %10 = tpu.reciprocal %6 {approx = true} : vector<32x1xf32> -> vector<32x1xf32>
    %11 = vector.broadcast %10 : vector<32x1xf32> to vector<32x128xf32>
    %12 = arith.mulf %9, %11 : vector<32x128xf32>
    %13 = arith.mulf %12, %12 : vector<32x128xf32>
    %cst_2 = arith.constant dense<0.000000e+00> : vector<32xf32>
    %14 = vector.multi_reduction <add>, %13, %cst_2 [1] : vector<32x128xf32> to vector<32xf32>
    %15 = vector.shape_cast %14 : vector<32xf32> to vector<32x1xf32>
    %16 = math.sqrt %15 : vector<32x1xf32>
    %cst_3 = arith.constant 1.000000e-15 : f32
    %17 = vector.broadcast %cst_3 : f32 to vector<32x1xf32>
    %18 = arith.maximumf %16, %17 : vector<32x1xf32>
    %cst_4 = arith.constant 0.995999991 : f32
    %19 = vector.broadcast %cst_4 : f32 to vector<32x1xf32>
    %20 = arith.cmpf ogt, %18, %19 : vector<32x1xf32>
    %21 = tpu.reciprocal %18 {approx = true} : vector<32x1xf32> -> vector<32x1xf32>
    %cst_5 = arith.constant 0.995999991 : f32
    %22 = vector.broadcast %cst_5 : f32 to vector<32x1xf32>
    %23 = arith.mulf %22, %21 : vector<32x1xf32>
    %24 = vector.broadcast %23 : vector<32x1xf32> to vector<32x128xf32>
    %25 = arith.mulf %12, %24 : vector<32x128xf32>
    %26 = vector.shape_cast %20 : vector<32x1xi1> to vector<32x1xi1>
    %27 = vector.broadcast %26 : vector<32x1xi1> to vector<32x128xi1>
    %28 = arith.select %27, %25, %12 : vector<32x128xi1>, vector<32x128xf32>
    %29 = arith.mulf %28, %28 : vector<32x128xf32>
    %cst_6 = arith.constant dense<0.000000e+00> : vector<32xf32>
    %30 = vector.multi_reduction <add>, %29, %cst_6 [1] : vector<32x128xf32> to vector<32xf32>
    %31 = vector.shape_cast %30 : vector<32xf32> to vector<32x1xf32>
    %32 = math.sqrt %31 : vector<32x1xf32>
    %cst_7 = arith.constant 1.000000e-15 : f32
    %33 = vector.broadcast %cst_7 : f32 to vector<32x1xf32>
    %34 = arith.maximumf %32, %33 : vector<32x1xf32>
    %c0_8 = arith.constant 0 : index
    %c0_9 = arith.constant 0 : index
    %35 = vector.load %arg8[%c0_8, %c0_9] : memref<128x128xf32, #tpu.memory_space<vmem>>, vector<128x128xf32>
    %cst_10 = arith.constant dense<0.000000e+00> : vector<32x128xf32>
    %36 = tpu.matmul %28, %35, %cst_10 {dimension_numbers = #tpu.dot_dimension_numbers<[1], [0], [0], [1], [0, 0, 1, 1], [], []>} : vector<32x128xf32>, vector<128x128xf32>, vector<32x128xf32> -> vector<32x128xf32>
    %37 = arith.mulf %36, %36 : vector<32x128xf32>
    %cst_11 = arith.constant dense<0.000000e+00> : vector<32xf32>
    %38 = vector.multi_reduction <add>, %37, %cst_11 [1] : vector<32x128xf32> to vector<32xf32>
    %39 = vector.shape_cast %38 : vector<32xf32> to vector<32x1xf32>
    %40 = math.sqrt %39 : vector<32x1xf32>
    %cst_12 = arith.constant 1.000000e-15 : f32
    %41 = vector.broadcast %cst_12 : f32 to vector<32x1xf32>
    %42 = arith.maximumf %40, %41 : vector<32x1xf32>
    %43 = tpu.reciprocal %34 {approx = true} : vector<32x1xf32> -> vector<32x1xf32>
    %44 = arith.mulf %42, %43 : vector<32x1xf32>
    %cst_13 = arith.constant -0.99999988 : f32
    %cst_14 = arith.constant 0.99999988 : f32
    %45 = vector.broadcast %cst_13 : f32 to vector<32x1xf32>
    %46 = arith.maximumf %45, %34 : vector<32x1xf32>
    %47 = vector.broadcast %cst_14 : f32 to vector<32x1xf32>
    %48 = arith.minimumf %47, %46 : vector<32x1xf32>
    %49 = math.log1p %48 : vector<32x1xf32>
    %cst_15 = arith.constant 0.000000e+00 : f32
    %50 = vector.broadcast %cst_15 : f32 to vector<32x1xf32>
    %51 = arith.subf %50, %48 : vector<32x1xf32>
    %52 = math.log1p %51 : vector<32x1xf32>
    %53 = arith.subf %49, %52 : vector<32x1xf32>
    %cst_16 = arith.constant 5.000000e-01 : f32
    %54 = vector.broadcast %cst_16 : f32 to vector<32x1xf32>
    %55 = arith.mulf %54, %53 : vector<32x1xf32>
    %56 = arith.mulf %44, %55 : vector<32x1xf32>
    %57 = math.tanh %56 : vector<32x1xf32>
    %58 = vector.broadcast %57 : vector<32x1xf32> to vector<32x128xf32>
    %59 = arith.mulf %58, %36 : vector<32x128xf32>
    %60 = tpu.reciprocal %42 {approx = true} : vector<32x1xf32> -> vector<32x1xf32>
    %61 = vector.broadcast %60 : vector<32x1xf32> to vector<32x128xf32>
    %62 = arith.mulf %59, %61 : vector<32x128xf32>
    %63 = math.absf %36 : vector<32x128xf32>
    %cst_17 = arith.constant dense<0.000000e+00> : vector<32xf32>
    %64 = vector.multi_reduction <add>, %63, %cst_17 [1] : vector<32x128xf32> to vector<32xf32>
    %65 = vector.shape_cast %64 : vector<32xf32> to vector<32x1xf32>
    %cst_18 = arith.constant 1.000000e-15 : f32
    %66 = vector.broadcast %cst_18 : f32 to vector<32x1xf32>
    %67 = arith.cmpf olt, %65, %66 : vector<32x1xf32>
    %cst_19 = arith.constant 0.000000e+00 : f32
    %68 = vector.shape_cast %67 : vector<32x1xi1> to vector<32x1xi1>
    %69 = vector.broadcast %68 : vector<32x1xi1> to vector<32x128xi1>
    %70 = vector.broadcast %cst_19 : f32 to vector<32x128xf32>
    %71 = arith.select %69, %70, %62 : vector<32x128xi1>, vector<32x128xf32>
    %72 = arith.mulf %71, %71 : vector<32x128xf32>
    %cst_20 = arith.constant dense<0.000000e+00> : vector<32xf32>
    %73 = vector.multi_reduction <add>, %72, %cst_20 [1] : vector<32x128xf32> to vector<32xf32>
    %74 = vector.shape_cast %73 : vector<32xf32> to vector<32x1xf32>
    %75 = math.sqrt %74 : vector<32x1xf32>
    %cst_21 = arith.constant 1.000000e-15 : f32
    %76 = vector.broadcast %cst_21 : f32 to vector<32x1xf32>
    %77 = arith.maximumf %75, %76 : vector<32x1xf32>
    %cst_22 = arith.constant 0.995999991 : f32
    %78 = vector.broadcast %cst_22 : f32 to vector<32x1xf32>
    %79 = arith.cmpf ogt, %77, %78 : vector<32x1xf32>
    %80 = tpu.reciprocal %77 {approx = true} : vector<32x1xf32> -> vector<32x1xf32>
    %cst_23 = arith.constant 0.995999991 : f32
    %81 = vector.broadcast %cst_23 : f32 to vector<32x1xf32>
    %82 = arith.mulf %81, %80 : vector<32x1xf32>
    %83 = vector.broadcast %82 : vector<32x1xf32> to vector<32x128xf32>
    %84 = arith.mulf %71, %83 : vector<32x128xf32>
    %85 = vector.shape_cast %79 : vector<32x1xi1> to vector<32x1xi1>
    %86 = vector.broadcast %85 : vector<32x1xi1> to vector<32x128xi1>
    %87 = arith.select %86, %84, %71 : vector<32x128xi1>, vector<32x128xf32>
    %88 = arith.mulf %87, %87 : vector<32x128xf32>
    %cst_24 = arith.constant dense<0.000000e+00> : vector<32xf32>
    %89 = vector.multi_reduction <add>, %88, %cst_24 [1] : vector<32x128xf32> to vector<32xf32>
    %90 = vector.shape_cast %89 : vector<32xf32> to vector<32x1xf32>
    %91 = math.sqrt %90 : vector<32x1xf32>
    %cst_25 = arith.constant 1.000000e-15 : f32
    %92 = vector.broadcast %cst_25 : f32 to vector<32x1xf32>
    %93 = arith.maximumf %91, %92 : vector<32x1xf32>
    %cst_26 = arith.constant -0.99999988 : f32
    %cst_27 = arith.constant 0.99999988 : f32
    %94 = vector.broadcast %cst_26 : f32 to vector<32x1xf32>
    %95 = arith.maximumf %94, %93 : vector<32x1xf32>
    %96 = vector.broadcast %cst_27 : f32 to vector<32x1xf32>
    %97 = arith.minimumf %96, %95 : vector<32x1xf32>
    %98 = math.log1p %97 : vector<32x1xf32>
    %cst_28 = arith.constant 0.000000e+00 : f32
    %99 = vector.broadcast %cst_28 : f32 to vector<32x1xf32>
    %100 = arith.subf %99, %97 : vector<32x1xf32>
    %101 = math.log1p %100 : vector<32x1xf32>
    %102 = arith.subf %98, %101 : vector<32x1xf32>
    %cst_29 = arith.constant 5.000000e-01 : f32
    %103 = vector.broadcast %cst_29 : f32 to vector<32x1xf32>
    %104 = arith.mulf %103, %102 : vector<32x1xf32>
    %105 = tpu.reciprocal %93 {approx = true} : vector<32x1xf32> -> vector<32x1xf32>
    %106 = arith.mulf %104, %105 : vector<32x1xf32>
    %107 = vector.broadcast %106 : vector<32x1xf32> to vector<32x128xf32>
    %108 = arith.mulf %107, %87 : vector<32x128xf32>
    %c0_30 = arith.constant 0 : index
    %c0_31 = arith.constant 0 : index
    %109 = vector.load %arg2[%c0_30, %c0_31] : memref<64x128xf32, #tpu.memory_space<vmem>>, vector<64x128xf32>
    %110 = arith.truncf %109 : vector<64x128xf32> to vector<64x128xbf16>
    %c0_32 = arith.constant 0 : index
    %c0_33 = arith.constant 0 : index
    %111 = vector.load %arg9[%c0_32, %c0_33] : memref<128x128xbf16, #tpu.memory_space<vmem>>, vector<128x128xbf16>
    %cst_34 = arith.constant dense<0.000000e+00> : vector<64x128xf32>
    %112 = tpu.matmul %110, %111, %cst_34 {dimension_numbers = #tpu.dot_dimension_numbers<[1], [0], [0], [1], [0, 0, 1, 1], [], []>} : vector<64x128xbf16>, vector<128x128xbf16>, vector<64x128xf32> -> vector<64x128xf32>
    %c0_35 = arith.constant 0 : index
    %c0_36 = arith.constant 0 : index
    %113 = vector.load %arg10[%c0_35, %c0_36] : memref<1x128xf32, #tpu.memory_space<vmem>>, vector<1x128xf32>
    %114 = vector.broadcast %113 : vector<1x128xf32> to vector<64x128xf32>
    %115 = arith.addf %112, %114 : vector<64x128xf32>
    %116 = tpu.iota {dimensions = array<i32: 1>} : vector<64x32xi32>
    %c0_37 = arith.constant 0 : index
    %c0_38 = arith.constant 0 : index
    %117 = vector.load %arg3[%c0_37, %c0_38] : memref<64x1xi32, #tpu.memory_space<vmem>>, vector<64x1xi32>
    %118 = vector.broadcast %117 : vector<64x1xi32> to vector<64x32xi32>
    %119 = arith.cmpi eq, %116, %118 : vector<64x32xi32>
    %120 = arith.extui %119 : vector<64x32xi1> to vector<64x32xi32>
    %121 = arith.sitofp %120 : vector<64x32xi32> to vector<64x32xf32>
    %c0_39 = arith.constant 0 : index
    %c0_40 = arith.constant 0 : index
    %122 = vector.load %arg4[%c0_39, %c0_40] : memref<64x1xi32, #tpu.memory_space<vmem>>, vector<64x1xi32>
    %123 = vector.broadcast %122 : vector<64x1xi32> to vector<64x32xi32>
    %124 = arith.cmpi eq, %116, %123 : vector<64x32xi32>
    %125 = arith.extui %124 : vector<64x32xi1> to vector<64x32xi32>
    %126 = arith.sitofp %125 : vector<64x32xi32> to vector<64x32xf32>
    %cst_41 = arith.constant dense<0.000000e+00> : vector<64x128xf32>
    %127 = tpu.matmul %126, %108, %cst_41 {dimension_numbers = #tpu.dot_dimension_numbers<[1], [0], [0], [1], [0, 0, 1, 1], [], []>} : vector<64x32xf32>, vector<32x128xf32>, vector<64x128xf32> -> vector<64x128xf32>
    %cst_42 = arith.constant dense<0.000000e+00> : vector<64x128xf32>
    %128 = tpu.matmul %121, %108, %cst_42 {dimension_numbers = #tpu.dot_dimension_numbers<[1], [0], [0], [1], [0, 0, 1, 1], [], []>} : vector<64x32xf32>, vector<32x128xf32>, vector<64x128xf32> -> vector<64x128xf32>
    %129 = arith.subf %121, %126 : vector<64x32xf32>
    %c0_43 = arith.constant 0 : index
    %c0_44 = arith.constant 0 : index
    %130 = vector.load %arg1[%c0_43, %c0_44] : memref<32x128xf32, #tpu.memory_space<vmem>>, vector<32x128xf32>
    %cst_45 = arith.constant dense<0.000000e+00> : vector<64x128xf32>
    %131 = tpu.matmul %129, %130, %cst_45 {dimension_numbers = #tpu.dot_dimension_numbers<[1], [0], [0], [1], [0, 0, 1, 1], [], []>} : vector<64x32xf32>, vector<32x128xf32>, vector<64x128xf32> -> vector<64x128xf32>
    %132 = arith.mulf %131, %131 : vector<64x128xf32>
    %cst_46 = arith.constant dense<0.000000e+00> : vector<64xf32>
    %133 = vector.multi_reduction <add>, %132, %cst_46 [1] : vector<64x128xf32> to vector<64xf32>
    %134 = vector.shape_cast %133 : vector<64xf32> to vector<64x1xf32>
    %135 = arith.truncf %127 : vector<64x128xf32> to vector<64x128xbf16>
    %c0_47 = arith.constant 0 : index
    %c0_48 = arith.constant 0 : index
    %136 = vector.load %arg11[%c0_47, %c0_48] : memref<384x896xbf16, #tpu.memory_space<vmem>>, vector<128x896xbf16>
    %cst_49 = arith.constant dense<0.000000e+00> : vector<64x896xf32>
    %137 = tpu.matmul %135, %136, %cst_49 {dimension_numbers = #tpu.dot_dimension_numbers<[1], [0], [0], [1], [0, 0, 1, 1], [], []>} : vector<64x128xbf16>, vector<128x896xbf16>, vector<64x896xf32> -> vector<64x896xf32>
    %138 = arith.truncf %128 : vector<64x128xf32> to vector<64x128xbf16>
    %c128 = arith.constant 128 : index
    %c0_50 = arith.constant 0 : index
    %139 = vector.load %arg11[%c128, %c0_50] : memref<384x896xbf16, #tpu.memory_space<vmem>>, vector<128x896xbf16>
    %cst_51 = arith.constant dense<0.000000e+00> : vector<64x896xf32>
    %140 = tpu.matmul %138, %139, %cst_51 {dimension_numbers = #tpu.dot_dimension_numbers<[1], [0], [0], [1], [0, 0, 1, 1], [], []>} : vector<64x128xbf16>, vector<128x896xbf16>, vector<64x896xf32> -> vector<64x896xf32>
    %141 = arith.addf %137, %140 : vector<64x896xf32>
    %142 = arith.truncf %115 : vector<64x128xf32> to vector<64x128xbf16>
    %c256 = arith.constant 256 : index
    %c0_52 = arith.constant 0 : index
    %143 = vector.load %arg11[%c256, %c0_52] : memref<384x896xbf16, #tpu.memory_space<vmem>>, vector<128x896xbf16>
    %cst_53 = arith.constant dense<0.000000e+00> : vector<64x896xf32>
    %144 = tpu.matmul %142, %143, %cst_53 {dimension_numbers = #tpu.dot_dimension_numbers<[1], [0], [0], [1], [0, 0, 1, 1], [], []>} : vector<64x128xbf16>, vector<128x896xbf16>, vector<64x896xf32> -> vector<64x896xf32>
    %145 = arith.addf %141, %144 : vector<64x896xf32>
    %c0_54 = arith.constant 0 : index
    %c0_55 = arith.constant 0 : index
    %146 = vector.load %arg12[%c0_54, %c0_55] : memref<1x896xf32, #tpu.memory_space<vmem>>, vector<1x896xf32>
    %147 = vector.broadcast %134 : vector<64x1xf32> to vector<64x896xf32>
    %148 = vector.broadcast %146 : vector<1x896xf32> to vector<64x896xf32>
    %149 = arith.mulf %147, %148 : vector<64x896xf32>
    %150 = arith.addf %145, %149 : vector<64x896xf32>
    %c0_56 = arith.constant 0 : index
    %c0_57 = arith.constant 0 : index
    %151 = vector.load %arg13[%c0_56, %c0_57] : memref<1x896xf32, #tpu.memory_space<vmem>>, vector<1x896xf32>
    %152 = vector.broadcast %151 : vector<1x896xf32> to vector<64x896xf32>
    %153 = arith.addf %150, %152 : vector<64x896xf32>
    %154 = arith.negf %153 : vector<64x896xf32>
    %155 = math.exp %154 : vector<64x896xf32>
    %cst_58 = arith.constant 1.000000e+00 : f32
    %156 = vector.broadcast %cst_58 : f32 to vector<64x896xf32>
    %157 = arith.addf %156, %155 : vector<64x896xf32>
    %158 = arith.divf %156, %157 : vector<64x896xf32>
    %159 = arith.mulf %153, %158 : vector<64x896xf32>
    %160 = arith.truncf %159 : vector<64x896xf32> to vector<64x896xbf16>
    %c0_59 = arith.constant 0 : index
    %c0_60 = arith.constant 0 : index
    %161 = vector.load %arg14[%c0_59, %c0_60] : memref<896x128xbf16, #tpu.memory_space<vmem>>, vector<896x128xbf16>
    %cst_61 = arith.constant dense<0.000000e+00> : vector<64x128xf32>
    %162 = tpu.matmul %160, %161, %cst_61 {dimension_numbers = #tpu.dot_dimension_numbers<[1], [0], [0], [1], [0, 0, 1, 1], [], []>} : vector<64x896xbf16>, vector<896x128xbf16>, vector<64x128xf32> -> vector<64x128xf32>
    %c0_62 = arith.constant 0 : index
    %c0_63 = arith.constant 0 : index
    %163 = vector.load %arg15[%c0_62, %c0_63] : memref<1x128xf32, #tpu.memory_space<vmem>>, vector<1x128xf32>
    %164 = vector.broadcast %163 : vector<1x128xf32> to vector<64x128xf32>
    %165 = arith.addf %162, %164 : vector<64x128xf32>
    %166 = arith.negf %165 : vector<64x128xf32>
    %167 = math.exp %166 : vector<64x128xf32>
    %cst_64 = arith.constant 1.000000e+00 : f32
    %168 = vector.broadcast %cst_64 : f32 to vector<64x128xf32>
    %169 = arith.addf %168, %167 : vector<64x128xf32>
    %170 = arith.divf %168, %169 : vector<64x128xf32>
    %171 = arith.mulf %165, %170 : vector<64x128xf32>
    %172 = tpu.iota {dimensions = array<i32: 0>} : vector<32x64xi32>
    %c0_65 = arith.constant 0 : index
    %c0_66 = arith.constant 0 : index
    %173 = vector.load %arg5[%c0_65, %c0_66] : memref<1x64xi32, #tpu.memory_space<vmem>>, vector<1x64xi32>
    %174 = vector.broadcast %173 : vector<1x64xi32> to vector<32x64xi32>
    %175 = arith.cmpi eq, %172, %174 : vector<32x64xi32>
    %176 = arith.extui %175 : vector<32x64xi1> to vector<32x64xi32>
    %177 = arith.sitofp %176 : vector<32x64xi32> to vector<32x64xf32>
    %cst_67 = arith.constant dense<0.000000e+00> : vector<32x128xf32>
    %178 = tpu.matmul %177, %171, %cst_67 {dimension_numbers = #tpu.dot_dimension_numbers<[1], [0], [0], [1], [0, 0, 1, 1], [], []>} : vector<32x64xf32>, vector<64x128xf32>, vector<32x128xf32> -> vector<32x128xf32>
    %179 = arith.truncf %108 : vector<32x128xf32> to vector<32x128xbf16>
    %c0_68 = arith.constant 0 : index
    %c0_69 = arith.constant 0 : index
    %180 = vector.load %arg16[%c0_68, %c0_69] : memref<256x256xbf16, #tpu.memory_space<vmem>>, vector<128x256xbf16>
    %cst_70 = arith.constant dense<0.000000e+00> : vector<32x256xf32>
    %181 = tpu.matmul %179, %180, %cst_70 {dimension_numbers = #tpu.dot_dimension_numbers<[1], [0], [0], [1], [0, 0, 1, 1], [], []>} : vector<32x128xbf16>, vector<128x256xbf16>, vector<32x256xf32> -> vector<32x256xf32>
    %182 = arith.truncf %178 : vector<32x128xf32> to vector<32x128xbf16>
    %c128_71 = arith.constant 128 : index
    %c0_72 = arith.constant 0 : index
    %183 = vector.load %arg16[%c128_71, %c0_72] : memref<256x256xbf16, #tpu.memory_space<vmem>>, vector<128x256xbf16>
    %cst_73 = arith.constant dense<0.000000e+00> : vector<32x256xf32>
    %184 = tpu.matmul %182, %183, %cst_73 {dimension_numbers = #tpu.dot_dimension_numbers<[1], [0], [0], [1], [0, 0, 1, 1], [], []>} : vector<32x128xbf16>, vector<128x256xbf16>, vector<32x256xf32> -> vector<32x256xf32>
    %185 = arith.addf %181, %184 : vector<32x256xf32>
    %c0_74 = arith.constant 0 : index
    %c0_75 = arith.constant 0 : index
    %186 = vector.load %arg17[%c0_74, %c0_75] : memref<1x256xf32, #tpu.memory_space<vmem>>, vector<1x256xf32>
    %187 = vector.broadcast %186 : vector<1x256xf32> to vector<32x256xf32>
    %188 = arith.addf %185, %187 : vector<32x256xf32>
    %189 = arith.negf %188 : vector<32x256xf32>
    %190 = math.exp %189 : vector<32x256xf32>
    %cst_76 = arith.constant 1.000000e+00 : f32
    %191 = vector.broadcast %cst_76 : f32 to vector<32x256xf32>
    %192 = arith.addf %191, %190 : vector<32x256xf32>
    %193 = arith.divf %191, %192 : vector<32x256xf32>
    %194 = arith.mulf %188, %193 : vector<32x256xf32>
    %195 = arith.truncf %194 : vector<32x256xf32> to vector<32x256xbf16>
    %c0_77 = arith.constant 0 : index
    %c0_78 = arith.constant 0 : index
    %196 = vector.load %arg18[%c0_77, %c0_78] : memref<256x128xbf16, #tpu.memory_space<vmem>>, vector<256x128xbf16>
    %cst_79 = arith.constant dense<0.000000e+00> : vector<32x128xf32>
    %197 = tpu.matmul %195, %196, %cst_79 {dimension_numbers = #tpu.dot_dimension_numbers<[1], [0], [0], [1], [0, 0, 1, 1], [], []>} : vector<32x256xbf16>, vector<256x128xbf16>, vector<32x128xf32> -> vector<32x128xf32>
    %c0_80 = arith.constant 0 : index
    %c0_81 = arith.constant 0 : index
    %198 = vector.load %arg19[%c0_80, %c0_81] : memref<1x128xf32, #tpu.memory_space<vmem>>, vector<1x128xf32>
    %199 = vector.broadcast %198 : vector<1x128xf32> to vector<32x128xf32>
    %200 = arith.addf %197, %199 : vector<32x128xf32>
    %201 = arith.addf %200, %108 : vector<32x128xf32>
    %c0_82 = arith.constant 0 : index
    %c0_83 = arith.constant 0 : index
    %202 = vector.load %arg1[%c0_82, %c0_83] : memref<32x128xf32, #tpu.memory_space<vmem>>, vector<32x128xf32>
    %203 = arith.mulf %202, %202 : vector<32x128xf32>
    %cst_84 = arith.constant dense<0.000000e+00> : vector<32xf32>
    %204 = vector.multi_reduction <add>, %203, %cst_84 [1] : vector<32x128xf32> to vector<32xf32>
    %205 = vector.shape_cast %204 : vector<32xf32> to vector<32x1xf32>
    %206 = arith.mulf %201, %201 : vector<32x128xf32>
    %cst_85 = arith.constant dense<0.000000e+00> : vector<32xf32>
    %207 = vector.multi_reduction <add>, %206, %cst_85 [1] : vector<32x128xf32> to vector<32xf32>
    %208 = vector.shape_cast %207 : vector<32xf32> to vector<32x1xf32>
    %209 = arith.addf %205, %208 : vector<32x1xf32>
    %210 = math.sqrt %209 : vector<32x1xf32>
    %cst_86 = arith.constant 1.000000e-15 : f32
    %211 = vector.broadcast %cst_86 : f32 to vector<32x1xf32>
    %212 = arith.maximumf %210, %211 : vector<32x1xf32>
    %213 = math.tanh %212 : vector<32x1xf32>
    %214 = tpu.reciprocal %212 {approx = true} : vector<32x1xf32> -> vector<32x1xf32>
    %215 = arith.mulf %213, %214 : vector<32x1xf32>
    %216 = vector.broadcast %215 : vector<32x1xf32> to vector<32x128xf32>
    %217 = arith.mulf %201, %216 : vector<32x128xf32>
    %218 = tpu.iota {dimensions = array<i32: 1>} : vector<32x8xi32>
    %c0_87 = arith.constant 0 : index
    %c0_88 = arith.constant 0 : index
    %219 = vector.load %arg6[%c0_87, %c0_88] : memref<32x1xi32, #tpu.memory_space<vmem>>, vector<32x1xi32>
    %220 = vector.broadcast %219 : vector<32x1xi32> to vector<32x8xi32>
    %221 = arith.cmpi eq, %218, %220 : vector<32x8xi32>
    %222 = arith.extui %221 : vector<32x8xi1> to vector<32x8xi32>
    %223 = arith.sitofp %222 : vector<32x8xi32> to vector<32x8xf32>
    %c0_89 = arith.constant 0 : index
    %c0_90 = arith.constant 0 : index
    %224 = vector.load %arg7[%c0_89, %c0_90] : memref<8x256xf32, #tpu.memory_space<vmem>>, vector<8x256xf32>
    %cst_91 = arith.constant dense<0.000000e+00> : vector<32x256xf32>
    %225 = tpu.matmul %223, %224, %cst_91 {dimension_numbers = #tpu.dot_dimension_numbers<[1], [0], [0], [1], [0, 0, 1, 1], [], []>} : vector<32x8xf32>, vector<8x256xf32>, vector<32x256xf32> -> vector<32x256xf32>
    %226 = vector.extract_strided_slice %225 {offsets = [0, 0], sizes = [32, 128], strides = [1, 1]} : vector<32x256xf32> to vector<32x128xf32>
    %cst_92 = arith.constant 1.000000e+00 : f32
    %227 = vector.broadcast %cst_92 : f32 to vector<32x128xf32>
    %228 = arith.addf %226, %227 : vector<32x128xf32>
    %229 = arith.mulf %217, %228 : vector<32x128xf32>
    %230 = vector.extract_strided_slice %225 {offsets = [0, 128], sizes = [32, 128], strides = [1, 1]} : vector<32x256xf32> to vector<32x128xf32>
    %231 = arith.addf %229, %230 : vector<32x128xf32>
    %232 = arith.truncf %231 : vector<32x128xf32> to vector<32x128xbf16>
    %c0_93 = arith.constant 0 : index
    %c0_94 = arith.constant 0 : index
    %233 = vector.load %arg20[%c0_93, %c0_94] : memref<128x128xbf16, #tpu.memory_space<vmem>>, vector<128x128xbf16>
    %cst_95 = arith.constant dense<0.000000e+00> : vector<32x128xf32>
    %234 = tpu.matmul %232, %233, %cst_95 {dimension_numbers = #tpu.dot_dimension_numbers<[1], [0], [0], [1], [0, 0, 1, 1], [], []>} : vector<32x128xbf16>, vector<128x128xbf16>, vector<32x128xf32> -> vector<32x128xf32>
    %c0_96 = arith.constant 0 : index
    %c0_97 = arith.constant 0 : index
    %235 = vector.load %arg21[%c0_96, %c0_97] : memref<1x128xf32, #tpu.memory_space<vmem>>, vector<1x128xf32>
    %236 = vector.broadcast %235 : vector<1x128xf32> to vector<32x128xf32>
    %237 = arith.addf %234, %236 : vector<32x128xf32>
    %238 = arith.negf %237 : vector<32x128xf32>
    %239 = math.exp %238 : vector<32x128xf32>
    %cst_98 = arith.constant 1.000000e+00 : f32
    %240 = vector.broadcast %cst_98 : f32 to vector<32x128xf32>
    %241 = arith.addf %240, %239 : vector<32x128xf32>
    %242 = arith.divf %240, %241 : vector<32x128xf32>
    %243 = arith.mulf %237, %242 : vector<32x128xf32>
    %244 = vector.shape_cast %243 : vector<32x128xf32> to vector<1x32x128xf32>
    %cst_99 = arith.constant dense<0.000000e+00> : vector<1xf32>
    %245 = vector.multi_reduction <add>, %244, %cst_99 [1, 2] : vector<1x32x128xf32> to vector<1xf32>
    %246 = vector.shape_cast %245 : vector<1xf32> to vector<1x1x1xf32>
    %247 = vector.extract %246[0, 0, 0] : f32 from vector<1x1x1xf32>
    %cst_100 = arith.constant 4.096000e+03 : f32
    %248 = arith.divf %247, %cst_100 : f32
    %249 = vector.broadcast %248 : f32 to vector<32x128xf32>
    %250 = arith.subf %243, %249 : vector<32x128xf32>
    %251 = arith.mulf %250, %250 : vector<32x128xf32>
    %252 = vector.shape_cast %251 : vector<32x128xf32> to vector<1x32x128xf32>
    %cst_101 = arith.constant dense<0.000000e+00> : vector<1xf32>
    %253 = vector.multi_reduction <add>, %252, %cst_101 [1, 2] : vector<1x32x128xf32> to vector<1xf32>
    %254 = vector.shape_cast %253 : vector<1xf32> to vector<1x1x1xf32>
    %255 = vector.extract %254[0, 0, 0] : f32 from vector<1x1x1xf32>
    %cst_102 = arith.constant 4.096000e+03 : f32
    %256 = arith.divf %255, %cst_102 : f32
    %257 = math.sqrt %256 : f32
    %cst_103 = arith.constant 9.99999974E-6 : f32
    %258 = arith.addf %257, %cst_103 : f32
    %cst_104 = arith.constant 1.000000e+00 : f32
    %259 = arith.divf %cst_104, %258 : f32
    %260 = vector.broadcast %259 : f32 to vector<32x128xf32>
    %261 = arith.mulf %250, %260 : vector<32x128xf32>
    %c0_105 = arith.constant 0 : index
    %c0_106 = arith.constant 0 : index
    %262 = vector.load %arg22[%c0_105, %c0_106] : memref<1x128xf32, #tpu.memory_space<vmem>>, vector<1x128xf32>
    %263 = vector.broadcast %262 : vector<1x128xf32> to vector<32x128xf32>
    %264 = arith.mulf %261, %263 : vector<32x128xf32>
    %c0_107 = arith.constant 0 : index
    %c0_108 = arith.constant 0 : index
    %265 = vector.load %arg23[%c0_107, %c0_108] : memref<1x128xf32, #tpu.memory_space<vmem>>, vector<1x128xf32>
    %266 = vector.broadcast %265 : vector<1x128xf32> to vector<32x128xf32>
    %267 = arith.addf %264, %266 : vector<32x128xf32>
    %268 = arith.truncf %267 : vector<32x128xf32> to vector<32x128xbf16>
    %c0_109 = arith.constant 0 : index
    %c0_110 = arith.constant 0 : index
    %269 = vector.load %arg24[%c0_109, %c0_110] : memref<128x128xbf16, #tpu.memory_space<vmem>>, vector<128x128xbf16>
    %cst_111 = arith.constant dense<0.000000e+00> : vector<32x128xf32>
    %270 = tpu.matmul %268, %269, %cst_111 {dimension_numbers = #tpu.dot_dimension_numbers<[1], [0], [0], [1], [0, 0, 1, 1], [], []>} : vector<32x128xbf16>, vector<128x128xbf16>, vector<32x128xf32> -> vector<32x128xf32>
    %c0_112 = arith.constant 0 : index
    %c0_113 = arith.constant 0 : index
    %271 = vector.load %arg25[%c0_112, %c0_113] : memref<1x128xf32, #tpu.memory_space<vmem>>, vector<1x128xf32>
    %272 = vector.broadcast %271 : vector<1x128xf32> to vector<32x128xf32>
    %273 = arith.addf %270, %272 : vector<32x128xf32>
    %c0_114 = arith.constant 0 : index
    %c0_115 = arith.constant 0 : index
    %274 = vector.load %arg26[%c0_114, %c0_115] : memref<128x128xf32, #tpu.memory_space<vmem>>, vector<128x128xf32>
    %cst_116 = arith.constant dense<0.000000e+00> : vector<32x128xf32>
    %275 = tpu.matmul %273, %274, %cst_116 {dimension_numbers = #tpu.dot_dimension_numbers<[1], [0], [0], [1], [0, 0, 1, 1], [], []>} : vector<32x128xf32>, vector<128x128xf32>, vector<32x128xf32> -> vector<32x128xf32>
    %c0_117 = arith.constant 0 : index
    %c0_118 = arith.constant 0 : index
    %276 = vector.load %arg27[%c0_117, %c0_118] : memref<1x128xf32, #tpu.memory_space<vmem>>, vector<1x128xf32>
    %277 = vector.broadcast %276 : vector<1x128xf32> to vector<32x128xf32>
    %278 = arith.addf %275, %277 : vector<32x128xf32>
    %c0_119 = arith.constant 0 : index
    %c0_120 = arith.constant 0 : index
    %279 = vector.load %arg28[%c0_119, %c0_120] : memref<32x128xf32, #tpu.memory_space<vmem>>, vector<32x128xf32>
    tpu.vector_store %arg28[%c0_119, %c0_120], %278 {strides = array<i32>} : memref<32x128xf32, #tpu.memory_space<vmem>>, vector<32x128xf32>,
    return
  }
}

</mosaic_0001>

<bundles_post_ra>
// kernel: hegnn_forward.1
= control target key start
LH: loop header
LB: loop body
LE: loop exit
PB: predicated region body
PF: predicated region fallthrough
CT: control target
= control target key end

     0   :  { %s12869_s0 = inlined_call_operand.vmem [shape: f32[32,128], index: 0, kind: input, shape index: {}]   ;;  %s12870_s1 = inlined_call_operand.vmem [shape: f32[32,128], index: 1, kind: input, shape index: {}]   ;;  %s12871_s2 = inlined_call_operand.vmem [shape: f32[64,128], index: 2, kind: input, shape index: {}]   ;;  %s12872_s3 = inlined_call_operand.vmem [shape: s32[64,1], index: 3, kind: input, shape index: {}]   ;;  %s12873_s4 = inlined_call_operand.vmem [shape: s32[64,1], index: 4, kind: input, shape index: {}]   ;;  %s12874_s5 = inlined_call_operand.vmem [shape: s32[1,64], index: 5, kind: input, shape index: {}]   ;;  %s12875_s6 = inlined_call_operand.vmem [shape: s32[32,1], index: 6, kind: input, shape index: {}]   ;;  %s12876_s7 = inlined_call_operand.vmem [shape: f32[8,256], index: 7, kind: input, shape index: {}]   ;;  %s12877_s8 = inlined_call_operand.vmem [shape: f32[128,128], index: 8, kind: input, shape index: {}]   ;;  %s12878_s9 = inlined_call_operand.vmem [shape: bf16[128,128], index: 9, kind: input, shape index: {}]   ;;  %s12879_s10 = inlined_call_operand.vmem [shape: f32[1,128], index: 10, kind: input, shape index: {}]   ;;  %s12880_s11 = inlined_call_operand.hbm [shape: bf16[384,896], index: 11, kind: input, shape index: {}]   ;;  %s12881_s12 = inlined_call_operand.vmem [shape: f32[1,896], index: 12, kind: input, shape index: {}]   ;;  %s12882_s13 = inlined_call_operand.vmem [shape: f32[1,896], index: 13, kind: input, shape index: {}]   ;;  %s12883_s14 = inlined_call_operand.hbm [shape: bf16[896,128], index: 14, kind: input, shape index: {}]   ;;  %s12884_s15 = inlined_call_operand.vmem [shape: f32[1,128], index: 15, kind: input, shape index: {}]   ;;  %s12885_s16 = inlined_call_operand.vmem [shape: bf16[256,256], index: 16, kind: input, shape index: {}]   ;;  %s12886_s17 = inlined_call_operand.vmem [shape: f32[1,256], index: 17, kind: input, shape index: {}]   ;;  %s12887_s18 = inlined_call_operand.vmem [shape: bf16[256,128], index: 18, kind: input, shape index: {}]   ;;  %s12888_s19 = inlined_call_operand.vmem [shape: f32[1,128], index: 19, kind: input, shape index: {}]   ;;  %s12889_s20 = inlined_call_operand.vmem [shape: bf16[128,128], index: 20, kind: input, shape index: {}]   ;;  %s12890_s21 = inlined_call_operand.vmem [shape: f32[1,128], index: 21, kind: input, shape index: {}]   ;;  %s12891_s22 = inlined_call_operand.vmem [shape: f32[1,128], index: 22, kind: input, shape index: {}]   ;;  %s12892_s23 = inlined_call_operand.vmem [shape: f32[1,128], index: 23, kind: input, shape index: {}]   ;;  %s12893_s24 = inlined_call_operand.vmem [shape: bf16[128,128], index: 24, kind: input, shape index: {}]   ;;  %s12894_s25 = inlined_call_operand.vmem [shape: f32[1,128], index: 25, kind: input, shape index: {}]   ;;  %s12895_s26 = inlined_call_operand.vmem [shape: f32[128,128], index: 26, kind: input, shape index: {}]   ;;  %s12896_s27 = inlined_call_operand.vmem [shape: f32[1,128], index: 27, kind: input, shape index: {}]   ;;  %s12897_s28 = inlined_call_operand.vmem [shape: f32[32,128], index: 28, kind: output, shape index: {}]  }
   0x1   :  { %12953 = sst [smem:[#allocation118_spill]] %s12869_s0 }
   0x2   :  { %12954 = sst [smem:[#allocation119_spill]] %s12870_s1 }
   0x3   :  { %12955 = sst [smem:[#allocation120_spill]] %s12871_s2 }
   0x4   :  { %12956 = sst [smem:[#allocation121_spill]] %s12872_s3 }
   0x5   :  { %12957 = sst [smem:[#allocation122_spill]] %s12873_s4 }
   0x6   :  { %12958 = sst [smem:[#allocation123_spill]] %s12874_s5 }
   0x7   :  { %12959 = sst [smem:[#allocation124_spill]] %s12875_s6 }
   0x8   :  { %12960 = sst [smem:[#allocation125_spill]] %s12876_s7 }
   0x9   :  { %12961 = sst [smem:[#allocation126_spill]] %s12877_s8 }
   0xa   :  { %12962 = sst [smem:[#allocation127_spill]] %s12878_s9 }
   0xb   :  { %12963 = sst [smem:[#allocation128_spill]] %s12879_s10 }
   0xc   :  { %12964 = sst [smem:[#allocation129_spill]] %s12880_s11 }
   0xd   :  { %12965 = sst [smem:[#allocation130_spill]] %s12881_s12 }
   0xe   :  { %33 = vsyncpa [#allocation3], 0  ;;  %s12966_s9 = sld [smem:[#allocation129_spill]] }
  0x14   :  { %s61_s30 = sshll.u32 %s12966_s9, 4  ;;  %s62_s30 = int_to_ptr.hbm [resolvable:$true] %s61_s30 }
  0x15   :  { %34 = vsyncpa [#allocation5], 0  ;;  %s8737_s3 = smov [#allocation2]   ;;  %s78_s11 = sshll.u32 %s12883_s14, 4  ;;  %s79_s11 = int_to_ptr.hbm [resolvable:$true] %s78_s11 }
  0x16   :  { %s63_s6 = sshll.u32 %s8737_s3, 4  ;;  %s8738_s29 = smov 448   ;;  %s64_s6 = int_to_ptr.vmem [resolvable:$true] %s63_s6 }
  0x17   :  { %s8739_s2 = smov 28   ;;  %s8740_s7 = smov [#allocation4]  }
  0x18   :  { %69 = dma.hbm_to_vmem [thread:$0]  %s62_s30, 21504, %s64_s6, [#allocation3], %s8738_s29, %s8738_s29, %s8739_s2  }
  0x19   :  { %s80_s12 = sshll.u32 %s8740_s7, 4  ;;  %s8741_s1 = smov 64   ;;  %s81_s12 = int_to_ptr.vmem [resolvable:$true] %s80_s12 }
  0x1a   :  { %s8742_s4 = smov 4  }
  0x1b   :  { %86 = dma.hbm_to_vmem [thread:$0]  %s79_s11, 7168, %s81_s12, [#allocation5], %s8741_s1, %s8741_s1, %s8742_s4  }
  0x1c   :  { %8733 = dma.done.wait [#allocation3], 21504  }
  0x1d   :  { %8734 = vsyncadd [#allocation3], 4294945792 }
  0x1e   :  { %8735 = dma.done.wait [#allocation5], 7168  }
  0x1f   :  { %8736 = vsyncadd [#allocation5], 4294960128  ;;  %s12967_s9 = sld [smem:[#allocation118_spill]] }
  0x20   :  { %s12968_s2 = sld [smem:[#allocation126_spill]] }
  0x21   :  { %s12983_s12 = sld [smem:[#allocation121_spill]] }
  0x22   :  { %s12985_s8 = sld [smem:[#allocation119_spill]] }
  0x23   :  { %s12999_s29 = sld [smem:[#allocation127_spill]] }
  0x24   :  { %s13012_s0 = sld [smem:[#allocation128_spill]] }
  0x25   :  { %v8900_v0 = vld [vmem:[%s12967_s9 + $0x10] sm:$0xff]  ;;  %v8905_v1 = vld [vmem:[%s12967_s9] sm:$0xff]  ;;  %v8914_v4 = vld [vmem:[%s12967_s9 + $0x18] sm:$0xff]  ;;  %s13052_s7 = sld [smem:[#allocation130_spill]] }
  0x26   :  { %v127_v2 = vmul.f32 %v8900_v0, %v8900_v0  ;;  %v125_v3 = vmul.f32 %v8905_v1, %v8905_v1  ;;  %v8919_v5 = vld [vmem:[%s12967_s9 + $0x8] sm:$0xff]  ;;  %v128_v6 = vmul.f32 %v8914_v4, %v8914_v4  ;;  %s12984_s9 = sld [smem:[#allocation122_spill]] }
  0x27   :  { %v126_v7 = vmul.f32 %v8919_v5, %v8919_v5  ;;  %s13415_s14 = sld [smem:[#allocation123_spill]] }
  0x28   :  { %133 = vadd.xlane.f32.xlu1 %v127_v2  ;;  %129 = vadd.xlane.f32.xlu0 %v125_v3  ;;  %s13417_s3 = sld [smem:[#allocation125_spill]] }
  0x30   :  { %135 = vadd.xlane.f32.xlu1 %v128_v6  ;;  %131 = vadd.xlane.f32.xlu0 %v126_v7 }
  0x9b   :  { %v134_v8 = vpop.xlane.xlu1 %133  ;;  %v130_v9 = vpop.xlane.xlu0 %129 }
  0x9c   :  { %8202 = vrsqrt.f32 %v134_v8  ;;  %vm168_vm0 = vcmp.eq.f32.partialorder %v134_v8, inf  ;;  %vm170_vm1 = vcmp.eq.f32.partialorder %v134_v8, 0.0  ;;  %v171_v30 = vand.u32 2147483648, %v134_v8 }
  0x9d   :  { %8204 = vrsqrt.f32 %v130_v9  ;;  %vm144_vm2 = vcmp.eq.f32.partialorder %v130_v9, inf  ;;  %v147_v34 = vand.u32 2147483648, %v130_v9  ;;  %vm146_vm3 = vcmp.eq.f32.partialorder %v130_v9, 0.0 }
  0xa2   :  { %v8203_v10 = vpop.eup %8202 }
  0xa3   :  { %v8205_v11 = vpop.eup %8204  ;;  %v162_v12 = vmul.f32 %v8203_v10, %v134_v8  ;;  %v136_v13 = vpop.xlane.xlu1 %135 }
  0xa4   :  { %v132_v14 = vpop.xlane.xlu0 %131  ;;  %v138_v15 = vmul.f32 %v8205_v11, %v130_v9  ;;  %8206 = vrsqrt.f32 %v136_v13  ;;  %vm180_vm4 = vcmp.eq.f32.partialorder %v136_v13, inf  ;;  %vm182_vm5 = vcmp.eq.f32.partialorder %v136_v13, 0.0 }
  0xa5   :  { %v163_v16 = vmul.f32 %v8203_v10, %v162_v12  ;;  %8208 = vrsqrt.f32 %v132_v14  ;;  %v183_v47 = vand.u32 2147483648, %v136_v13  ;;  %vm156_vm6 = vcmp.eq.f32.partialorder %v132_v14, inf }
  0xa6   :  { %v139_v17 = vmul.f32 %v8205_v11, %v138_v15  ;;  %v159_v50 = vand.u32 2147483648, %v132_v14  ;;  %vm158_vm7 = vcmp.eq.f32.partialorder %v132_v14, 0.0  ;;  %v373_v15 = vld [vmem:[%s12968_s2 + $0x60] sm:$0xff] }
  0xa7   :  { %v164_v18 = vmul.f32 0.5, %v163_v16  ;;  %v372_v16 = vld [vmem:[%s12968_s2 + $0x58] sm:$0xff] }
  0xa8   :  { %v140_v19 = vmul.f32 0.5, %v139_v17  ;;  %v371_v17 = vld [vmem:[%s12968_s2 + $0x50] sm:$0xff] }
  0xa9   :  { %v165_v20 = vsub.f32 1.5, %v164_v18  ;;  %v370_v18 = vld [vmem:[%s12968_s2 + $0x48] sm:$0xff] }
  0xaa   :  { %v8207_v21 = vpop.eup %8206  ;;  %v141_v22 = vsub.f32 1.5, %v140_v19  ;;  %v369_v19 = vld [vmem:[%s12968_s2 + $0x40] sm:$0xff] }
  0xab   :  { %v8209_v23 = vpop.eup %8208  ;;  %v166_v24 = vmul.f32 %v8203_v10, %v165_v20  ;;  %v174_v25 = vmul.f32 %v8207_v21, %v136_v13  ;;  %v368_v20 = vld [vmem:[%s12968_s2 + $0x38] sm:$0xff] }
  0xac   :  { %v142_v26 = vmul.f32 %v8205_v11, %v141_v22  ;;  %v150_v27 = vmul.f32 %v8209_v23, %v132_v14  ;;  %v366_v22 = vld [vmem:[%s12968_s2 + $0x28] sm:$0xff] }
  0xad   :  { %v167_v28 = vmul.f32 %v166_v24, %v134_v8  ;;  %v175_v29 = vmul.f32 %v8207_v21, %v174_v25  ;;  %v364_v24 = vld [vmem:[%s12968_s2 + $0x18] sm:$0xff]  ;;  %v363_v25 = vld [vmem:[%s12968_s2 + $0x10] sm:$0xff] }
  0xae   :  { %v143_v31 = vmul.f32 %v142_v26, %v130_v9  ;;  %v151_v32 = vmul.f32 %v8209_v23, %v150_v27  ;;  %v362_v27 = vld [vmem:[%s12968_s2 + $0x8] sm:$0xff] }
  0xaf   :  { %v169_v33 = vsel %vm168_vm0, %v134_v8, %v167_v28  ;;  %v176_v35 = vmul.f32 0.5, %v175_v29  ;;  %v361_v29 = vld [vmem:[%s12968_s2] sm:$0xff] }
  0xb0   :  { %v145_v36 = vsel %vm144_vm2, %v130_v9, %v143_v31  ;;  %v152_v37 = vmul.f32 0.5, %v151_v32  ;;  %v172_v38 = vsel %vm170_vm1, %v171_v30, %v169_v33 }
  0xb1   :  { %v177_v39 = vsub.f32 1.5, %v176_v35  ;;  %v187_v40 = vmax.f32 %v172_v38, 1e-15  ;;  %v148_v41 = vsel %vm146_vm3, %v147_v34, %v145_v36 }
  0xb2   :  { %v153_v42 = vsub.f32 1.5, %v152_v37  ;;  %v185_v43 = vmax.f32 %v148_v41, 1e-15 }
  0xb3   :  { %v178_v44 = vmul.f32 %v8207_v21, %v177_v39  ;;  %8210 = vtanh.f32 %v187_v40  ;;  %v367_v21 = vld [vmem:[%s12968_s2 + $0x30] sm:$0xff] }
  0xb4   :  { %v154_v45 = vmul.f32 %v8209_v23, %v153_v42  ;;  %8212 = vrcp.f32 %v187_v40  ;;  %v365_v23 = vld [vmem:[%s12968_s2 + $0x20] sm:$0xff] }
  0xb5   :  { %v179_v46 = vmul.f32 %v178_v44, %v136_v13  ;;  %8214 = vtanh.f32 %v185_v43 }
  0xb6   :  { %v155_v48 = vmul.f32 %v154_v45, %v132_v14  ;;  %8216 = vrcp.f32 %v185_v43 }
  0xb7   :  { %v181_v49 = vsel %vm180_vm4, %v136_v13, %v179_v46 }
  0xb8   :  { %v157_v51 = vsel %vm156_vm6, %v132_v14, %v155_v48  ;;  %v184_v52 = vsel %vm182_vm5, %v183_v47, %v181_v49  ;;  %v374_v14 = vld [vmem:[%s12968_s2 + $0x68] sm:$0xff] }
  0xb9   :  { %v8211_v53 = vpop.eup %8210  ;;  %v188_v54 = vmax.f32 %v184_v52, 1e-15  ;;  %v160_v55 = vsel %vm158_vm7, %v159_v50, %v157_v51 }
  0xba   :  { %v8213_v56 = vpop.eup %8212  ;;  %v195_v57 = vmul.f32 %v8211_v53, %v8900_v0  ;;  %v186_v58 = vmax.f32 %v160_v55, 1e-15 }
  0xbb   :  { %v8215_v59 = vpop.eup %8214  ;;  %8218 = vtanh.f32 %v188_v54 }
  0xbc   :  { %v8926_v60 = vmul.f32 %v8213_v56, %v195_v57  ;;  %v193_v61 = vmul.f32 %v8215_v59, %v8905_v1  ;;  %8220 = vrcp.f32 %v188_v54  ;;  %v8217_v62 = vpop.eup %8216 }
  0xbd   :  { %8222 = vtanh.f32 %v186_v58 }
  0xbe   :  { %v207_v63 = vmul.f32 %v8926_v60, %v8926_v60  ;;  %v8931_v2 = vmul.f32 %v8217_v62, %v193_v61  ;;  %8224 = vrcp.f32 %v186_v58 }
  0xc0   :  { %213 = vadd.xlane.f32.xlu0 %v207_v63  ;;  %v205_v0 = vmul.f32 %v8931_v2, %v8931_v2 }
  0xc1   :  { %v8219_v3 = vpop.eup %8218 }
  0xc2   :  { %v8221_v6 = vpop.eup %8220  ;;  %209 = vadd.xlane.f32.xlu2 %v205_v0  ;;  %v196_v7 = vmul.f32 %v8219_v3, %v8914_v4  ;;  %v376_v4 = vld [vmem:[%s12968_s2 + $0x78] sm:$0xff] }
  0xc3   :  { %v8223_v8 = vpop.eup %8222  ;;  %377 = vmatpush.msra.mxu0 %v376_v4 }
  0xc4   :  { %v8936_v1 = vmul.f32 %v8221_v6, %v196_v7  ;;  %v194_v9 = vmul.f32 %v8223_v8, %v8919_v5  ;;  %v8225_v10 = vpop.eup %8224  ;;  %v375_v5 = vld [vmem:[%s12968_s2 + $0x70] sm:$0xff] }
  0xc5   :  { %378 = vmatpush.msra.mxu0 %v375_v5 }
  0xc6   :  { %v208_v11 = vmul.f32 %v8936_v1, %v8936_v1  ;;  %v8941_v12 = vmul.f32 %v8225_v10, %v194_v9 }
  0xc7   :  { %379 = vmatpush.msra.mxu0 %v374_v14 }
  0xc8   :  { %215 = vadd.xlane.f32.xlu1 %v208_v11  ;;  %v206_v13 = vmul.f32 %v8941_v12, %v8941_v12 }
  0xc9   :  { %380 = vmatpush.msra.mxu0 %v373_v15 }
  0xca   :  { %211 = vadd.xlane.f32.xlu2 %v206_v13 }
  0xcb   :  { %381 = vmatpush.msra.mxu0 %v372_v16 }
  0xcd   :  { %382 = vmatpush.msra.mxu0 %v371_v17 }
  0xcf   :  { %383 = vmatpush.msra.mxu0 %v370_v18 }
  0xd1   :  { %384 = vmatpush.msra.mxu0 %v369_v19 }
  0xd3   :  { %385 = vmatpush.msra.mxu0 %v368_v20 }
  0xd5   :  { %386 = vmatpush.msra.mxu0 %v367_v21 }
  0xd7   :  { %387 = vmatpush.msra.mxu0 %v366_v22 }
  0xd9   :  { %388 = vmatpush.msra.mxu0 %v365_v23 }
  0xdb   :  { %389 = vmatpush.msra.mxu0 %v364_v24 }
  0xdd   :  { %390 = vmatpush.msra.mxu0 %v363_v25 }
  0xdf   :  { %391 = vmatpush.msra.mxu0 %v362_v27 }
  0xe1   :  { %392 = vmatpush.msra.mxu0 %v361_v29 }
 0x133   :  { %v214_v26 = vpop.xlane.xlu0 %213 }
 0x134   :  { %8226 = vrsqrt.f32 %v214_v26  ;;  %vm248_vm8 = vcmp.eq.f32.partialorder %v214_v26, inf  ;;  %vm250_vm9 = vcmp.eq.f32.partialorder %v214_v26, 0.0  ;;  %v251_v50 = vand.u32 2147483648, %v214_v26 }
 0x135   :  { %v210_v28 = vpop.xlane.xlu2 %209 }
 0x136   :  { %8228 = vrsqrt.f32 %v210_v28  ;;  %vm224_vm10 = vcmp.eq.f32.partialorder %v210_v28, inf  ;;  %vm226_vm11 = vcmp.eq.f32.partialorder %v210_v28, 0.0  ;;  %v227_v55 = vand.u32 2147483648, %v210_v28 }
 0x13a   :  { %v8227_v30 = vpop.eup %8226 }
 0x13b   :  { %v242_v31 = vmul.f32 %v8227_v30, %v214_v26  ;;  %v216_v32 = vpop.xlane.xlu1 %215 }
 0x13c   :  { %v8229_v33 = vpop.eup %8228  ;;  %8230 = vrsqrt.f32 %v216_v32  ;;  %vm260_vm12 = vcmp.eq.f32.partialorder %v216_v32, inf  ;;  %v263_v9 = vand.u32 2147483648, %v216_v32  ;;  %vm262_vm14 = vcmp.eq.f32.partialorder %v216_v32, 0.0 }
 0x13d   :  { %v218_v34 = vmul.f32 %v8229_v33, %v210_v28  ;;  %v243_v35 = vmul.f32 %v8227_v30, %v242_v31  ;;  %v212_v36 = vpop.xlane.xlu2 %211 }
 0x13e   :  { %8232 = vrsqrt.f32 %v212_v36  ;;  %vm236_vm13 = vcmp.eq.f32.partialorder %v212_v36, inf  ;;  %v239_v10 = vand.u32 2147483648, %v212_v36  ;;  %vm238_vm15 = vcmp.eq.f32.partialorder %v212_v36, 0.0 }
 0x13f   :  { %v244_v37 = vmul.f32 0.5, %v243_v35  ;;  %v219_v38 = vmul.f32 %v8229_v33, %v218_v34 }
 0x141   :  { %v220_v39 = vmul.f32 0.5, %v219_v38  ;;  %v245_v40 = vsub.f32 1.5, %v244_v37 }
 0x142   :  { %v8231_v41 = vpop.eup %8230 }
 0x143   :  { %v254_v42 = vmul.f32 %v8231_v41, %v216_v32  ;;  %v221_v43 = vsub.f32 1.5, %v220_v39  ;;  %v246_v44 = vmul.f32 %v8227_v30, %v245_v40 }
 0x144   :  { %v8233_v45 = vpop.eup %8232 }
 0x145   :  { %v255_v46 = vmul.f32 %v8231_v41, %v254_v42  ;;  %v230_v47 = vmul.f32 %v8233_v45, %v212_v36  ;;  %v222_v48 = vmul.f32 %v8229_v33, %v221_v43  ;;  %v247_v49 = vmul.f32 %v246_v44, %v214_v26 }
 0x147   :  { %v256_v51 = vmul.f32 0.5, %v255_v46  ;;  %v223_v52 = vmul.f32 %v222_v48, %v210_v28  ;;  %v249_v53 = vsel %vm248_vm8, %v214_v26, %v247_v49  ;;  %v231_v54 = vmul.f32 %v8233_v45, %v230_v47 }
 0x148   :  { %v252_v56 = vsel %vm250_vm9, %v251_v50, %v249_v53 }
 0x149   :  { %v225_v57 = vsel %vm224_vm10, %v210_v28, %v223_v52  ;;  %v267_v58 = vmax.f32 %v252_v56, 1e-15  ;;  %v232_v59 = vmul.f32 0.5, %v231_v54  ;;  %v257_v61 = vsub.f32 1.5, %v256_v51 }
 0x14a   :  { %v228_v62 = vsel %vm226_vm11, %v227_v55, %v225_v57 }
 0x14b   :  { %v265_v63 = vmax.f32 %v228_v62, 1e-15  ;;  %8234 = vrcp.f32 %v267_v58  ;;  %v233_v0 = vsub.f32 1.5, %v232_v59  ;;  %v258_v3 = vmul.f32 %v8231_v41, %v257_v61 }
 0x14c   :  { %vm271_vm0 = vcmp.gt.f32.partialorder %v267_v58, 0.996 }
 0x14d   :  { %8236 = vrcp.f32 %v265_v63  ;;  %v234_v6 = vmul.f32 %v8233_v45, %v233_v0  ;;  %v259_v7 = vmul.f32 %v258_v3, %v216_v32  ;;  %vm269_vm1 = vcmp.gt.f32.partialorder %v265_v63, 0.996 }
 0x14f   :  { %v235_v8 = vmul.f32 %v234_v6, %v212_v36  ;;  %v261_v11 = vsel %vm260_vm12, %v216_v32, %v259_v7 }
 0x150   :  { %v264_v5 = vsel %vm262_vm14, %v263_v9, %v261_v11 }
 0x151   :  { %v8235_v13 = vpop.eup %8234  ;;  %v237_v4 = vsel %vm236_vm13, %v212_v36, %v235_v8  ;;  %v268_v16 = vmax.f32 %v264_v5, 1e-15 }
 0x152   :  { %v279_v14 = vmul.f32 0.996, %v8235_v13  ;;  %v240_v15 = vsel %vm238_vm15, %v239_v10, %v237_v4 }
 0x153   :  { %v8237_v17 = vpop.eup %8236  ;;  %v266_v18 = vmax.f32 %v240_v15, 1e-15  ;;  %8238 = vrcp.f32 %v268_v16  ;;  %vm272_vm2 = vcmp.gt.f32.partialorder %v268_v16, 0.996 }
 0x154   :  { %v277_v19 = vmul.f32 0.996, %v8237_v17  ;;  %v283_v20 = vmul.f32 %v279_v14, %v8926_v60 }
 0x155   :  { %8240 = vrcp.f32 %v266_v18  ;;  %vm270_vm3 = vcmp.gt.f32.partialorder %v266_v18, 0.996 }
 0x156   :  { %v281_v21 = vmul.f32 %v277_v19, %v8931_v2  ;;  %v295_v22 = vsel %vm271_vm0, %v283_v20, %v8926_v60 }
 0x157   :  { %v299_v23 = vmul.f32 %v295_v22, %v295_v22 }
 0x158   :  { %v293_v24 = vsel %vm269_vm1, %v281_v21, %v8931_v2 }
 0x159   :  { %393 = vmatmul.f32.vlgmr.msra.gmra.mxu0 %v293_v24  ;;  %305 = vadd.xlane.f32.xlu0 %v299_v23  ;;  %v8239_v25 = vpop.eup %8238  ;;  %v297_v2 = vmul.f32 %v293_v24, %v293_v24 }
 0x15a   :  { %v280_v27 = vmul.f32 0.996, %v8239_v25 }
 0x15b   :  { %v8241_v26 = vpop.eup %8240 }
 0x15c   :  { %v278_v28 = vmul.f32 0.996, %v8241_v26  ;;  %v284_v29 = vmul.f32 %v280_v27, %v8936_v1 }
 0x15e   :  { %v282_v30 = vmul.f32 %v278_v28, %v8941_v12  ;;  %v296_v31 = vsel %vm272_vm2, %v284_v29, %v8936_v1 }
 0x15f   :  { %v300_v32 = vmul.f32 %v296_v31, %v296_v31 }
 0x160   :  { %v294_v60 = vsel %vm270_vm3, %v282_v30, %v8941_v12 }
 0x161   :  { %396 = vmatmul.f32.gmra.mxu0 %v294_v60  ;;  %v298_v33 = vmul.f32 %v294_v60, %v294_v60  ;;  %307 = vadd.xlane.f32.xlu2 %v300_v32 }
 0x163   :  { %303 = vadd.xlane.f32.xlu1 %v298_v33 }
 0x169   :  { %399 = vmatmul.f32.gmra.mxu0 %v295_v22  ;;  %301 = vadd.xlane.f32.xlu2 %v297_v2 }
 0x171   :  { %402 = vmatmul.f32.gmra.mxu0 %v296_v31 }
 0x1cc   :  { %v306_v45 = vpop.xlane.xlu0 %305 }
 0x1cd   :  { %vm340_vm6 = vcmp.eq.f32.partialorder %v306_v45, inf  ;;  %v343_v14 = vand.u32 2147483648, %v306_v45  ;;  %vm342_vm7 = vcmp.eq.f32.partialorder %v306_v45, 0.0 }
 0x1d4   :  { %v308_v49 = vpop.xlane.xlu2 %307 }
 0x1d5   :  { %vm352_vm8 = vcmp.eq.f32.partialorder %v308_v49, inf  ;;  %v355_v26 = vand.u32 2147483648, %v308_v49  ;;  %vm354_vm9 = vcmp.eq.f32.partialorder %v308_v49, 0.0 }
 0x1d6   :  { %v9001_v34 = vpop.f32.mrf.mxu0  ;;  %v304_v44 = vpop.xlane.xlu1 %303 }
 0x1d7   :  { %v590_v41 = vand.u32 2147483647, %v9001_v34  ;;  %v406_v42 = vmul.f32 %v9001_v34, %v9001_v34  ;;  %8242 = vrsqrt.f32 %v304_v44  ;;  %vm328_vm4 = vcmp.eq.f32.partialorder %v304_v44, inf }
 0x1d8   :  { %8244 = vrsqrt.f32 %v306_v45  ;;  %v331_v10 = vand.u32 2147483648, %v304_v44  ;;  %vm330_vm5 = vcmp.eq.f32.partialorder %v304_v44, 0.0 }
 0x1d9   :  { %8246 = vrsqrt.f32 %v308_v49 }
 0x1dc   :  { %v9021_v55 = vpop.xlane.xlu2 %301 }
 0x1dd   :  { %v8243_v46 = vpop.eup %8242  ;;  %8248 = vrsqrt.f32 %v9021_v55  ;;  %vm316_vm10 = vcmp.eq.f32.partialorder %v9021_v55, inf  ;;  %vm318_vm11 = vcmp.eq.f32.partialorder %v9021_v55, 0.0 }
 0x1de   :  { %v9003_v35 = vpop.f32.mrf.mxu0  ;;  %v322_v47 = vmul.f32 %v8243_v46, %v304_v44  ;;  %v8245_v48 = vpop.eup %8244 }
 0x1df   :  { %v407_v36 = vmul.f32 %v9003_v35, %v9003_v35  ;;  %v591_v43 = vand.u32 2147483647, %v9003_v35  ;;  %v334_v50 = vmul.f32 %v8245_v48, %v306_v45  ;;  %v8247_v54 = vpop.eup %8246 }
 0x1e0   :  { %v323_v51 = vmul.f32 %v8243_v46, %v322_v47  ;;  %v346_v58 = vmul.f32 %v8247_v54, %v308_v49 }
 0x1e1   :  { %412 = vadd.xlane.f32.xlu2 %v407_v36  ;;  %v335_v52 = vmul.f32 %v8245_v48, %v334_v50 }
 0x1e2   :  { %v324_v53 = vmul.f32 0.5, %v323_v51  ;;  %v347_v62 = vmul.f32 %v8247_v54, %v346_v58 }
 0x1e3   :  { %v336_v56 = vmul.f32 0.5, %v335_v52  ;;  %v8249_v63 = vpop.eup %8248 }
 0x1e4   :  { %v325_v57 = vsub.f32 1.5, %v324_v53  ;;  %v348_v6 = vmul.f32 0.5, %v347_v62  ;;  %v310_v7 = vmul.f32 %v8249_v63, %v9021_v55 }
 0x1e5   :  { %v337_v59 = vsub.f32 1.5, %v336_v56 }
 0x1e6   :  { %v9007_v1 = vpop.f32.mrf.mxu0  ;;  %v326_v61 = vmul.f32 %v8243_v46, %v325_v57  ;;  %v349_v11 = vsub.f32 1.5, %v348_v6  ;;  %v311_v4 = vmul.f32 %v8249_v63, %v310_v7 }
 0x1e7   :  { %v592_v12 = vand.u32 2147483647, %v9007_v1  ;;  %v408_v37 = vmul.f32 %v9007_v1, %v9007_v1  ;;  %v338_v0 = vmul.f32 %v8245_v48, %v337_v59 }
 0x1e8   :  { %v327_v3 = vmul.f32 %v326_v61, %v304_v44  ;;  %v350_v16 = vmul.f32 %v8247_v54, %v349_v11  ;;  %v312_v18 = vmul.f32 0.5, %v311_v4 }
 0x1e9   :  { %598 = vadd.xlane.f32.xlu2 %v592_v12  ;;  %414 = vadd.xlane.f32.xlu1 %v408_v37  ;;  %v339_v8 = vmul.f32 %v338_v0, %v306_v45 }
 0x1ea   :  { %v329_v9 = vsel %vm328_vm4, %v304_v44, %v327_v3  ;;  %v351_v21 = vmul.f32 %v350_v16, %v308_v49  ;;  %v313_v22 = vsub.f32 1.5, %v312_v18 }
 0x1eb   :  { %v9025_v13 = vsel %vm330_vm5, %v331_v10, %v329_v9  ;;  %v341_v5 = vsel %vm340_vm6, %v306_v45, %v339_v8 }
 0x1ec   :  { %v358_v15 = vmax.f32 %v9025_v13, 1e-15  ;;  %v344_v17 = vsel %vm342_vm7, %v343_v14, %v341_v5  ;;  %v353_v24 = vsel %vm352_vm8, %v308_v49, %v351_v21  ;;  %v314_v27 = vmul.f32 %v8249_v63, %v313_v22 }
 0x1ed   :  { %v359_v19 = vmax.f32 %v344_v17, 1e-15  ;;  %v9033_v28 = vsel %vm354_vm9, %v355_v26, %v353_v24 }
 0x1ee   :  { %v9012_v38 = vpop.f32.mrf.mxu0  ;;  %v9028_v20 = vclamps-f32 %v358_v15, 0.9999999  ;;  %v315_v60 = vmul.f32 %v314_v27, %v9021_v55  ;;  %v360_v33 = vmax.f32 %v9033_v28, 1e-15 }
 0x1ef   :  { %v593_v39 = vand.u32 2147483647, %v9012_v38  ;;  %v409_v40 = vmul.f32 %v9012_v38, %v9012_v38  ;;  %v6545_v23 = vclamps-f32 %v359_v19, 0.9999999 }
 0x1f0   :  { %v9031_v25 = vsub.f32 0.0, %v9028_v20  ;;  %v495_v2 = vadd.f32 1.0, %v9028_v20  ;;  %v317_v37 = vsel %vm316_vm10, %v9021_v55, %v315_v60  ;;  %v498_v47 = vmul.f32 -0.5, %v9028_v20 }
 0x1f1   :  { %600 = vadd.xlane.f32.xlu1 %v593_v39  ;;  %416 = vadd.xlane.f32.xlu0 %v409_v40  ;;  %v9038_v31 = vsub.f32 0.0, %v6545_v23  ;;  %v504_v32 = vadd.f32 1.0, %v6545_v23  ;;  %v507_v36 = vmul.f32 -0.5, %v6545_v23  ;;  %v9049_v39 = vclamps-f32 %v360_v33, 0.9999999 }
 0x1f2   :  { %v535_v30 = vadd.f32 1.0, %v9031_v25  ;;  %v319_v40 = vand.u32 2147483648, %v9021_v55  ;;  %v510_v48 = vand.u32 2147483647, %v6545_v23  ;;  %v501_v55 = vand.u32 2147483647, %v9028_v20 }
 0x1f3   :  { %v544_v12 = vadd.f32 1.0, %v9038_v31  ;;  %v508_v46 = vadd.f32 1.0, %v507_v36  ;;  %v547_v51 = vmul.f32 -0.5, %v9038_v31  ;;  %v9063_v52 = vsub.f32 0.0, %v9049_v39 }
 0x1f4   :  { %v541_v59 = vand.u32 2147483647, %v9031_v25  ;;  %v513_v62 = vadd.f32 1.0, %v9049_v39  ;;  %v499_v63 = vadd.f32 1.0, %v498_v47  ;;  %vm9071_vm12 = vcmp.lt.f32.partialorder %v510_v48, 0.0004427343 }
 0x1f5   :  { %v9068_v61 = vmul.f32 %v6545_v23, %v508_v46  ;;  %v550_v6 = vand.u32 2147483647, %v9038_v31  ;;  %v548_v10 = vadd.f32 1.0, %v547_v51  ;;  %v553_v11 = vadd.f32 1.0, %v9063_v52 }
 0x1f6   :  { %vm9081_vm13 = vcmp.lt.f32.partialorder %v501_v55, 0.0004427343  ;;  %vm9089_vm14 = vcmp.lt.f32.partialorder %v541_v59, 0.0004427343  ;;  %v500_v22 = vmul.f32 %v9028_v20, %v499_v63  ;;  %v516_v24 = vmul.f32 -0.5, %v9049_v39 }
 0x1f7   :  { %vm9111_vm1 = vcmp.lt.f32.partialorder %v550_v6, 0.0004427343  ;;  %v559_v63 = vand.u32 2147483647, %v9063_v52 }
 0x1f9   :  { %594 = vadd.xlane.f32.xlu1 %v590_v41  ;;  %410 = vadd.xlane.f32.xlu0 %v406_v42  ;;  %v538_v42 = vmul.f32 -0.5, %v9031_v25  ;;  %vm9142_vm5 = vcmp.lt.f32.partialorder %v559_v63, 0.0004427343 }
 0x1fb   :  { %v539_v56 = vadd.f32 1.0, %v538_v42  ;;  %v556_v42 = vmul.f32 -0.5, %v9063_v52 }
 0x201   :  { %596 = vadd.xlane.f32.xlu0 %v591_v43  ;;  %v9054_v43 = vsel %vm318_vm11, %v319_v40, %v317_v37  ;;  %v549_v40 = vmul.f32 %v548_v10, %v9038_v31  ;;  %v517_v31 = vadd.f32 1.0, %v516_v24 }
 0x202   :  { %v357_v54 = vmax.f32 %v9054_v43, 1e-15 }
 0x203   :  { %v518_v24 = vmul.f32 %v9049_v39, %v517_v31 }
 0x204   :  { %v9079_v4 = vclamps-f32 %v357_v54, 0.9999999 }
 0x206   :  { %v9106_v20 = vsub.f32 0.0, %v9079_v4  ;;  %v486_v51 = vadd.f32 1.0, %v9079_v4 }
 0x254   :  { %v9035_v29 = vpop.xlane.xlu2 %412 }
 0x255   :  { %8250 = vrsqrt.f32 %v9035_v29  ;;  %vm437_vm15 = vcmp.eq.f32.partialorder %v9035_v29, inf  ;;  %v440_v60 = vand.u32 2147483648, %v9035_v29  ;;  %vm439_vm0 = vcmp.eq.f32.partialorder %v9035_v29, 0.0 }
 0x256   :  { %8252 = vlog2.f32 %v535_v30 }
 0x257   :  { %8254 = vlog2.f32 %v504_v32 }
 0x258   :  { %8256 = vlog2.f32 %v495_v2 }
 0x259   :  { %8258 = vlog2.f32 %v544_v12 }
 0x25b   :  { %v8251_v41 = vpop.eup %8250 }
 0x25c   :  { %v431_v44 = vmul.f32 %v8251_v41, %v9035_v29  ;;  %v9057_v45 = vpop.xlane.xlu1 %414  ;;  %v8253_v49 = vpop.eup %8252 }
 0x25d   :  { %8260 = vrsqrt.f32 %v9057_v45  ;;  %v8255_v53 = vpop.eup %8254  ;;  %v537_v0 = vmul.f32 0.6931472, %v8253_v49  ;;  %v519_v49 = vand.u32 2147483647, %v9049_v39  ;;  %vm449_vm2 = vcmp.eq.f32.partialorder %v9057_v45, inf }
 0x25e   :  { %v432_v50 = vmul.f32 %v8251_v41, %v431_v44  ;;  %8262 = vrcp.f32 %v359_v19  ;;  %v8257_v57 = vpop.eup %8256  ;;  %v506_v9 = vmul.f32 0.6931472, %v8255_v53  ;;  %v526_v53 = vadd.f32 1.0, %v9106_v20 }
 0x25f   :  { %8264 = vrcp.f32 %v358_v15  ;;  %v8259_v7 = vpop.eup %8258  ;;  %v497_v5 = vmul.f32 0.6931472, %v8257_v57  ;;  %v540_v15 = vmul.f32 %v539_v56, %v9031_v25  ;;  %vm451_vm3 = vcmp.eq.f32.partialorder %v9057_v45, 0.0 }
 0x260   :  { %v433_v58 = vmul.f32 0.5, %v432_v50  ;;  %8266 = vlog2.f32 %v513_v62  ;;  %v546_v27 = vmul.f32 0.6931472, %v8259_v7  ;;  %v512_v48 = vsel %vm9071_vm12, %v9068_v61, %v506_v9 }
 0x261   :  { %v543_v23 = vsel %vm9089_vm14, %v540_v15, %v537_v0  ;;  %v503_v32 = vsel %vm9081_vm13, %v500_v22, %v497_v5  ;;  %v557_v61 = vadd.f32 1.0, %v556_v42  ;;  %v489_v0 = vmul.f32 -0.5, %v9079_v4 }
 0x262   :  { %v434_v8 = vsub.f32 1.5, %v433_v58  ;;  %v563_v12 = vsub.f32 %v503_v32, %v543_v23  ;;  %v552_v50 = vsel %vm9111_vm1, %v549_v40, %v546_v27  ;;  %v452_v9 = vand.u32 2147483648, %v9057_v45 }
 0x263   :  { %v8261_v13 = vpop.eup %8260  ;;  %v558_v15 = vmul.f32 %v557_v61, %v9063_v52  ;;  %v529_v19 = vmul.f32 -0.5, %v9106_v20  ;;  %vm9138_vm4 = vcmp.lt.f32.partialorder %v519_v49, 0.0004427343  ;;  %v490_v32 = vadd.f32 1.0, %v489_v0 }
 0x264   :  { %v435_v16 = vmul.f32 %v8251_v41, %v434_v8  ;;  %v443_v17 = vmul.f32 %v8261_v13, %v9057_v45  ;;  %v9087_v18 = vpop.xlane.xlu0 %416  ;;  %v9093_v21 = vpop.eup %8262  ;;  %v567_v62 = vmul.f32 0.5, %v563_v12  ;;  %v564_v8 = vsub.f32 %v512_v48, %v552_v50 }
 0x265   :  { %8268 = vrsqrt.f32 %v9087_v18  ;;  %v8265_v30 = vpop.eup %8264  ;;  %v530_v41 = vadd.f32 1.0, %v529_v19  ;;  %vm461_vm6 = vcmp.eq.f32.partialorder %v9087_v18, inf  ;;  %v464_v42 = vand.u32 2147483648, %v9087_v18 }
 0x266   :  { %v436_v25 = vmul.f32 %v435_v16, %v9035_v29  ;;  %v444_v26 = vmul.f32 %v8261_v13, %v443_v17  ;;  %8270 = vlog2.f32 %v553_v11  ;;  %v8267_v44 = vpop.eup %8266  ;;  %v568_v23 = vmul.f32 0.5, %v564_v8  ;;  %v599_v8 = vpop.xlane.xlu2 %598 }
 0x267   :  { %v515_v14 = vmul.f32 0.6931472, %v8267_v44  ;;  %vm463_vm7 = vcmp.eq.f32.partialorder %v9087_v18, 0.0  ;;  %v492_v50 = vand.u32 2147483647, %v9079_v4  ;;  %v491_v0 = vmul.f32 %v9079_v4, %v490_v32 }
 0x268   :  { %v445_v2 = vmul.f32 0.5, %v444_v26  ;;  %v438_v36 = vsel %vm437_vm15, %v9035_v29, %v436_v25  ;;  %vm604_vm13 = vcmp.lt.f32.partialorder %v599_v8, 1e-15 }
 0x269   :  { %v441_v37 = vsel %vm439_vm0, %v440_v60, %v438_v36  ;;  %v521_v39 = vsel %vm9138_vm4, %v518_v24, %v515_v14  ;;  %vm493_vm10 = vcmp.lt.f32.partialorder %v492_v50, 0.0004427343 }
 0x26a   :  { %v446_v46 = vsub.f32 1.5, %v445_v2  ;;  %v467_v47 = vmax.f32 %v441_v37, 1e-15  ;;  %v532_v2 = vand.u32 2147483647, %v9106_v20 }
 0x26b   :  { %v8269_v29 = vpop.eup %8268 }
 0x26c   :  { %v8271_v55 = vpop.eup %8270  ;;  %v447_v56 = vmul.f32 %v8261_v13, %v446_v46  ;;  %v455_v57 = vmul.f32 %v8269_v29, %v9087_v18  ;;  %v9125_v58 = vpop.xlane.xlu0 %410  ;;  %v475_v59 = vmul.f32 %v8265_v30, %v467_v47  ;;  %vm9165_vm9 = vcmp.lt.f32.partialorder %v532_v2, 0.0004427343 }
 0x26d   :  { %8272 = vrsqrt.f32 %v9125_v58  ;;  %v555_v10 = vmul.f32 0.6931472, %v8271_v55  ;;  %vm425_vm11 = vcmp.eq.f32.partialorder %v9125_v58, inf  ;;  %vm427_vm12 = vcmp.eq.f32.partialorder %v9125_v58, 0.0 }
 0x26e   :  { %v448_v3 = vmul.f32 %v447_v56, %v9057_v45  ;;  %v456_v6 = vmul.f32 %v8269_v29, %v455_v57  ;;  %v571_v7 = vmul.f32 %v567_v62, %v475_v59  ;;  %8274 = vlog2.f32 %v526_v53 }
 0x26f   :  { %v561_v30 = vsel %vm9142_vm5, %v558_v15, %v555_v10  ;;  %v531_v57 = vmul.f32 %v530_v41, %v9106_v20 }
 0x270   :  { %v450_v11 = vsel %vm449_vm2, %v9057_v45, %v448_v3  ;;  %v457_v13 = vmul.f32 0.5, %v456_v6  ;;  %8276 = vtanh.f32 %v571_v7  ;;  %v565_v44 = vsub.f32 %v521_v39, %v561_v30 }
 0x271   :  { %v453_v5 = vsel %vm451_vm3, %v452_v9, %v450_v11  ;;  %8278 = vlog2.f32 %v486_v51  ;;  %v428_v9 = vand.u32 2147483648, %v9125_v58 }
 0x272   :  { %v458_v16 = vsub.f32 1.5, %v457_v13  ;;  %8280 = vrcp.f32 %v467_v47  ;;  %v468_v17 = vmax.f32 %v453_v5, 1e-15  ;;  %v569_v63 = vmul.f32 0.5, %v565_v44 }
 0x273   :  { %v8273_v22 = vpop.eup %8272  ;;  %8282 = vrcp.f32 %v360_v33 }
 0x274   :  { %v459_v26 = vmul.f32 %v8269_v29, %v458_v16  ;;  %v419_v52 = vmul.f32 %v8273_v22, %v9125_v58  ;;  %v476_v27 = vmul.f32 %v9093_v21, %v468_v17  ;;  %v8275_v60 = vpop.eup %8274  ;;  %v597_v33 = vpop.xlane.xlu0 %596 }
 0x275   :  { %v528_v31 = vmul.f32 0.6931472, %v8275_v60  ;;  %vm603_vm8 = vcmp.lt.f32.partialorder %v597_v33, 1e-15 }
 0x276   :  { %v8277_v36 = vpop.eup %8276  ;;  %v460_v12 = vmul.f32 %v459_v26, %v9087_v18  ;;  %v420_v37 = vmul.f32 %v8273_v22, %v419_v52  ;;  %v572_v40 = vmul.f32 %v568_v23, %v476_v27 }
 0x277   :  { %v8279_v21 = vpop.eup %8278  ;;  %v579_v28 = vmul.f32 %v8277_v36, %v9003_v35  ;;  %v534_v3 = vsel %vm9165_vm9, %v531_v57, %v528_v31 }
 0x278   :  { %v8281_v46 = vpop.eup %8280  ;;  %v462_v47 = vsel %vm461_vm6, %v9087_v18, %v460_v12  ;;  %v421_v48 = vmul.f32 0.5, %v420_v37  ;;  %8284 = vtanh.f32 %v572_v40  ;;  %v488_v56 = vmul.f32 0.6931472, %v8279_v21 }
 0x279   :  { %v587_v49 = vmul.f32 %v8281_v46, %v579_v28  ;;  %v465_v29 = vsel %vm463_vm7, %v464_v42, %v462_v47  ;;  %8286 = vrcp.f32 %v468_v17  ;;  %v8283_v55 = vpop.eup %8282 }
 0x27a   :  { %v422_v51 = vsub.f32 1.5, %v421_v48  ;;  %v469_v53 = vmax.f32 %v465_v29, 1e-15  ;;  %8288 = vrcp.f32 %v357_v54  ;;  %v494_v43 = vsel %vm493_vm10, %v491_v0, %v488_v56 }
 0x27b   :  { %v9162_v35 = vsel %vm603_vm8, 0.0, %v587_v49  ;;  %v562_v11 = vsub.f32 %v494_v43, %v534_v3 }
 0x27c   :  { %v423_v18 = vmul.f32 %v8273_v22, %v422_v51  ;;  %v619_v62 = vmul.f32 %v9162_v35, %v9162_v35  ;;  %v477_v61 = vmul.f32 %v8283_v55, %v469_v53  ;;  %v601_v22 = vpop.xlane.xlu1 %600 }
 0x27d   :  { %v566_v19 = vmul.f32 0.5, %v562_v11  ;;  %vm605_vm14 = vcmp.lt.f32.partialorder %v601_v22, 1e-15 }
 0x27e   :  { %v8285_v6 = vpop.eup %8284  ;;  %v424_v20 = vmul.f32 %v423_v18, %v9125_v58  ;;  %624 = vadd.xlane.f32.xlu1 %v619_v62  ;;  %v573_v7 = vmul.f32 %v569_v63, %v477_v61 }
 0x27f   :  { %v580_v10 = vmul.f32 %v8285_v6, %v9007_v1  ;;  %v8287_v54 = vpop.eup %8286 }
 0x280   :  { %v426_v4 = vsel %vm425_vm11, %v9125_v58, %v424_v20  ;;  %8290 = vtanh.f32 %v573_v7  ;;  %v8289_v15 = vpop.eup %8288 }
 0x281   :  { %v588_v13 = vmul.f32 %v8287_v54, %v580_v10  ;;  %v429_v5 = vsel %vm427_vm12, %v428_v9, %v426_v4  ;;  %8292 = vrcp.f32 %v469_v53  ;;  %v8743_v9 = vmov 0  }
 0x282   :  { %v466_v14 = vmax.f32 %v429_v5, 1e-15  ;;  %8190 = vset.pattern.permute.xlu1 %v8743_v9  ;;  %8192 = vset.pattern.permute.xlu0 %v8743_v9 }
 0x283   :  { %v9182_v16 = vsel %vm604_vm13, 0.0, %v588_v13  ;;  %8191 = vset.pattern.permute.xlu2 %v8743_v9 }
 0x284   :  { %v620_v17 = vmul.f32 %v9182_v16, %v9182_v16  ;;  %v474_v1 = vmul.f32 %v8289_v15, %v466_v14  ;;  %v595_v30 = vpop.xlane.xlu1 %594 }
 0x285   :  { %vm602_vm15 = vcmp.lt.f32.partialorder %v595_v30, 1e-15 }
 0x286   :  { %v8291_v23 = vpop.eup %8290  ;;  %626 = vadd.xlane.f32.xlu0 %v620_v17  ;;  %v570_v24 = vmul.f32 %v566_v19, %v474_v1 }
 0x287   :  { %v581_v58 = vmul.f32 %v8291_v23, %v9012_v38  ;;  %v8293_v25 = vpop.eup %8292 }
 0x288   :  { %8294 = vtanh.f32 %v570_v24 }
 0x289   :  { %v589_v45 = vmul.f32 %v8293_v25, %v581_v58  ;;  %8296 = vrcp.f32 %v466_v14 }
 0x28b   :  { %v9187_v26 = vsel %vm605_vm14, 0.0, %v589_v45 }
 0x28c   :  { %v621_v52 = vmul.f32 %v9187_v26, %v9187_v26 }
 0x28e   :  { %v8295_v27 = vpop.eup %8294  ;;  %628 = vadd.xlane.f32.xlu2 %v621_v52 }
 0x28f   :  { %v578_v60 = vmul.f32 %v8295_v27, %v9001_v34  ;;  %v8297_v39 = vpop.eup %8296 }
 0x291   :  { %v586_v32 = vmul.f32 %v8297_v39, %v578_v60 }
 0x293   :  { %v9192_v2 = vsel %vm602_vm15, 0.0, %v586_v32 }
 0x294   :  { %v618_v38 = vmul.f32 %v9192_v2, %v9192_v2 }
 0x296   :  { %622 = vadd.xlane.f32.xlu2 %v618_v38 }
 0x2f1   :  { %v625_v36 = vpop.xlane.xlu1 %624 }
 0x2f2   :  { %8298 = vrsqrt.f32 %v625_v36  ;;  %vm649_vm0 = vcmp.eq.f32.partialorder %v625_v36, inf  ;;  %v652_v48 = vand.u32 2147483648, %v625_v36  ;;  %vm651_vm1 = vcmp.eq.f32.partialorder %v625_v36, 0.0 }
 0x2f8   :  { %v8299_v12 = vpop.eup %8298 }
 0x2f9   :  { %v643_v37 = vmul.f32 %v8299_v12, %v625_v36  ;;  %v627_v40 = vpop.xlane.xlu0 %626 }
 0x2fa   :  { %8300 = vrsqrt.f32 %v627_v40  ;;  %vm661_vm2 = vcmp.eq.f32.partialorder %v627_v40, inf  ;;  %v664_v62 = vand.u32 2147483648, %v627_v40  ;;  %vm663_vm3 = vcmp.eq.f32.partialorder %v627_v40, 0.0 }
 0x2fb   :  { %v644_v41 = vmul.f32 %v8299_v12, %v643_v37 }
 0x2fd   :  { %v645_v21 = vmul.f32 0.5, %v644_v41 }
 0x2ff   :  { %v646_v42 = vsub.f32 1.5, %v645_v21 }
 0x300   :  { %v8301_v28 = vpop.eup %8300 }
 0x301   :  { %v655_v34 = vmul.f32 %v8301_v28, %v627_v40  ;;  %v629_v33 = vpop.xlane.xlu2 %628  ;;  %v647_v44 = vmul.f32 %v8299_v12, %v646_v42  ;;  %v989_v42 = vld [vmem:[%s12983_s12] sm:$0xff] }
 0x302   :  { %8302 = vrsqrt.f32 %v629_v33  ;;  %vm673_vm5 = vcmp.eq.f32.partialorder %v629_v33, inf  ;;  %v676_v5 = vand.u32 2147483648, %v629_v33  ;;  %vm675_vm6 = vcmp.eq.f32.partialorder %v629_v33, 0.0 }
 0x303   :  { %v656_v46 = vmul.f32 %v8301_v28, %v655_v34  ;;  %v648_v47 = vmul.f32 %v647_v44, %v625_v36  ;;  %v1052_v34 = vld [vmem:[%s12984_s9 + $0x38] sm:$0xff]  ;;  %v990_v44 = vld [vmem:[%s12983_s12 + $0x8] sm:$0xff] }
 0x305   :  { %v657_v49 = vmul.f32 0.5, %v656_v46  ;;  %v650_v29 = vsel %vm649_vm0, %v625_v36, %v648_v47  ;;  %v995_v46 = vld [vmem:[%s12983_s12 + $0x30] sm:$0xff]  ;;  %v994_v47 = vld [vmem:[%s12983_s12 + $0x28] sm:$0xff] }
 0x306   :  { %v653_v50 = vsel %vm651_vm1, %v652_v48, %v650_v29  ;;  %v1045_v48 = vld [vmem:[%s12984_s9] sm:$0xff]  ;;  %v996_v29 = vld [vmem:[%s12983_s12 + $0x38] sm:$0xff] }
 0x307   :  { %v679_v31 = vmax.f32 %v653_v50, 1e-15  ;;  %v658_v51 = vsub.f32 1.5, %v657_v49  ;;  %v1046_v49 = vld [vmem:[%s12984_s9 + $0x8] sm:$0xff]  ;;  %v1048_v50 = vld [vmem:[%s12984_s9 + $0x18] sm:$0xff] }
 0x308   :  { %v8303_v53 = vpop.eup %8302 }
 0x309   :  { %v667_v55 = vmul.f32 %v8303_v53, %v629_v33  ;;  %v623_v56 = vpop.xlane.xlu2 %622  ;;  %8304 = vrcp.f32 %v679_v31  ;;  %v659_v57 = vmul.f32 %v8301_v28, %v658_v51  ;;  %vm683_vm4 = vcmp.gt.f32.partialorder %v679_v31, 0.996  ;;  %v991_v28 = vld [vmem:[%s12983_s12 + $0x10] sm:$0xff]  ;;  %v1049_v31 = vld [vmem:[%s12984_s9 + $0x20] sm:$0xff] }
 0x30a   :  { %8306 = vrsqrt.f32 %v623_v56  ;;  %vm637_vm8 = vcmp.eq.f32.partialorder %v623_v56, inf  ;;  %v640_v52 = vand.u32 2147483648, %v623_v56  ;;  %vm639_vm9 = vcmp.eq.f32.partialorder %v623_v56, 0.0  ;;  %v1047_v51 = vld [vmem:[%s12984_s9 + $0x10] sm:$0xff] }
 0x30b   :  { %v668_v59 = vmul.f32 %v8303_v53, %v667_v55  ;;  %v660_v18 = vmul.f32 %v659_v57, %v627_v40  ;;  %v1050_v55 = vld [vmem:[%s12984_s9 + $0x28] sm:$0xff] }
 0x30d   :  { %v669_v61 = vmul.f32 0.5, %v668_v59  ;;  %v662_v63 = vsel %vm661_vm2, %v627_v40, %v660_v18 }
 0x30e   :  { %v665_v0 = vsel %vm663_vm3, %v664_v62, %v662_v63 }
 0x30f   :  { %v8305_v3 = vpop.eup %8304  ;;  %v680_v6 = vmax.f32 %v665_v0, 1e-15  ;;  %v670_v20 = vsub.f32 1.5, %v669_v61 }
 0x310   :  { %v8307_v7 = vpop.eup %8306  ;;  %v691_v8 = vmul.f32 0.996, %v8305_v3 }
 0x311   :  { %v631_v10 = vmul.f32 %v8307_v7, %v623_v56  ;;  %8308 = vrcp.f32 %v680_v6  ;;  %v671_v43 = vmul.f32 %v8303_v53, %v670_v20  ;;  %vm684_vm7 = vcmp.gt.f32.partialorder %v680_v6, 0.996  ;;  %v1051_v53 = vld [vmem:[%s12984_s9 + $0x30] sm:$0xff]  ;;  %s13001_s9 = sld [smem:[#allocation124_spill]] }
 0x312   :  { %v695_v54 = vmul.f32 %v691_v8, %v9162_v35 }
 0x313   :  { %v632_v4 = vmul.f32 %v8307_v7, %v631_v10  ;;  %v672_v11 = vmul.f32 %v671_v43, %v629_v33  ;;  %v1243_v43 = vld [vmem:[%s12985_s8 + $0x18] sm:$0xff] }
 0x314   :  { %v9198_v13 = vsel %vm683_vm4, %v695_v54, %v9162_v35  ;;  %v1242_v54 = vld [vmem:[%s12985_s8 + $0x10] sm:$0xff]  ;;  %1280 = vmatpush.msrb.mxu0 %v1243_v43 }
 0x315   :  { %v633_v14 = vmul.f32 0.5, %v632_v4  ;;  %v711_v15 = vmul.f32 %v9198_v13, %v9198_v13  ;;  %v674_v17 = vsel %vm673_vm5, %v629_v33, %v672_v11  ;;  %v992_v33 = vld [vmem:[%s12983_s12 + $0x18] sm:$0xff] }
 0x316   :  { %v677_v1 = vsel %vm675_vm6, %v676_v5, %v674_v17  ;;  %1281 = vmatpush.msrb.mxu0 %v1242_v54  ;;  %v1241_v17 = vld [vmem:[%s12985_s8 + $0x8] sm:$0xff]  ;;  %vm1101_vm6 = vcmask 261120  }
 0x317   :  { %v8309_v19 = vpop.eup %8308  ;;  %716 = vadd.xlane.f32.xlu2 %v711_v15  ;;  %v681_v22 = vmax.f32 %v677_v1, 1e-15  ;;  %v634_v23 = vsub.f32 1.5, %v633_v14  ;;  %v1240_v1 = vld [vmem:[%s12985_s8] sm:$0xff] }
 0x318   :  { %v692_v24 = vmul.f32 0.996, %v8309_v19  ;;  %1282 = vmatpush.msrb.mxu0 %v1241_v17 }
 0x319   :  { %8310 = vrcp.f32 %v681_v22  ;;  %v635_v58 = vmul.f32 %v8307_v7, %v634_v23  ;;  %vm685_vm10 = vcmp.gt.f32.partialorder %v681_v22, 0.996 }
 0x31a   :  { %v696_v25 = vmul.f32 %v692_v24, %v9182_v16  ;;  %1283 = vmatpush.msrb.mxu0 %v1240_v1 }
 0x31b   :  { %v636_v35 = vmul.f32 %v635_v58, %v623_v56 }
 0x31c   :  { %v9204_v45 = vsel %vm684_vm7, %v696_v25, %v9182_v16 }
 0x31d   :  { %v712_v27 = vmul.f32 %v9204_v45, %v9204_v45  ;;  %v638_v30 = vsel %vm637_vm8, %v623_v56, %v636_v35 }
 0x31e   :  { %v641_v60 = vsel %vm639_vm9, %v640_v52, %v638_v30 }
 0x31f   :  { %v8311_v39 = vpop.eup %8310  ;;  %718 = vadd.xlane.f32.xlu1 %v712_v27  ;;  %v678_v32 = vmax.f32 %v641_v60, 1e-15 }
 0x320   :  { %v693_v38 = vmul.f32 0.996, %v8311_v39 }
 0x321   :  { %8312 = vrcp.f32 %v678_v32  ;;  %vm682_vm11 = vcmp.gt.f32.partialorder %v678_v32, 0.996 }
 0x322   :  { %v697_v36 = vmul.f32 %v693_v38, %v9187_v26  ;;  %v12909_v38 = vlaneseq }
 0x324   :  { %v9210_v12 = vsel %vm685_vm10, %v697_v36, %v9187_v26 }
 0x325   :  { %v713_v16 = vmul.f32 %v9210_v12, %v9210_v12 }
 0x327   :  { %v8313_v37 = vpop.eup %8312  ;;  %720 = vadd.xlane.f32.xlu0 %v713_v16 }
 0x328   :  { %v690_v40 = vmul.f32 0.996, %v8313_v37 }
 0x32a   :  { %v694_v41 = vmul.f32 %v690_v40, %v9192_v2 }
 0x32c   :  { %v9216_v21 = vsel %vm682_vm11, %v694_v41, %v9192_v2  ;;  %v993_v2 = vld [vmem:[%s12983_s12 + $0x20] sm:$0xff]  ;;  %s13000_s12 = sld [smem:[#allocation120_spill]] }
 0x32d   :  { %v710_v26 = vmul.f32 %v9216_v21, %v9216_v21 }
 0x32f   :  { %714 = vadd.xlane.f32.xlu0 %v710_v26  ;;  %998 = vperm.xlu2 %8191, %v989_v42  }
 0x337   :  { %1004 = vperm.xlu2 %8191, %v991_v28  }
 0x338   :  { %1075 = vperm.xlu1 %8190, %v1052_v34  }
 0x33f   :  { %1010 = vperm.xlu2 %8191, %v993_v2   ;;  %v9301_v2 = vand.u32 127, %v12909_v38 }
 0x340   :  { %1007 = vperm.xlu1 %8190, %v992_v33  }
 0x341   :  { %12986 = vst [vmem:[#allocation8_spill] sm:$0xff] %v9301_v2 }
 0x343   :  { %1001 = vperm.xlu0 %8192, %v990_v44  }
 0x347   :  { %1016 = vperm.xlu2 %8191, %v995_v46  }
 0x348   :  { %1013 = vperm.xlu1 %8190, %v994_v47  }
 0x34b   :  { %1054 = vperm.xlu0 %8192, %v1045_v48  }
 0x34f   :  { %1057 = vperm.xlu2 %8191, %v1046_v49  }
 0x350   :  { %1019 = vperm.xlu1 %8190, %v996_v29  }
 0x353   :  { %1063 = vperm.xlu0 %8192, %v1048_v50  }
 0x357   :  { %1066 = vperm.xlu2 %8191, %v1049_v31  }
 0x358   :  { %1060 = vperm.xlu1 %8190, %v1047_v51  }
 0x35b   :  { %1072 = vperm.xlu0 %8192, %v1051_v53  }
 0x360   :  { %1069 = vperm.xlu1 %8190, %v1050_v55  }
 0x38a   :  { %v717_v56 = vpop.xlane.xlu2 %716 }
 0x38b   :  { %8314 = vrsqrt.f32 %v717_v56  ;;  %vm741_vm12 = vcmp.eq.f32.partialorder %v717_v56, inf  ;;  %v744_v4 = vand.u32 2147483648, %v717_v56  ;;  %vm743_vm13 = vcmp.eq.f32.partialorder %v717_v56, 0.0 }
 0x391   :  { %v8315_v57 = vpop.eup %8314 }
 0x392   :  { %v735_v59 = vmul.f32 %v8315_v57, %v717_v56  ;;  %v719_v18 = vpop.xlane.xlu1 %718  ;;  %v9268_v62 = vpop.permute.xlu2 %998 }
 0x393   :  { %8316 = vrsqrt.f32 %v719_v18  ;;  %vm753_vm14 = vcmp.eq.f32.partialorder %v719_v18, inf  ;;  %v756_v30 = vand.u32 2147483648, %v719_v18  ;;  %vm755_vm15 = vcmp.eq.f32.partialorder %v719_v18, 0.0 }
 0x394   :  { %v736_v61 = vmul.f32 %v8315_v57, %v735_v59  ;;  %vm1021_vm2 = vcmp.eq.s32.totalorder %v9301_v2, %v9268_v62 }
 0x396   :  { %v737_v63 = vmul.f32 0.5, %v736_v61 }
 0x398   :  { %v738_v0 = vsub.f32 1.5, %v737_v63 }
 0x399   :  { %v8317_v3 = vpop.eup %8316 }
 0x39a   :  { %v739_v6 = vmul.f32 %v8315_v57, %v738_v0  ;;  %v747_v20 = vmul.f32 %v8317_v3, %v719_v18  ;;  %v721_v7 = vpop.xlane.xlu0 %720  ;;  %v9270_v8 = vpop.permute.xlu2 %1004 }
 0x39b   :  { %8318 = vrsqrt.f32 %v721_v7  ;;  %vm765_vm0 = vcmp.eq.f32.partialorder %v721_v7, inf  ;;  %vm767_vm1 = vcmp.eq.f32.partialorder %v721_v7, 0.0  ;;  %v768_v46 = vand.u32 2147483648, %v721_v7 }
 0x39c   :  { %v740_v9 = vmul.f32 %v739_v6, %v717_v56  ;;  %v748_v10 = vmul.f32 %v8317_v3, %v747_v20  ;;  %v12907_v20 = vmov 0.0  }
 0x39e   :  { %v742_v11 = vsel %vm741_vm12, %v717_v56, %v740_v9  ;;  %v749_v5 = vmul.f32 0.5, %v748_v10 }
 0x39f   :  { %v745_v14 = vsel %vm743_vm13, %v744_v4, %v742_v11 }
 0x3a0   :  { %v750_v15 = vsub.f32 1.5, %v749_v5  ;;  %v771_v22 = vmax.f32 %v745_v14, 1e-15 }
 0x3a1   :  { %v8319_v19 = vpop.eup %8318 }
 0x3a2   :  { %v751_v23 = vmul.f32 %v8317_v3, %v750_v15  ;;  %v759_v24 = vmul.f32 %v8319_v19, %v721_v7  ;;  %v9284_v58 = vpop.xlane.xlu0 %714  ;;  %v9287_v25 = vpop.permute.xlu2 %1010  ;;  %v9289_v27 = vclamps-f32 %v771_v22, 0.9999999 }
 0x3a3   :  { %8320 = vrsqrt.f32 %v9284_v58  ;;  %vm729_vm3 = vcmp.eq.f32.partialorder %v9284_v58, inf  ;;  %vm731_vm4 = vcmp.eq.f32.partialorder %v9284_v58, 0.0  ;;  %v732_v43 = vand.u32 2147483648, %v9284_v58 }
 0x3a4   :  { %v752_v35 = vmul.f32 %v751_v23, %v719_v18  ;;  %v760_v52 = vmul.f32 %v8319_v19, %v759_v24  ;;  %v9292_v40 = vsub.f32 0.0, %v9289_v27  ;;  %v791_v34 = vadd.f32 1.0, %v9289_v27 }
 0x3a5   :  { %v794_v49 = vmul.f32 -0.5, %v9289_v27 }
 0x3a6   :  { %v754_v60 = vsel %vm753_vm14, %v719_v18, %v752_v35  ;;  %v761_v39 = vmul.f32 0.5, %v760_v52  ;;  %v831_v29 = vadd.f32 1.0, %v9292_v40  ;;  %8322 = vlog2.f32 %v791_v34 }
 0x3a7   :  { %v757_v32 = vsel %vm755_vm15, %v756_v30, %v754_v60  ;;  %8324 = vrcp.f32 %v771_v22  ;;  %v795_v59 = vadd.f32 1.0, %v794_v49  ;;  %v797_v18 = vand.u32 2147483647, %v9289_v27 }
 0x3a8   :  { %v772_v36 = vmax.f32 %v757_v32, 1e-15  ;;  %v762_v16 = vsub.f32 1.5, %v761_v39  ;;  %8326 = vlog2.f32 %v831_v29  ;;  %v834_v61 = vmul.f32 -0.5, %v9292_v40 }
 0x3a9   :  { %v8321_v37 = vpop.eup %8320  ;;  %vm9339_vm5 = vcmp.lt.f32.partialorder %v797_v18, 0.0004427343  ;;  %v796_v22 = vmul.f32 %v9289_v27, %v795_v59  ;;  %v837_v30 = vand.u32 2147483647, %v9292_v40  ;;  %vm1023_vm15 = vcmp.eq.s32.totalorder %v9301_v2, %v9270_v8 }
 0x3aa   :  { %v9294_v41 = vclamps-f32 %v772_v36, 0.9999999  ;;  %v763_v42 = vmul.f32 %v8319_v19, %v762_v16  ;;  %v723_v26 = vmul.f32 %v8321_v37, %v9284_v58  ;;  %v9297_v28 = vpop.permute.xlu1 %1075  ;;  %v9303_v47 = vpop.permute.xlu2 %1016  ;;  %v835_v15 = vadd.f32 1.0, %v834_v61 }
 0x3ab   :  { %vm9374_vm9 = vcmp.lt.f32.partialorder %v837_v30, 0.0004427343 }
 0x3ac   :  { %v764_v33 = vmul.f32 %v763_v42, %v721_v7  ;;  %v724_v44 = vmul.f32 %v8321_v37, %v723_v26  ;;  %v9306_v48 = vsub.f32 0.0, %v9294_v41  ;;  %v800_v51 = vadd.f32 1.0, %v9294_v41  ;;  %v8323_v9 = vpop.eup %8322 }
 0x3ad   :  { %v803_v6 = vmul.f32 -0.5, %v9294_v41  ;;  %v806_v14 = vand.u32 2147483647, %v9294_v41  ;;  %v9343_v17 = vpop.eup %8324  ;;  %v793_v52 = vmul.f32 0.6931472, %v8323_v9  ;;  %v836_v26 = vmul.f32 %v835_v15, %v9292_v40 }
 0x3ae   :  { %v766_v50 = vsel %vm765_vm0, %v721_v7, %v764_v33  ;;  %v725_v31 = vmul.f32 0.5, %v724_v44  ;;  %v840_v57 = vadd.f32 1.0, %v9306_v48  ;;  %8328 = vlog2.f32 %v800_v51  ;;  %v8327_v23 = vpop.eup %8326 }
 0x3af   :  { %v769_v53 = vsel %vm767_vm1, %v768_v46, %v766_v50  ;;  %v9327_v7 = vsel %vm1021_vm2, 1.0, %v12907_v20  ;;  %v843_v4 = vmul.f32 -0.5, %v9306_v48  ;;  %v804_v19 = vadd.f32 1.0, %v803_v6 }
 0x3b0   :  { %v773_v55 = vmax.f32 %v769_v53, 1e-15  ;;  %v726_v56 = vsub.f32 1.5, %v725_v31  ;;  %8330 = vlog2.f32 %v840_v57  ;;  %v846_v16 = vand.u32 2147483647, %v9306_v48 }
 0x3b1   :  { %8332 = vrcp.f32 %v772_v36  ;;  %v844_v36 = vadd.f32 1.0, %v843_v4  ;;  %vm9359_vm7 = vcmp.lt.f32.partialorder %v806_v14, 0.0004427343  ;;  %v805_v44 = vmul.f32 %v9294_v41, %v804_v19 }
 0x3b2   :  { %v9316_v63 = vclamps-f32 %v773_v55, 0.9999999  ;;  %v727_v0 = vmul.f32 %v8321_v37, %v726_v56  ;;  %v9318_v3 = vpop.permute.xlu1 %1007  ;;  %v1058_v35 = vpop.permute.xlu2 %1057  ;;  %v799_v49 = vsel %vm9339_vm5, %v796_v22, %v793_v52  ;;  %v833_v29 = vmul.f32 0.6931472, %v8327_v23 }
 0x3b3   :  { %vm1078_vm8 = vcmp.eq.s32.totalorder %v9301_v2, %v1058_v35  ;;  %v845_v51 = vmul.f32 %v844_v36, %v9306_v48  ;;  %vm9379_vm10 = vcmp.lt.f32.partialorder %v846_v16, 0.0004427343  ;;  %v9424_v50 = vsel %vm1023_vm15, 1.0, %v12907_v20 }
 0x3b4   :  { %v728_v10 = vmul.f32 %v727_v0, %v9284_v58  ;;  %v809_v54 = vadd.f32 1.0, %v9316_v63  ;;  %v9336_v5 = vsub.f32 0.0, %v9316_v63  ;;  %v8329_v60 = vpop.eup %8328  ;;  %v812_v37 = vmul.f32 -0.5, %v9316_v63 }
 0x3b5   :  { %v9333_v11 = vpop.permute.xlu0 %1001  ;;  %v802_v31 = vmul.f32 0.6931472, %v8329_v60  ;;  %v9384_v57 = vsel %vm1078_vm8, 1.0, %v12907_v20 }
 0x3b6   :  { %v730_v1 = vsel %vm729_vm3, %v9284_v58, %v728_v10  ;;  %8334 = vlog2.f32 %v809_v54  ;;  %v849_v32 = vadd.f32 1.0, %v9336_v5  ;;  %v8331_v27 = vpop.eup %8330  ;;  %v852_v58 = vmul.f32 -0.5, %v9336_v5 }
 0x3b7   :  { %v9351_v24 = vsel %vm731_vm4, %v732_v43, %v730_v1  ;;  %v842_v46 = vmul.f32 0.6931472, %v8331_v27  ;;  %v8333_v40 = vpop.eup %8332  ;;  %v813_v59 = vadd.f32 1.0, %v812_v37  ;;  %v855_v9 = vand.u32 2147483647, %v9336_v5 }
 0x3b8   :  { %v770_v39 = vmax.f32 %v9351_v24, 1e-15  ;;  %8336 = vlog2.f32 %v849_v32  ;;  %v853_v18 = vadd.f32 1.0, %v852_v58  ;;  %v839_v10 = vsel %vm9374_vm9, %v836_v26, %v833_v29 }
 0x3b9   :  { %8338 = vrcp.f32 %v773_v55  ;;  %v815_v55 = vand.u32 2147483647, %v9316_v63  ;;  %v848_v48 = vsel %vm9379_vm10, %v845_v51, %v842_v46  ;;  %vm1022_vm12 = vcmp.eq.s32.totalorder %v9301_v2, %v9333_v11 }
 0x3ba   :  { %v9366_v34 = vclamps-f32 %v770_v39, 0.9999999  ;;  %v9368_v33 = vpop.permute.xlu1 %1013  ;;  %v808_v4 = vsel %vm9359_vm7, %v805_v44, %v802_v31  ;;  %v814_v62 = vmul.f32 %v9316_v63, %v813_v59  ;;  %v854_v15 = vmul.f32 %v853_v18, %v9336_v5 }
 0x3bb   :  { %v860_v1 = vsub.f32 %v808_v4, %v848_v48  ;;  %v859_v52 = vsub.f32 %v799_v49, %v839_v10  ;;  %v9414_v32 = vsel %vm1022_vm12, 1.0, %v12907_v20  ;;  %vm816_vm13 = vcmp.lt.f32.partialorder %v815_v55, 0.0004427343 }
 0x3bc   :  { %v8335_v41 = vpop.eup %8334  ;;  %v782_v61 = vadd.f32 1.0, %v9366_v34  ;;  %v818_v0 = vsub.f32 0.0, %v9366_v34  ;;  %v785_v30 = vmul.f32 -0.5, %v9366_v34  ;;  %vm856_vm14 = vcmp.lt.f32.partialorder %v855_v9, 0.0004427343 }
 0x3bd   :  { %v1055_v56 = vpop.permute.xlu0 %1054  ;;  %v811_v54 = vmul.f32 0.6931472, %v8335_v41  ;;  %v864_v27 = vmul.f32 0.5, %v860_v1  ;;  %v1233_v37 = vsub.f32 %v9414_v32, %v9384_v57  ;;  %v863_v58 = vmul.f32 0.5, %v859_v52  ;;  %v7877_v1 = vld [vmem:[%s12999_s29 + $0x30] sm:$0xff] }
 0x3be   :  { %vm1077_vm11 = vcmp.eq.s32.totalorder %v9301_v2, %v1055_v56  ;;  %8340 = vlog2.f32 %v782_v61  ;;  %v8337_v14 = vpop.eup %8336  ;;  %v822_v19 = vadd.f32 1.0, %v818_v0  ;;  %v825_v60 = vmul.f32 -0.5, %v818_v0 }
 0x3bf   :  { %v9393_v6 = vsel %vm1077_vm11, 1.0, %v12907_v20  ;;  %v8339_v22 = vpop.eup %8338  ;;  %v851_v35 = vmul.f32 0.6931472, %v8337_v14  ;;  %v817_v63 = vsel %vm816_vm13, %v814_v62, %v811_v54  ;;  %v786_v42 = vadd.f32 1.0, %v785_v30  ;;  %v7874_v30 = vld [vmem:[%s12999_s29 + $0x18] sm:$0xff] }
 0x3c0   :  { %v1232_v43 = vsub.f32 %v9327_v7, %v9393_v6  ;;  %8342 = vlog2.f32 %v822_v19  ;;  %v826_v26 = vadd.f32 1.0, %v825_v60  ;;  %v788_v44 = vand.u32 2147483647, %v9366_v34  ;;  %v7872_v60 = vld [vmem:[%s12999_s29 + $0x8] sm:$0xff] }
 0x3c1   :  { %v857_v5 = vsel %vm856_vm14, %v854_v15, %v851_v35  ;;  %v828_v46 = vand.u32 2147483647, %v818_v0  ;;  %8344 = vrcp.f32 %v770_v39  ;;  %v872_v31 = vmul.f32 %v8333_v40, %v864_v27  ;;  %v7875_v35 = vld [vmem:[%s12999_s29 + $0x20] sm:$0xff]  ;;  %v881_v27 = vld [vmem:[%s13000_s12 + $0x18] sm:$0xff] }
 0x3c2   :  { %v9406_v23 = vpop.permute.xlu1 %1019  ;;  %6615 = vmatmul.msk.f32.vlgmr.msrb.gmra.mxu0 %vm1101_vm6, %v1232_v43  ;;  %v861_v16 = vsub.f32 %v817_v63, %v857_v5  ;;  %v871_v53 = vmul.f32 %v9343_v17, %v863_v58  ;;  %v787_v41 = vmul.f32 %v9366_v34, %v786_v42  ;;  %v827_v59 = vmul.f32 %v826_v26, %v818_v0  ;;  %v878_v63 = vld [vmem:[%s13000_s12] sm:$0xff]  ;;  %v879_v5 = vld [vmem:[%s13000_s12 + $0x8] sm:$0xff] }
 0x3c3   :  { %vm789_vm1 = vcmp.lt.f32.partialorder %v788_v44, 0.0004427343  ;;  %vm829_vm2 = vcmp.lt.f32.partialorder %v828_v46, 0.0004427343  ;;  %v9437_v17 = vmul.f32 %v872_v31, %v9204_v45  ;;  %vm1084_vm3 = vcmp.eq.s32.totalorder %v9301_v2, %v9297_v28  ;;  %v882_v58 = vld [vmem:[%s13000_s12 + $0x20] sm:$0xff]  ;;  %v883_v42 = vld [vmem:[%s13000_s12 + $0x28] sm:$0xff] }
 0x3c4   :  { %v8341_v36 = vpop.eup %8340  ;;  %v865_v11 = vmul.f32 0.5, %v861_v16  ;;  %vm1024_vm4 = vcmp.eq.s32.totalorder %v9301_v2, %v9318_v3  ;;  %v1067_v3 = vpop.permute.xlu2 %1066  ;;  %vm1025_vm7 = vcmp.eq.s32.totalorder %v9301_v2, %v9287_v25  ;;  %vm1026_vm10 = vcmp.eq.s32.totalorder %v9301_v2, %v9368_v33  ;;  %v880_v16 = vld [vmem:[%s13000_s12 + $0x10] sm:$0xff]  ;;  %v6821_v26 = vld [vmem:[#allocation2 + $0x348] sm:$0xf]  ;;  %v7987_v44 = vld [vmem:[#allocation2 + $0x360] sm:$0xf0] }
 0x3c5   :  { %v784_v49 = vmul.f32 0.6931472, %v8341_v36  ;;  %12996 = vst [vmem:[#allocation10_spill] sm:$0xff] %v9437_v17  ;;  %v1064_v48 = vpop.permute.xlu0 %1063  ;;  %v6586_v10 = vsel %vm1024_vm4, 1.0, %v12907_v20  ;;  %vm1081_vm8 = vcmp.eq.s32.totalorder %v9301_v2, %v1067_v3  ;;  %vm1027_vm11 = vcmp.eq.s32.totalorder %v9301_v2, %v9303_v47  ;;  %v7876_v47 = vld [vmem:[%s12999_s29 + $0x28] sm:$0xff] }
 0x3c6   :  { %v8343_v29 = vpop.eup %8342  ;;  %v873_v8 = vmul.f32 %v8339_v22, %v865_v11  ;;  %vm1080_vm5 = vcmp.eq.s32.totalorder %v9301_v2, %v1064_v48  ;;  %v6589_v33 = vsel %vm1027_vm11, 1.0, %v12907_v20  ;;  %vm1028_vm13 = vcmp.eq.s32.totalorder %v9301_v2, %v9406_v23  ;;  %v7873_v23 = vld [vmem:[%s12999_s29 + $0x10] sm:$0xff]  ;;  %v7984_v46 = vld [vmem:[#allocation2 + $0x34c] sm:$0xf] }
 0x3c7   :  { %v824_v56 = vmul.f32 0.6931472, %v8343_v29  ;;  %v790_v39 = vsel %vm789_vm1, %v787_v41, %v784_v49  ;;  %v8345_v55 = vpop.eup %8344  ;;  %v6594_v28 = vsel %vm1080_vm5, 1.0, %v12907_v20  ;;  %v6590_v22 = vsel %vm1028_vm13, 1.0, %v12907_v20  ;;  %v6823_v49 = vld [vmem:[#allocation2 + $0x364] sm:$0xf0] }
 0x3c8   :  { %v9431_v18 = vmul.f32 %v873_v8, %v9210_v12  ;;  %v9443_v12 = vmul.f32 %v871_v53, %v9198_v13  ;;  %v6598_v13 = vsel %vm1084_vm3, 1.0, %v12907_v20  ;;  %v1235_v43 = vsub.f32 %v6586_v10, %v6594_v28  ;;  %v6829_v8 = vld [vmem:[#allocation2 + $0x350] sm:$0xf]  ;;  %v7988_v31 = vld [vmem:[#allocation2 + $0x368] sm:$0xf0] }
 0x3c9   :  { %v830_v40 = vsel %vm829_vm2, %v827_v59, %v824_v56  ;;  %v1239_v52 = vsub.f32 %v6590_v22, %v6598_v13  ;;  %v886_v36 = vpack.c.bf16 %v879_v5, %v878_v63  ;;  %v888_v11 = vpack.c.bf16 %v883_v42, %v882_v58  ;;  %v6831_v41 = vld [vmem:[#allocation2 + $0x36c] sm:$0xf0]  ;;  %v7980_v59 = vld [vmem:[#allocation2 + $0x328] sm:$0xf0]  ;;  %v7981_v48 = vld [vmem:[#allocation2 + $0x330] sm:$0xf0] }
 0x3ca   :  { %v1061_v51 = vpop.permute.xlu1 %1060  ;;  %6616 = vmatmul.msk.f32.gmra.mxu0 %vm1101_vm6, %v1233_v37  ;;  %12995 = vst [vmem:[#allocation9_spill] sm:$0xff] %v9431_v18  ;;  %1138 = vmatpush.msra.mxu2 %v9431_v18  ;;  %v858_v34 = vsub.f32 %v790_v39, %v830_v40  ;;  %v887_v37 = vpack.c.bf16 %v881_v27, %v880_v16  ;;  %v6793_v56 = vld [vmem:[#allocation2 + $0x310] sm:$0xf]  ;;  %v7977_v40 = vld [vmem:[#allocation2 + $0x314] sm:$0xf]  ;;  %v885_v5 = vld [vmem:[%s13000_s12 + $0x38] sm:$0xff] }
 0x3cb   :  { %vm1079_vm0 = vcmp.eq.s32.totalorder %v9301_v2, %v1061_v51  ;;  %8167 = vmatpush.msra.mxu3 %v9431_v18  ;;  %12997 = vst [vmem:[#allocation11_spill] sm:$0xff] %v9443_v12  ;;  %v6822_v29 = vor.u32 %v7987_v44, %v6821_v26  ;;  %v7985_v51 = vld [vmem:[#allocation2 + $0x354] sm:$0xf]  ;;  %v6830_v53 = vor.u32 %v7988_v31, %v6829_v8  ;;  %v7959_v16 = vld [vmem:[#allocation2 + $0x280] sm:$0xf0] }
 0x3cc   :  { %v6593_v24 = vsel %vm1079_vm0, 1.0, %v12907_v20  ;;  %1139 = vmatpush.msra.mxu2 %v9437_v17  ;;  %v862_v0 = vmul.f32 0.5, %v858_v34  ;;  %v6794_v39 = vor.u32 %v7980_v59, %v6793_v56  ;;  %v6795_v34 = vld [vmem:[#allocation2 + $0x32c] sm:$0xf0]  ;;  %v7973_v3 = vld [vmem:[#allocation2 + $0x2f0] sm:$0xf0] }
 0x3cd   :  { %v1234_v61 = vsub.f32 %v9424_v50, %v6593_v24  ;;  %8168 = vmatpush.msra.mxu3 %v9437_v17  ;;  %v1073_v14 = vpop.permute.xlu0 %1072  ;;  %v7956_v58 = vld [vmem:[#allocation2 + $0x26c] sm:$0xf]  ;;  %v6711_v42 = vld [vmem:[#allocation2 + $0x284] sm:$0xf0]  ;;  %v6717_v26 = vld [vmem:[#allocation2 + $0x270] sm:$0xf] }
 0x3ce   :  { %1140 = vmatpush.msra.mxu2 %v9443_v12  ;;  %v870_v45 = vmul.f32 %v8345_v55, %v862_v0  ;;  %vm1083_vm12 = vcmp.eq.s32.totalorder %v9301_v2, %v1073_v14  ;;  %v6798_v55 = vor.u32 %v7977_v40, %v6795_v34  ;;  %v7978_v0 = vld [vmem:[#allocation2 + $0x31c] sm:$0xf]  ;;  %v6775_v14 = vld [vmem:[#allocation2 + $0x2fc] sm:$0xf0]  ;;  %v7960_v44 = vld [vmem:[#allocation2 + $0x288] sm:$0xf0] }
 0x3cf   :  { %8169 = vmatpush.msra.mxu3 %v9443_v12  ;;  %v6597_v15 = vsel %vm1083_vm12, 1.0, %v12907_v20  ;;  %v6683_v59 = vld [vmem:[#allocation2 + $0x24c] sm:$0xf0] }
 0x3d0   :  { %v9455_v9 = vmul.f32 %v870_v45, %v9216_v21  ;;  %v6587_v21 = vsel %vm1025_vm7, 1.0, %v12907_v20  ;;  %v1238_v19 = vsub.f32 %v6589_v33, %v6597_v15  ;;  %v6803_v45 = vld [vmem:[#allocation2 + $0x334] sm:$0xf0] }
 0x3d2   :  { %6617 = vmatmul.msk.f32.gmra.mxu0 %vm1101_vm6, %v1234_v61  ;;  %12998 = vst [vmem:[#allocation12_spill] sm:$0xff] %v9455_v9  ;;  %1141 = vmatpush.msra.mxu2 %v9455_v9  ;;  %v1070_v54 = vpop.permute.xlu1 %1069  ;;  %v6801_v61 = vld [vmem:[#allocation2 + $0x318] sm:$0xf] }
 0x3d3   :  { %8170 = vmatpush.msra.mxu3 %v9455_v9  ;;  %6599 = vmatmul.msk.f32.vlgmr.msra.gmra.mxu2 %vm1101_vm6, %v9393_v6  ;;  %v6595_v6 = vsel %vm1081_vm8, 1.0, %v12907_v20  ;;  %vm1082_vm9 = vcmp.eq.s32.totalorder %v9301_v2, %v1070_v54  ;;  %v6773_v54 = vld [vmem:[#allocation2 + $0x2e0] sm:$0xf] }
 0x3d4   :  { %6606 = vmatmul.msk.f32.vlgmr.msra.gmra.mxu3 %vm1101_vm6, %v6598_v13  ;;  %v1236_v25 = vsub.f32 %v6587_v21, %v6595_v6  ;;  %v6596_v4 = vsel %vm1082_vm9, 1.0, %v12907_v20  ;;  %1757 = vmatpush.bf16.msrb.mxu2 %v6822_v29  ;;  %v6802_v13 = vor.u32 %v7981_v48, %v6801_v61  ;;  %v7950_v61 = vld [vmem:[#allocation2 + $0x23c] sm:$0xf]  ;;  %v6653_v48 = vld [vmem:[#allocation2 + $0x1f8] sm:$0xf] }
 0x3d5   :  { %1203 = vmatpush.msrb.mxu3 %v9431_v18  ;;  %v8037_v18 = vld [vmem:[#allocation2 + $0x4f0] sm:$0xf0] }
 0x3d7   :  { %1204 = vmatpush.msrb.mxu3 %v9437_v17  ;;  %v8034_v17 = vld [vmem:[#allocation2 + $0x4dc] sm:$0xf] }
 0x3d8   :  { %1758 = vmatpush.bf16.msrb.mxu2 %v6794_v39  ;;  %v7953_v39 = vld [vmem:[#allocation2 + $0x250] sm:$0xf0] }
 0x3d9   :  { %1205 = vmatpush.msrb.mxu3 %v9443_v12 }
 0x3da   :  { %6618 = vmatmul.msk.f32.gmra.mxu0 %vm1101_vm6, %v1235_v43  ;;  %v7970_v43 = vld [vmem:[#allocation2 + $0x2dc] sm:$0xf] }
 0x3db   :  { %1206 = vmatpush.msrb.mxu3 %v9455_v9  ;;  %6600 = vmatmul.msk.f32.gmra.mxu2 %vm1101_vm6, %v9384_v57  ;;  %v6588_v57 = vsel %vm1026_vm10, 1.0, %v12907_v20  ;;  %v7287_v20 = vld [vmem:[#allocation2 + $0x534] sm:$0xf0] }
 0x3dc   :  { %6607 = vmatmul.msk.f32.vlgmr.msrb.gmra.mxu3 %vm1101_vm6, %v9327_v7  ;;  %v7878_v7 = vld [vmem:[%s12999_s29 + $0x38] sm:$0xff]  ;;  %v1237_v62 = vsub.f32 %v6588_v57, %v6596_v4 }
 0x3dd   :  { %958 = vmatpush.bf16.msra.mxu1 %v7878_v7  ;;  %v7251_v9 = vld [vmem:[#allocation2 + $0x4f4] sm:$0xf0] }
 0x3e1   :  { %959 = vmatpush.bf16.msra.mxu1 %v7877_v1  ;;  %v7963_v1 = vld [vmem:[#allocation2 + $0x2a4] sm:$0xf] }
 0x3e2   :  { %6619 = vmatmul.msk.f32.gmra.mxu0 %vm1101_vm6, %v1236_v25  ;;  %v7974_v25 = vld [vmem:[#allocation2 + $0x2f8] sm:$0xf0] }
 0x3e3   :  { %6601 = vmatmul.msk.f32.gmra.mxu2 %vm1101_vm6, %v6593_v24  ;;  %v6834_v24 = vor.u32 %v7985_v51, %v6831_v41  ;;  %v6774_v7 = vor.u32 %v7974_v25, %v6773_v54  ;;  %v6681_v51 = vld [vmem:[#allocation2 + $0x230] sm:$0xf]  ;;  %v7949_v41 = vld [vmem:[#allocation2 + $0x234] sm:$0xf] }
 0x3e4   :  { %6608 = vmatmul.msk.f32.gmra.mxu3 %vm1101_vm6, %v9414_v32  ;;  %v7871_v32 = vld [vmem:[%s12999_s29] sm:$0xff]  ;;  %v6686_v40 = vor.u32 %v7949_v41, %v6683_v59 }
 0x3e5   :  { %960 = vmatpush.bf16.msra.mxu1 %v7876_v47  ;;  %1844 = vmatpush.bf16.msra.mxu0 %v6834_v24  ;;  %v6739_v47 = vld [vmem:[#allocation2 + $0x2bc] sm:$0xf0]  ;;  %v6689_v24 = vld [vmem:[#allocation2 + $0x238] sm:$0xf]  ;;  %v7931_v59 = vld [vmem:[#allocation2 + $0x1a0] sm:$0xf0] }
 0x3e6   :  { %v6690_v34 = vor.u32 %v7953_v39, %v6689_v24 }
 0x3e9   :  { %961 = vmatpush.bf16.msra.mxu1 %v7875_v35  ;;  %v7967_v35 = vld [vmem:[#allocation2 + $0x2c0] sm:$0xf0] }
 0x3ea   :  { %6620 = vmatmul.msk.f32.gmra.mxu0 %vm1101_vm6, %v1237_v62 }
 0x3eb   :  { %6602 = vmatmul.msk.f32.gmra.mxu2 %vm1101_vm6, %v6594_v28  ;;  %v6765_v28 = vld [vmem:[#allocation2 + $0x2d8] sm:$0xf] }
 0x3ec   :  { %6609 = vmatmul.msk.f32.gmra.mxu3 %vm1101_vm6, %v9424_v50  ;;  %v6826_v50 = vor.u32 %v7984_v46, %v6823_v49  ;;  %v7957_v46 = vld [vmem:[#allocation2 + $0x274] sm:$0xf]  ;;  %v6719_v49 = vld [vmem:[#allocation2 + $0x28c] sm:$0xf0] }
 0x3ed   :  { %962 = vmatpush.bf16.msra.mxu1 %v7874_v30  ;;  %v6722_v8 = vor.u32 %v7957_v46, %v6719_v49  ;;  %v7989_v46 = vld [vmem:[#allocation2 + $0x370] sm:$0xf0]  ;;  %v7986_v49 = vld [vmem:[#allocation2 + $0x35c] sm:$0xf] }
 0x3ee   :  { %1786 = vmatpush.bf16.msra.mxu3 %v6826_v50  ;;  %v6718_v50 = vor.u32 %v7960_v44, %v6717_v26  ;;  %v6837_v44 = vld [vmem:[#allocation2 + $0x358] sm:$0xf] }
 0x3f1   :  { %963 = vmatpush.bf16.msra.mxu1 %v7873_v23  ;;  %v7964_v23 = vld [vmem:[#allocation2 + $0x2ac] sm:$0xf] }
 0x3f2   :  { %6621 = vmatmul.msk.f32.gmra.mxu0 %vm1101_vm6, %v1238_v19  ;;  %1787 = vmatpush.bf16.msra.mxu3 %v6798_v55  ;;  %v6691_v55 = vld [vmem:[#allocation2 + $0x254] sm:$0xf0] }
 0x3f3   :  { %6603 = vmatmul.msk.f32.gmra.mxu2 %vm1101_vm6, %v6595_v6  ;;  %v6767_v6 = vld [vmem:[#allocation2 + $0x2f4] sm:$0xf0] }
 0x3f4   :  { %6610 = vmatmul.msk.f32.gmra.mxu3 %vm1101_vm6, %v6586_v10  ;;  %v6806_v10 = vor.u32 %v7978_v0, %v6803_v45  ;;  %v6694_v0 = vor.u32 %v7950_v61, %v6691_v55  ;;  %v7945_v45 = vld [vmem:[#allocation2 + $0x210] sm:$0xf0]  ;;  %v7982_v61 = vld [vmem:[#allocation2 + $0x338] sm:$0xf0]  ;;  %v7979_v55 = vld [vmem:[#allocation2 + $0x324] sm:$0xf] }
 0x3f5   :  { %964 = vmatpush.bf16.msra.mxu1 %v7872_v60  ;;  %v6747_v60 = vld [vmem:[#allocation2 + $0x2c4] sm:$0xf0] }
 0x3f6   :  { %1845 = vmatpush.bf16.msra.mxu0 %v6806_v10  ;;  %v6750_v63 = vor.u32 %v7964_v23, %v6747_v60  ;;  %v6655_v10 = vld [vmem:[#allocation2 + $0x214] sm:$0xf0] }
 0x3f9   :  { %965 = vmatpush.bf16.msra.mxu1 %v7871_v32  ;;  %v884_v32 = vld [vmem:[%s13000_s12 + $0x30] sm:$0xff] }
 0x3fa   :  { %6622 = vmatmul.msk.f32.gmra.mxu0 %vm1101_vm6, %v1239_v52  ;;  %v6742_v52 = vor.u32 %v7963_v1, %v6739_v47  ;;  %v889_v27 = vpack.c.bf16 %v885_v5, %v884_v32  ;;  %v6627_v1 = vld [vmem:[#allocation2 + $0x1dc] sm:$0xf0]  ;;  %v7939_v47 = vld [vmem:[#allocation2 + $0x1e0] sm:$0xf0] }
 0x3fb   :  { %6604 = vmatmul.msk.f32.gmra.mxu2 %vm1101_vm6, %v6596_v4  ;;  %v6770_v4 = vor.u32 %v7970_v43, %v6767_v6  ;;  %v6661_v43 = vld [vmem:[#allocation2 + $0x200] sm:$0xf]  ;;  %v7943_v6 = vld [vmem:[#allocation2 + $0x204] sm:$0xf] }
 0x3fc   :  { %6611 = vmatmul.msk.f32.gmra.mxu3 %vm1101_vm6, %v6587_v21  ;;  %966 = vmatmul.bf16.vlgmr.msra.gmra.mxu1 %v886_v36  ;;  %v6766_v21 = vor.u32 %v7973_v3, %v6765_v28  ;;  %v6709_v36 = vld [vmem:[#allocation2 + $0x268] sm:$0xf]  ;;  %v6654_v28 = vor.u32 %v7945_v45, %v6653_v48 }
 0x3fd   :  { %1815 = vmatpush.bf16.msrb.mxu1 %v6830_v53  ;;  %1788 = vmatpush.bf16.msra.mxu3 %v6770_v4  ;;  %v7952_v53 = vld [vmem:[#allocation2 + $0x248] sm:$0xf0]  ;;  %v6663_v4 = vld [vmem:[#allocation2 + $0x21c] sm:$0xf0]  ;;  %v6817_v45 = vld [vmem:[#allocation2 + $0x328] sm:$0xf] }
 0x3fe   :  { %1759 = vmatpush.bf16.msrb.mxu2 %v6766_v21  ;;  %v6682_v56 = vor.u32 %v7952_v53, %v6681_v51  ;;  %v7946_v21 = vld [vmem:[#allocation2 + $0x218] sm:$0xf0] }
 0x3ff   :  { %v6662_v25 = vor.u32 %v7946_v21, %v6661_v43  ;;  %v7924_v43 = vld [vmem:[#allocation2 + $0x168] sm:$0xf0] }
 0x401   :  { %1816 = vmatpush.bf16.msrb.mxu1 %v6802_v13  ;;  %1789 = vmatpush.bf16.msra.mxu3 %v6742_v52  ;;  %v7942_v13 = vld [vmem:[#allocation2 + $0x1fc] sm:$0xf]  ;;  %v7936_v52 = vld [vmem:[#allocation2 + $0x1cc] sm:$0xf] }
 0x402   :  { %v6658_v3 = vor.u32 %v7942_v13, %v6655_v10  ;;  %v7983_v13 = vld [vmem:[#allocation2 + $0x340] sm:$0xf0] }
 0x403   :  { %6605 = vmatmul.msk.f32.gmra.mxu2 %vm1101_vm6, %v6597_v15  ;;  %v7966_v15 = vld [vmem:[#allocation2 + $0x2b8] sm:$0xf0] }
 0x404   :  { %6612 = vmatmul.msk.f32.gmra.mxu3 %vm1101_vm6, %v6588_v57  ;;  %v7971_v57 = vld [vmem:[#allocation2 + $0x2e4] sm:$0xf] }
 0x405   :  { %v6778_v62 = vor.u32 %v7971_v57, %v6775_v14  ;;  %1817 = vmatpush.bf16.msrb.mxu1 %v6774_v7  ;;  %v6666_v57 = vor.u32 %v7943_v6, %v6663_v4  ;;  %v6625_v14 = vld [vmem:[#allocation2 + $0x1c0] sm:$0xf]  ;;  %v6781_v6 = vld [vmem:[#allocation2 + $0x2e8] sm:$0xf] }
 0x407   :  { %1846 = vmatpush.bf16.msra.mxu0 %v6778_v62  ;;  %v7938_v62 = vld [vmem:[#allocation2 + $0x1d8] sm:$0xf0] }
 0x40b   :  { %1847 = vmatpush.bf16.msra.mxu0 %v6750_v63 }
 0x40c   :  { %6613 = vmatmul.msk.f32.gmra.mxu3 %vm1101_vm6, %v6589_v33  ;;  %971 = vmatmul.bf16.gmra.mxu1 %v887_v37  ;;  %v6737_v33 = vld [vmem:[#allocation2 + $0x2a0] sm:$0xf]  ;;  %v6710_v37 = vor.u32 %v7959_v16, %v6709_v36 }
 0x40d   :  { %v6738_v19 = vor.u32 %v7966_v15, %v6737_v33  ;;  %v7935_v33 = vld [vmem:[#allocation2 + $0x1c4] sm:$0xf]  ;;  %v6626_v15 = vor.u32 %v7938_v62, %v6625_v14  ;;  %v7976_v14 = vld [vmem:[#allocation2 + $0x308] sm:$0xf0] }
 0x40f   :  { %1760 = vmatpush.bf16.msrb.mxu2 %v6738_v19  ;;  %1848 = vmatpush.bf16.msra.mxu0 %v6722_v8  ;;  %v6633_v19 = vld [vmem:[#allocation2 + $0x1c8] sm:$0xf]  ;;  %v6845_v8 = vld [vmem:[#allocation2 + $0x360] sm:$0xf] }
 0x413   :  { %1761 = vmatpush.bf16.msrb.mxu2 %v6710_v37  ;;  %1849 = vmatpush.bf16.msra.mxu0 %v6694_v0  ;;  %v6811_v0 = vld [vmem:[#allocation2 + $0x33c] sm:$0xf0] }
 0x414   :  { %6614 = vmatmul.msk.f32.gmra.mxu3 %vm1101_vm6, %v6590_v22  ;;  %v6745_v22 = vld [vmem:[#allocation2 + $0x2a8] sm:$0xf]  ;;  %v6814_v10 = vor.u32 %v7979_v55, %v6811_v0  ;;  %v7955_v0 = vld [vmem:[#allocation2 + $0x260] sm:$0xf0] }
 0x415   :  { %v6746_v30 = vor.u32 %v7967_v35, %v6745_v22  ;;  %v6630_v22 = vor.u32 %v7935_v33, %v6627_v1  ;;  %v6634_v35 = vor.u32 %v7939_v47, %v6633_v19  ;;  %v7917_v1 = vld [vmem:[#allocation2 + $0x130] sm:$0xf0] }
 0x417   :  { %1818 = vmatpush.bf16.msrb.mxu1 %v6746_v30  ;;  %1762 = vmatpush.bf16.msrb.mxu2 %v6682_v56  ;;  %v6635_v30 = vld [vmem:[#allocation2 + $0x1e4] sm:$0xf0] }
 0x418   :  { %1850 = vmatpush.bf16.msra.mxu0 %v6666_v57  ;;  %v6638_v23 = vor.u32 %v7936_v52, %v6635_v30  ;;  %v7045_v56 = vld [vmem:[#allocation2 + $0x188] sm:$0xf]  ;;  %v6789_v57 = vld [vmem:[#allocation2 + $0x2f0] sm:$0xf] }
 0x419   :  { %v7046_v39 = vor.u32 %v7931_v59, %v7045_v56  ;;  %v6790_v33 = vor.u32 %v7976_v14, %v6789_v57  ;;  %v6753_v30 = vld [vmem:[#allocation2 + $0x2b0] sm:$0xf]  ;;  %v6933_v56 = vld [vmem:[#allocation2 + $0xa8] sm:$0xf]  ;;  %v7903_v59 = vld [vmem:[#allocation2 + $0xc0] sm:$0xf0] }
 0x41a   :  { %v7948_v57 = vld [vmem:[#allocation2 + $0x228] sm:$0xf0] }
 0x41b   :  { %1819 = vmatpush.bf16.msrb.mxu1 %v6718_v50  ;;  %1763 = vmatpush.bf16.msrb.mxu2 %v6654_v28  ;;  %v6839_v50 = vld [vmem:[#allocation2 + $0x374] sm:$0xf0]  ;;  %v6818_v28 = vor.u32 %v7983_v13, %v6817_v45  ;;  %v6905_v45 = vld [vmem:[#allocation2 + $0x70] sm:$0xf]  ;;  %v6011_v13 = vld [vmem:[%s13001_s9 + $0x8] sm:$0xff] }
 0x41c   :  { %976 = vmatmul.bf16.gmra.mxu1 %v888_v11  ;;  %v6714_v11 = vor.u32 %v7956_v58, %v6711_v42  ;;  %1851 = vmatpush.bf16.msra.mxu0 %v6638_v23  ;;  %v6842_v53 = vor.u32 %v7986_v49, %v6839_v50  ;;  %v7968_v23 = vld [vmem:[#allocation2 + $0x2c8] sm:$0xf0]  ;;  %v7961_v49 = vld [vmem:[#allocation2 + $0x290] sm:$0xf0] }
 0x41e   :  { %1790 = vmatpush.bf16.msra.mxu3 %v6714_v11 }
 0x41f   :  { %1820 = vmatpush.bf16.msrb.mxu1 %v6690_v34  ;;  %1764 = vmatpush.bf16.msrb.mxu2 %v6626_v15  ;;  %v6809_v34 = vld [vmem:[#allocation2 + $0x320] sm:$0xf]  ;;  %v6989_v15 = vld [vmem:[#allocation2 + $0x118] sm:$0xf] }
 0x420   :  { %2248 = vmatpush.bf16.msrb.mxu0 %v7046_v39  ;;  %v6810_v48 = vor.u32 %v7982_v61, %v6809_v34  ;;  %v6990_v47 = vor.u32 %v7917_v1, %v6989_v15  ;;  %v6934_v39 = vor.u32 %v7903_v59, %v6933_v56  ;;  %v7951_v34 = vld [vmem:[#allocation2 + $0x244] sm:$0xf]  ;;  %v6699_v61 = vld [vmem:[#allocation2 + $0x25c] sm:$0xf0]  ;;  %v6877_v15 = vld [vmem:[#allocation2 + $0x38] sm:$0xf] }
 0x421   :  { %v7889_v1 = vld [vmem:[#allocation2 + $0x50] sm:$0xf0]  ;;  %v7928_v56 = vld [vmem:[#allocation2 + $0x18c] sm:$0xf]  ;;  %v7047_v59 = vld [vmem:[#allocation2 + $0x1a4] sm:$0xf0] }
 0x422   :  { %1791 = vmatpush.bf16.msra.mxu3 %v6686_v40 }
 0x423   :  { %1821 = vmatpush.bf16.msrb.mxu1 %v6662_v25  ;;  %v7972_v25 = vld [vmem:[#allocation2 + $0x2ec] sm:$0xf] }
 0x426   :  { %1792 = vmatpush.bf16.msra.mxu3 %v6658_v3  ;;  %v7017_v3 = vld [vmem:[#allocation2 + $0x150] sm:$0xf] }
 0x427   :  { %1822 = vmatpush.bf16.msrb.mxu1 %v6634_v35  ;;  %v7018_v21 = vor.u32 %v7924_v43, %v7017_v3  ;;  %v6702_v3 = vor.u32 %v7951_v34, %v6699_v61  ;;  %v7932_v34 = vld [vmem:[#allocation2 + $0x1a8] sm:$0xf0]  ;;  %v7929_v61 = vld [vmem:[#allocation2 + $0x194] sm:$0xf] }
 0x429   :  { %2249 = vmatpush.bf16.msrb.mxu0 %v7018_v21  ;;  %v6669_v21 = vld [vmem:[#allocation2 + $0x208] sm:$0xf] }
 0x42a   :  { %1793 = vmatpush.bf16.msra.mxu3 %v6630_v22 }
 0x42c   :  { %981 = vmatmul.bf16.gmra.mxu1 %v889_v27 }
 0x42d   :  { %2250 = vmatpush.bf16.msrb.mxu0 %v6990_v47  ;;  %v7940_v47 = vld [vmem:[#allocation2 + $0x1e8] sm:$0xf0] }
 0x42e   :  { %1902 = vmatpush.bf16.msrb.mxu3 %v6842_v53 }
 0x432   :  { %1903 = vmatpush.bf16.msrb.mxu3 %v6814_v10 }
 0x43f   :  { %v1285_v29 = vpop.f32.mrf.mxu0 }
 0x440   :  { %v1309_v31 = vmul.f32 %v1285_v29, %v1285_v29  ;;  %v6838_v29 = vor.u32 %v7989_v46, %v6837_v44  ;;  %v6725_v46 = vld [vmem:[#allocation2 + $0x278] sm:$0xf] }
 0x441   :  { %v6726_v50 = vor.u32 %v7961_v49, %v6725_v46 }
 0x442   :  { %1317 = vadd.xlane.f32.xlu2 %v1309_v31  ;;  %v7990_v31 = vld [vmem:[#allocation2 + $0x378] sm:$0xf0]  ;;  %1873 = vmatpush.bf16.msra.mxu2 %v6838_v29 }
 0x443   :  { %v6846_v41 = vor.u32 %v7990_v31, %v6845_v8  ;;  %v7958_v29 = vld [vmem:[#allocation2 + $0x27c] sm:$0xf]  ;;  %v6727_v8 = vld [vmem:[#allocation2 + $0x294] sm:$0xf0]  ;;  %v6733_v31 = vld [vmem:[#allocation2 + $0x280] sm:$0xf] }
 0x444   :  { %v6730_v53 = vor.u32 %v7958_v29, %v6727_v8 }
 0x445   :  { %1931 = vmatpush.bf16.msra.mxu1 %v6846_v41 }
 0x446   :  { %1874 = vmatpush.bf16.msra.mxu2 %v6810_v48  ;;  %v6705_v48 = vld [vmem:[#allocation2 + $0x248] sm:$0xf] }
 0x447   :  { %v1288_v54 = vpop.f32.mrf.mxu0  ;;  %v6706_v43 = vor.u32 %v7955_v0, %v6705_v48 }
 0x448   :  { %v1310_v7 = vmul.f32 %v1288_v54, %v1288_v54  ;;  %v7975_v54 = vld [vmem:[#allocation2 + $0x300] sm:$0xf0] }
 0x449   :  { %1932 = vmatpush.bf16.msra.mxu1 %v6818_v28  ;;  %v6782_v4 = vor.u32 %v7975_v54, %v6781_v6  ;;  %v7896_v28 = vld [vmem:[#allocation2 + $0x88] sm:$0xf0]  ;;  %v7947_v6 = vld [vmem:[#allocation2 + $0x220] sm:$0xf0] }
 0x44a   :  { %1319 = vadd.xlane.f32.xlu1 %v1310_v7  ;;  %v6783_v7 = vld [vmem:[#allocation2 + $0x304] sm:$0xf0]  ;;  %v7944_v54 = vld [vmem:[#allocation2 + $0x20c] sm:$0xf]  ;;  %v6670_v14 = vor.u32 %v7947_v6, %v6669_v21 }
 0x44b   :  { %v6786_v62 = vor.u32 %v7972_v25, %v6783_v7  ;;  %1875 = vmatpush.bf16.msra.mxu2 %v6782_v4  ;;  %v6906_v25 = vor.u32 %v7896_v28, %v6905_v45  ;;  %v6671_v4 = vld [vmem:[#allocation2 + $0x224] sm:$0xf0]  ;;  %v6677_v7 = vld [vmem:[#allocation2 + $0x210] sm:$0xf]  ;;  %v7061_v45 = vld [vmem:[#allocation2 + $0x198] sm:$0xf] }
 0x44d   :  { %1904 = vmatpush.bf16.msrb.mxu3 %v6786_v62  ;;  %1933 = vmatpush.bf16.msra.mxu1 %v6790_v33  ;;  %v6674_v62 = vor.u32 %v7944_v54, %v6671_v4  ;;  %v6678_v33 = vor.u32 %v7948_v57, %v6677_v7  ;;  %v7922_v54 = vld [vmem:[#allocation2 + $0x15c] sm:$0xf]  ;;  %v7033_v4 = vld [vmem:[#allocation2 + $0x160] sm:$0xf] }
 0x44e   :  { %v7926_v57 = vld [vmem:[#allocation2 + $0x178] sm:$0xf0] }
 0x44f   :  { %v1291_v60 = vpop.f32.mrf.mxu0 }
 0x450   :  { %v1311_v32 = vmul.f32 %v1291_v60, %v1291_v60  ;;  %v7965_v60 = vld [vmem:[#allocation2 + $0x2b4] sm:$0xf] }
 0x452   :  { %1321 = vadd.xlane.f32.xlu0 %v1311_v32  ;;  %v6754_v32 = vor.u32 %v7968_v23, %v6753_v30  ;;  %v6649_v23 = vld [vmem:[#allocation2 + $0x1d8] sm:$0xf] }
 0x454   :  { %1876 = vmatpush.bf16.msra.mxu2 %v6754_v32 }
 0x456   :  { %v1143_v49 = vpop.f32.mrf.mxu2 }
 0x457   :  { %v1294_v63 = vpop.f32.mrf.mxu0  ;;  %v9557_v36 = vpop.f32.mrf.mxu3 }
 0x458   :  { %v1312_v5 = vmul.f32 %v1294_v63, %v1294_v63  ;;  %v6755_v63 = vld [vmem:[#allocation2 + $0x2cc] sm:$0xf0]  ;;  %1877 = vmatpush.bf16.msra.mxu2 %v6726_v50 }
 0x45a   :  { %1323 = vadd.xlane.f32.xlu2 %v1312_v5  ;;  %v6761_v5 = vld [vmem:[#allocation2 + $0x2b8] sm:$0xf] }
 0x45f   :  { %v1297_v16 = vpop.f32.mrf.mxu0  ;;  %v1208_v37 = vpop.f32.mrf.mxu3 }
 0x460   :  { %v1313_v27 = vmul.f32 %v1297_v16, %v1297_v16  ;;  %v7969_v16 = vld [vmem:[#allocation2 + $0x2d0] sm:$0xf0] }
 0x462   :  { %1325 = vadd.xlane.f32.xlu1 %v1313_v27  ;;  %v6758_v27 = vor.u32 %v7965_v60, %v6755_v63  ;;  %v7941_v60 = vld [vmem:[#allocation2 + $0x1f0] sm:$0xf0]  ;;  %v6878_v63 = vor.u32 %v7889_v1, %v6877_v15  ;;  %v6997_v15 = vld [vmem:[#allocation2 + $0x120] sm:$0xf]  ;;  %v7918_v1 = vld [vmem:[#allocation2 + $0x138] sm:$0xf0] }
 0x464   :  { %1905 = vmatpush.bf16.msrb.mxu3 %v6758_v27 }
 0x467   :  { %v1300_v58 = vpop.f32.mrf.mxu0  ;;  %v1211_v26 = vpop.f32.mrf.mxu3 }
 0x468   :  { %v1314_v42 = vmul.f32 %v1300_v58, %v1300_v58  ;;  %v9559_v11 = vpack.c.bf16 %v1211_v26, %v1208_v37  ;;  %v6762_v37 = vor.u32 %v7969_v16, %v6761_v5  ;;  %v6961_v58 = vld [vmem:[#allocation2 + $0xe0] sm:$0xf]  ;;  %1906 = vmatpush.bf16.msrb.mxu3 %v6730_v53  ;;  %v6013_v5 = vld [vmem:[%s13001_s9 + $0x18] sm:$0xff] }
 0x469   :  { %v6010_v26 = vld [vmem:[%s13001_s9] sm:$0xff] }
 0x46a   :  { %1327 = vadd.xlane.f32.xlu2 %v1314_v42  ;;  %1765 = vmatmul.bf16.vlgmr.msrb.gmra.mxu2 %v9559_v11  ;;  %v7910_v42 = vld [vmem:[#allocation2 + $0xf8] sm:$0xf0] }
 0x46b   :  { %1794 = vmatmul.bf16.vlgmr.msra.gmra.mxu3 %v9559_v11  ;;  %1823 = vmatmul.bf16.vlgmr.msrb.gmra.mxu1 %v9559_v11  ;;  %v6962_v44 = vor.u32 %v7910_v42, %v6961_v58  ;;  %v7882_v58 = vld [vmem:[#allocation2 + $0x18] sm:$0xf0]  ;;  %v6650_v42 = vor.u32 %v7941_v60, %v6649_v23  ;;  %v7919_v23 = vld [vmem:[#allocation2 + $0x140] sm:$0xf0]  ;;  %v6998_v60 = vor.u32 %v7918_v1, %v6997_v15  ;;  %v6879_v15 = vld [vmem:[#allocation2 + $0x54] sm:$0xf0] }
 0x46c   :  { %1852 = vmatmul.bf16.vlgmr.msra.gmra.mxu0 %v9559_v11  ;;  %1934 = vmatpush.bf16.msra.mxu1 %v6762_v37  ;;  %v6849_v37 = vld [vmem:[#allocation2] sm:$0xf] }
 0x46d   :  { %2251 = vmatpush.bf16.msrb.mxu0 %v6962_v44  ;;  %1907 = vmatpush.bf16.msrb.mxu3 %v6702_v3  ;;  %v6012_v44 = vld [vmem:[%s13001_s9 + $0x10] sm:$0xff] }
 0x46e   :  { %v7019_v3 = vld [vmem:[#allocation2 + $0x16c] sm:$0xf0] }
 0x46f   :  { %v1303_v51 = vpop.f32.mrf.mxu0  ;;  %v1214_v40 = vpop.f32.mrf.mxu3 }
 0x470   :  { %v1315_v24 = vmul.f32 %v1303_v51, %v1303_v51  ;;  %v7962_v51 = vld [vmem:[#allocation2 + $0x298] sm:$0xf0] }
 0x471   :  { %v6734_v41 = vor.u32 %v7962_v51, %v6733_v31  ;;  %2252 = vmatpush.bf16.msrb.mxu0 %v6934_v39  ;;  %1908 = vmatpush.bf16.msrb.mxu3 %v6674_v62  ;;  %v1146_v31 = vpop.f32.mrf.mxu2  ;;  %v6991_v62 = vld [vmem:[#allocation2 + $0x134] sm:$0xf0] }
 0x472   :  { %1329 = vadd.xlane.f32.xlu0 %v1315_v24  ;;  %v6697_v24 = vld [vmem:[#allocation2 + $0x240] sm:$0xf] }
 0x473   :  { %1935 = vmatpush.bf16.msra.mxu1 %v6734_v41  ;;  %v9601_v41 = vpack.c.bf16 %v1146_v31, %v1143_v49  ;;  %v7912_v49 = vld [vmem:[#allocation2 + $0x108] sm:$0xf0] }
 0x475   :  { %2253 = vmatpush.bf16.msrb.mxu0 %v6906_v25  ;;  %v7027_v25 = vld [vmem:[#allocation2 + $0x174] sm:$0xf0] }
 0x476   :  { %v7030_v7 = vor.u32 %v7922_v54, %v7027_v25  ;;  %v7894_v54 = vld [vmem:[#allocation2 + $0x7c] sm:$0xf]  ;;  %v6915_v25 = vld [vmem:[#allocation2 + $0x94] sm:$0xf0] }
 0x477   :  { %v1306_v19 = vpop.f32.mrf.mxu0  ;;  %v1217_v35 = vpop.f32.mrf.mxu3  ;;  %1936 = vmatpush.bf16.msra.mxu1 %v6706_v43  ;;  %v7925_v43 = vld [vmem:[#allocation2 + $0x170] sm:$0xf0]  ;;  %v6918_v1 = vor.u32 %v7894_v54, %v6915_v25 }
 0x478   :  { %v1316_v22 = vmul.f32 %v1306_v19, %v1306_v19  ;;  %v9565_v52 = vpack.c.bf16 %v1217_v35, %v1214_v40  ;;  %v7954_v40 = vld [vmem:[#allocation2 + $0x258] sm:$0xf0]  ;;  %v6641_v19 = vld [vmem:[#allocation2 + $0x1d0] sm:$0xf] }
 0x479   :  { %v6698_v10 = vor.u32 %v7954_v40, %v6697_v24  ;;  %v6643_v35 = vld [vmem:[#allocation2 + $0x1ec] sm:$0xf0]  ;;  %v6642_v16 = vor.u32 %v7940_v47, %v6641_v19  ;;  %2254 = vmatpush.bf16.msrb.mxu0 %v6878_v63  ;;  %v9591_v8 = vpop.f32.mrf.mxu1  ;;  %v9599_v53 = vpop.f32.mrf.mxu2  ;;  %v7050_v40 = vor.u32 %v7928_v56, %v7047_v59  ;;  %v7915_v19 = vld [vmem:[#allocation2 + $0x124] sm:$0xf] }
 0x47a   :  { %1331 = vadd.xlane.f32.xlu1 %v1316_v22  ;;  %1770 = vmatmul.bf16.gmra.mxu2 %v9565_v52  ;;  %v7937_v22 = vld [vmem:[#allocation2 + $0x1d4] sm:$0xf]  ;;  %v7053_v24 = vld [vmem:[#allocation2 + $0x190] sm:$0xf] }
 0x47b   :  { %1799 = vmatmul.bf16.gmra.mxu3 %v9565_v52  ;;  %1828 = vmatmul.bf16.gmra.mxu1 %v9565_v52  ;;  %v6646_v27 = vor.u32 %v7937_v22, %v6643_v35  ;;  %v7054_v48 = vor.u32 %v7932_v34, %v7053_v24  ;;  %v6999_v35 = vld [vmem:[#allocation2 + $0x13c] sm:$0xf0]  ;;  %v6935_v34 = vld [vmem:[#allocation2 + $0xc4] sm:$0xf0] }
 0x47c   :  { %1857 = vmatmul.bf16.gmra.mxu0 %v9565_v52  ;;  %1878 = vmatpush.bf16.msra.mxu2 %v6698_v10  ;;  %v7921_v10 = vld [vmem:[#allocation2 + $0x154] sm:$0xf]  ;;  %v7002_v63 = vor.u32 %v7915_v19, %v6999_v35  ;;  %v7887_v35 = vld [vmem:[#allocation2 + $0x44] sm:$0xf] }
 0x47d   :  { %1937 = vmatpush.bf16.msra.mxu1 %v6678_v33  ;;  %1909 = vmatpush.bf16.msrb.mxu3 %v6646_v27  ;;  %v7022_v21 = vor.u32 %v7921_v10, %v7019_v3  ;;  %v7034_v33 = vor.u32 %v7926_v57, %v7033_v4  ;;  %v6963_v27 = vld [vmem:[#allocation2 + $0xfc] sm:$0xf0]  ;;  %v7905_v3 = vld [vmem:[#allocation2 + $0xd0] sm:$0xf0] }
 0x47e   :  { %v6921_v4 = vld [vmem:[#allocation2 + $0x80] sm:$0xf] }
 0x47f   :  { %v1220_v55 = vpop.f32.mrf.mxu3 }
 0x480   :  { %1879 = vmatpush.bf16.msra.mxu2 %v6670_v14  ;;  %v7914_v14 = vld [vmem:[#allocation2 + $0x11c] sm:$0xf] }
 0x481   :  { %1938 = vmatpush.bf16.msra.mxu1 %v6650_v42  ;;  %v9597_v51 = vpop.f32.mrf.mxu1  ;;  %2306 = vmatpush.bf16.msra.mxu3 %v7054_v48  ;;  %v1152_v47 = vpop.f32.mrf.mxu2  ;;  %v6994_v22 = vor.u32 %v7914_v14, %v6991_v62  ;;  %v7908_v42 = vld [vmem:[#allocation2 + $0xec] sm:$0xf]  ;;  %v7898_v62 = vld [vmem:[#allocation2 + $0x98] sm:$0xf0] }
 0x482   :  { %6015 = vperm.xlu2 %8191, %v6010_v26   ;;  %v6850_v26 = vor.u32 %v7882_v58, %v6849_v37  ;;  %v6969_v37 = vld [vmem:[#allocation2 + $0xe8] sm:$0xf]  ;;  %v7911_v58 = vld [vmem:[#allocation2 + $0x100] sm:$0xf0]  ;;  %v9612_v56 = vpack.c.bf16 %v1152_v47, %v9599_v53  ;;  %v7901_v53 = vld [vmem:[#allocation2 + $0xb4] sm:$0xf]  ;;  %v6922_v19 = vor.u32 %v7898_v62, %v6921_v4 }
 0x483   :  { %v6970_v31 = vor.u32 %v7911_v58, %v6969_v37  ;;  %v6885_v47 = vld [vmem:[#allocation2 + $0x40] sm:$0xf]  ;;  %v7879_v58 = vld [vmem:[#allocation2 + $0x4] sm:$0xf]  ;;  %v8040_v4 = vld [vmem:[#allocation2 + $0x50c] sm:$0xf] }
 0x484   :  { %1880 = vmatpush.bf16.msra.mxu2 %v6642_v16  ;;  %2255 = vmatpush.bf16.msrb.mxu0 %v6850_v26  ;;  %v7907_v16 = vld [vmem:[#allocation2 + $0xe4] sm:$0xf] }
 0x486   :  { %6018 = vperm.xlu0 %8192, %v6011_v13   ;;  %v7933_v13 = vld [vmem:[#allocation2 + $0x1b0] sm:$0xf0] }
 0x487   :  { %v1223_v30 = vpop.f32.mrf.mxu3  ;;  %v7062_v28 = vor.u32 %v7933_v13, %v7061_v45  ;;  %v6943_v45 = vld [vmem:[#allocation2 + $0xcc] sm:$0xf0] }
 0x488   :  { %v9577_v32 = vpack.c.bf16 %v1223_v30, %v1220_v55  ;;  %v7055_v55 = vld [vmem:[#allocation2 + $0x1ac] sm:$0xf0]  ;;  %2277 = vmatpush.bf16.msrb.mxu2 %v7050_v40  ;;  %v7005_v30 = vld [vmem:[#allocation2 + $0x128] sm:$0xf]  ;;  %v7900_v40 = vld [vmem:[#allocation2 + $0xac] sm:$0xf]  ;;  %v6946_v10 = vor.u32 %v7901_v53, %v6943_v45 }
 0x489   :  { %v9607_v39 = vpop.f32.mrf.mxu1  ;;  %v7058_v0 = vor.u32 %v7929_v61, %v7055_v55  ;;  %2364 = vmatpush.bf16.msra.mxu0 %v7062_v28  ;;  %v6941_v61 = vld [vmem:[#allocation2 + $0xb0] sm:$0xf]  ;;  %v1155_v55 = vpop.f32.mrf.mxu2  ;;  %v6938_v48 = vor.u32 %v7900_v40, %v6935_v34  ;;  %v6949_v28 = vld [vmem:[#allocation2 + $0xb8] sm:$0xf] }
 0x48a   :  { %1775 = vmatmul.bf16.gmra.mxu2 %v9577_v32 }
 0x48b   :  { %1804 = vmatmul.bf16.gmra.mxu3 %v9577_v32  ;;  %1833 = vmatmul.bf16.gmra.mxu1 %v9577_v32 }
 0x48c   :  { %1862 = vmatmul.bf16.gmra.mxu0 %v9577_v32  ;;  %2335 = vmatpush.bf16.msrb.mxu1 %v7058_v0  ;;  %v7904_v0 = vld [vmem:[#allocation2 + $0xc8] sm:$0xf0] }
 0x48d   :  { %2278 = vmatpush.bf16.msrb.mxu2 %v7022_v21  ;;  %2365 = vmatpush.bf16.msra.mxu0 %v7034_v33  ;;  %v6942_v13 = vor.u32 %v7904_v0, %v6941_v61  ;;  %v6913_v21 = vld [vmem:[#allocation2 + $0x78] sm:$0xf]  ;;  %v7886_v33 = vld [vmem:[#allocation2 + $0x3c] sm:$0xf]  ;;  %v6865_v61 = vld [vmem:[#allocation2 + $0x10] sm:$0xf] }
 0x48e   :  { %6024 = vperm.xlu0 %8192, %v6013_v5   ;;  %v7006_v5 = vor.u32 %v7919_v23, %v7005_v30  ;;  %v6887_v30 = vld [vmem:[#allocation2 + $0x5c] sm:$0xf0]  ;;  %v6893_v23 = vld [vmem:[#allocation2 + $0x48] sm:$0xf] }
 0x48f   :  { %v1226_v46 = vpop.f32.mrf.mxu3 }
 0x490   :  { %2336 = vmatpush.bf16.msrb.mxu1 %v7030_v7 }
 0x491   :  { %v9609_v26 = vpop.f32.mrf.mxu1  ;;  %2279 = vmatpush.bf16.msrb.mxu2 %v6994_v22  ;;  %2366 = vmatpush.bf16.msra.mxu0 %v7006_v5  ;;  %v7890_v22 = vld [vmem:[#allocation2 + $0x58] sm:$0xf0]  ;;  %v1158_v37 = vpop.f32.mrf.mxu2 }
 0x492   :  { %v6886_v5 = vor.u32 %v7890_v22, %v6885_v47  ;;  %v7927_v22 = vld [vmem:[#allocation2 + $0x180] sm:$0xf0] }
 0x493   :  { %6021 = vperm.xlu1 %8190, %v6012_v44   ;;  %v6971_v44 = vld [vmem:[#allocation2 + $0x104] sm:$0xf0] }
 0x494   :  { %2337 = vmatpush.bf16.msrb.mxu1 %v7002_v63  ;;  %v6974_v59 = vor.u32 %v7908_v42, %v6971_v44  ;;  %v6882_v63 = vor.u32 %v7886_v33, %v6879_v15  ;;  %v6851_v42 = vld [vmem:[#allocation2 + $0x1c] sm:$0xf0]  ;;  %v6857_v44 = vld [vmem:[#allocation2 + $0x8] sm:$0xf]  ;;  %v7923_v15 = vld [vmem:[#allocation2 + $0x164] sm:$0xf] }
 0x497   :  { %v1229_v29 = vpop.f32.mrf.mxu3 }
 0x498   :  { %v9589_v50 = vpack.c.bf16 %v1229_v29, %v1226_v46  ;;  %v6977_v46 = vld [vmem:[#allocation2 + $0xf0] sm:$0xf]  ;;  %v6966_v29 = vor.u32 %v7907_v16, %v6963_v27  ;;  %2338 = vmatpush.bf16.msrb.mxu1 %v6974_v59  ;;  %v6890_v16 = vor.u32 %v7887_v35, %v6887_v30  ;;  %v6859_v59 = vld [vmem:[#allocation2 + $0x24] sm:$0xf0]  ;;  %v8036_v30 = vld [vmem:[#allocation2 + $0x4e8] sm:$0xf0] }
 0x499   :  { %v6978_v24 = vor.u32 %v7912_v49, %v6977_v46  ;;  %v9618_v7 = vpop.f32.mrf.mxu1  ;;  %v9620_v46 = vpack.c.bf16 %v1158_v37, %v1155_v55  ;;  %v6854_v49 = vor.u32 %v7879_v58, %v6851_v42  ;;  %v1161_v53 = vpop.f32.mrf.mxu2  ;;  %v7241_v35 = vld [vmem:[#allocation2 + $0x4d0] sm:$0xf]  ;;  %v7007_v37 = vld [vmem:[#allocation2 + $0x144] sm:$0xf0]  ;;  %v7920_v42 = vld [vmem:[#allocation2 + $0x148] sm:$0xf0] }
 0x49a   :  { %1780 = vmatmul.bf16.gmra.mxu2 %v9589_v50  ;;  %v9631_v45 = vpack.c.bf16 %v9557_v36, %v1161_v53  ;;  %v7930_v36 = vld [vmem:[#allocation2 + $0x19c] sm:$0xf]  ;;  %v7013_v58 = vld [vmem:[#allocation2 + $0x130] sm:$0xf] }
 0x49b   :  { %1809 = vmatmul.bf16.gmra.mxu3 %v9589_v50  ;;  %1838 = vmatmul.bf16.gmra.mxu1 %v9589_v50 }
 0x49c   :  { %1867 = vmatmul.bf16.gmra.mxu0 %v9589_v50  ;;  %2280 = vmatpush.bf16.msrb.mxu2 %v6966_v29  ;;  %v7883_v29 = vld [vmem:[#allocation2 + $0x20] sm:$0xf0] }
 0x49d   :  { %2367 = vmatpush.bf16.msra.mxu0 %v6978_v24  ;;  %2339 = vmatpush.bf16.msrb.mxu1 %v6946_v10  ;;  %v6858_v40 = vor.u32 %v7883_v29, %v6857_v44  ;;  %v7213_v29 = vld [vmem:[#allocation2 + $0x498] sm:$0xf] }
 0x4a0   :  { %2281 = vmatpush.bf16.msrb.mxu2 %v6938_v48  ;;  %v7884_v48 = vld [vmem:[#allocation2 + $0x28] sm:$0xf0] }
 0x4a1   :  { %2340 = vmatpush.bf16.msrb.mxu1 %v6918_v1  ;;  %v9624_v24 = vpop.f32.mrf.mxu1  ;;  %v6866_v55 = vor.u32 %v7884_v48, %v6865_v61  ;;  %v7035_v1 = vld [vmem:[#allocation2 + $0x17c] sm:$0xf0]  ;;  %v7215_v48 = vld [vmem:[#allocation2 + $0x4b4] sm:$0xf0] }
 0x4a2   :  { %v7038_v47 = vor.u32 %v7923_v15, %v7035_v1  ;;  %v7902_v1 = vld [vmem:[#allocation2 + $0xbc] sm:$0xf] }
 0x4a5   :  { %2341 = vmatpush.bf16.msrb.mxu1 %v6890_v16  ;;  %v7916_v16 = vld [vmem:[#allocation2 + $0x12c] sm:$0xf] }
 0x4a6   :  { %v7010_v44 = vor.u32 %v7916_v16, %v7007_v37  ;;  %v7159_v37 = vld [vmem:[#allocation2 + $0x444] sm:$0xf0] }
 0x4a9   :  { %v9628_v0 = vpop.f32.mrf.mxu1 }
 0x4aa   :  { %1881 = vmatmul.bf16.vlgmr.msra.gmra.mxu2 %v9559_v11 }
 0x4ab   :  { %1910 = vmatmul.bf16.vlgmr.msrb.gmra.mxu3 %v9559_v11  ;;  %1939 = vmatmul.bf16.vlgmr.msra.gmra.mxu1 %v9559_v11  ;;  %v7025_v11 = vld [vmem:[#allocation2 + $0x158] sm:$0xf] }
 0x4ac   :  { %2256 = vmatmul.bf16.vlgmr.msrb.gmra.mxu0 %v9601_v41  ;;  %v7026_v6 = vor.u32 %v7925_v43, %v7025_v11  ;;  %v7893_v11 = vld [vmem:[#allocation2 + $0x74] sm:$0xf]  ;;  %v6907_v43 = vld [vmem:[#allocation2 + $0x8c] sm:$0xf0] }
 0x4ad   :  { %v6910_v57 = vor.u32 %v7893_v11, %v6907_v43  ;;  %v7934_v11 = vld [vmem:[#allocation2 + $0x1b8] sm:$0xf0]  ;;  %v8043_v43 = vld [vmem:[#allocation2 + $0x520] sm:$0xf0] }
 0x4ae   :  { %2307 = vmatpush.bf16.msra.mxu3 %v7026_v6  ;;  %v7897_v6 = vld [vmem:[#allocation2 + $0x90] sm:$0xf0] }
 0x4af   :  { %v6914_v14 = vor.u32 %v7897_v6, %v6913_v21  ;;  %2282 = vmatpush.bf16.msrb.mxu2 %v6910_v57  ;;  %v7271_v57 = vld [vmem:[#allocation2 + $0x524] sm:$0xf0] }
 0x4b2   :  { %2308 = vmatpush.bf16.msra.mxu3 %v6998_v60  ;;  %v7891_v60 = vld [vmem:[#allocation2 + $0x60] sm:$0xf0] }
 0x4b3   :  { %v6894_v27 = vor.u32 %v7891_v60, %v6893_v23  ;;  %2283 = vmatpush.bf16.msrb.mxu2 %v6882_v63  ;;  %v7242_v60 = vor.u32 %v8036_v30, %v7241_v35  ;;  %v8033_v63 = vld [vmem:[#allocation2 + $0x4d4] sm:$0xf]  ;;  %v7906_v35 = vld [vmem:[#allocation2 + $0xd8] sm:$0xf0]  ;;  %v7157_v30 = vld [vmem:[#allocation2 + $0x428] sm:$0xf] }
 0x4b6   :  { %2309 = vmatpush.bf16.msra.mxu3 %v6970_v31  ;;  %v7880_v31 = vld [vmem:[#allocation2 + $0xc] sm:$0xf] }
 0x4b7   :  { %v6862_v34 = vor.u32 %v7880_v31, %v6859_v59  ;;  %2284 = vmatpush.bf16.msrb.mxu2 %v6854_v49  ;;  %v7014_v49 = vor.u32 %v7920_v42, %v7013_v58  ;;  %v8029_v31 = vld [vmem:[#allocation2 + $0x4b0] sm:$0xf0]  ;;  %v8026_v59 = vld [vmem:[#allocation2 + $0x49c] sm:$0xf] }
 0x4b8   :  { %v7214_v61 = vor.u32 %v8029_v31, %v7213_v29  ;;  %v6923_v29 = vld [vmem:[#allocation2 + $0x9c] sm:$0xf0] }
 0x4b9   :  { %2342 = vmatpush.bf16.msrb.mxu1 %v6862_v34 }
 0x4ba   :  { %1886 = vmatmul.bf16.gmra.mxu2 %v9565_v52  ;;  %2310 = vmatpush.bf16.msra.mxu3 %v6942_v13 }
 0x4bb   :  { %1915 = vmatmul.bf16.gmra.mxu3 %v9565_v52  ;;  %1944 = vmatmul.bf16.gmra.mxu1 %v9565_v52  ;;  %v6950_v52 = vor.u32 %v7905_v3, %v6949_v28  ;;  %v7063_v28 = vld [vmem:[#allocation2 + $0x1b4] sm:$0xf0]  ;;  %v7069_v3 = vld [vmem:[#allocation2 + $0x1a0] sm:$0xf] }
 0x4bc   :  { %2261 = vmatmul.bf16.gmra.mxu0 %v9612_v56  ;;  %v7070_v54 = vor.u32 %v7934_v11, %v7069_v3  ;;  %v6979_v3 = vld [vmem:[#allocation2 + $0x10c] sm:$0xf0]  ;;  %v6985_v11 = vld [vmem:[#allocation2 + $0xf8] sm:$0xf] }
 0x4bd   :  { %2368 = vmatpush.bf16.msra.mxu0 %v6950_v52  ;;  %v7269_v52 = vld [vmem:[#allocation2 + $0x508] sm:$0xf] }
 0x4be   :  { %2311 = vmatpush.bf16.msra.mxu3 %v6914_v14  ;;  %v7270_v25 = vor.u32 %v8043_v43, %v7269_v52  ;;  %v7274_v14 = vor.u32 %v8040_v4, %v7271_v57  ;;  %v7913_v52 = vld [vmem:[#allocation2 + $0x110] sm:$0xf0]  ;;  %v7185_v43 = vld [vmem:[#allocation2 + $0x460] sm:$0xf]  ;;  %v8019_v4 = vld [vmem:[#allocation2 + $0x464] sm:$0xf] }
 0x4bf   :  { %v7187_v57 = vld [vmem:[#allocation2 + $0x47c] sm:$0xf0] }
 0x4c0   :  { %2807 = vmatpush.bf16.msra.mxu1 %v7270_v25  ;;  %v8022_v25 = vld [vmem:[#allocation2 + $0x478] sm:$0xf0]  ;;  %v7190_v15 = vor.u32 %v8019_v4, %v7187_v57  ;;  %v7892_v57 = vld [vmem:[#allocation2 + $0x68] sm:$0xf0] }
 0x4c1   :  { %2369 = vmatpush.bf16.msra.mxu0 %v6922_v19  ;;  %v7041_v19 = vld [vmem:[#allocation2 + $0x168] sm:$0xf] }
 0x4c2   :  { %2312 = vmatpush.bf16.msra.mxu3 %v6886_v5  ;;  %v7042_v23 = vor.u32 %v7927_v22, %v7041_v19  ;;  %v7243_v5 = vld [vmem:[#allocation2 + $0x4ec] sm:$0xf0]  ;;  %v6951_v19 = vld [vmem:[#allocation2 + $0xd4] sm:$0xf0] }
 0x4c3   :  { %v6954_v22 = vor.u32 %v7902_v1, %v6951_v19 }
 0x4c4   :  { %2808 = vmatpush.bf16.msra.mxu1 %v7242_v60 }
 0x4c5   :  { %2370 = vmatpush.bf16.msra.mxu0 %v6894_v27  ;;  %v7246_v27 = vor.u32 %v8033_v63, %v7243_v5 }
 0x4c6   :  { %2313 = vmatpush.bf16.msra.mxu3 %v6858_v40 }
 0x4c8   :  { %2809 = vmatpush.bf16.msra.mxu1 %v7214_v61  ;;  %v7899_v61 = vld [vmem:[#allocation2 + $0xa0] sm:$0xf0] }
 0x4c9   :  { %2371 = vmatpush.bf16.msra.mxu0 %v6866_v55  ;;  %v7218_v55 = vor.u32 %v8026_v59, %v7215_v48  ;;  %v6929_v59 = vld [vmem:[#allocation2 + $0x88] sm:$0xf]  ;;  %v7129_v48 = vld [vmem:[#allocation2 + $0x3f0] sm:$0xf] }
 0x4ca   :  { %1891 = vmatmul.bf16.gmra.mxu2 %v9577_v32  ;;  %2422 = vmatpush.bf16.msrb.mxu3 %v7070_v54  ;;  %v6986_v54 = vor.u32 %v7913_v52, %v6985_v11 }
 0x4cb   :  { %1920 = vmatmul.bf16.gmra.mxu3 %v9577_v32  ;;  %1949 = vmatmul.bf16.gmra.mxu1 %v9577_v32  ;;  %v9637_v32 = vpop.f32.mrf.mxu1 }
 0x4cc   :  { %2266 = vmatmul.bf16.gmra.mxu0 %v9620_v46 }
 0x4cd   :  { %2836 = vmatpush.bf16.msrb.mxu0 %v7274_v14  ;;  %v7186_v14 = vor.u32 %v8022_v25, %v7185_v43  ;;  %v7888_v43 = vld [vmem:[#allocation2 + $0x4c] sm:$0xf]  ;;  %v6901_v25 = vld [vmem:[#allocation2 + $0x50] sm:$0xf] }
 0x4ce   :  { %2423 = vmatpush.bf16.msrb.mxu3 %v7042_v23  ;;  %v8015_v23 = vld [vmem:[#allocation2 + $0x440] sm:$0xf0] }
 0x4cf   :  { %2810 = vmatpush.bf16.msra.mxu1 %v7186_v14  ;;  %v7158_v16 = vor.u32 %v8015_v23, %v7157_v30  ;;  %v7101_v14 = vld [vmem:[#allocation2 + $0x3b8] sm:$0xf] }
 0x4d0   :  { %v7103_v30 = vld [vmem:[#allocation2 + $0x3d4] sm:$0xf0] }
 0x4d1   :  { %2837 = vmatpush.bf16.msrb.mxu0 %v7246_v27  ;;  %v8012_v27 = vld [vmem:[#allocation2 + $0x42c] sm:$0xf] }
 0x4d2   :  { %2424 = vmatpush.bf16.msrb.mxu3 %v7014_v49  ;;  %v7162_v58 = vor.u32 %v8012_v27, %v7159_v37  ;;  %v7895_v49 = vld [vmem:[#allocation2 + $0x84] sm:$0xf]  ;;  %v7881_v27 = vld [vmem:[#allocation2 + $0x14] sm:$0xf]  ;;  %v6867_v37 = vld [vmem:[#allocation2 + $0x2c] sm:$0xf0] }
 0x4d3   :  { %2811 = vmatpush.bf16.msra.mxu1 %v7158_v16  ;;  %v6926_v31 = vor.u32 %v7895_v49, %v6923_v29  ;;  %v6870_v49 = vor.u32 %v7881_v27, %v6867_v37  ;;  %v7885_v29 = vld [vmem:[#allocation2 + $0x30] sm:$0xf0] }
 0x4d5   :  { %2838 = vmatpush.bf16.msrb.mxu0 %v7218_v55  ;;  %v6930_v55 = vor.u32 %v7899_v61, %v6929_v59  ;;  %v7994_v59 = vld [vmem:[#allocation2 + $0x398] sm:$0xf0] }
 0x4d6   :  { %2425 = vmatpush.bf16.msrb.mxu3 %v6986_v54  ;;  %v6895_v54 = vld [vmem:[#allocation2 + $0x64] sm:$0xf0] }
 0x4d7   :  { %v6898_v4 = vor.u32 %v7888_v43, %v6895_v54 }
 0x4d9   :  { %2839 = vmatpush.bf16.msrb.mxu0 %v7190_v15  ;;  %v8001_v15 = vld [vmem:[#allocation2 + $0x3d0] sm:$0xf0] }
 0x4da   :  { %1896 = vmatmul.bf16.gmra.mxu2 %v9589_v50 }
 0x4db   :  { %1925 = vmatmul.bf16.gmra.mxu3 %v9589_v50  ;;  %1954 = vmatmul.bf16.gmra.mxu1 %v9589_v50  ;;  %v7066_v50 = vor.u32 %v7930_v36, %v7063_v28  ;;  %v7909_v28 = vld [vmem:[#allocation2 + $0xf4] sm:$0xf] }
 0x4dc   :  { %2271 = vmatmul.bf16.gmra.mxu0 %v9631_v45 }
 0x4dd   :  { %2393 = vmatpush.bf16.msra.mxu2 %v7066_v50  ;;  %v6982_v50 = vor.u32 %v7909_v28, %v6979_v3  ;;  %2840 = vmatpush.bf16.msrb.mxu0 %v7162_v58  ;;  %v8008_v28 = vld [vmem:[#allocation2 + $0x408] sm:$0xf0]  ;;  %v8005_v3 = vld [vmem:[#allocation2 + $0x3f4] sm:$0xf]  ;;  %v6873_v58 = vld [vmem:[#allocation2 + $0x18] sm:$0xf] }
 0x4de   :  { %v7130_v11 = vor.u32 %v8008_v28, %v7129_v48  ;;  %v6874_v61 = vor.u32 %v7885_v29, %v6873_v58  ;;  %v7075_v28 = vld [vmem:[#allocation2 + $0x39c] sm:$0xf0] }
 0x4e0   :  { %2812 = vmatpush.bf16.msra.mxu1 %v7130_v11 }
 0x4e1   :  { %2394 = vmatpush.bf16.msra.mxu2 %v7038_v47  ;;  %v6957_v47 = vld [vmem:[#allocation2 + $0xc0] sm:$0xf] }
 0x4e2   :  { %v6958_v5 = vor.u32 %v7906_v35, %v6957_v47  ;;  %v6902_v47 = vor.u32 %v7892_v57, %v6901_v25  ;;  %v7998_v35 = vld [vmem:[#allocation2 + $0x3bc] sm:$0xf] }
 0x4e3   :  { %v7106_v23 = vor.u32 %v7998_v35, %v7103_v30  ;;  %v9718_v35 = vld [vmem:[%s13012_s0] ss:$0 sm:$0xff] }
 0x4e4   :  { %2426 = vmatpush.bf16.msrb.mxu3 %v6958_v5  ;;  %v968_v30 = vadd.f32 %v9718_v35, %v9591_v8  ;;  %v7277_v8 = vld [vmem:[#allocation2 + $0x510] sm:$0xf] }
 0x4e5   :  { %2395 = vmatpush.bf16.msra.mxu2 %v7010_v44 }
 0x4e8   :  { %v9639_v13 = vpop.f32.mrf.mxu1  ;;  %2427 = vmatpush.bf16.msrb.mxu3 %v6930_v55  ;;  %v7991_v55 = vld [vmem:[#allocation2 + $0x384] sm:$0xf] }
 0x4e9   :  { %v9641_v10 = vpop.f32.mrf.mxu0  ;;  %2396 = vmatpush.bf16.msra.mxu2 %v6982_v50  ;;  %v7131_v50 = vld [vmem:[#allocation2 + $0x40c] sm:$0xf0] }
 0x4ea   :  { %2285 = vmatmul.bf16.vlgmr.msrb.gmra.mxu2 %v9601_v41  ;;  %v7134_v52 = vor.u32 %v8005_v3, %v7131_v50  ;;  %v7078_v3 = vor.u32 %v7991_v55, %v7075_v28  ;;  %v7285_v55 = vld [vmem:[#allocation2 + $0x518] sm:$0xf]  ;;  %v8045_v28 = vld [vmem:[#allocation2 + $0x530] sm:$0xf0] }
 0x4eb   :  { %2314 = vmatmul.bf16.vlgmr.msra.gmra.mxu3 %v9601_v41  ;;  %2343 = vmatmul.bf16.vlgmr.msrb.gmra.mxu1 %v9601_v41 }
 0x4ec   :  { %2372 = vmatmul.bf16.vlgmr.msra.gmra.mxu0 %v9601_v41  ;;  %2428 = vmatpush.bf16.msrb.mxu3 %v6902_v47 }
 0x4ed   :  { %v9647_v21 = vpop.f32.mrf.mxu2  ;;  %2397 = vmatpush.bf16.msra.mxu2 %v6954_v22  ;;  %2841 = vmatpush.bf16.msrb.mxu0 %v7134_v52  ;;  %v7102_v22 = vor.u32 %v8001_v15, %v7101_v14 }
 0x4ee   :  { %v9649_v6 = vpop.f32.mrf.mxu3 }
 0x4ef   :  { %2813 = vmatpush.bf16.msra.mxu1 %v7102_v22 }
 0x4f0   :  { %v9651_v62 = vpop.f32.mrf.mxu1  ;;  %2429 = vmatpush.bf16.msrb.mxu3 %v6874_v61 }
 0x4f1   :  { %v9653_v33 = vpop.f32.mrf.mxu0  ;;  %2398 = vmatpush.bf16.msra.mxu2 %v6926_v31  ;;  %2842 = vmatpush.bf16.msrb.mxu0 %v7106_v23  ;;  %v7073_v31 = vld [vmem:[#allocation2 + $0x380] sm:$0xf]  ;;  %v970_v23 = vadd.f32 %v9718_v35, %v9597_v51  ;;  %v8044_v51 = vld [vmem:[#allocation2 + $0x528] sm:$0xf0] }
 0x4f2   :  { %v7074_v48 = vor.u32 %v7994_v59, %v7073_v31  ;;  %v8041_v59 = vld [vmem:[#allocation2 + $0x514] sm:$0xf]  ;;  %v7278_v61 = vor.u32 %v8044_v51, %v7277_v8  ;;  %v7249_v51 = vld [vmem:[#allocation2 + $0x4d8] sm:$0xf] }
 0x4f3   :  { %v9730_v29 = vpack.c.bf16 %v970_v23, %v968_v30  ;;  %v7286_v23 = vor.u32 %v8045_v28, %v7285_v55  ;;  %v7250_v12 = vor.u32 %v8037_v18, %v7249_v51  ;;  %v7254_v55 = vor.u32 %v8034_v17, %v7251_v9 }
 0x4f4   :  { %2814 = vmatpush.bf16.msra.mxu1 %v7074_v48  ;;  %v7279_v48 = vld [vmem:[#allocation2 + $0x52c] sm:$0xf0] }
 0x4f5   :  { %v9655_v40 = vpop.f32.mrf.mxu2  ;;  %2399 = vmatpush.bf16.msra.mxu2 %v6898_v4  ;;  %2843 = vmatpush.bf16.msrb.mxu0 %v7078_v3 }
 0x4f6   :  { %v9657_v34 = vpop.f32.mrf.mxu3 }
 0x4f8   :  { %v9659_v53 = vpop.f32.mrf.mxu1  ;;  %2923 = vmatpush.bf16.msrb.mxu1 %v7286_v23  ;;  %v973_v23 = vadd.f32 %v9718_v35, %v9607_v39  ;;  %v7231_v39 = vld [vmem:[#allocation2 + $0x4c4] sm:$0xf0] }
 0x4f9   :  { %v9661_v36 = vpop.f32.mrf.mxu0  ;;  %2400 = vmatpush.bf16.msra.mxu2 %v6870_v49 }
 0x4fa   :  { %2290 = vmatmul.bf16.gmra.mxu2 %v9612_v56 }
 0x4fb   :  { %2319 = vmatmul.bf16.gmra.mxu3 %v9612_v56  ;;  %2348 = vmatmul.bf16.gmra.mxu1 %v9612_v56 }
 0x4fc   :  { %2377 = vmatmul.bf16.gmra.mxu0 %v9612_v56 }
 0x4fd   :  { %v9667_v60 = vpop.f32.mrf.mxu2  ;;  %2865 = vmatpush.bf16.msrb.mxu2 %v7278_v61  ;;  %v8035_v61 = vld [vmem:[#allocation2 + $0x4e4] sm:$0xf] }
 0x4fe   :  { %v9669_v63 = vpop.f32.mrf.mxu3 }
 0x500   :  { %v9671_v42 = vpop.f32.mrf.mxu1 }
 0x501   :  { %v9673_v44 = vpop.f32.mrf.mxu0  ;;  %2866 = vmatpush.bf16.msrb.mxu2 %v7250_v12 }
 0x505   :  { %v9675_v1 = vpop.f32.mrf.mxu2 }
 0x506   :  { %v9677_v19 = vpop.f32.mrf.mxu3 }
 0x508   :  { %v9679_v5 = vpop.f32.mrf.mxu1 }
 0x509   :  { %13002 = vst [vmem:[#allocation13_spill] sm:$0xff] %v9679_v5  ;;  %v9681_v16 = vpop.f32.mrf.mxu0 }
 0x50a   :  { %13003 = vst [vmem:[#allocation14_spill] sm:$0xff] %v9681_v16  ;;  %2295 = vmatmul.bf16.gmra.mxu2 %v9620_v46 }
 0x50b   :  { %2324 = vmatmul.bf16.gmra.mxu3 %v9620_v46  ;;  %2353 = vmatmul.bf16.gmra.mxu1 %v9620_v46 }
 0x50c   :  { %2382 = vmatmul.bf16.gmra.mxu0 %v9620_v46 }
 0x50d   :  { %v9687_v50 = vpop.f32.mrf.mxu2 }
 0x50e   :  { %v9689_v11 = vpop.f32.mrf.mxu3 }
 0x510   :  { %v9691_v52 = vpop.f32.mrf.mxu1 }
 0x511   :  { %13004 = vst [vmem:[#allocation15_spill] sm:$0xff] %v9691_v52  ;;  %v9693_v43 = vpop.f32.mrf.mxu0 }
 0x512   :  { %13005 = vst [vmem:[#allocation16_spill] sm:$0xff] %v9693_v43 }
 0x515   :  { %v9695_v54 = vpop.f32.mrf.mxu2 }
 0x516   :  { %v9697_v25 = vpop.f32.mrf.mxu3 }
 0x517   :  { %13006 = vst [vmem:[#allocation17_spill] sm:$0xff] %v9697_v25 }
 0x518   :  { %v9699_v4 = vpop.f32.mrf.mxu1 }
 0x519   :  { %13007 = vst [vmem:[#allocation18_spill] sm:$0xff] %v9699_v4  ;;  %v9701_v57 = vpop.f32.mrf.mxu0  ;;  %v7109_v4 = vld [vmem:[#allocation2 + $0x3c0] sm:$0xf] }
 0x51a   :  { %13008 = vst [vmem:[#allocation19_spill] sm:$0xff] %v9701_v57  ;;  %2300 = vmatmul.bf16.gmra.mxu2 %v9631_v45 }
 0x51b   :  { %2329 = vmatmul.bf16.gmra.mxu3 %v9631_v45  ;;  %2358 = vmatmul.bf16.gmra.mxu1 %v9631_v45 }
 0x51c   :  { %2387 = vmatmul.bf16.gmra.mxu0 %v9631_v45 }
 0x51d   :  { %v9707_v14 = vpop.f32.mrf.mxu2 }
 0x51e   :  { %v9709_v15 = vpop.f32.mrf.mxu3 }
 0x51f   :  { %13009 = vst [vmem:[#allocation20_spill] sm:$0xff] %v9709_v15 }
 0x520   :  { %v9711_v47 = vpop.f32.mrf.mxu1 }
 0x521   :  { %13010 = vst [vmem:[#allocation21_spill] sm:$0xff] %v9711_v47  ;;  %v9713_v22 = vpop.f32.mrf.mxu0 }
 0x522   :  { %13011 = vst [vmem:[#allocation22_spill] sm:$0xff] %v9713_v22 }
 0x525   :  { %v9724_v27 = vpop.f32.mrf.mxu2 }
 0x526   :  { %v9726_v37 = vpop.f32.mrf.mxu3 }
 0x527   :  { %13013 = vst [vmem:[#allocation23_spill] sm:$0xff] %v9726_v37 }
 0x528   :  { %v9728_v58 = vpop.f32.mrf.mxu1 }
 0x529   :  { %13014 = vst [vmem:[#allocation24_spill] sm:$0xff] %v9728_v58  ;;  %v2257_v49 = vpop.f32.mrf.mxu0  ;;  %v8028_v58 = vld [vmem:[#allocation2 + $0x4ac] sm:$0xf] }
 0x52a   :  { %v9733_v31 = vadd.f32 %v2257_v49, %v9647_v21  ;;  %2401 = vmatmul.bf16.vlgmr.msra.gmra.mxu2 %v9601_v41  ;;  %v7282_v21 = vor.u32 %v8041_v59, %v7279_v48  ;;  %v8042_v49 = vld [vmem:[#allocation2 + $0x51c] sm:$0xf]  ;;  %v7257_v59 = vld [vmem:[#allocation2 + $0x4e0] sm:$0xf]  ;;  %v7234_v47 = vor.u32 %v8028_v58, %v7231_v39  ;;  %v8021_v58 = vld [vmem:[#allocation2 + $0x474] sm:$0xf] }
 0x52b   :  { %2430 = vmatmul.bf16.vlgmr.msrb.gmra.mxu3 %v9601_v41  ;;  %2815 = vmatmul.bf16.vlgmr.msra.gmra.mxu1 %v9730_v29  ;;  %v7290_v41 = vor.u32 %v8042_v49, %v7287_v20  ;;  %v8038_v48 = vld [vmem:[#allocation2 + $0x4f8] sm:$0xf0]  ;;  %v7259_v20 = vld [vmem:[#allocation2 + $0x4fc] sm:$0xf0] }
 0x52c   :  { %2844 = vmatmul.bf16.vlgmr.msrb.gmra.mxu0 %v9730_v29  ;;  %2894 = vmatpush.bf16.msra.mxu3 %v7282_v21  ;;  %v7258_v28 = vor.u32 %v8038_v48, %v7257_v59  ;;  %v7221_v21 = vld [vmem:[#allocation2 + $0x4a0] sm:$0xf]  ;;  %v7262_v49 = vor.u32 %v8035_v61, %v7259_v20  ;;  %v7229_v59 = vld [vmem:[#allocation2 + $0x4a8] sm:$0xf]  ;;  %v8031_v48 = vld [vmem:[#allocation2 + $0x4c0] sm:$0xf0] }
 0x52d   :  { %v9739_v3 = vpop.f32.mrf.mxu2  ;;  %2952 = vmatpush.bf16.msra.mxu0 %v7290_v41  ;;  %v8030_v41 = vld [vmem:[#allocation2 + $0x4b8] sm:$0xf0]  ;;  %v7230_v12 = vor.u32 %v8031_v48, %v7229_v59  ;;  %v8016_v59 = vld [vmem:[#allocation2 + $0x448] sm:$0xf0]  ;;  %v8013_v48 = vld [vmem:[#allocation2 + $0x434] sm:$0xf] }
 0x52e   :  { %v9741_v30 = vpop.f32.mrf.mxu3  ;;  %2924 = vmatpush.bf16.msrb.mxu1 %v7258_v28  ;;  %v7222_v17 = vor.u32 %v8030_v41, %v7221_v21  ;;  %v8023_v28 = vld [vmem:[#allocation2 + $0x480] sm:$0xf0]  ;;  %v8020_v21 = vld [vmem:[#allocation2 + $0x46c] sm:$0xf]  ;;  %v7195_v41 = vld [vmem:[#allocation2 + $0x484] sm:$0xf0] }
 0x52f   :  { %13015 = vst [vmem:[#allocation25_spill] sm:$0xff] %v9741_v30 }
 0x530   :  { %v9743_v38 = vpop.f32.mrf.mxu1  ;;  %2895 = vmatpush.bf16.msra.mxu3 %v7254_v55  ;;  %2867 = vmatpush.bf16.msrb.mxu2 %v7222_v17  ;;  %v7193_v55 = vld [vmem:[#allocation2 + $0x468] sm:$0xf]  ;;  %v7165_v17 = vld [vmem:[#allocation2 + $0x430] sm:$0xf] }
 0x531   :  { %13016 = vst [vmem:[#allocation26_spill] sm:$0xff] %v9743_v38  ;;  %v2259_v2 = vpop.f32.mrf.mxu0  ;;  %v975_v38 = vadd.f32 %v9718_v35, %v9609_v26  ;;  %2953 = vmatpush.bf16.msra.mxu0 %v7262_v49  ;;  %v7194_v49 = vor.u32 %v8023_v28, %v7193_v55  ;;  %v7173_v28 = vld [vmem:[#allocation2 + $0x438] sm:$0xf] }
 0x532   :  { %v9746_v8 = vadd.f32 %v2259_v2, %v9655_v40  ;;  %v8027_v2 = vld [vmem:[#allocation2 + $0x4a4] sm:$0xf]  ;;  %v7223_v40 = vld [vmem:[#allocation2 + $0x4bc] sm:$0xf0]  ;;  %2925 = vmatpush.bf16.msrb.mxu1 %v7230_v12  ;;  %v7167_v12 = vld [vmem:[#allocation2 + $0x44c] sm:$0xf0] }
 0x533   :  { %v7226_v9 = vor.u32 %v8027_v2, %v7223_v40  ;;  %v9758_v26 = vpack.c.bf16 %v975_v38, %v973_v23  ;;  %v7201_v2 = vld [vmem:[#allocation2 + $0x470] sm:$0xf]  ;;  %v8024_v40 = vld [vmem:[#allocation2 + $0x488] sm:$0xf0]  ;;  %v7198_v38 = vor.u32 %v8020_v21, %v7195_v41  ;;  %v7170_v55 = vor.u32 %v8013_v48, %v7167_v12  ;;  %v8017_v21 = vld [vmem:[#allocation2 + $0x450] sm:$0xf0] }
 0x534   :  { %v7203_v23 = vld [vmem:[#allocation2 + $0x48c] sm:$0xf0]  ;;  %2868 = vmatpush.bf16.msrb.mxu2 %v7194_v49  ;;  %v8014_v41 = vld [vmem:[#allocation2 + $0x43c] sm:$0xf]  ;;  %v7145_v48 = vld [vmem:[#allocation2 + $0x400] sm:$0xf] }
 0x535   :  { %v9752_v18 = vpop.f32.mrf.mxu2  ;;  %2896 = vmatpush.bf16.msra.mxu3 %v7226_v9  ;;  %2954 = vmatpush.bf16.msra.mxu0 %v7234_v47  ;;  %v7206_v9 = vor.u32 %v8021_v58, %v7203_v23  ;;  %v8006_v23 = vld [vmem:[#allocation2 + $0x3fc] sm:$0xf] }
 0x536   :  { %v9754_v51 = vpop.f32.mrf.mxu3  ;;  %v8010_v12 = vld [vmem:[#allocation2 + $0x418] sm:$0xf0] }
 0x537   :  { %13017 = vst [vmem:[#allocation27_spill] sm:$0xff] %v9754_v51 }
 0x538   :  { %v9756_v61 = vpop.f32.mrf.mxu1 }
 0x539   :  { %13018 = vst [vmem:[#allocation28_spill] sm:$0xff] %v9756_v61  ;;  %v2262_v20 = vpop.f32.mrf.mxu0  ;;  %2897 = vmatpush.bf16.msra.mxu3 %v7198_v38  ;;  %2955 = vmatpush.bf16.msra.mxu0 %v7206_v9  ;;  %v7137_v38 = vld [vmem:[#allocation2 + $0x3f8] sm:$0xf]  ;;  %v978_v9 = vadd.f32 %v9718_v35, %v9618_v7  ;;  %v8000_v7 = vld [vmem:[#allocation2 + $0x3cc] sm:$0xf] }
 0x53a   :  { %v9761_v22 = vadd.f32 %v2262_v20, %v9667_v60  ;;  %2406 = vmatmul.bf16.gmra.mxu2 %v9612_v56  ;;  %v7202_v60 = vor.u32 %v8024_v40, %v7201_v2  ;;  %v7166_v20 = vor.u32 %v8016_v59, %v7165_v17  ;;  %v7174_v2 = vor.u32 %v8017_v21, %v7173_v28  ;;  %v7175_v40 = vld [vmem:[#allocation2 + $0x454] sm:$0xf0] }
 0x53b   :  { %2435 = vmatmul.bf16.gmra.mxu3 %v9612_v56  ;;  %2820 = vmatmul.bf16.gmra.mxu1 %v9758_v26  ;;  %v7178_v49 = vor.u32 %v8014_v41, %v7175_v40  ;;  %v7139_v59 = vld [vmem:[#allocation2 + $0x414] sm:$0xf0]  ;;  %v7146_v21 = vor.u32 %v8010_v12, %v7145_v48  ;;  %v7111_v41 = vld [vmem:[#allocation2 + $0x3dc] sm:$0xf0] }
 0x53c   :  { %2849 = vmatmul.bf16.gmra.mxu0 %v9758_v26  ;;  %2926 = vmatpush.bf16.msrb.mxu1 %v7202_v60  ;;  %v8009_v60 = vld [vmem:[#allocation2 + $0x410] sm:$0xf0]  ;;  %v7142_v28 = vor.u32 %v8006_v23, %v7139_v59  ;;  %v7117_v23 = vld [vmem:[#allocation2 + $0x3c8] sm:$0xf]  ;;  %v8003_v59 = vld [vmem:[#allocation2 + $0x3e0] sm:$0xf0] }
 0x53d   :  { %v9767_v56 = vpop.f32.mrf.mxu2  ;;  %2869 = vmatpush.bf16.msrb.mxu2 %v7166_v20  ;;  %2898 = vmatpush.bf16.msra.mxu3 %v7170_v55  ;;  %v7138_v17 = vor.u32 %v8009_v60, %v7137_v38  ;;  %v8002_v20 = vld [vmem:[#allocation2 + $0x3d8] sm:$0xf0]  ;;  %v7999_v55 = vld [vmem:[#allocation2 + $0x3c4] sm:$0xf] }
 0x53e   :  { %v9769_v39 = vpop.f32.mrf.mxu3  ;;  %2956 = vmatpush.bf16.msra.mxu0 %v7178_v49  ;;  %v7110_v38 = vor.u32 %v8002_v20, %v7109_v4  ;;  %v7114_v60 = vor.u32 %v7999_v55, %v7111_v41  ;;  %v7118_v49 = vor.u32 %v8003_v59, %v7117_v23  ;;  %v7081_v4 = vld [vmem:[#allocation2 + $0x388] sm:$0xf]  ;;  %v7089_v41 = vld [vmem:[#allocation2 + $0x390] sm:$0xf] }
 0x53f   :  { %13019 = vst [vmem:[#allocation29_spill] sm:$0xff] %v9769_v39  ;;  %v8007_v39 = vld [vmem:[#allocation2 + $0x404] sm:$0xf]  ;;  %v7083_v55 = vld [vmem:[#allocation2 + $0x3a4] sm:$0xf0] }
 0x540   :  { %v9771_v61 = vpop.f32.mrf.mxu1  ;;  %2927 = vmatpush.bf16.msrb.mxu1 %v7174_v2  ;;  %v980_v2 = vadd.f32 %v9718_v35, %v9624_v24 }
 0x541   :  { %13020 = vst [vmem:[#allocation30_spill] sm:$0xff] %v9771_v61  ;;  %v2264_v47 = vpop.f32.mrf.mxu0  ;;  %v7147_v61 = vld [vmem:[#allocation2 + $0x41c] sm:$0xf0]  ;;  %2870 = vmatpush.bf16.msrb.mxu2 %v7138_v17  ;;  %2899 = vmatpush.bf16.msra.mxu3 %v7142_v28  ;;  %v7119_v17 = vld [vmem:[#allocation2 + $0x3e4] sm:$0xf0] }
 0x542   :  { %v9774_v58 = vadd.f32 %v2264_v47, %v9675_v1  ;;  %v7150_v1 = vor.u32 %v8007_v39, %v7147_v61  ;;  %v7122_v48 = vor.u32 %v8000_v7, %v7119_v17  ;;  %v9786_v24 = vpack.c.bf16 %v980_v2, %v978_v9  ;;  %v7995_v28 = vld [vmem:[#allocation2 + $0x3a0] sm:$0xf0]  ;;  %v7993_v2 = vld [vmem:[#allocation2 + $0x394] sm:$0xf] }
 0x543   :  { %v7082_v20 = vor.u32 %v7995_v28, %v7081_v4  ;;  %v983_v17 = vadd.f32 %v9718_v35, %v9628_v0 }
 0x544   :  { %13021 = vst [vmem:[#allocation31_spill] sm:$0xff] %v9774_v58  ;;  %2928 = vmatpush.bf16.msrb.mxu1 %v7146_v21  ;;  %2957 = vmatpush.bf16.msra.mxu0 %v7150_v1  ;;  %v7992_v21 = vld [vmem:[#allocation2 + $0x38c] sm:$0xf] }
 0x545   :  { %v9780_v40 = vpop.f32.mrf.mxu2  ;;  %2871 = vmatpush.bf16.msrb.mxu2 %v7110_v38  ;;  %13024 = vst [vmem:[#allocation34_spill] sm:$0xff] %v9786_v24  ;;  %2900 = vmatpush.bf16.msra.mxu3 %v7114_v60  ;;  %v7996_v1 = vld [vmem:[#allocation2 + $0x3a8] sm:$0xf0]  ;;  %v7086_v9 = vor.u32 %v7992_v21, %v7083_v55  ;;  %v7091_v38 = vld [vmem:[#allocation2 + $0x3ac] sm:$0xf0] }
 0x546   :  { %v9782_v47 = vpop.f32.mrf.mxu3  ;;  %v7094_v60 = vor.u32 %v7993_v2, %v7091_v38  ;;  %v8046_v2 = vld [vmem:[#allocation2 + $0x538] sm:$0xf0] }
 0x547   :  { %13022 = vst [vmem:[#allocation32_spill] sm:$0xff] %v9782_v47 }
 0x548   :  { %v9784_v61 = vpop.f32.mrf.mxu1  ;;  %2929 = vmatpush.bf16.msrb.mxu1 %v7118_v49  ;;  %2958 = vmatpush.bf16.msra.mxu0 %v7122_v48 }
 0x549   :  { %13023 = vst [vmem:[#allocation33_spill] sm:$0xff] %v9784_v61  ;;  %v2267_v39 = vpop.f32.mrf.mxu0  ;;  %2872 = vmatpush.bf16.msrb.mxu2 %v7082_v20  ;;  %2901 = vmatpush.bf16.msra.mxu3 %v7086_v9 }
 0x54a   :  { %v9789_v12 = vadd.f32 %v2267_v39, %v9687_v50  ;;  %2411 = vmatmul.bf16.gmra.mxu2 %v9620_v46  ;;  %v7090_v50 = vor.u32 %v7996_v1, %v7089_v41  ;;  %v985_v39 = vadd.f32 %v9718_v35, %v9637_v32 }
 0x54b   :  { %2440 = vmatmul.bf16.gmra.mxu3 %v9620_v46  ;;  %2825 = vmatmul.bf16.gmra.mxu1 %v9786_v24 }
 0x54c   :  { %13025 = vst [vmem:[#allocation35_spill] sm:$0xff] %v9789_v12  ;;  %2854 = vmatmul.bf16.gmra.mxu0 %v9786_v24  ;;  %2930 = vmatpush.bf16.msrb.mxu1 %v7090_v50  ;;  %v9814_v20 = vpack.c.bf16 %v985_v39, %v983_v17  ;;  %v7265_v39 = vld [vmem:[#allocation2 + $0x4e8] sm:$0xf]  ;;  %v8051_v12 = vld [vmem:[#allocation4 + $0x20] sm:$0xff] }
 0x54d   :  { %v9795_v23 = vpop.f32.mrf.mxu2  ;;  %2959 = vmatpush.bf16.msra.mxu0 %v7094_v60 }
 0x54e   :  { %v9797_v59 = vpop.f32.mrf.mxu3  ;;  %13032 = vst [vmem:[#allocation42_spill] sm:$0xff] %v9814_v20 }
 0x54f   :  { %13026 = vst [vmem:[#allocation36_spill] sm:$0xff] %v9797_v59  ;;  %v8004_v59 = vld [vmem:[#allocation2 + $0x3e8] sm:$0xf0] }
 0x550   :  { %v9799_v46 = vpop.f32.mrf.mxu1 }
 0x551   :  { %13027 = vst [vmem:[#allocation37_spill] sm:$0xff] %v9799_v46  ;;  %v2269_v7 = vpop.f32.mrf.mxu0 }
 0x552   :  { %v9802_v49 = vadd.f32 %v2269_v7, %v9695_v54 }
 0x554   :  { %13028 = vst [vmem:[#allocation38_spill] sm:$0xff] %v9802_v49 }
 0x555   :  { %v9808_v48 = vpop.f32.mrf.mxu2 }
 0x556   :  { %13029 = vst [vmem:[#allocation39_spill] sm:$0xff] %v9808_v48  ;;  %v9810_v4 = vpop.f32.mrf.mxu3  ;;  %v8060_v48 = vld [vmem:[#allocation4 + $0x68] sm:$0xff] }
 0x557   :  { %13030 = vst [vmem:[#allocation40_spill] sm:$0xff] %v9810_v4  ;;  %v8011_v4 = vld [vmem:[#allocation2 + $0x420] sm:$0xf0] }
 0x558   :  { %v9812_v28 = vpop.f32.mrf.mxu1 }
 0x559   :  { %13031 = vst [vmem:[#allocation41_spill] sm:$0xff] %v9812_v28  ;;  %v2272_v21 = vpop.f32.mrf.mxu0 }
 0x55a   :  { %v9817_v55 = vadd.f32 %v2272_v21, %v9707_v14  ;;  %2416 = vmatmul.bf16.gmra.mxu2 %v9631_v45  ;;  %v8039_v21 = vld [vmem:[#allocation2 + $0x500] sm:$0xf0] }
 0x55b   :  { %2445 = vmatmul.bf16.gmra.mxu3 %v9631_v45  ;;  %2830 = vmatmul.bf16.gmra.mxu1 %v9814_v20 }
 0x55c   :  { %13033 = vst [vmem:[#allocation43_spill] sm:$0xff] %v9817_v55  ;;  %2859 = vmatmul.bf16.gmra.mxu0 %v9814_v20 }
 0x55d   :  { %v9823_v0 = vpop.f32.mrf.mxu2 }
 0x55e   :  { %v9825_v32 = vpop.f32.mrf.mxu3 }
 0x55f   :  { %13034 = vst [vmem:[#allocation44_spill] sm:$0xff] %v9825_v32  ;;  %v8025_v32 = vld [vmem:[#allocation2 + $0x490] sm:$0xf0] }
 0x560   :  { %v9827_v54 = vpop.f32.mrf.mxu1 }
 0x561   :  { %13035 = vst [vmem:[#allocation45_spill] sm:$0xff] %v9827_v54  ;;  %v2274_v35 = vpop.f32.mrf.mxu0  ;;  %v8032_v54 = vld [vmem:[#allocation2 + $0x4c8] sm:$0xf0] }
 0x562   :  { %v9830_v41 = vadd.f32 %v2274_v35, %v9724_v27  ;;  %v7293_v27 = vld [vmem:[#allocation2 + $0x520] sm:$0xf]  ;;  %v7237_v35 = vld [vmem:[#allocation2 + $0x4b0] sm:$0xf] }
 0x563   :  { %v7294_v38 = vor.u32 %v8046_v2, %v7293_v27  ;;  %v7238_v28 = vor.u32 %v8032_v54, %v7237_v35  ;;  %v7181_v54 = vld [vmem:[#allocation2 + $0x440] sm:$0xf] }
 0x564   :  { %13036 = vst [vmem:[#allocation46_spill] sm:$0xff] %v9830_v41  ;;  %v9903_v41 = vpop.xlane.xlu1 %1319 }
 0x565   :  { %v9832_v14 = vpop.f32.mrf.mxu2  ;;  %2981 = vmatpush.bf16.msra.mxu2 %v7294_v38 }
 0x566   :  { %13037 = vst [vmem:[#allocation47_spill] sm:$0xff] %v9832_v14  ;;  %v9834_v1 = vpop.f32.mrf.mxu3 }
 0x567   :  { %13038 = vst [vmem:[#allocation48_spill] sm:$0xff] %v9834_v1  ;;  %v7209_v1 = vld [vmem:[#allocation2 + $0x478] sm:$0xf] }
 0x568   :  { %v9836_v9 = vpop.f32.mrf.mxu1 }
 0x569   :  { %v2373_v45 = vpop.f32.mrf.mxu0 }
 0x56a   :  { %v9839_v50 = vadd.f32 %v2373_v45, %v9739_v3  ;;  %2873 = vmatmul.bf16.vlgmr.msrb.gmra.mxu2 %v9730_v29  ;;  %v7266_v45 = vor.u32 %v8039_v21, %v7265_v39  ;;  %v7210_v39 = vor.u32 %v8025_v32, %v7209_v1  ;;  %v8018_v21 = vld [vmem:[#allocation2 + $0x458] sm:$0xf0]  ;;  %v7125_v32 = vld [vmem:[#allocation2 + $0x3d0] sm:$0xf] }
 0x56b   :  { %2902 = vmatmul.bf16.vlgmr.msra.gmra.mxu3 %v9730_v29  ;;  %2931 = vmatmul.bf16.vlgmr.msrb.gmra.mxu1 %v9730_v29  ;;  %v7182_v35 = vor.u32 %v8018_v21, %v7181_v54  ;;  %v7126_v47 = vor.u32 %v8004_v59, %v7125_v32  ;;  %v7097_v59 = vld [vmem:[#allocation2 + $0x398] sm:$0xf] }
 0x56c   :  { %13039 = vst [vmem:[#allocation49_spill] sm:$0xff] %v9839_v50  ;;  %2960 = vmatmul.bf16.vlgmr.msra.gmra.mxu0 %v9730_v29  ;;  %2982 = vmatpush.bf16.msra.mxu2 %v7266_v45 }
 0x56d   :  { %v9845_v60 = vpop.f32.mrf.mxu2 }
 0x56e   :  { %v9847_v7 = vpop.f32.mrf.mxu3 }
 0x570   :  { %v9849_v17 = vpop.f32.mrf.mxu1  ;;  %2983 = vmatpush.bf16.msra.mxu2 %v7238_v28 }
 0x571   :  { %v9851_v3 = vpop.f32.mrf.mxu0 }
 0x574   :  { %2984 = vmatpush.bf16.msra.mxu2 %v7210_v39 }
 0x575   :  { %v9853_v46 = vpop.f32.mrf.mxu2 }
 0x576   :  { %v9855_v61 = vpop.f32.mrf.mxu3 }
 0x578   :  { %v9857_v27 = vpop.f32.mrf.mxu1  ;;  %2985 = vmatpush.bf16.msra.mxu2 %v7182_v35 }
 0x579   :  { %v2378_v2 = vpop.f32.mrf.mxu0 }
 0x57a   :  { %v9860_v38 = vadd.f32 %v2378_v2, %v9767_v56  ;;  %2878 = vmatmul.bf16.gmra.mxu2 %v9758_v26 }
 0x57b   :  { %2907 = vmatmul.bf16.gmra.mxu3 %v9758_v26  ;;  %2936 = vmatmul.bf16.gmra.mxu1 %v9758_v26 }
 0x57c   :  { %13040 = vst [vmem:[#allocation50_spill] sm:$0xff] %v9860_v38  ;;  %2965 = vmatmul.bf16.gmra.mxu0 %v9758_v26  ;;  %v7153_v38 = vld [vmem:[#allocation2 + $0x408] sm:$0xf] }
 0x57d   :  { %v9866_v45 = vpop.f32.mrf.mxu2  ;;  %v7154_v1 = vor.u32 %v8011_v4, %v7153_v38  ;;  %v7997_v4 = vld [vmem:[#allocation2 + $0x3b0] sm:$0xf0] }
 0x57e   :  { %v9868_v28 = vpop.f32.mrf.mxu3  ;;  %v7098_v38 = vor.u32 %v7997_v4, %v7097_v59  ;;  %v8054_v4 = vld [vmem:[#allocation4 + $0x38] sm:$0xff] }
 0x57f   :  { %2986 = vmatpush.bf16.msra.mxu2 %v7154_v1  ;;  %4866 = vmatpush.bf16.msrb.mxu3 %v8054_v4  ;;  %v9930_v4 = vpop.xlane.xlu1 %1325 }
 0x580   :  { %v9870_v56 = vpop.f32.mrf.mxu1 }
 0x581   :  { %v9872_v2 = vpop.f32.mrf.mxu0 }
 0x583   :  { %2987 = vmatpush.bf16.msra.mxu2 %v7126_v47 }
 0x585   :  { %v9874_v14 = vpop.f32.mrf.mxu2 }
 0x586   :  { %v9876_v39 = vpop.f32.mrf.mxu3 }
 0x587   :  { %2988 = vmatpush.bf16.msra.mxu2 %v7098_v38  ;;  %v8062_v38 = vld [vmem:[#allocation4 + $0x78] sm:$0xff] }
 0x588   :  { %v9878_v54 = vpop.f32.mrf.mxu1  ;;  %4895 = vmatpush.bf16.msra.mxu1 %v8062_v38 }
 0x589   :  { %13041 = vst [vmem:[#allocation51_spill] sm:$0xff] %v9878_v54  ;;  %v2383_v21 = vpop.f32.mrf.mxu0 }
 0x58a   :  { %v9881_v57 = vadd.f32 %v2383_v21, %v9795_v23  ;;  %2883 = vmatmul.bf16.gmra.mxu2 %v9786_v24 }
 0x58b   :  { %2912 = vmatmul.bf16.gmra.mxu3 %v9786_v24  ;;  %2941 = vmatmul.bf16.gmra.mxu1 %v9786_v24 }
 0x58c   :  { %13042 = vst [vmem:[#allocation52_spill] sm:$0xff] %v9881_v57  ;;  %2970 = vmatmul.bf16.gmra.mxu0 %v9786_v24  ;;  %v9899_v57 = vpop.xlane.xlu2 %1317  ;;  %v8059_v24 = vld [vmem:[#allocation4 + $0x60] sm:$0xff] }
 0x58d   :  { %v9887_v35 = vpop.f32.mrf.mxu2 }
 0x58e   :  { %v9889_v32 = vpop.f32.mrf.mxu3 }
 0x58f   :  { %13043 = vst [vmem:[#allocation53_spill] sm:$0xff] %v9889_v32 }
 0x590   :  { %v9891_v47 = vpop.f32.mrf.mxu1 }
 0x591   :  { %13044 = vst [vmem:[#allocation54_spill] sm:$0xff] %v9891_v47  ;;  %v9893_v23 = vpop.f32.mrf.mxu0 }
 0x592   :  { %13045 = vst [vmem:[#allocation55_spill] sm:$0xff] %v9893_v23 }
 0x594   :  { %v9925_v52 = vpop.xlane.xlu2 %1323 }
 0x595   :  { %v9895_v1 = vpop.f32.mrf.mxu2 }
 0x596   :  { %13046 = vst [vmem:[#allocation56_spill] sm:$0xff] %v9895_v1  ;;  %v9897_v21 = vpop.f32.mrf.mxu3 }
 0x597   :  { %13047 = vst [vmem:[#allocation57_spill] sm:$0xff] %v9897_v21  ;;  %v8061_v21 = vld [vmem:[#allocation4 + $0x70] sm:$0xff] }
 0x598   :  { %v9901_v50 = vpop.f32.mrf.mxu1  ;;  %4896 = vmatpush.bf16.msra.mxu1 %v8061_v21  ;;  %v9948_v21 = vld [vmem:[%s12882_s13] sm:$0xff] }
 0x599   :  { %13048 = vst [vmem:[#allocation58_spill] sm:$0xff] %v9901_v50  ;;  %v2388_v51 = vpop.f32.mrf.mxu0  ;;  %v8053_v50 = vld [vmem:[#allocation4 + $0x30] sm:$0xff] }
 0x59a   :  { %v9906_v59 = vadd.f32 %v2388_v51, %v9823_v0  ;;  %2888 = vmatmul.bf16.gmra.mxu2 %v9814_v20  ;;  %v9919_v51 = vld [vmem:[%s13052_s7] sm:$0xff]  ;;  %4867 = vmatpush.bf16.msrb.mxu3 %v8053_v50  ;;  %13057 = vst [vmem:[#allocation66_spill] sm:$0xff] %v9948_v21 }
 0x59b   :  { %2917 = vmatmul.bf16.gmra.mxu3 %v9814_v20  ;;  %2946 = vmatmul.bf16.gmra.mxu1 %v9814_v20  ;;  %v3068_v23 = vperm.slane %v9919_v51, 0  ;;  %v3069_v38 = vperm.slane %v9919_v51, 1  ;;  %v9960_v5 = vperm.slane %v9919_v51, 2 }
 0x59c   :  { %13049 = vst [vmem:[#allocation59_spill] sm:$0xff] %v9906_v59  ;;  %2975 = vmatmul.bf16.gmra.mxu0 %v9814_v20  ;;  %v9927_v20 = vpop.xlane.xlu0 %1321  ;;  %4897 = vmatpush.bf16.msra.mxu1 %v8060_v48 }
 0x59d   :  { %v9912_v30 = vpop.f32.mrf.mxu2  ;;  %v3083_v47 = vmul.f32 %v3069_v38, %v9899_v57  ;;  %v9940_v43 = vmul.f32 %v3068_v23, %v9903_v41  ;;  %v9943_v50 = vmul.f32 %v3069_v38, %v9903_v41  ;;  %v9951_v32 = vmul.f32 %v3068_v23, %v9927_v20 }
 0x59e   :  { %13050 = vst [vmem:[#allocation60_spill] sm:$0xff] %v9912_v30  ;;  %v9914_v37 = vpop.f32.mrf.mxu3  ;;  %v2287_v30 = vadd.f32 %v9845_v60, %v9649_v6  ;;  %v9965_v15 = vmul.f32 %v3069_v38, %v9927_v20  ;;  %v9968_v54 = vmul.f32 %v3068_v23, %v9925_v52  ;;  %v9974_v49 = vmul.f32 %v3069_v38, %v9925_v52 }
 0x59f   :  { %13051 = vst [vmem:[#allocation61_spill] sm:$0xff] %v9914_v37  ;;  %v8052_v37 = vld [vmem:[#allocation4 + $0x28] sm:$0xff]  ;;  %v9986_v60 = vmul.f32 %v9960_v5, %v9899_v57 }
 0x5a0   :  { %v9921_v0 = vpop.f32.mrf.mxu1  ;;  %4868 = vmatpush.bf16.msrb.mxu3 %v8052_v37  ;;  %13058 = vst [vmem:[#allocation67_spill] sm:$0xff] %v9965_v15  ;;  %v9971_v37 = vperm.slane %v9919_v51, 3  ;;  %v9995_v15 = vperm.slane %v9948_v21, 1  ;;  %4898 = vmatpush.bf16.msra.mxu1 %v8059_v24 }
 0x5a1   :  { %13053 = vst [vmem:[#allocation62_spill] sm:$0xff] %v9921_v0  ;;  %v9923_v59 = vpop.f32.mrf.mxu0 }
 0x5a2   :  { %13054 = vst [vmem:[#allocation63_spill] sm:$0xff] %v9923_v59  ;;  %v3082_v59 = vmul.f32 %v3068_v23, %v9899_v57 }
 0x5a3   :  { %13059 = vst [vmem:[#allocation68_spill] sm:$0xff] %v9968_v54  ;;  %v9988_v54 = vpop.xlane.xlu2 %1327 }
 0x5a4   :  { %13060 = vst [vmem:[#allocation69_spill] sm:$0xff] %v9974_v49  ;;  %v9992_v49 = vperm.slane %v9948_v21, 0  ;;  %4869 = vmatpush.bf16.msrb.mxu3 %v8051_v12  ;;  %v10020_v12 = vmul.f32 %v9971_v37, %v9903_v41  ;;  %v8058_v21 = vld [vmem:[#allocation4 + $0x58] sm:$0xff] }
 0x5a5   :  { %v9933_v55 = vpop.f32.mrf.mxu2  ;;  %13063 = vst [vmem:[#allocation72_spill] sm:$0xff] %v9986_v60  ;;  %4899 = vmatpush.bf16.msra.mxu1 %v8058_v21  ;;  %v10086_v21 = vmul.f32 %v9960_v5, %v9925_v52 }
 0x5a6   :  { %13055 = vst [vmem:[#allocation64_spill] sm:$0xff] %v9933_v55  ;;  %v9935_v0 = vpop.f32.mrf.mxu3  ;;  %v9957_v55 = vperm.slane %v9919_v51, 5 }
 0x5a7   :  { %13056 = vst [vmem:[#allocation65_spill] sm:$0xff] %v9935_v0  ;;  %v9954_v0 = vperm.slane %v9919_v51, 4 }
 0x5a8   :  { %v2816_v48 = vpop.f32.mrf.mxu1  ;;  %v9982_v6 = vmul.f32 %v9957_v55, %v9899_v57  ;;  %13068 = vst [vmem:[#allocation77_spill] sm:$0xff] %v10020_v12 }
 0x5a9   :  { %v2845_v16 = vpop.f32.mrf.mxu0  ;;  %v9978_v58 = vmul.f32 %v9954_v0, %v9899_v57  ;;  %v3010_v1 = vadd.f32 %v2816_v48, %v9733_v31  ;;  %v10006_v60 = vmul.f32 %v9954_v0, %v9903_v41  ;;  %v10010_v31 = vmul.f32 %v9957_v55, %v9903_v41 }
 0x5aa   :  { %13062 = vst [vmem:[#allocation71_spill] sm:$0xff] %v9982_v6  ;;  %v3011_v25 = vadd.f32 %v2845_v16, %v2287_v30  ;;  %2989 = vmatmul.bf16.vlgmr.msra.gmra.mxu2 %v9730_v29  ;;  %v10002_v6 = vmul.f32 %v9971_v37, %v9899_v57  ;;  %v10012_v16 = vpop.xlane.xlu1 %1331  ;;  %v10016_v29 = vmul.f32 %v9960_v5, %v9903_v41 }
 0x5ab   :  { %13061 = vst [vmem:[#allocation70_spill] sm:$0xff] %v9978_v58  ;;  %v9997_v58 = vpop.xlane.xlu0 %1329  ;;  %v3138_v30 = vadd.f32 %v3082_v59, %v3010_v1  ;;  %v10029_v1 = vmul.f32 %v3068_v23, %v9988_v54 }
 0x5ac   :  { %13064 = vst [vmem:[#allocation73_spill] sm:$0xff] %v10002_v6  ;;  %v3139_v48 = vadd.f32 %v3083_v47, %v3011_v25  ;;  %v10023_v6 = vmul.f32 %v3068_v23, %v9930_v4  ;;  %v10032_v25 = vmul.f32 %v3069_v38, %v9988_v54 }
 0x5ad   :  { %13065 = vst [vmem:[#allocation74_spill] sm:$0xff] %v10006_v60  ;;  %v10026_v60 = vmul.f32 %v3069_v38, %v9930_v4  ;;  %v10035_v24 = vadd.f32 %v9992_v49, %v3138_v30  ;;  %v10040_v59 = vpop.f32.mrf.mxu2  ;;  %v10054_v30 = vmul.f32 %v3069_v38, %v10012_v16 }
 0x5ae   :  { %13066 = vst [vmem:[#allocation75_spill] sm:$0xff] %v10010_v31  ;;  %v8050_v31 = vld [vmem:[#allocation4 + $0x18] sm:$0xff]  ;;  %v10038_v47 = vadd.f32 %v9995_v15, %v3139_v48  ;;  %v10042_v12 = vpop.f32.mrf.mxu3  ;;  %v10058_v48 = vmul.f32 %v9954_v0, %v9927_v20 }
 0x5af   :  { %13067 = vst [vmem:[#allocation76_spill] sm:$0xff] %v10016_v29  ;;  %v10045_v29 = vmul.f32 %v3068_v23, %v9997_v58  ;;  %4870 = vmatpush.bf16.msrb.mxu3 %v8050_v31 }
 0x5b0   :  { %13069 = vst [vmem:[#allocation78_spill] sm:$0xff] %v10026_v60  ;;  %v10048_v60 = vmul.f32 %v3069_v38, %v9997_v58  ;;  %v7296_v31 = vmul.f32 -1.442695, %v10038_v47  ;;  %v2818_v38 = vpop.f32.mrf.mxu1 }
 0x5b1   :  { %13070 = vst [vmem:[#allocation79_spill] sm:$0xff] %v10029_v1  ;;  %v10051_v1 = vmul.f32 %v3068_v23, %v10012_v16  ;;  %v10070_v23 = vmul.f32 %v9960_v5, %v9927_v20 }
 0x5b2   :  { %13071 = vst [vmem:[#allocation80_spill] sm:$0xff] %v10032_v25  ;;  %v10091_v25 = vmul.f32 %v9971_v37, %v9925_v52 }
 0x5b3   :  { %13072 = vst [vmem:[#allocation81_spill] sm:$0xff] %v10040_v59  ;;  %v2289_v59 = vadd.f32 %v9853_v46, %v9657_v34  ;;  %v10078_v34 = vmul.f32 %v9954_v0, %v9925_v52  ;;  %v10082_v46 = vmul.f32 %v9957_v55, %v9925_v52 }
 0x5b4   :  { %13073 = vst [vmem:[#allocation82_spill] sm:$0xff] %v10042_v12  ;;  %v10062_v12 = vmul.f32 %v9957_v55, %v9927_v20 }
 0x5b5   :  { %13074 = vst [vmem:[#allocation83_spill] sm:$0xff] %v10045_v29  ;;  %v10074_v29 = vmul.f32 %v9971_v37, %v9927_v20 }
 0x5b6   :  { %13075 = vst [vmem:[#allocation84_spill] sm:$0xff] %v10048_v60  ;;  %v7295_v60 = vmul.f32 -1.442695, %v10035_v24 }
 0x5b7   :  { %13076 = vst [vmem:[#allocation85_spill] sm:$0xff] %v10051_v1  ;;  %v8049_v1 = vld [vmem:[#allocation4 + $0x10] sm:$0xff] }
 0x5b8   :  { %13077 = vst [vmem:[#allocation86_spill] sm:$0xff] %v10054_v30  ;;  %v2847_v30 = vpop.f32.mrf.mxu0  ;;  %8346 = vpow2.f32 %v7295_v60  ;;  %4871 = vmatpush.bf16.msrb.mxu3 %v8049_v1  ;;  %v10103_v60 = vmul.f32 %v9960_v5, %v9930_v4  ;;  %v10109_v1 = vmul.f32 %v9971_v37, %v9930_v4 }
 0x5b9   :  { %13078 = vst [vmem:[#allocation87_spill] sm:$0xff] %v10058_v48  ;;  %v8057_v48 = vld [vmem:[#allocation4 + $0x50] sm:$0xff]  ;;  %8348 = vpow2.f32 %v7296_v31  ;;  %v8048_v31 = vld [vmem:[#allocation4 + $0x8] sm:$0xff] }
 0x5ba   :  { %13079 = vst [vmem:[#allocation88_spill] sm:$0xff] %v10062_v12  ;;  %v3018_v12 = vadd.f32 %v2847_v30, %v2289_v59  ;;  %4900 = vmatpush.bf16.msra.mxu1 %v8057_v48  ;;  %v3074_v30 = vperm.slane %v9919_v51, 6  ;;  %v10134_v48 = vpop.f32.mrf.mxu2  ;;  %2994 = vmatmul.bf16.gmra.mxu2 %v9758_v26  ;;  %v10212_v26 = vadd.f32 %v9847_v7, %v9639_v13 }
 0x5bb   :  { %13080 = vst [vmem:[#allocation89_spill] sm:$0xff] %v10070_v23  ;;  %v3017_v23 = vadd.f32 %v2818_v38, %v9746_v8  ;;  %v8056_v38 = vld [vmem:[#allocation4 + $0x48] sm:$0xff]  ;;  %v2294_v7 = vadd.f32 %v9874_v14, %v9677_v19 }
 0x5bc   :  { %13081 = vst [vmem:[#allocation90_spill] sm:$0xff] %v10078_v34  ;;  %v10095_v34 = vmul.f32 %v9954_v0, %v9930_v4  ;;  %v3146_v59 = vadd.f32 %v9943_v50, %v3018_v12  ;;  %v10126_v50 = vmul.f32 %v9971_v37, %v9988_v54  ;;  %4872 = vmatpush.bf16.msrb.mxu3 %v8048_v31 }
 0x5bd   :  { %13082 = vst [vmem:[#allocation91_spill] sm:$0xff] %v10082_v46  ;;  %v10099_v46 = vmul.f32 %v9957_v55, %v9930_v4  ;;  %v3145_v8 = vadd.f32 %v9940_v43, %v3017_v23  ;;  %v10122_v43 = vmul.f32 %v9960_v5, %v9988_v54  ;;  %v10136_v23 = vpop.f32.mrf.mxu3  ;;  %v10163_v31 = vmul.f32 %v9954_v0, %v10012_v16 }
 0x5be   :  { %13083 = vst [vmem:[#allocation92_spill] sm:$0xff] %v10091_v25  ;;  %v10132_v12 = vadd.f32 %v9995_v15, %v3146_v59  ;;  %v10154_v59 = vmul.f32 %v9960_v5, %v9997_v58  ;;  %4901 = vmatpush.bf16.msra.mxu1 %v8056_v38  ;;  %v8047_v38 = vld [vmem:[#allocation4] sm:$0xff] }
 0x5bf   :  { %13084 = vst [vmem:[#allocation93_spill] sm:$0xff] %v10095_v34  ;;  %v10129_v51 = vadd.f32 %v9992_v49, %v3145_v8  ;;  %v10150_v8 = vmul.f32 %v9957_v55, %v9997_v58  ;;  %v8055_v34 = vld [vmem:[#allocation4 + $0x40] sm:$0xff] }
 0x5c0   :  { %13085 = vst [vmem:[#allocation94_spill] sm:$0xff] %v10099_v46  ;;  %v10114_v46 = vmul.f32 %v9954_v0, %v9988_v54  ;;  %4873 = vmatpush.bf16.msrb.mxu3 %v8047_v38 }
 0x5c1   :  { %13086 = vst [vmem:[#allocation95_spill] sm:$0xff] %v10103_v60  ;;  %v10118_v60 = vmul.f32 %v9957_v55, %v9988_v54 }
 0x5c2   :  { %13087 = vst [vmem:[#allocation96_spill] sm:$0xff] %v10109_v1  ;;  %v2850_v1 = vpop.f32.mrf.mxu0  ;;  %4902 = vmatpush.bf16.msra.mxu1 %v8055_v34  ;;  %v10231_v13 = vpop.f32.mrf.mxu2  ;;  %v13112_v34 = vld [vmem:[#allocation31_spill] sm:$0xff] }
 0x5c3   :  { %13088 = vst [vmem:[#allocation97_spill] sm:$0xff] %v10114_v46  ;;  %v10142_v46 = vmul.f32 %v3074_v30, %v9903_v41  ;;  %v7302_v41 = vmul.f32 -1.442695, %v10129_v51 }
 0x5c4   :  { %13089 = vst [vmem:[#allocation98_spill] sm:$0xff] %v10118_v60  ;;  %v10139_v60 = vmul.f32 %v3074_v30, %v9899_v57  ;;  %v10158_v57 = vmul.f32 %v9971_v37, %v9997_v58 }
 0x5c5   :  { %13090 = vst [vmem:[#allocation99_spill] sm:$0xff] %v10122_v43  ;;  %v2821_v43 = vpop.f32.mrf.mxu1  ;;  %8350 = vpow2.f32 %v7302_v41 }
 0x5c6   :  { %13091 = vst [vmem:[#allocation100_spill] sm:$0xff] %v10126_v50  ;;  %v10146_v50 = vmul.f32 %v9954_v0, %v9997_v58  ;;  %v10178_v0 = vmul.f32 %v9971_v37, %v10012_v16  ;;  %v10194_v37 = vmul.f32 %v3074_v30, %v9930_v4  ;;  %v10217_v4 = vadd.f32 %v9849_v17, %v9653_v33 }
 0x5c7   :  { %13092 = vst [vmem:[#allocation101_spill] sm:$0xff] %v10139_v60  ;;  %v8347_v60 = vpop.eup %8346  ;;  %v10237_v33 = vadd.f32 %v9868_v28, %v9659_v53  ;;  %v10254_v17 = vadd.f32 %v9876_v39, %v9671_v42  ;;  %v10258_v53 = vadd.f32 %v9887_v35, %v9689_v11  ;;  %v13111_v28 = vld [vmem:[#allocation56_spill] sm:$0xff] }
 0x5c8   :  { %13093 = vst [vmem:[#allocation102_spill] sm:$0xff] %v10142_v46  ;;  %v10167_v46 = vmul.f32 %v9957_v55, %v10012_v16  ;;  %v10181_v55 = vmul.f32 %v3074_v30, %v9927_v20  ;;  %v10197_v20 = vmul.f32 %v3074_v30, %v9988_v54 }
 0x5c9   :  { %13094 = vst [vmem:[#allocation103_spill] sm:$0xff] %v10146_v50  ;;  %v10173_v50 = vadd.f32 1.0, %v8347_v60  ;;  %v3024_v60 = vadd.f32 %v2821_v43, %v9761_v22  ;;  %v10201_v22 = vmul.f32 %v3074_v30, %v9997_v58  ;;  %v10221_v58 = vadd.f32 %v9851_v3, %v9752_v18 }
 0x5ca   :  { %13095 = vst [vmem:[#allocation104_spill] sm:$0xff] %v10150_v8  ;;  %v10171_v8 = vmul.f32 %v9960_v5, %v10012_v16  ;;  %v2292_v5 = vadd.f32 %v9866_v45, %v9669_v63  ;;  %v10204_v45 = vmul.f32 %v3074_v30, %v10012_v16  ;;  %v10225_v16 = vadd.f32 %v9855_v61, %v9651_v62  ;;  %v2852_v14 = vpop.f32.mrf.mxu0 }
 0x5cb   :  { %13096 = vst [vmem:[#allocation105_spill] sm:$0xff] %v10154_v59  ;;  %v8349_v59 = vpop.eup %8348  ;;  %8352 = vrcp.f32 %v10173_v50  ;;  %v3152_v54 = vadd.f32 %v9951_v32, %v3024_v60  ;;  %v10241_v18 = vadd.f32 %v9870_v56, %v9673_v44  ;;  %v10245_v62 = vadd.f32 %v9872_v2, %v9780_v40  ;;  %v13109_v44 = vld [vmem:[#allocation67_spill] sm:$0xff]  ;;  %v13110_v40 = vld [vmem:[#allocation17_spill] sm:$0xff] }
 0x5cc   :  { %13097 = vst [vmem:[#allocation106_spill] sm:$0xff] %v10158_v57  ;;  %v7303_v57 = vmul.f32 -1.442695, %v10132_v12  ;;  %v3025_v63 = vadd.f32 %v2850_v1, %v2292_v5  ;;  %v10265_v56 = vadd.f32 %v13111_v28, %v13110_v40  ;;  %vm3495_vm6 = vweird.f32 %v10173_v50 }
 0x5cd   :  { %13098 = vst [vmem:[#allocation107_spill] sm:$0xff] %v10163_v31  ;;  %v10248_v61 = vadd.f32 %v9992_v49, %v3152_v54  ;;  %v2823_v42 = vpop.f32.mrf.mxu1  ;;  %v3499_v35 = vand.u32 2147483647, %v10173_v50  ;;  %v3501_v32 = vand.u32 2147483648, %v10173_v50 }
 0x5ce   :  { %13099 = vst [vmem:[#allocation108_spill] sm:$0xff] %v10167_v46  ;;  %v10191_v46 = vmul.f32 %v3074_v30, %v9925_v52  ;;  %v10208_v52 = vadd.f32 %v9836_v9, %v9641_v10  ;;  %v10229_v10 = vadd.f32 %v9857_v27, %v9661_v36  ;;  %v10233_v9 = vpop.f32.mrf.mxu3  ;;  %v8351_v36 = vpop.eup %8350  ;;  %v3153_v3 = vadd.f32 %v13109_v44, %v3025_v63  ;;  %v13113_v63 = vld [vmem:[#allocation68_spill] sm:$0xff] }
 0x5cf   :  { %13100 = vst [vmem:[#allocation109_spill] sm:$0xff] %v10171_v8  ;;  %v10185_v8 = vadd.f32 1.0, %v8349_v59  ;;  %v10268_v2 = vadd.f32 1.0, %v8351_v36  ;;  %v7309_v19 = vmul.f32 -1.442695, %v10248_v61  ;;  %v3031_v1 = vadd.f32 %v2823_v42, %v13112_v34  ;;  %v10295_v42 = vpop.f32.mrf.mxu2 }
 0x5d0   :  { %13101 = vst [vmem:[#allocation110_spill] sm:$0xff] %v10178_v0  ;;  %v10288_v5 = vadd.f32 %v9995_v15, %v3153_v3  ;;  %v3032_v36 = vadd.f32 %v2852_v14, %v2294_v7  ;;  %vm10299_vm0 = vcmp.eq.f32.partialorder %v3499_v35, 8.507059e+37  ;;  %v13132_v7 = vld [vmem:[#allocation38_spill] sm:$0xff] }
 0x5d1   :  { %13102 = vst [vmem:[#allocation111_spill] sm:$0xff] %v10181_v55  ;;  %8354 = vrcp.f32 %v10185_v8  ;;  %v10261_v27 = vpop.eup %8352  ;;  %vm3510_vm14 = vweird.f32 %v10185_v8  ;;  %v3514_v59 = vand.u32 2147483647, %v10185_v8  ;;  %v3159_v54 = vadd.f32 %v13113_v63, %v3031_v1 }
 0x5d2   :  { %13103 = vst [vmem:[#allocation112_spill] sm:$0xff] %v10191_v46  ;;  %8356 = vpow2.f32 %v7303_v57  ;;  %v3491_v11 = vmul.f32 %v10261_v27, %v10173_v50  ;;  %v3516_v57 = vand.u32 2147483648, %v10185_v8  ;;  %vm3496_vm15 = vweird.f32 %v10261_v27 }
 0x5d3   :  { %13104 = vst [vmem:[#allocation113_spill] sm:$0xff] %v10194_v37  ;;  %8358 = vrcp.f32 %v10268_v2  ;;  %v3604_v40 = vand.u32 2147483647, %v10268_v2  ;;  %v3606_v28 = vand.u32 2147483648, %v10268_v2  ;;  %vm10304_vm1 = vcmp.eq.f32.partialorder %v3514_v59, 8.507059e+37  ;;  %vm10318_vm2 = vmor %vm3495_vm6, %vm3496_vm15 }
 0x5d4   :  { %13105 = vst [vmem:[#allocation114_spill] sm:$0xff] %v10197_v20  ;;  %v3492_v41 = vsub.f32 1.0, %v3491_v11  ;;  %8360 = vpow2.f32 %v7309_v19  ;;  %v3502_v19 = vor.u32 1.1754944e-38, %v3501_v32  ;;  %v7310_v1 = vmul.f32 -1.442695, %v10288_v5 }
 0x5d5   :  { %13106 = vst [vmem:[#allocation115_spill] sm:$0xff] %v10201_v22  ;;  %vm3600_vm4 = vweird.f32 %v10268_v2  ;;  %v2826_v63 = vpop.f32.mrf.mxu1  ;;  %vm10329_vm5 = vcmp.eq.f32.partialorder %v3604_v40, 8.507059e+37 }
 0x5d6   :  { %13107 = vst [vmem:[#allocation116_spill] sm:$0xff] %v10204_v45  ;;  %v3493_v44 = vmul.f32 %v10261_v27, %v3492_v41  ;;  %v10297_v11 = vpop.f32.mrf.mxu3 }
 0x5d7   :  { %13108 = vst [vmem:[#allocation117_spill] sm:$0xff] %v10233_v9  ;;  %v10271_v39 = vpop.eup %8354  ;;  %v13168_v9 = vld [vmem:[#allocation46_spill] sm:$0xff] }
 0x5d8   :  { %v8357_v30 = vpop.eup %8356  ;;  %v3506_v43 = vmul.f32 %v10271_v39, %v10185_v8  ;;  %13114 = vst [vmem:[#allocation67_spill] sm:$0xff] %v10297_v11  ;;  %v3494_v14 = vadd.f32 %v10261_v27, %v3493_v44  ;;  %vm3511_vm3 = vweird.f32 %v10271_v39 }
 0x5d9   :  { %v10285_v38 = vadd.f32 1.0, %v8357_v30  ;;  %v10311_v30 = vadd.f32 %v9992_v49, %v3159_v54  ;;  %v8359_v35 = vpop.eup %8358  ;;  %v2855_v54 = vpop.f32.mrf.mxu0  ;;  %vm10345_vm8 = vmor %vm3510_vm14, %vm3511_vm3 }
 0x5da   :  { %v3507_v60 = vsub.f32 1.0, %v3506_v43  ;;  %v13119_v43 = vld [vmem:[#allocation69_spill] sm:$0xff]  ;;  %v3596_v44 = vmul.f32 %v8359_v35, %v10268_v2  ;;  %v8361_v45 = vpop.eup %8360  ;;  %vm3601_vm9 = vweird.f32 %v8359_v35 }
 0x5db   :  { %8362 = vrcp.f32 %v10285_v38  ;;  %v3160_v41 = vadd.f32 %v13119_v43, %v3032_v36  ;;  %v3498_v36 = vsel %vm10318_vm2, %v10261_v27, %v3494_v14  ;;  %v3607_v43 = vor.u32 1.1754944e-38, %v3606_v28  ;;  %v13124_v27 = vld [vmem:[#allocation34_spill] sm:$0xff]  ;;  %vm3602_vm11 = vmor %vm3600_vm4, %vm3601_vm9 }
 0x5dc   :  { %v3508_v34 = vmul.f32 %v10271_v39, %v3507_v60  ;;  %v3517_v60 = vor.u32 1.1754944e-38, %v3516_v57  ;;  %vm3615_vm7 = vweird.f32 %v10285_v38  ;;  %v3619_v57 = vand.u32 2147483647, %v10285_v38  ;;  %2999 = vmatmul.bf16.gmra.mxu2 %v13124_v27 }
 0x5dd   :  { %v3621_v22 = vand.u32 2147483648, %v10285_v38  ;;  %v10338_v20 = vadd.f32 %v9995_v15, %v3160_v41  ;;  %v3597_v28 = vsub.f32 1.0, %v3596_v44  ;;  %v10349_v32 = vadd.f32 1.0, %v8361_v45  ;;  %v13127_v44 = vld [vmem:[#allocation35_spill] sm:$0xff]  ;;  %v10360_v45 = vpop.f32.mrf.mxu2 }
 0x5de   :  { %v3509_v59 = vadd.f32 %v10271_v39, %v3508_v34  ;;  %v7316_v34 = vmul.f32 -1.442695, %v10311_v30  ;;  %8364 = vpow2.f32 %v7310_v1  ;;  %v3503_v41 = vsel %vm10299_vm0, %v3502_v19, %v3498_v36  ;;  %v10362_v1 = vpop.f32.mrf.mxu3  ;;  %v13136_v19 = vld [vmem:[#allocation14_spill] sm:$0xff] }
 0x5df   :  { %v3598_v8 = vmul.f32 %v8359_v35, %v3597_v28  ;;  %v7317_v46 = vmul.f32 -1.442695, %v10338_v20  ;;  %v3038_v55 = vadd.f32 %v2826_v63, %v13127_v44  ;;  %13128 = vst [vmem:[#allocation17_spill] sm:$0xff] %v10362_v1  ;;  %vm10364_vm10 = vcmp.eq.f32.partialorder %v3619_v57, 8.507059e+37  ;;  %v13131_v57 = vld [vmem:[#allocation78_spill] sm:$0xff]  ;;  %v13163_v1 = vld [vmem:[#allocation81_spill] sm:$0xff] }
 0x5e0   :  { %v3513_v27 = vsel %vm10345_vm8, %v10271_v39, %v3509_v59  ;;  %8366 = vpow2.f32 %v7316_v34  ;;  %v3622_v39 = vor.u32 1.1754944e-38, %v3621_v22  ;;  %v3039_v59 = vadd.f32 %v2855_v54, %v10258_v53  ;;  %v2828_v22 = vpop.f32.mrf.mxu1 }
 0x5e1   :  { %v8363_v14 = vpop.eup %8362  ;;  %8368 = vrcp.f32 %v10349_v32  ;;  %v4330_v36 = vmul.f32 %v3503_v41, %v10035_v24  ;;  %v3518_v34 = vsel %vm10304_vm1, %v3517_v60, %v3513_v27  ;;  %v3599_v40 = vadd.f32 %v8359_v35, %v3598_v8  ;;  %v2857_v44 = vpop.f32.mrf.mxu0 }
 0x5e2   :  { %v3611_v37 = vmul.f32 %v8363_v14, %v10285_v38  ;;  %v3166_v63 = vadd.f32 %v10023_v6, %v3038_v55  ;;  %vm3616_vm12 = vweird.f32 %v8363_v14  ;;  %8370 = vpow2.f32 %v7317_v46 }
 0x5e3   :  { %v3167_v28 = vadd.f32 %v13131_v57, %v3039_v59  ;;  %v3603_v54 = vsel %vm3602_vm11, %v8359_v35, %v3599_v40  ;;  %v3045_v60 = vadd.f32 %v2828_v22, %v13132_v7  ;;  %v3046_v6 = vadd.f32 %v2857_v44, %v10265_v56  ;;  %vm3617_vm13 = vmor %vm3615_vm7, %vm3616_vm12  ;;  %v13139_v7 = vld [vmem:[#allocation20_spill] sm:$0xff] }
 0x5e4   :  { %v3612_v3 = vsub.f32 1.0, %v3611_v37  ;;  %v8365_v53 = vpop.eup %8364  ;;  %v10378_v24 = vadd.f32 %v9992_v49, %v3166_v63  ;;  %v4331_v2 = vmul.f32 %v3518_v34, %v10038_v47  ;;  %v3608_v41 = vsel %vm10329_vm5, %v3607_v43, %v3603_v54  ;;  %v13133_v47 = vld [vmem:[#allocation79_spill] sm:$0xff]  ;;  %v13134_v34 = vld [vmem:[#allocation80_spill] sm:$0xff] }
 0x5e5   :  { %v10386_v27 = vadd.f32 %v9995_v15, %v3167_v28  ;;  %v4337_v35 = vmul.f32 %v3608_v41, %v10129_v51  ;;  %v3173_v59 = vadd.f32 %v13133_v47, %v3045_v60  ;;  %v3174_v40 = vadd.f32 %v13134_v34, %v3046_v6  ;;  %v10408_v57 = vpop.f32.mrf.mxu2  ;;  %v13140_v60 = vld [vmem:[#allocation60_spill] sm:$0xff]  ;;  %v13141_v41 = vld [vmem:[#allocation13_spill] sm:$0xff]  ;;  %v13145_v34 = vld [vmem:[#allocation54_spill] sm:$0xff] }
 0x5e6   :  { %v3613_v37 = vmul.f32 %v8363_v14, %v3612_v3  ;;  %v8367_v55 = vpop.eup %8366  ;;  %v7323_v56 = vmul.f32 -1.442695, %v10378_v24  ;;  %v10410_v28 = vpop.f32.mrf.mxu3  ;;  %v10413_v44 = vadd.f32 1.0, %v8365_v53  ;;  %v2302_v6 = vadd.f32 %v13140_v60, %v13139_v7 }
 0x5e7   :  { %v10388_v8 = vpop.eup %8368  ;;  %v10394_v3 = vadd.f32 1.0, %v8367_v55  ;;  %v7324_v43 = vmul.f32 -1.442695, %v10386_v27  ;;  %v10406_v38 = vadd.f32 %v9992_v49, %v3173_v59  ;;  %13135 = vst [vmem:[#allocation56_spill] sm:$0xff] %v10410_v28  ;;  %v13162_v28 = vld [vmem:[#allocation25_spill] sm:$0xff]  ;;  %vm3705_vm14 = vweird.f32 %v10349_v32 }
 0x5e8   :  { %v3614_v46 = vadd.f32 %v8363_v14, %v3613_v37  ;;  %v3701_v63 = vmul.f32 %v10388_v8, %v10349_v32  ;;  %v4386_v37 = vpack.c.bf16 %v4337_v35, %v4330_v36  ;;  %v10416_v36 = vadd.f32 %v9995_v15, %v3174_v40 }
 0x5e9   :  { %8372 = vrcp.f32 %v10394_v3  ;;  %v7330_v55 = vmul.f32 -1.442695, %v10406_v38  ;;  %v2860_v47 = vpop.f32.mrf.mxu0  ;;  %vm3706_vm6 = vweird.f32 %v10388_v8  ;;  %v10474_v11 = vadd.f32 %v13163_v1, %v13162_v28 }
 0x5ea   :  { %v3618_v50 = vsel %vm3617_vm13, %v8363_v14, %v3614_v46  ;;  %v8371_v14 = vpop.eup %8370  ;;  %8374 = vpow2.f32 %v7323_v56  ;;  %4874 = vmatmul.bf16.vlgmr.msrb.gmra.mxu3 %v4386_v37  ;;  %v13142_v46 = vld [vmem:[#allocation53_spill] sm:$0xff]  ;;  %v7331_v35 = vmul.f32 -1.442695, %v10416_v36  ;;  %v2831_v56 = vpop.f32.mrf.mxu1  ;;  %v3702_v59 = vsub.f32 1.0, %v3701_v63  ;;  %v13149_v37 = vld [vmem:[#allocation55_spill] sm:$0xff]  ;;  %vm10481_vm15 = vmor %vm3705_vm14, %vm3706_vm6 }
 0x5eb   :  { %v3623_v51 = vsel %vm10364_vm10, %v3622_v39, %v3618_v50  ;;  %v13137_v39 = vld [vmem:[#allocation51_spill] sm:$0xff]  ;;  %8376 = vpow2.f32 %v7324_v43  ;;  %v13144_v50 = vld [vmem:[#allocation16_spill] sm:$0xff]  ;;  %vm3810_vm1 = vweird.f32 %v10394_v3  ;;  %v3814_v1 = vand.u32 2147483647, %v10394_v3 }
 0x5ec   :  { %v4338_v22 = vmul.f32 %v3623_v51, %v10132_v12  ;;  %v10420_v54 = vadd.f32 %v13137_v39, %v13136_v19  ;;  %v10427_v12 = vadd.f32 %v13142_v46, %v13141_v41  ;;  %v10432_v40 = vadd.f32 %v13145_v34, %v13144_v50  ;;  %v13147_v51 = vld [vmem:[#allocation43_spill] sm:$0xff]  ;;  %v13153_v46 = vld [vmem:[#allocation84_spill] sm:$0xff] }
 0x5ed   :  { %8378 = vpow2.f32 %v7330_v55  ;;  %v3052_v43 = vadd.f32 %v2831_v56, %v13147_v51  ;;  %v3053_v19 = vadd.f32 %v2860_v47, %v2302_v6  ;;  %v13148_v39 = vld [vmem:[#allocation39_spill] sm:$0xff]  ;;  %v3703_v63 = vmul.f32 %v10388_v8, %v3702_v59  ;;  %v13155_v51 = vld [vmem:[#allocation57_spill] sm:$0xff] }
 0x5ee   :  { %13138 = vst [vmem:[#allocation31_spill] sm:$0xff] %v10420_v54  ;;  %v4387_v53 = vpack.c.bf16 %v4338_v22, %v4331_v2  ;;  %v10437_v7 = vadd.f32 %v13149_v37, %v13148_v39  ;;  %8380 = vrcp.f32 %v10413_v44  ;;  %v10440_v2 = vadd.f32 1.0, %v8371_v14  ;;  %v13151_v22 = vld [vmem:[#allocation42_spill] sm:$0xff]  ;;  %v13152_v55 = vld [vmem:[#allocation83_spill] sm:$0xff]  ;;  %v10466_v37 = vpop.f32.mrf.mxu2 }
 0x5ef   :  { %13143 = vst [vmem:[#allocation68_spill] sm:$0xff] %v10427_v12  ;;  %3004 = vmatmul.bf16.gmra.mxu2 %v13151_v22  ;;  %v10444_v60 = vpop.eup %8372  ;;  %8382 = vpow2.f32 %v7331_v35  ;;  %v3180_v41 = vadd.f32 %v13152_v55, %v3052_v43  ;;  %v3181_v6 = vadd.f32 %v13153_v46, %v3053_v19  ;;  %v3709_v56 = vand.u32 2147483647, %v10349_v32  ;;  %v13154_v34 = vld [vmem:[#allocation15_spill] sm:$0xff]  ;;  %v10468_v22 = vpop.f32.mrf.mxu3  ;;  %v13161_v55 = vld [vmem:[#allocation64_spill] sm:$0xff] }
 0x5f0   :  { %13146 = vst [vmem:[#allocation69_spill] sm:$0xff] %v10432_v40  ;;  %4903 = vmatmul.bf16.vlgmr.msra.gmra.mxu1 %v4387_v53  ;;  %v8375_v47 = vpop.eup %8374  ;;  %v3704_v50 = vadd.f32 %v10388_v8, %v3703_v63  ;;  %v3711_v14 = vand.u32 2147483648, %v10349_v32  ;;  %v3806_v53 = vmul.f32 %v10444_v60, %v10394_v3  ;;  %v10456_v35 = vadd.f32 %v13155_v51, %v13154_v34  ;;  %v13160_v63 = vld [vmem:[#allocation23_spill] sm:$0xff] }
 0x5f1   :  { %13150 = vst [vmem:[#allocation34_spill] sm:$0xff] %v10437_v7  ;;  %v8377_v59 = vpop.eup %8376  ;;  %v10458_v43 = vadd.f32 1.0, %v8375_v47  ;;  %v10461_v19 = vadd.f32 %v9992_v49, %v3180_v41  ;;  %v10464_v39 = vadd.f32 %v9995_v15, %v3181_v6  ;;  %v2304_v46 = vadd.f32 %v13161_v55, %v13160_v63  ;;  %v2862_v63 = vpop.f32.mrf.mxu0 }
 0x5f2   :  { %13156 = vst [vmem:[#allocation35_spill] sm:$0xff] %v10456_v35  ;;  %8384 = vrcp.f32 %v10440_v2  ;;  %vm10485_vm0 = vcmp.eq.f32.partialorder %v3709_v56, 8.507059e+37  ;;  %v10493_v32 = vadd.f32 1.0, %v8377_v59  ;;  %v2833_v51 = vpop.f32.mrf.mxu1  ;;  %v3708_v55 = vsel %vm10481_vm15, %v10388_v8, %v3704_v50  ;;  %v13169_v8 = vld [vmem:[#allocation85_spill] sm:$0xff] }
 0x5f3   :  { %13157 = vst [vmem:[#allocation78_spill] sm:$0xff] %v10461_v19  ;;  %v8379_v41 = vpop.eup %8378  ;;  %v7337_v47 = vmul.f32 -1.442695, %v10461_v19  ;;  %v3807_v0 = vsub.f32 1.0, %v3806_v53  ;;  %8386 = vrcp.f32 %v10458_v43  ;;  %v3059_v31 = vadd.f32 %v2833_v51, %v13168_v9 }
 0x5f4   :  { %13158 = vst [vmem:[#allocation38_spill] sm:$0xff] %v10464_v39  ;;  %v10491_v28 = vpop.eup %8380  ;;  %v3060_v40 = vadd.f32 %v2862_v63, %v2304_v46  ;;  %v3816_v35 = vand.u32 2147483648, %v10394_v3  ;;  %v10501_v7 = vadd.f32 1.0, %v8379_v41  ;;  %vm3811_vm2 = vweird.f32 %v10444_v60 }
 0x5f5   :  { %13159 = vst [vmem:[#allocation79_spill] sm:$0xff] %v10468_v22  ;;  %v3712_v22 = vor.u32 1.1754944e-38, %v3711_v14  ;;  %v8383_v56 = vpop.eup %8382  ;;  %8388 = vpow2.f32 %v7337_v47  ;;  %v3808_v59 = vmul.f32 %v10444_v60, %v3807_v0  ;;  %v7338_v6 = vmul.f32 -1.442695, %v10464_v39  ;;  %v13170_v14 = vld [vmem:[#allocation86_spill] sm:$0xff]  ;;  %vm3812_vm3 = vmor %vm3810_vm1, %vm3811_vm2 }
 0x5f6   :  { %v3187_v50 = vadd.f32 %v13169_v8, %v3059_v31  ;;  %v3188_v53 = vadd.f32 %v13170_v14, %v3060_v40  ;;  %v3716_v54 = vmul.f32 %v10491_v28, %v10413_v44  ;;  %8390 = vrcp.f32 %v10493_v32  ;;  %v10524_v40 = vpop.f32.mrf.mxu2  ;;  %v13174_v8 = vld [vmem:[#allocation27_spill] sm:$0xff] }
 0x5f7   :  { %v10513_v46 = vadd.f32 1.0, %v8383_v56  ;;  %v3713_v0 = vsel %vm10485_vm0, %v3712_v22, %v3708_v55  ;;  %v3809_v41 = vadd.f32 %v10444_v60, %v3808_v59  ;;  %v10526_v51 = vpop.f32.mrf.mxu3  ;;  %v3817_v63 = vor.u32 1.1754944e-38, %v3816_v35 }
 0x5f8   :  { %v10510_v9 = vpop.eup %8384  ;;  %v10519_v47 = vadd.f32 %v9992_v49, %v3187_v50  ;;  %v10522_v31 = vadd.f32 %v9995_v15, %v3188_v53  ;;  %13173 = vst [vmem:[#allocation51_spill] sm:$0xff] %v10526_v51  ;;  %v3717_v56 = vsub.f32 1.0, %v3716_v54  ;;  %v10532_v22 = vadd.f32 %v10134_v48, %v13174_v8 }
 0x5f9   :  { %8392 = vrcp.f32 %v10501_v7  ;;  %v3813_v49 = vsel %vm3812_vm3, %v10444_v60, %v3809_v41  ;;  %vm3815_vm4 = vcmp.eq.f32.partialorder %v3814_v1, 8.507059e+37  ;;  %v10536_v15 = vpop.eup %8386  ;;  %vm3721_vm5 = vweird.f32 %v10491_v28  ;;  %v2961_v1 = vpop.f32.mrf.mxu0 }
 0x5fa   :  { %13171 = vst [vmem:[#allocation80_spill] sm:$0xff] %v10519_v47  ;;  %v3818_v34 = vsel %vm3815_vm4, %v3817_v63, %v3813_v49  ;;  %v3718_v55 = vmul.f32 %v10491_v28, %v3717_v56  ;;  %v3726_v3 = vand.u32 2147483648, %v10413_v44  ;;  %8394 = vrcp.f32 %v10513_v46  ;;  %v2932_v60 = vpop.f32.mrf.mxu1 }
 0x5fb   :  { %13172 = vst [vmem:[#allocation14_spill] sm:$0xff] %v10522_v31  ;;  %v8389_v35 = vpop.eup %8388  ;;  %v4344_v48 = vmul.f32 %v3713_v0, %v10248_v61  ;;  %v4351_v54 = vmul.f32 %v3818_v34, %v10311_v30  ;;  %v3724_v59 = vand.u32 2147483647, %v10413_v44  ;;  %8396 = vpow2.f32 %v7338_v6  ;;  %v13175_v34 = vld [vmem:[#allocation49_spill] sm:$0xff] }
 0x5fc   :  { %v3719_v50 = vadd.f32 %v10491_v28, %v3718_v55  ;;  %vm3720_vm7 = vweird.f32 %v10413_v44  ;;  %v3821_v14 = vmul.f32 %v10510_v9, %v10440_v2  ;;  %v10549_v53 = vpop.eup %8390  ;;  %v7344_v41 = vmul.f32 -1.442695, %v10519_v47  ;;  %v13182_v47 = vld [vmem:[#allocation73_spill] sm:$0xff] }
 0x5fd   :  { %v7345_v61 = vmul.f32 -1.442695, %v10522_v31  ;;  %v4393_v0 = vpack.c.bf16 %v4351_v54, %v4344_v48  ;;  %vm3722_vm8 = vmor %vm3720_vm7, %vm3721_vm5  ;;  %v3829_v30 = vand.u32 2147483647, %v10440_v2  ;;  %v10556_v6 = vadd.f32 1.0, %v8389_v35  ;;  %v13176_v35 = vld [vmem:[#allocation66_spill] sm:$0xff] }
 0x5fe   :  { %v3723_v63 = vsel %vm3722_vm8, %v10491_v28, %v3719_v50  ;;  %v3727_v44 = vor.u32 1.1754944e-38, %v3726_v3  ;;  %v3822_v56 = vsub.f32 1.0, %v3821_v14  ;;  %vm3725_vm9 = vcmp.eq.f32.partialorder %v3724_v59, 8.507059e+37  ;;  %v2874_v28 = vpop.f32.mrf.mxu2  ;;  %v13179_v14 = vld [vmem:[#allocation70_spill] sm:$0xff] }
 0x5ff   :  { %v10559_v8 = vpop.eup %8392  ;;  %4879 = vmatmul.bf16.gmra.mxu3 %v4393_v0  ;;  %vm3825_vm10 = vweird.f32 %v10440_v2  ;;  %v3831_v49 = vand.u32 2147483648, %v10440_v2  ;;  %v3014_v55 = vadd.f32 %v2932_v60, %v13175_v34  ;;  %vm3826_vm11 = vweird.f32 %v10510_v9  ;;  %v2903_v3 = vpop.f32.mrf.mxu3 }
 0x600   :  { %v3728_v48 = vsel %vm3725_vm9, %v3727_v44, %v3723_v63  ;;  %v3823_v54 = vmul.f32 %v10510_v9, %v3822_v56  ;;  %v10567_v51 = vperm.slane %v13176_v35, 4  ;;  %v10569_v50 = vpop.eup %8394  ;;  %vm10571_vm12 = vcmp.eq.f32.partialorder %v3829_v30, 8.507059e+37  ;;  %vm3827_vm13 = vmor %vm3825_vm10, %vm3826_vm11 }
 0x601   :  { %v3142_v0 = vadd.f32 %v13179_v14, %v3014_v55  ;;  %v3015_v60 = vadd.f32 %v2961_v1, %v10474_v11  ;;  %v10578_v63 = vperm.slane %v13176_v35, 5  ;;  %v8397_v44 = vpop.eup %8396  ;;  %v3012_v34 = vadd.f32 %v2874_v28, %v10212_v26  ;;  %v13180_v11 = vld [vmem:[#allocation71_spill] sm:$0xff]  ;;  %v13181_v28 = vld [vmem:[#allocation72_spill] sm:$0xff]  ;;  %v2963_v2 = vpop.f32.mrf.mxu0 }
 0x602   :  { %v3824_v56 = vadd.f32 %v10510_v9, %v3823_v54  ;;  %v10583_v31 = vperm.slane %v13176_v35, 2  ;;  %v3013_v30 = vadd.f32 %v2903_v3, %v10208_v52  ;;  %v3832_v12 = vor.u32 1.1754944e-38, %v3831_v49  ;;  %v2934_v54 = vpop.f32.mrf.mxu1 }
 0x603   :  { %v10589_v55 = vadd.f32 %v10567_v51, %v3142_v0  ;;  %v3143_v1 = vadd.f32 %v13180_v11, %v3015_v60  ;;  %v10593_v14 = vperm.slane %v13176_v35, 3  ;;  %v3140_v39 = vadd.f32 %v13181_v28, %v3012_v34  ;;  %v13187_v11 = vld [vmem:[#allocation19_spill] sm:$0xff] }
 0x604   :  { %v3828_v26 = vsel %vm3827_vm13, %v10510_v9, %v3824_v56  ;;  %v3141_v19 = vadd.f32 %v13182_v47, %v3013_v30  ;;  %v3021_v52 = vadd.f32 %v2934_v54, %v10221_v58  ;;  %8398 = vpow2.f32 %v7344_v41  ;;  %v13185_v58 = vld [vmem:[#allocation74_spill] sm:$0xff] }
 0x605   :  { %v3833_v49 = vsel %vm10571_vm12, %v3832_v12, %v3828_v26  ;;  %v4345_v3 = vmul.f32 %v3728_v48, %v10288_v5  ;;  %v7299_v0 = vmul.f32 -1.442695, %v10589_v55  ;;  %v10605_v60 = vadd.f32 %v10578_v63, %v3143_v1  ;;  %v13188_v1 = vld [vmem:[#allocation58_spill] sm:$0xff] }
 0x606   :  { %v4352_v35 = vmul.f32 %v3833_v49, %v10338_v20  ;;  %v10608_v9 = vadd.f32 %v10583_v31, %v3140_v39  ;;  %v10611_v47 = vadd.f32 %v10593_v14, %v3141_v19  ;;  %8400 = vpow2.f32 %v7345_v61  ;;  %v2876_v56 = vpop.f32.mrf.mxu2  ;;  %v13186_v61 = vld [vmem:[#allocation75_spill] sm:$0xff] }
 0x607   :  { %13183 = vst [vmem:[#allocation20_spill] sm:$0xff] %v10605_v60  ;;  %v3149_v41 = vadd.f32 %v13185_v58, %v3021_v52  ;;  %v3022_v12 = vadd.f32 %v2963_v2, %v10532_v22  ;;  %v3911_v5 = vmul.f32 %v10536_v15, %v10458_v43  ;;  %8402 = vpow2.f32 %v7299_v0  ;;  %v2905_v39 = vpop.f32.mrf.mxu3 }
 0x608   :  { %13184 = vst [vmem:[#allocation60_spill] sm:$0xff] %v10611_v47  ;;  %v4394_v48 = vpack.c.bf16 %v4352_v35, %v4345_v3  ;;  %v7300_v20 = vmul.f32 -1.442695, %v10605_v60  ;;  %v7297_v59 = vmul.f32 -1.442695, %v10608_v9  ;;  %v3019_v22 = vadd.f32 %v2876_v56, %v10225_v16  ;;  %v13191_v3 = vld [vmem:[#allocation76_spill] sm:$0xff] }
 0x609   :  { %v7298_v34 = vmul.f32 -1.442695, %v10611_v47  ;;  %v10621_v19 = vadd.f32 %v10567_v51, %v3149_v41  ;;  %v3150_v30 = vadd.f32 %v13186_v61, %v3022_v12  ;;  %v10627_v54 = vadd.f32 %v13188_v1, %v13187_v11  ;;  %v13192_v35 = vld [vmem:[#allocation18_spill] sm:$0xff]  ;;  %v13193_v16 = vld [vmem:[#allocation61_spill] sm:$0xff] }
 0x60a   :  { %4908 = vmatmul.bf16.gmra.mxu1 %v4394_v48  ;;  %8404 = vpow2.f32 %v7300_v20  ;;  %v3020_v26 = vadd.f32 %v2905_v39, %v10217_v4  ;;  %v3912_v28 = vsub.f32 1.0, %v3911_v5  ;;  %v8399_v52 = vpop.eup %8398  ;;  %v3147_v0 = vadd.f32 %v13191_v3, %v3019_v22  ;;  %v13195_v41 = vld [vmem:[#allocation22_spill] sm:$0xff]  ;;  %v13199_v56 = vld [vmem:[#allocation77_spill] sm:$0xff]  ;;  %v13201_v22 = vld [vmem:[#allocation63_spill] sm:$0xff] }
 0x60b   :  { %13189 = vst [vmem:[#allocation13_spill] sm:$0xff] %v10627_v54  ;;  %8406 = vpow2.f32 %v7297_v59  ;;  %v7306_v2 = vmul.f32 -1.442695, %v10621_v19  ;;  %v10632_v49 = vadd.f32 %v10578_v63, %v3150_v30  ;;  %v10637_v58 = vadd.f32 %v13193_v16, %v13192_v35  ;;  %v13196_v12 = vld [vmem:[#allocation62_spill] sm:$0xff]  ;;  %v13200_v30 = vld [vmem:[#allocation47_spill] sm:$0xff]  ;;  %v13203_v1 = vld [vmem:[#allocation21_spill] sm:$0xff] }
 0x60c   :  { %v10641_v48 = vadd.f32 %v13196_v12, %v13195_v41  ;;  %v10643_v20 = vadd.f32 1.0, %v8397_v44  ;;  %8408 = vpow2.f32 %v7298_v34  ;;  %v8401_v4 = vpop.eup %8400  ;;  %v10648_v59 = vadd.f32 %v10583_v31, %v3147_v0  ;;  %v13204_v3 = vld [vmem:[#allocation65_spill] sm:$0xff]  ;;  %v13207_v41 = vld [vmem:[#allocation24_spill] sm:$0xff]  ;;  %v13208_v12 = vld [vmem:[#allocation82_spill] sm:$0xff] }
 0x60d   :  { %13190 = vst [vmem:[#allocation53_spill] sm:$0xff] %v10632_v49  ;;  %8410 = vrcp.f32 %v10556_v6  ;;  %v7307_v5 = vmul.f32 -1.442695, %v10632_v49  ;;  %v3148_v39 = vadd.f32 %v13199_v56, %v3020_v26  ;;  %v8403_v61 = vpop.eup %8402  ;;  %v10653_v11 = vadd.f32 %v13201_v22, %v13200_v30  ;;  %v13210_v30 = vld [vmem:[#allocation26_spill] sm:$0xff] }
 0x60e   :  { %13194 = vst [vmem:[#allocation16_spill] sm:$0xff] %v10637_v58  ;;  %v10657_v44 = vadd.f32 %v13204_v3, %v13203_v1  ;;  %8412 = vpow2.f32 %v7306_v2  ;;  %v3913_v34 = vmul.f32 %v10536_v15, %v3912_v28  ;;  %v10660_v35 = vadd.f32 1.0, %v8399_v52  ;;  %v13212_v1 = vld [vmem:[#allocation29_spill] sm:$0xff]  ;;  %v13213_v52 = vld [vmem:[#allocation32_spill] sm:$0xff] }
 0x60f   :  { %13197 = vst [vmem:[#allocation54_spill] sm:$0xff] %v10641_v48  ;;  %v10662_v16 = vadd.f32 1.0, %v8403_v61  ;;  %8414 = vpow2.f32 %v7307_v5  ;;  %v7304_v0 = vmul.f32 -1.442695, %v10648_v59  ;;  %v10667_v56 = vadd.f32 %v13208_v12, %v13207_v41 }
 0x610   :  { %13198 = vst [vmem:[#allocation43_spill] sm:$0xff] %v10643_v20  ;;  %v8405_v26 = vpop.eup %8404  ;;  %v10671_v22 = vadd.f32 %v10136_v23, %v13210_v30  ;;  %v10675_v2 = vadd.f32 %v10231_v13, %v13212_v1  ;;  %8416 = vrcp.f32 %v10643_v20  ;;  %v10680_v5 = vadd.f32 %v10295_v42, %v13213_v52  ;;  %v13217_v52 = vld [vmem:[#allocation36_spill] sm:$0xff] }
 0x611   :  { %13202 = vst [vmem:[#allocation39_spill] sm:$0xff] %v10653_v11  ;;  %v8407_v28 = vpop.eup %8406  ;;  %8418 = vrcp.f32 %v10662_v16  ;;  %v10684_v61 = vadd.f32 %v10593_v14, %v3148_v39  ;;  %vm3916_vm6 = vweird.f32 %v10536_v15  ;;  %v10687_v3 = vadd.f32 1.0, %v8405_v26 }
 0x612   :  { %13205 = vst [vmem:[#allocation55_spill] sm:$0xff] %v10657_v44  ;;  %v8409_v23 = vpop.eup %8408  ;;  %v10689_v41 = vadd.f32 1.0, %v8407_v28  ;;  %8420 = vpow2.f32 %v7304_v0  ;;  %v3914_v13 = vadd.f32 %v10536_v15, %v3913_v34  ;;  %v10695_v42 = vadd.f32 1.0, %v8401_v4  ;;  %v13219_v28 = vld [vmem:[#allocation40_spill] sm:$0xff] }
 0x613   :  { %13206 = vst [vmem:[#allocation42_spill] sm:$0xff] %v10660_v35  ;;  %v10692_v12 = vpop.eup %8410  ;;  %8422 = vrcp.f32 %v10660_v35  ;;  %v10697_v30 = vadd.f32 1.0, %v8409_v23  ;;  %v3921_v39 = vand.u32 2147483648, %v10458_v43  ;;  %v10702_v26 = vadd.f32 %v10360_v45, %v13217_v52  ;;  %v13226_v44 = vld [vmem:[#allocation48_spill] sm:$0xff] }
 0x614   :  { %13209 = vst [vmem:[#allocation83_spill] sm:$0xff] %v10667_v56  ;;  %v8413_v1 = vpop.eup %8412  ;;  %8424 = vrcp.f32 %v10687_v3  ;;  %vm3915_vm14 = vweird.f32 %v10458_v43  ;;  %v3919_v34 = vand.u32 2147483647, %v10458_v43  ;;  %v10709_v4 = vadd.f32 %v10408_v57, %v13219_v28 }
 0x615   :  { %13211 = vst [vmem:[#allocation84_spill] sm:$0xff] %v10671_v22  ;;  %v8415_v0 = vpop.eup %8414  ;;  %8426 = vrcp.f32 %v10689_v41  ;;  %v7305_v23 = vmul.f32 -1.442695, %v10684_v61  ;;  %vm10715_vm15 = vmor %vm3915_vm14, %vm3916_vm6  ;;  %v10721_v52 = vmul.f32 %v10559_v8, %v10501_v7  ;;  %v13224_v22 = vld [vmem:[#allocation44_spill] sm:$0xff]  ;;  %v3561_v28 = vand.u32 2147483648, %v10662_v16 }
 0x616   :  { %13214 = vst [vmem:[#allocation15_spill] sm:$0xff] %v10684_v61  ;;  %v10723_v43 = vpop.eup %8416  ;;  %v10727_v57 = vadd.f32 %v10466_v37, %v13224_v22  ;;  %8428 = vrcp.f32 %v10697_v30  ;;  %v3918_v56 = vsel %vm10715_vm15, %v10536_v15, %v3914_v13  ;;  %v10739_v60 = vadd.f32 %v10524_v40, %v13226_v44 }
 0x617   :  { %13215 = vst [vmem:[#allocation57_spill] sm:$0xff] %v10692_v12  ;;  %v10734_v48 = vpop.eup %8418  ;;  %8430 = vrcp.f32 %v10695_v42  ;;  %v3559_v49 = vand.u32 2147483647, %v10662_v16  ;;  %v3922_v37 = vor.u32 1.1754944e-38, %v3921_v39  ;;  %v10744_v54 = vadd.f32 1.0, %v8413_v1 }
 0x618   :  { %13216 = vst [vmem:[#allocation23_spill] sm:$0xff] %v10695_v42  ;;  %v8421_v22 = vpop.eup %8420  ;;  %v3551_v11 = vmul.f32 %v10734_v48, %v10662_v16  ;;  %v10746_v58 = vadd.f32 1.0, %v8415_v0  ;;  %vm3920_vm0 = vcmp.eq.f32.partialorder %v3919_v34, 8.507059e+37  ;;  %vm3555_vm1 = vweird.f32 %v10662_v16 }
 0x619   :  { %13218 = vst [vmem:[#allocation64_spill] sm:$0xff] %v10702_v26  ;;  %v10748_v15 = vpop.eup %8422  ;;  %8432 = vpow2.f32 %v7305_v23  ;;  %v10751_v13 = vsel %vm3920_vm0, %v3922_v37, %v3918_v56  ;;  %v4017_v40 = vsub.f32 1.0, %v10721_v52  ;;  %v3562_v45 = vor.u32 1.1754944e-38, %v3561_v28 }
 0x61a   :  { %13220 = vst [vmem:[#allocation25_spill] sm:$0xff] %v10709_v4  ;;  %v10754_v44 = vpop.eup %8424  ;;  %v3552_v39 = vsub.f32 1.0, %v3551_v11  ;;  %8434 = vrcp.f32 %v10744_v54  ;;  %vm10760_vm2 = vcmp.eq.f32.partialorder %v3559_v49, 8.507059e+37  ;;  %v3531_v0 = vand.u32 2147483648, %v10689_v41 }
 0x61b   :  { %13223 = vst [vmem:[#allocation81_spill] sm:$0xff] %v10723_v43  ;;  %v10758_v1 = vpop.eup %8426  ;;  %v3566_v56 = vmul.f32 %v10754_v44, %v10687_v3  ;;  %8436 = vrcp.f32 %v10746_v58  ;;  %v10768_v23 = vadd.f32 1.0, %v8421_v22  ;;  %vm3570_vm3 = vweird.f32 %v10687_v3 }
 0x61c   :  { %13225 = vst [vmem:[#allocation46_spill] sm:$0xff] %v10727_v57  ;;  %v10770_v11 = vpop.eup %8428  ;;  %v3553_v52 = vmul.f32 %v10734_v48, %v3552_v39  ;;  %v3521_v28 = vmul.f32 %v10758_v1, %v10689_v41  ;;  %v3546_v37 = vand.u32 2147483648, %v10697_v30  ;;  %vm3556_vm4 = vweird.f32 %v10734_v48 }
 0x61d   :  { %13227 = vst [vmem:[#allocation85_spill] sm:$0xff] %v10739_v60  ;;  %v3576_v60 = vand.u32 2147483648, %v10687_v3  ;;  %v10778_v57 = vpop.eup %8430  ;;  %v3567_v4 = vsub.f32 1.0, %v3566_v56  ;;  %vm3525_vm5 = vweird.f32 %v10689_v41  ;;  %v3529_v22 = vand.u32 2147483647, %v10689_v41  ;;  %vm10797_vm8 = vmor %vm3555_vm1, %vm3556_vm4 }
 0x61e   :  { %13228 = vst [vmem:[#allocation86_spill] sm:$0xff] %v10748_v15  ;;  %v3536_v39 = vmul.f32 %v10770_v11, %v10697_v30  ;;  %v3554_v26 = vadd.f32 %v10734_v48, %v3553_v52  ;;  %v3522_v42 = vsub.f32 1.0, %v3521_v28  ;;  %vm3540_vm7 = vweird.f32 %v10697_v30 }
 0x61f   :  { %13231 = vst [vmem:[#allocation27_spill] sm:$0xff] %v10778_v57  ;;  %v10786_v49 = vor.u32 1.1754944e-38, %v3576_v60  ;;  %v8433_v43 = vpop.eup %8432  ;;  %v10789_v20 = vor.u32 1.1754944e-38, %v3531_v0  ;;  %v3664_v56 = vand.u32 2147483647, %v10744_v54  ;;  %8438 = vrcp.f32 %v10768_v23 }
 0x620   :  { %v3537_v57 = vsub.f32 1.0, %v3536_v39  ;;  %v8435_v15 = vpop.eup %8434  ;;  %v3568_v60 = vmul.f32 %v10754_v44, %v3567_v4  ;;  %v3544_v28 = vand.u32 2147483647, %v10697_v30  ;;  %v10803_v0 = vor.u32 1.1754944e-38, %v3546_v37 }
 0x621   :  { %13232 = vst [vmem:[#allocation49_spill] sm:$0xff] %v10786_v49  ;;  %v3666_v39 = vand.u32 2147483648, %v10744_v54  ;;  %v10806_v49 = vpop.eup %8436  ;;  %v3558_v35 = vsel %vm10797_vm8, %v10734_v48, %v3554_v26  ;;  %v3523_v16 = vmul.f32 %v10758_v1, %v3522_v42  ;;  %v3656_v25 = vmul.f32 %v8435_v15, %v10744_v54 }
 0x622   :  { %v3538_v61 = vmul.f32 %v10770_v11, %v3537_v57  ;;  %vm3571_vm9 = vweird.f32 %v10754_v44  ;;  %vm3660_vm10 = vweird.f32 %v10744_v54  ;;  %v3671_v4 = vmul.f32 %v10806_v49, %v10746_v58 }
 0x623   :  { %v4018_v37 = vmul.f32 %v10559_v8, %v4017_v40  ;;  %vm3526_vm11 = vweird.f32 %v10758_v1  ;;  %vm3541_vm12 = vweird.f32 %v10770_v11  ;;  %v3657_v48 = vsub.f32 1.0, %v3656_v25  ;;  %vm10834_vm6 = vmor %vm3570_vm3, %vm3571_vm9 }
 0x624   :  { %vm10821_vm13 = vcmp.eq.f32.partialorder %v3664_v56, 8.507059e+37  ;;  %v3563_v26 = vsel %vm10760_vm2, %v3562_v45, %v3558_v35  ;;  %v10828_v57 = vadd.f32 %v10754_v44, %v3568_v60  ;;  %v3667_v52 = vor.u32 1.1754944e-38, %v3666_v39  ;;  %vm10852_vm1 = vmor %vm3525_vm5, %vm3526_vm11  ;;  %v8084_v45 = vld [vmem:[#allocation4 + $0x128] sm:$0xff] }
 0x625   :  { %v3672_v47 = vsub.f32 1.0, %v3671_v4  ;;  %v10830_v12 = vpop.eup %8438  ;;  %v13237_v40 = vmov 0  ;;  %v3524_v25 = vadd.f32 %v10758_v1, %v3523_v16  ;;  %vm10839_vm14 = vcmp.eq.f32.partialorder %v3529_v22, 8.507059e+37  ;;  %vm10868_vm3 = vmor %vm3540_vm7, %vm3541_vm12 }
 0x626   :  { %v13238_v40 = vsel %vm10834_vm6, 4294967295, %v13237_v40  ;;  %v3539_v35 = vadd.f32 %v10770_v11, %v3538_v61  ;;  %vm10844_vm15 = vcmp.eq.f32.partialorder %v3544_v28, 8.507059e+37  ;;  %v3658_v34 = vmul.f32 %v8435_v15, %v3657_v48  ;;  %v8086_v48 = vld [vmem:[#allocation4 + $0x138] sm:$0xff] }
 0x627   :  { %13239 = vst [vmem:[#allocation66_spill] sm:$0xff] %v13238_v40  ;;  %vm3661_vm0 = vweird.f32 %v8435_v15  ;;  %v3673_v22 = vmul.f32 %v10806_v49, %v3672_v47  ;;  %vm3675_vm2 = vweird.f32 %v10746_v58  ;;  %v3626_v28 = vmul.f32 %v10830_v12, %v10768_v23  ;;  %4982 = vmatpush.bf16.msra.mxu3 %v8086_v48 }
 0x628   :  { %v10862_v39 = vmul.f32 %v3563_v26, %v10589_v55  ;;  %v3659_v16 = vadd.f32 %v8435_v15, %v3658_v34  ;;  %v3681_v47 = vand.u32 2147483648, %v10746_v58  ;;  %vm3630_vm4 = vweird.f32 %v10768_v23  ;;  %vm3662_vm5 = vmor %vm3660_vm10, %vm3661_vm0  ;;  %v8094_v26 = vld [vmem:[#allocation4 + $0x178] sm:$0xff] }
 0x629   :  { %vm3676_vm8 = vweird.f32 %v10806_v49  ;;  %v3627_v55 = vsub.f32 1.0, %v3626_v28  ;;  %v10881_v30 = vadd.f32 1.0, %v8433_v43  ;;  %v3528_v34 = vsel %vm10852_vm1, %v10758_v1, %v3524_v25  ;;  %5011 = vmatpush.bf16.msrb.mxu1 %v8094_v26  ;;  %v8085_v1 = vld [vmem:[#allocation4 + $0x130] sm:$0xff] }
 0x62a   :  { %v3543_v61 = vsel %vm10868_vm3, %v10770_v11, %v3539_v35  ;;  %v3663_v40 = vsel %vm3662_vm5, %v8435_v15, %v3659_v16  ;;  %vm3631_vm7 = vweird.f32 %v10830_v12  ;;  %v10893_v28 = vadd.f32 %v10806_v49, %v3673_v22  ;;  %v8093_v25 = vld [vmem:[#allocation4 + $0x170] sm:$0xff]  ;;  %vm10907_vm9 = vmor %vm3675_vm2, %vm3676_vm8  ;;  %v10916_v35 = vpop.f32.mrf.mxu1  ;;  %v8070_v22 = vld [vmem:[#allocation4 + $0xb8] sm:$0xff]  ;;  %v2879_v16 = vpop.f32.mrf.mxu2 }
 0x62b   :  { %v3668_v54 = vsel %vm10821_vm13, %v3667_v52, %v3663_v40  ;;  %v3628_v43 = vmul.f32 %v10830_v12, %v3627_v55  ;;  %v3634_v4 = vand.u32 2147483647, %v10768_v23  ;;  %v3636_v15 = vand.u32 2147483648, %v10768_v23  ;;  %vm10924_vm11 = vmor %vm3630_vm4, %vm3631_vm7  ;;  %4983 = vmatpush.bf16.msra.mxu3 %v8085_v1  ;;  %4924 = vmatpush.bf16.msrb.mxu0 %v8070_v22 }
 0x62c   :  { %v10898_v60 = vmul.f32 %v3668_v54, %v10621_v19  ;;  %8440 = vrcp.f32 %v10881_v30  ;;  %v4019_v11 = vadd.f32 %v10559_v8, %v4018_v37  ;;  %v10911_v52 = vor.u32 1.1754944e-38, %v3681_v47  ;;  %v8078_v37 = vld [vmem:[#allocation4 + $0xf8] sm:$0xff] }
 0x62d   :  { %v3629_v40 = vadd.f32 %v10830_v12, %v3628_v43  ;;  %v3651_v19 = vand.u32 2147483648, %v10881_v30  ;;  %vm4020_vm10 = vweird.f32 %v10501_v7  ;;  %vm4021_vm12 = vweird.f32 %v10559_v8  ;;  %5012 = vmatpush.bf16.msrb.mxu1 %v8093_v25  ;;  %4953 = vmatpush.bf16.msrb.mxu2 %v8078_v37  ;;  %v8077_v25 = vld [vmem:[#allocation4 + $0xf0] sm:$0xff]  ;;  %v2966_v37 = vpop.f32.mrf.mxu0 }
 0x62e   :  { %v4024_v47 = vand.u32 2147483647, %v10501_v7  ;;  %v4026_v55 = vand.u32 2147483648, %v10501_v7  ;;  %v10934_v48 = vsel %vm10839_vm14, %v10789_v20, %v3528_v34  ;;  %v10939_v26 = vsel %vm10844_vm15, %v10803_v0, %v3543_v61  ;;  %vm10948_vm0 = vmor %vm4020_vm10, %vm4021_vm12  ;;  %v8092_v61 = vld [vmem:[#allocation4 + $0x168] sm:$0xff]  ;;  %v2908_v7 = vpop.f32.mrf.mxu3 }
 0x62f   :  { %v3633_v23 = vsel %vm10924_vm11, %v10830_v12, %v3629_v40  ;;  %vm10944_vm13 = vcmp.eq.f32.partialorder %v3634_v4, 8.507059e+37  ;;  %v3678_v20 = vsel %vm10907_vm9, %v10806_v49, %v10893_v28  ;;  %v3637_v0 = vor.u32 1.1754944e-38, %v3636_v15  ;;  %v8069_v4 = vld [vmem:[#allocation4 + $0xb0] sm:$0xff]  ;;  %4984 = vmatpush.bf16.msra.mxu3 %v8084_v45  ;;  %v8068_v45 = vld [vmem:[#allocation4 + $0xa8] sm:$0xff] }
 0x630   :  { %v4023_v12 = vsel %vm10948_vm0, %v10559_v8, %v4019_v11  ;;  %v4027_v56 = vor.u32 1.1754944e-38, %v4026_v55  ;;  %v3649_v34 = vand.u32 2147483647, %v10881_v30  ;;  %v10960_v43 = vor.u32 1.1754944e-38, %v3651_v19  ;;  %4925 = vmatpush.bf16.msrb.mxu0 %v8069_v4 }
 0x631   :  { %vm4025_vm14 = vcmp.eq.f32.partialorder %v4024_v47, 8.507059e+37  ;;  %v3926_v1 = vmul.f32 %v10549_v53, %v10493_v32  ;;  %v3638_v8 = vsel %vm10944_vm13, %v3637_v0, %v3633_v23  ;;  %v3934_v40 = vand.u32 2147483647, %v10493_v32  ;;  %5013 = vmatpush.bf16.msrb.mxu1 %v8092_v61  ;;  %4954 = vmatpush.bf16.msrb.mxu2 %v8077_v25  ;;  %v8083_v0 = vld [vmem:[#allocation4 + $0x120] sm:$0xff]  ;;  %v8076_v25 = vld [vmem:[#allocation4 + $0xe8] sm:$0xff] }
 0x632   :  { %v10964_v15 = vpop.eup %8440  ;;  %v4028_v11 = vsel %vm4025_vm14, %v4027_v56, %v4023_v12  ;;  %v3936_v22 = vand.u32 2147483648, %v10493_v32  ;;  %v4358_v47 = vmul.f32 %v10751_v13, %v10378_v24  ;;  %vm3930_vm15 = vweird.f32 %v10493_v32  ;;  %v8091_v12 = vld [vmem:[#allocation4 + $0x160] sm:$0xff]  ;;  %v2881_v13 = vpop.f32.mrf.mxu2 }
 0x633   :  { %v3641_v19 = vmul.f32 %v10964_v15, %v10881_v30  ;;  %v4365_v55 = vmul.f32 %v4028_v11, %v10406_v38  ;;  %vm3646_vm1 = vweird.f32 %v10964_v15  ;;  %v3927_v23 = vsub.f32 1.0, %v3926_v1  ;;  %4985 = vmatpush.bf16.msra.mxu3 %v8083_v0 }
 0x634   :  { %vm3931_vm2 = vweird.f32 %v10549_v53  ;;  %v4031_v54 = vmul.f32 %v10569_v50, %v10513_v46  ;;  %vm3645_vm3 = vweird.f32 %v10881_v30  ;;  %vm10981_vm4 = vcmp.eq.f32.partialorder %v3934_v40, 8.507059e+37  ;;  %4926 = vmatpush.bf16.msrb.mxu0 %v8068_v45 }
 0x635   :  { %v3642_v24 = vsub.f32 1.0, %v3641_v19  ;;  %v4400_v38 = vpack.c.bf16 %v4365_v55, %v4358_v47  ;;  %v3937_v56 = vor.u32 1.1754944e-38, %v3936_v22  ;;  %v3928_v61 = vmul.f32 %v10549_v53, %v3927_v23  ;;  %v13258_v19 = vld [vmem:[#allocation50_spill] sm:$0xff]  ;;  %v2939_v22 = vpop.f32.mrf.mxu1  ;;  %5014 = vmatpush.bf16.msrb.mxu1 %v8091_v12  ;;  %vm3932_vm7 = vmor %vm3930_vm15, %vm3931_vm2  ;;  %4955 = vmatpush.bf16.msrb.mxu2 %v8076_v25 }
 0x636   :  { %v4032_v1 = vsub.f32 1.0, %v4031_v54  ;;  %vm4035_vm5 = vweird.f32 %v10513_v46  ;;  %v4041_v4 = vand.u32 2147483648, %v10513_v46  ;;  %v3028_v47 = vadd.f32 %v10916_v35, %v13258_v19  ;;  %vm11041_vm13 = vmor %vm3645_vm3, %vm3646_vm1 }
 0x637   :  { %v3643_v11 = vmul.f32 %v10964_v15, %v3642_v24  ;;  %4884 = vmatmul.bf16.gmra.mxu3 %v4400_v38  ;;  %v3029_v40 = vadd.f32 %v2966_v37, %v10675_v2  ;;  %v3026_v55 = vadd.f32 %v2879_v16, %v10237_v33  ;;  %v3929_v41 = vadd.f32 %v10549_v53, %v3928_v61  ;;  %v13259_v2 = vld [vmem:[#allocation87_spill] sm:$0xff]  ;;  %v13260_v33 = vld [vmem:[#allocation88_spill] sm:$0xff]  ;;  %v13261_v24 = vld [vmem:[#allocation89_spill] sm:$0xff] }
 0x638   :  { %v4033_v23 = vmul.f32 %v10569_v50, %v4032_v1  ;;  %vm4036_vm8 = vweird.f32 %v10569_v50  ;;  %v4039_v54 = vand.u32 2147483647, %v10513_v46  ;;  %v4042_v35 = vor.u32 1.1754944e-38, %v4041_v4  ;;  %v13273_v1 = vld [vmem:[#allocation15_spill] sm:$0xff] }
 0x639   :  { %v3156_v37 = vadd.f32 %v13259_v2, %v3028_v47  ;;  %v3157_v16 = vadd.f32 %v13260_v33, %v3029_v40  ;;  %v3154_v38 = vadd.f32 %v13261_v24, %v3026_v55  ;;  %v13262_v61 = vand.u32 2147483647, %v10746_v58  ;;  %vm4037_vm11 = vmor %vm4035_vm5, %vm4036_vm8  ;;  %v13267_v40 = vld [vmem:[#allocation90_spill] sm:$0xff]  ;;  %v2910_v55 = vpop.f32.mrf.mxu3 }
 0x63a   :  { %v3933_v0 = vsel %vm3932_vm7, %v10549_v53, %v3929_v41  ;;  %v4034_v12 = vadd.f32 %v10569_v50, %v4033_v23  ;;  %v3027_v32 = vadd.f32 %v2908_v7, %v10229_v10  ;;  %v3035_v4 = vadd.f32 %v2939_v22, %v10245_v62  ;;  %v2968_v7 = vpop.f32.mrf.mxu0 }
 0x63b   :  { %vm11006_vm10 = vcmp.eq.f32.partialorder %v13262_v61, 8.507059e+37  ;;  %v3644_v19 = vadd.f32 %v10964_v15, %v3643_v11  ;;  %v3938_v45 = vsel %vm10981_vm4, %v3937_v56, %v3933_v0  ;;  %v11022_v58 = vadd.f32 %v10567_v51, %v3156_v37  ;;  %v13271_v61 = vld [vmem:[#allocation60_spill] sm:$0xff] }
 0x63c   :  { %v11025_v53 = vadd.f32 %v10578_v63, %v3157_v16  ;;  %v11028_v10 = vmul.f32 %v3638_v8, %v10648_v59  ;;  %v4038_v62 = vsel %vm4037_vm11, %v10569_v50, %v4034_v12  ;;  %vm4040_vm12 = vcmp.eq.f32.partialorder %v4039_v54, 8.507059e+37  ;;  %v13270_v16 = vld [vmem:[#allocation57_spill] sm:$0xff]  ;;  %v8067_v59 = vld [vmem:[#allocation4 + $0xa0] sm:$0xff] }
 0x63d   :  { %v11032_v41 = vadd.f32 %v10583_v31, %v3154_v38  ;;  %v4043_v56 = vsel %vm4040_vm12, %v4042_v35, %v4038_v62  ;;  %v4359_v46 = vmul.f32 %v3938_v45, %v10386_v27  ;;  %v7313_v25 = vmul.f32 -1.442695, %v11022_v58  ;;  %v11072_v38 = vpop.f32.mrf.mxu1  ;;  %4927 = vmatpush.bf16.msrb.mxu0 %v8067_v59  ;;  %v8065_v59 = vld [vmem:[#allocation4 + $0x90] sm:$0xff] }
 0x63e   :  { %v7314_v11 = vmul.f32 -1.442695, %v11025_v53  ;;  %v4366_v50 = vmul.f32 %v4043_v56, %v10416_v36  ;;  %v3155_v47 = vadd.f32 %v10074_v29, %v3027_v32  ;;  %v3163_v27 = vadd.f32 %v13267_v40, %v3035_v4  ;;  %v13269_v29 = vld [vmem:[#allocation91_spill] sm:$0xff]  ;;  %v13275_v56 = vld [vmem:[#allocation86_spill] sm:$0xff]  ;;  %v8075_v40 = vld [vmem:[#allocation4 + $0xe0] sm:$0xff] }
 0x63f   :  { %v7311_v8 = vmul.f32 -1.442695, %v11032_v41  ;;  %v3648_v22 = vsel %vm11041_vm13, %v10964_v15, %v3644_v19  ;;  %8442 = vpow2.f32 %v7313_v25  ;;  %v3036_v23 = vadd.f32 %v2968_v7, %v10680_v5  ;;  %v8082_v25 = vld [vmem:[#allocation4 + $0x118] sm:$0xff]  ;;  %4956 = vmatpush.bf16.msrb.mxu2 %v8075_v40 }
 0x640   :  { %v3033_v54 = vadd.f32 %v2881_v13, %v10254_v17  ;;  %v4401_v35 = vpack.c.bf16 %v4366_v50, %v4359_v46  ;;  %8444 = vpow2.f32 %v7314_v11  ;;  %v11055_v36 = vadd.f32 %v10593_v14, %v3155_v47  ;;  %v13274_v13 = vld [vmem:[#allocation42_spill] sm:$0xff]  ;;  %v8090_v11 = vld [vmem:[#allocation4 + $0x158] sm:$0xff]  ;;  %4986 = vmatpush.bf16.msra.mxu3 %v8082_v25 }
 0x641   :  { %v11058_v2 = vadd.f32 %v10567_v51, %v3163_v27  ;;  %8446 = vpow2.f32 %v7311_v8  ;;  %v3164_v37 = vadd.f32 %v13269_v29, %v3036_v23  ;;  %v3034_v15 = vadd.f32 %v2910_v55, %v10241_v18  ;;  %v11122_v27 = vpop.f32.mrf.mxu2  ;;  %5015 = vmatpush.bf16.msrb.mxu1 %v8090_v11  ;;  %v11129_v29 = vpop.f32.mrf.mxu3 }
 0x642   :  { %13268 = vst [vmem:[#allocation70_spill] sm:$0xff] %v11055_v36  ;;  %v3161_v33 = vadd.f32 %v10086_v21, %v3033_v54  ;;  %v11065_v5 = vmul.f32 %v10934_v48, %v10608_v9  ;;  %vm3650_vm0 = vcmp.eq.f32.partialorder %v3649_v34, 8.507059e+37  ;;  %4913 = vmatmul.bf16.gmra.mxu1 %v4401_v35  ;;  %v7312_v17 = vmul.f32 -1.442695, %v11055_v36  ;;  %v11108_v19 = vpop.f32.mrf.mxu0  ;;  %v8081_v54 = vld [vmem:[#allocation4 + $0x110] sm:$0xff] }
 0x643   :  { %v4121_v24 = vmul.f32 %v13270_v16, %v10556_v6  ;;  %v11076_v21 = vmul.f32 %v10939_v26, %v13271_v61  ;;  %v11086_v18 = vsel %vm11006_vm10, %v10911_v52, %v3678_v20  ;;  %v3653_v9 = vsel %vm3650_vm0, %v10960_v43, %v3648_v22  ;;  %v13272_v26 = vld [vmem:[#allocation92_spill] sm:$0xff]  ;;  %v8089_v35 = vld [vmem:[#allocation4 + $0x150] sm:$0xff]  ;;  %v13282_v61 = vld [vmem:[#allocation81_spill] sm:$0xff] }
 0x644   :  { %v11090_v30 = vadd.f32 %v10578_v63, %v3164_v37  ;;  %8448 = vpow2.f32 %v7312_v17  ;;  %v7320_v48 = vmul.f32 -1.442695, %v11058_v2  ;;  %v3162_v34 = vadd.f32 %v13272_v26, %v3034_v15  ;;  %v8074_v26 = vld [vmem:[#allocation4 + $0xd8] sm:$0xff]  ;;  %4987 = vmatpush.bf16.msra.mxu3 %v8081_v54 }
 0x645   :  { %v4122_v0 = vsub.f32 1.0, %v4121_v24  ;;  %v8443_v42 = vpop.eup %8442  ;;  %v11098_v52 = vadd.f32 %v10583_v31, %v3161_v33  ;;  %v4129_v20 = vand.u32 2147483647, %v10556_v6  ;;  %v11102_v12 = vmul.f32 %v3653_v9, %v13273_v1  ;;  %v13281_v24 = vld [vmem:[#allocation43_spill] sm:$0xff]  ;;  %5016 = vmatpush.bf16.msrb.mxu1 %v8089_v35  ;;  %4957 = vmatpush.bf16.msrb.mxu2 %v8074_v26 }
 0x646   :  { %v7321_v28 = vmul.f32 -1.442695, %v11090_v30  ;;  %v8445_v43 = vpop.eup %8444  ;;  %v11104_v32 = vadd.f32 1.0, %v8443_v42  ;;  %vm4125_vm9 = vweird.f32 %v10556_v6  ;;  %vm4126_vm14 = vweird.f32 %v13270_v16 }
 0x647   :  { %v4123_v4 = vmul.f32 %v13270_v16, %v4122_v0  ;;  %v8447_v45 = vpop.eup %8446  ;;  %v11110_v62 = vadd.f32 1.0, %v8445_v43  ;;  %v4131_v7 = vand.u32 2147483648, %v10556_v6  ;;  %v4226_v46 = vmul.f32 %v13275_v56, %v13274_v13  ;;  %vm11136_vm1 = vmor %vm4125_vm9, %vm4126_vm14 }
 0x648   :  { %v11116_v50 = vadd.f32 1.0, %v8447_v45  ;;  %8450 = vpow2.f32 %v7320_v48  ;;  %v11119_v8 = vadd.f32 %v10593_v14, %v3162_v34  ;;  %v7318_v55 = vmul.f32 -1.442695, %v11098_v52  ;;  %v8066_v48 = vld [vmem:[#allocation4 + $0x98] sm:$0xff] }
 0x649   :  { %v4124_v47 = vadd.f32 %v13270_v16, %v4123_v4  ;;  %8452 = vpow2.f32 %v7321_v28  ;;  %vm11125_vm15 = vcmp.eq.f32.partialorder %v4129_v20, 8.507059e+37  ;;  %v4227_v23 = vsub.f32 1.0, %v4226_v46  ;;  %v11153_v28 = vpop.f32.mrf.mxu1  ;;  %v8088_v4 = vld [vmem:[#allocation4 + $0x148] sm:$0xff]  ;;  %4928 = vmatpush.bf16.msrb.mxu0 %v8066_v48 }
 0x64a   :  { %13276 = vst [vmem:[#allocation71_spill] sm:$0xff] %v11119_v8  ;;  %v8449_v37 = vpop.eup %8448  ;;  %8454 = vrcp.f32 %v11104_v32  ;;  %v4234_v15 = vand.u32 2147483647, %v13274_v13  ;;  %v4236_v17 = vand.u32 2147483648, %v13274_v13  ;;  %v4136_v9 = vmul.f32 %v13282_v61, %v13281_v24  ;;  %v2973_v11 = vpop.f32.mrf.mxu0  ;;  %5017 = vmatpush.bf16.msrb.mxu1 %v8088_v4 }
 0x64b   :  { %8456 = vrcp.f32 %v11110_v62  ;;  %v4128_v6 = vsel %vm11136_vm1, %v13270_v16, %v4124_v47  ;;  %v4228_v34 = vmul.f32 %v13275_v56, %v4227_v23  ;;  %vm4231_vm2 = vweird.f32 %v13275_v56  ;;  %v8080_v16 = vld [vmem:[#allocation4 + $0x108] sm:$0xff]  ;;  %v8073_v47 = vld [vmem:[#allocation4 + $0xd0] sm:$0xff] }
 0x64c   :  { %8458 = vrcp.f32 %v11116_v50  ;;  %v7319_v0 = vmul.f32 -1.442695, %v11119_v8  ;;  %v4132_v42 = vor.u32 1.1754944e-38, %v4131_v7  ;;  %vm4230_vm3 = vweird.f32 %v13274_v13  ;;  %4988 = vmatpush.bf16.msra.mxu3 %v8080_v16  ;;  %4958 = vmatpush.bf16.msrb.mxu2 %v8073_v47  ;;  %v8079_v13 = vld [vmem:[#allocation4 + $0x100] sm:$0xff] }
 0x64d   :  { %v11155_v20 = vadd.f32 1.0, %v8449_v37  ;;  %8460 = vpow2.f32 %v7318_v55  ;;  %v4229_v43 = vadd.f32 %v13275_v56, %v4228_v34  ;;  %v4137_v1 = vsub.f32 1.0, %v4136_v9  ;;  %vm11164_vm4 = vmor %vm4230_vm3, %vm4231_vm2  ;;  %4929 = vmatpush.bf16.msrb.mxu0 %v8065_v59  ;;  %v13303_v37 = vld [vmem:[#allocation95_spill] sm:$0xff]  ;;  %v13304_v8 = vld [vmem:[#allocation96_spill] sm:$0xff] }
 0x64e   :  { %v11158_v45 = vpop.eup %8450  ;;  %v4133_v46 = vsel %vm11125_vm15, %v4132_v42, %v4128_v6  ;;  %vm11168_vm5 = vcmp.eq.f32.partialorder %v4234_v15, 8.507059e+37  ;;  %v4237_v25 = vor.u32 1.1754944e-38, %v4236_v17  ;;  %vm4141_vm8 = vweird.f32 %v13282_v61  ;;  %v13287_v15 = vld [vmem:[#allocation23_spill] sm:$0xff]  ;;  %v13290_v6 = vld [vmem:[#allocation80_spill] sm:$0xff] }
 0x64f   :  { %v11173_v40 = vpop.eup %8452  ;;  %v4233_v55 = vsel %vm11164_vm4, %v13275_v56, %v4229_v43  ;;  %v4138_v22 = vmul.f32 %v13282_v61, %v4137_v1  ;;  %v4144_v23 = vand.u32 2147483647, %v13281_v24  ;;  %v4146_v54 = vand.u32 2147483648, %v13281_v24  ;;  %v13288_v17 = vld [vmem:[#allocation27_spill] sm:$0xff]  ;;  %v13289_v56 = vld [vmem:[#allocation78_spill] sm:$0xff]  ;;  %v8087_v43 = vld [vmem:[#allocation4 + $0x140] sm:$0xff] }
 0x650   :  { %v11181_v35 = vpop.eup %8454  ;;  %8462 = vpow2.f32 %v7319_v0  ;;  %v4238_v33 = vsel %vm11168_vm5, %v4237_v25, %v4233_v55  ;;  %v4241_v9 = vmul.f32 %v13288_v17, %v13287_v15  ;;  %v4372_v26 = vmul.f32 %v4133_v46, %v13289_v56  ;;  %v2886_v25 = vpop.f32.mrf.mxu2  ;;  %5018 = vmatpush.bf16.msrb.mxu1 %v8087_v43  ;;  %4989 = vmatpush.bf16.msra.mxu3 %v8079_v13  ;;  %v13302_v13 = vld [vmem:[#allocation94_spill] sm:$0xff] }
 0x651   :  { %v11189_v48 = vpop.eup %8456  ;;  %v4379_v34 = vmul.f32 %v4238_v33, %v13290_v6  ;;  %v4139_v42 = vadd.f32 %v13282_v61, %v4138_v22  ;;  %vm4140_vm7 = vweird.f32 %v13281_v24  ;;  %8464 = vrcp.f32 %v11155_v20  ;;  %v2915_v22 = vpop.f32.mrf.mxu3 }
 0x652   :  { %v11195_v0 = vpop.eup %8458  ;;  %vm4142_vm10 = vmor %vm4140_vm7, %vm4141_vm8  ;;  %v4147_v1 = vor.u32 1.1754944e-38, %v4146_v54  ;;  %v4242_v7 = vsub.f32 1.0, %v4241_v9  ;;  %v4249_v46 = vand.u32 2147483647, %v13287_v15  ;;  %vm4145_vm11 = vcmp.eq.f32.partialorder %v4144_v23, 8.507059e+37  ;;  %v13293_v54 = vld [vmem:[#allocation38_spill] sm:$0xff]  ;;  %v2976_v36 = vpop.f32.mrf.mxu0 }
 0x653   :  { %v11201_v55 = vpop.eup %8460  ;;  %v4407_v24 = vpack.c.bf16 %v4379_v34, %v4372_v26  ;;  %v4143_v16 = vsel %vm4142_vm10, %v13282_v61, %v4139_v42  ;;  %v4251_v4 = vand.u32 2147483648, %v13287_v15  ;;  %vm4245_vm12 = vweird.f32 %v13287_v15  ;;  %v13294_v61 = vld [vmem:[#allocation52_spill] sm:$0xff] }
 0x654   :  { %v4148_v33 = vsel %vm4145_vm11, %v4147_v1, %v4143_v16  ;;  %v4243_v56 = vmul.f32 %v13288_v17, %v4242_v7  ;;  %vm4246_vm13 = vweird.f32 %v13288_v17  ;;  %vm11208_vm0 = vcmp.eq.f32.partialorder %v4249_v46, 8.507059e+37  ;;  %v13295_v34 = vld [vmem:[#allocation64_spill] sm:$0xff]  ;;  %v13297_v46 = vld [vmem:[#allocation31_spill] sm:$0xff]  ;;  %v8064_v16 = vld [vmem:[#allocation4 + $0x88] sm:$0xff] }
 0x655   :  { %4889 = vmatmul.bf16.gmra.mxu3 %v4407_v24  ;;  %v4252_v47 = vor.u32 1.1754944e-38, %v4251_v4  ;;  %v4373_v9 = vmul.f32 %v4148_v33, %v13293_v54  ;;  %v3042_v23 = vadd.f32 %v11072_v38, %v13294_v61  ;;  %v3043_v42 = vadd.f32 %v11108_v19, %v13295_v34  ;;  %v13296_v1 = vld [vmem:[#allocation68_spill] sm:$0xff]  ;;  %v8072_v4 = vld [vmem:[#allocation4 + $0xc8] sm:$0xff]  ;;  %v2947_v33 = vpop.f32.mrf.mxu1  ;;  %vm4247_vm9 = vmor %vm4245_vm12, %vm4246_vm13  ;;  %4930 = vmatpush.bf16.msrb.mxu0 %v8064_v16 }
 0x656   :  { %v11215_v26 = vpop.eup %8462  ;;  %v4244_v6 = vadd.f32 %v13288_v17, %v4243_v56  ;;  %v3040_v7 = vadd.f32 %v11122_v27, %v13296_v1  ;;  %v3041_v24 = vadd.f32 %v11129_v29, %v13297_v46  ;;  %v13298_v38 = vld [vmem:[#allocation93_spill] sm:$0xff]  ;;  %v13299_v56 = vld [vmem:[#allocation34_spill] sm:$0xff]  ;;  %v13301_v27 = vld [vmem:[#allocation35_spill] sm:$0xff]  ;;  %4959 = vmatpush.bf16.msrb.mxu2 %v8072_v4  ;;  %vm3765_vm15 = vweird.f32 %v11104_v32 }
 0x657   :  { %v3170_v43 = vadd.f32 %v13298_v38, %v3042_v23  ;;  %v3049_v19 = vadd.f32 %v11153_v28, %v13299_v56  ;;  %v13300_v54 = vld [vmem:[#allocation25_spill] sm:$0xff]  ;;  %v3047_v34 = vadd.f32 %v2886_v25, %v13301_v27  ;;  %v11233_v1 = vpop.eup %8464  ;;  %v3171_v46 = vadd.f32 %v13302_v13, %v3043_v42  ;;  %v8063_v23 = vld [vmem:[#allocation4 + $0x80] sm:$0xff]  ;;  %v13306_v56 = vld [vmem:[#allocation98_spill] sm:$0xff] }
 0x658   :  { %v3050_v61 = vadd.f32 %v2973_v11, %v13300_v54  ;;  %v4248_v29 = vsel %vm4247_vm9, %v13288_v17, %v4244_v6  ;;  %v3168_v49 = vadd.f32 %v13303_v37, %v3040_v7  ;;  %v3169_v15 = vadd.f32 %v13304_v8, %v3041_v24  ;;  %v13305_v25 = vld [vmem:[#allocation97_spill] sm:$0xff]  ;;  %v8071_v17 = vld [vmem:[#allocation4 + $0xc0] sm:$0xff]  ;;  %v13307_v6 = vld [vmem:[#allocation14_spill] sm:$0xff]  ;;  %v2889_v27 = vpop.f32.mrf.mxu2 }
 0x659   :  { %v4253_v28 = vsel %vm11208_vm0, %v4252_v47, %v4248_v29  ;;  %v11242_v11 = vadd.f32 %v10567_v51, %v3170_v43  ;;  %v3177_v38 = vadd.f32 %v13305_v25, %v3049_v19  ;;  %v11248_v37 = vadd.f32 %v10578_v63, %v3171_v46  ;;  %v13309_v16 = vld [vmem:[#allocation99_spill] sm:$0xff]  ;;  %4931 = vmatpush.bf16.msrb.mxu0 %v8063_v23 }
 0x65a   :  { %v3178_v54 = vadd.f32 %v13306_v56, %v3050_v61  ;;  %v4380_v42 = vmul.f32 %v4253_v28, %v13307_v6  ;;  %v11251_v8 = vadd.f32 %v10583_v31, %v3168_v49  ;;  %v11254_v59 = vadd.f32 %v10593_v14, %v3169_v15  ;;  %4960 = vmatpush.bf16.msrb.mxu2 %v8071_v17  ;;  %v2918_v15 = vpop.f32.mrf.mxu3  ;;  %v13311_v28 = vld [vmem:[#allocation59_spill] sm:$0xff]  ;;  %v13314_v17 = vld [vmem:[#allocation16_spill] sm:$0xff] }
 0x65b   :  { %v7327_v47 = vmul.f32 -1.442695, %v11242_v11  ;;  %v11258_v7 = vadd.f32 %v10567_v51, %v3177_v38  ;;  %v3175_v4 = vadd.f32 %v13309_v16, %v3047_v34  ;;  %v7328_v19 = vmul.f32 -1.442695, %v11248_v37  ;;  %v13312_v38 = vld [vmem:[#allocation46_spill] sm:$0xff]  ;;  %v13315_v16 = vld [vmem:[#allocation100_spill] sm:$0xff] }
 0x65c   :  { %13308 = vst [vmem:[#allocation72_spill] sm:$0xff] %v11254_v59  ;;  %v11261_v24 = vadd.f32 %v10578_v63, %v3178_v54  ;;  %v4408_v43 = vpack.c.bf16 %v4380_v42, %v4373_v9  ;;  %v7325_v61 = vmul.f32 -1.442695, %v11251_v8  ;;  %v7326_v49 = vmul.f32 -1.442695, %v11254_v59  ;;  %v13310_v9 = vld [vmem:[#allocation69_spill] sm:$0xff] }
 0x65d   :  { %8466 = vpow2.f32 %v7327_v47  ;;  %v7334_v29 = vmul.f32 -1.442695, %v11258_v7  ;;  %v11270_v46 = vadd.f32 %v10583_v31, %v3175_v4  ;;  %v3048_v34 = vadd.f32 %v2915_v22, %v13310_v9  ;;  %v2949_v23 = vpop.f32.mrf.mxu1  ;;  %v13316_v4 = vld [vmem:[#allocation103_spill] sm:$0xff]  ;;  %v13323_v9 = vld [vmem:[#allocation49_spill] sm:$0xff] }
 0x65e   :  { %v7335_v13 = vmul.f32 -1.442695, %v11261_v24  ;;  %4918 = vmatmul.bf16.gmra.mxu1 %v4408_v43  ;;  %8468 = vpow2.f32 %v7328_v19  ;;  %v3056_v25 = vadd.f32 %v2947_v33, %v13311_v28  ;;  %v3057_v56 = vadd.f32 %v2976_v36, %v13312_v38  ;;  %v13326_v38 = vld [vmem:[#allocation105_spill] sm:$0xff] }
 0x65f   :  { %v11276_v54 = vadd.f32 1.0, %v11158_v45  ;;  %8470 = vpow2.f32 %v7325_v61  ;;  %v7332_v6 = vmul.f32 -1.442695, %v11270_v46  ;;  %v13313_v42 = vpack.c.bf16 %v11028_v10, %v11065_v5  ;;  %v13318_v45 = vld [vmem:[#allocation13_spill] sm:$0xff]  ;;  %v13320_v10 = vld [vmem:[#allocation39_spill] sm:$0xff] }
 0x660   :  { %v3054_v47 = vadd.f32 %v2889_v27, %v13314_v17  ;;  %8472 = vpow2.f32 %v7326_v49  ;;  %v3176_v22 = vadd.f32 %v13315_v16, %v3048_v34  ;;  %v3184_v33 = vadd.f32 %v13316_v4, %v3056_v25  ;;  %v13330_v17 = vld [vmem:[#allocation20_spill] sm:$0xff]  ;;  %v13333_v16 = vld [vmem:[#allocation85_spill] sm:$0xff] }
 0x661   :  { %4932 = vmatmul.bf16.vlgmr.msrb.gmra.mxu0 %v13313_v42  ;;  %v13317_v36 = vpack.c.bf16 %v11102_v12, %v11076_v21  ;;  %v3055_v43 = vadd.f32 %v2918_v15, %v13318_v45  ;;  %v13319_v19 = vand.u32 2147483647, %v10687_v3  ;;  %v11292_v61 = vadd.f32 1.0, %v11173_v40  ;;  %v13324_v12 = vld [vmem:[#allocation104_spill] sm:$0xff]  ;;  %v2978_v15 = vpop.f32.mrf.mxu0  ;;  %v13325_v40 = vld [vmem:[#allocation53_spill] sm:$0xff] }
 0x662   :  { %8474 = vpow2.f32 %v7334_v29  ;;  %v3063_v5 = vadd.f32 %v2949_v23, %v13320_v10  ;;  %v13322_v27 = vsel %vm10834_vm6, %v10754_v44, %v10828_v57  ;;  %v11302_v21 = vadd.f32 1.0, %v11201_v55  ;;  %v13335_v45 = vld [vmem:[#allocation117_spill] sm:$0xff] }
 0x663   :  { %4961 = vmatmul.bf16.vlgmr.msrb.gmra.mxu2 %v13317_v36  ;;  %vm3575_vm14 = vcmp.eq.f32.partialorder %v13319_v19, 8.507059e+37  ;;  %8476 = vpow2.f32 %v7335_v13  ;;  %v3185_v3 = vadd.f32 %v13324_v12, %v3057_v56  ;;  %v8467_v28 = vpop.eup %8466  ;;  %v4342_v29 = vmul.f32 %v11086_v18, %v13325_v40  ;;  %v13329_v13 = vld [vmem:[#allocation106_spill] sm:$0xff]  ;;  %v13334_v36 = vld [vmem:[#allocation28_spill] sm:$0xff] }
 0x664   :  { %v3578_v34 = vsel %vm3575_vm14, %v13323_v9, %v13322_v27  ;;  %v11308_v25 = vadd.f32 1.0, %v11215_v26  ;;  %8478 = vpow2.f32 %v7332_v6  ;;  %v3182_v23 = vadd.f32 %v13326_v38, %v3054_v47  ;;  %v8469_v44 = vpop.eup %8468  ;;  %v13332_v6 = vld [vmem:[#allocation107_spill] sm:$0xff]  ;;  %v13340_v38 = vld [vmem:[#allocation108_spill] sm:$0xff] }
 0x665   :  { %8480 = vrcp.f32 %v11276_v54  ;;  %v11313_v57 = vadd.f32 %v10593_v14, %v3176_v22  ;;  %v11316_v55 = vadd.f32 %v10567_v51, %v3184_v33  ;;  %v3183_v56 = vadd.f32 %v13329_v13, %v3055_v43  ;;  %v8471_v42 = vpop.eup %8470 }
 0x666   :  { %v4335_v18 = vmul.f32 %v3578_v34, %v13330_v17  ;;  %8482 = vrcp.f32 %v11292_v61  ;;  %v13331_v26 = vpack.c.bf16 %v10898_v60, %v10862_v39  ;;  %v3191_v47 = vadd.f32 %v13332_v6, %v3063_v5  ;;  %v8473_v22 = vpop.eup %8472  ;;  %v2891_v5 = vpop.f32.mrf.mxu2  ;;  %v13341_v17 = vld [vmem:[#allocation55_spill] sm:$0xff]  ;;  %v13342_v6 = vld [vmem:[#allocation54_spill] sm:$0xff] }
 0x667   :  { %13327 = vst [vmem:[#allocation73_spill] sm:$0xff] %v11313_v57  ;;  %v3064_v4 = vadd.f32 %v2978_v15, %v13333_v16  ;;  %v11328_v33 = vadd.f32 %v13335_v45, %v13334_v36  ;;  %8484 = vrcp.f32 %v11302_v21  ;;  %v11331_v43 = vadd.f32 1.0, %v8467_v28  ;;  %v2920_v15 = vpop.f32.mrf.mxu3 }
 0x668   :  { %13328 = vst [vmem:[#allocation74_spill] sm:$0xff] %v11316_v55  ;;  %4990 = vmatmul.bf16.vlgmr.msra.gmra.mxu3 %v13331_v26  ;;  %v11334_v19 = vadd.f32 %v10578_v63, %v3185_v3  ;;  %v8475_v10 = vpop.eup %8474  ;;  %v4391_v49 = vpack.c.bf16 %v4342_v29, %v4335_v18  ;;  %8486 = vrcp.f32 %v11308_v25  ;;  %v11337_v39 = vadd.f32 1.0, %v8469_v44 }
 0x669   :  { %v11340_v60 = vadd.f32 %v10583_v31, %v3182_v23  ;;  %v8477_v27 = vpop.eup %8476  ;;  %v11342_v9 = vadd.f32 1.0, %v8471_v42  ;;  %v7333_v34 = vmul.f32 -1.442695, %v11313_v57  ;;  %v7341_v12 = vmul.f32 -1.442695, %v11316_v55 }
 0x66a   :  { %13336 = vst [vmem:[#allocation75_spill] sm:$0xff] %v11334_v19  ;;  %v11347_v3 = vadd.f32 %v10593_v14, %v3183_v56  ;;  %v8479_v28 = vpop.eup %8478  ;;  %v11349_v40 = vadd.f32 1.0, %v8473_v22  ;;  %v11352_v29 = vadd.f32 %v10567_v51, %v3191_v47  ;;  %v3192_v23 = vadd.f32 %v13340_v38, %v3064_v4 }
 0x66b   :  { %13337 = vst [vmem:[#allocation19_spill] sm:$0xff] %v11340_v60  ;;  %v3761_v44 = vmul.f32 %v11181_v35, %v11104_v32  ;;  %v11357_v13 = vpop.eup %8480  ;;  %8488 = vrcp.f32 %v11331_v43  ;;  %v11360_v42 = vadd.f32 1.0, %v8475_v10  ;;  %v7342_v56 = vmul.f32 -1.442695, %v11334_v19 }
 0x66c   :  { %13338 = vst [vmem:[#allocation58_spill] sm:$0xff] %v11347_v3  ;;  %v3061_v18 = vadd.f32 %v2891_v5, %v13341_v17  ;;  %v11364_v26 = vpop.eup %8482  ;;  %8490 = vrcp.f32 %v11337_v39  ;;  %v11367_v51 = vadd.f32 1.0, %v8477_v27  ;;  %v3062_v47 = vadd.f32 %v2920_v15, %v13342_v6  ;;  %v13345_v17 = vld [vmem:[#allocation110_spill] sm:$0xff] }
 0x66d   :  { %13339 = vst [vmem:[#allocation76_spill] sm:$0xff] %v11352_v29  ;;  %v3762_v16 = vsub.f32 1.0, %v3761_v44  ;;  %v11370_v4 = vpop.eup %8484  ;;  %8492 = vrcp.f32 %v11342_v9  ;;  %v11373_v22 = vadd.f32 1.0, %v8479_v28  ;;  %v7339_v36 = vmul.f32 -1.442695, %v11340_v60  ;;  %v13344_v28 = vld [vmem:[#allocation109_spill] sm:$0xff] }
 0x66e   :  { %v7340_v45 = vmul.f32 -1.442695, %v11347_v3  ;;  %v11377_v10 = vpop.eup %8486  ;;  %8494 = vrcp.f32 %v11349_v40  ;;  %v7348_v5 = vmul.f32 -1.442695, %v11352_v29  ;;  %v11382_v27 = vadd.f32 %v10578_v63, %v3192_v23  ;;  %5019 = vmatmul.bf16.vlgmr.msrb.gmra.mxu1 %v4391_v49 }
 0x66f   :  { %v3763_v15 = vmul.f32 %v11181_v35, %v3762_v16  ;;  %8496 = vrcp.f32 %v11360_v42  ;;  %v3189_v38 = vadd.f32 %v13344_v28, %v3061_v18  ;;  %vm3766_vm6 = vweird.f32 %v11181_v35 }
 0x670   :  { %13343 = vst [vmem:[#allocation18_spill] sm:$0xff] %v11382_v27  ;;  %v3866_v44 = vmul.f32 %v11357_v13, %v11276_v54  ;;  %8498 = vrcp.f32 %v11367_v51  ;;  %v3190_v6 = vadd.f32 %v13345_v17, %v3062_v47  ;;  %v3771_v63 = vand.u32 2147483648, %v11104_v32  ;;  %vm11402_vm1 = vmor %vm3765_vm15, %vm3766_vm6  ;;  %v13349_v47 = vld [vmem:[#allocation67_spill] sm:$0xff] }
 0x671   :  { %v3764_v3 = vadd.f32 %v11181_v35, %v3763_v15  ;;  %v11394_v23 = vpop.eup %8488  ;;  %8500 = vrcp.f32 %v11373_v22  ;;  %v3769_v49 = vand.u32 2147483647, %v11104_v32  ;;  %v7349_v28 = vmul.f32 -1.442695, %v11382_v27 }
 0x672   :  { %v3867_v18 = vsub.f32 1.0, %v3866_v44  ;;  %v11399_v16 = vpop.eup %8490  ;;  %8502 = vpow2.f32 %v7333_v34  ;;  %v3876_v15 = vand.u32 2147483648, %v11276_v54  ;;  %v3776_v17 = vmul.f32 %v11189_v48, %v11110_v62 }
 0x673   :  { %v11409_v60 = vpop.eup %8492  ;;  %v3768_v32 = vsel %vm11402_vm1, %v11181_v35, %v3764_v3  ;;  %vm3871_vm2 = vweird.f32 %v11357_v13  ;;  %v3874_v34 = vand.u32 2147483647, %v11276_v54  ;;  %8504 = vpow2.f32 %v7341_v12 }
 0x674   :  { %v3868_v44 = vmul.f32 %v11357_v13, %v3867_v18  ;;  %v11417_v27 = vpop.eup %8494  ;;  %v11420_v19 = vadd.f32 %v10583_v31, %v3189_v38  ;;  %v3772_v29 = vor.u32 1.1754944e-38, %v3771_v63  ;;  %v3777_v55 = vsub.f32 1.0, %v3776_v17 }
 0x675   :  { %v11422_v57 = vpop.eup %8496  ;;  %v11425_v59 = vadd.f32 %v10593_v14, %v3190_v6  ;;  %vm3770_vm3 = vcmp.eq.f32.partialorder %v3769_v49, 8.507059e+37  ;;  %vm3870_vm4 = vweird.f32 %v11276_v54  ;;  %8506 = vpow2.f32 %v7342_v56 }
 0x676   :  { %v3869_v35 = vadd.f32 %v11357_v13, %v3868_v44  ;;  %v11429_v3 = vpop.eup %8498  ;;  %v3773_v18 = vsel %vm3770_vm3, %v3772_v29, %v3768_v32  ;;  %vm3872_vm5 = vmor %vm3870_vm4, %vm3871_vm2  ;;  %v3877_v31 = vor.u32 1.1754944e-38, %v3876_v15  ;;  %v3778_v12 = vmul.f32 %v11189_v48, %v3777_v55 }
 0x677   :  { %v11434_v38 = vpop.eup %8500  ;;  %8508 = vpow2.f32 %v7339_v36  ;;  %vm3875_vm8 = vcmp.eq.f32.partialorder %v3874_v34, 8.507059e+37  ;;  %vm3781_vm7 = vweird.f32 %v11189_v48  ;;  %v7346_v54 = vmul.f32 -1.442695, %v11420_v19 }
 0x678   :  { %v3873_v14 = vsel %vm3872_vm5, %v11357_v13, %v3869_v35  ;;  %v8503_v6 = vpop.eup %8502  ;;  %8510 = vpow2.f32 %v7340_v45  ;;  %v3779_v29 = vadd.f32 %v11189_v48, %v3778_v12  ;;  %v4348_v63 = vmul.f32 %v3773_v18, %v11022_v58  ;;  %v13348_v13 = vld [vmem:[#allocation30_spill] sm:$0xff]  ;;  %v13353_v18 = vld [vmem:[#allocation17_spill] sm:$0xff] }
 0x679   :  { %v3878_v56 = vsel %vm3875_vm8, %v3877_v31, %v3873_v14  ;;  %vm3780_vm10 = vweird.f32 %v11110_v62  ;;  %v3784_v55 = vand.u32 2147483647, %v11110_v62  ;;  %v8505_v36 = vpop.eup %8504  ;;  %v11446_v15 = vadd.f32 %v13349_v47, %v13348_v13  ;;  %v13354_v12 = vld [vmem:[#allocation37_spill] sm:$0xff]  ;;  %v13355_v14 = vld [vmem:[#allocation56_spill] sm:$0xff] }
 0x67a   :  { %v4355_v49 = vmul.f32 %v3878_v56, %v11058_v2  ;;  %8512 = vpow2.f32 %v7348_v5  ;;  %v7347_v45 = vmul.f32 -1.442695, %v11425_v59  ;;  %vm11449_vm11 = vmor %vm3780_vm10, %vm3781_vm7  ;;  %v3786_v58 = vand.u32 2147483648, %v11110_v62  ;;  %v13352_v5 = vld [vmem:[#allocation33_spill] sm:$0xff] }
 0x67b   :  { %v11454_v32 = vadd.f32 1.0, %v8503_v6  ;;  %v3783_v44 = vsel %vm11449_vm11, %v11189_v48, %v3779_v29  ;;  %v3881_v34 = vmul.f32 %v11364_v26, %v11292_v61  ;;  %v8507_v35 = vpop.eup %8506  ;;  %v11463_v31 = vadd.f32 %v13353_v18, %v13352_v5 }
 0x67c   :  { %v4397_v2 = vpack.c.bf16 %v4355_v49, %v4348_v63  ;;  %v11467_v56 = vadd.f32 %v13355_v14, %v13354_v12  ;;  %8514 = vpow2.f32 %v7349_v28  ;;  %v3787_v62 = vor.u32 1.1754944e-38, %v3786_v58 }
 0x67d   :  { %v11469_v6 = vpop.eup %8508  ;;  %v11471_v63 = vadd.f32 1.0, %v8505_v36  ;;  %8516 = vpow2.f32 %v7346_v54  ;;  %vm3785_vm12 = vcmp.eq.f32.partialorder %v3784_v55, 8.507059e+37  ;;  %v3882_v48 = vsub.f32 1.0, %v3881_v34 }
 0x67e   :  { %4995 = vmatmul.bf16.gmra.mxu3 %v4397_v2  ;;  %v11473_v29 = vpop.eup %8510  ;;  %8518 = vpow2.f32 %v7347_v45  ;;  %v3788_v49 = vsel %vm3785_vm12, %v3787_v62, %v3783_v44  ;;  %v3889_v13 = vand.u32 2147483647, %v11292_v61  ;;  %v3891_v47 = vand.u32 2147483648, %v11292_v61  ;;  %v2990_v62 = vpop.f32.mrf.mxu2 }
 0x67f   :  { %8520 = vrcp.f32 %v11454_v32  ;;  %v3883_v28 = vmul.f32 %v11364_v26, %v3882_v48  ;;  %vm3886_vm13 = vweird.f32 %v11364_v26  ;;  %v3731_v54 = vmul.f32 %v11195_v0, %v11116_v50 }
 0x680   :  { %v11482_v36 = vpop.eup %8512  ;;  %v11484_v55 = vadd.f32 1.0, %v8507_v35  ;;  %vm3885_vm0 = vweird.f32 %v11292_v61  ;;  %vm11487_vm9 = vcmp.eq.f32.partialorder %v3889_v13, 8.507059e+37  ;;  %v4349_v17 = vmul.f32 %v3788_v49, %v11025_v53 }
 0x681   :  { %v3884_v58 = vadd.f32 %v11364_v26, %v3883_v28  ;;  %v3892_v2 = vor.u32 1.1754944e-38, %v3891_v47  ;;  %v3732_v44 = vsub.f32 1.0, %v3731_v54  ;;  %v3739_v34 = vand.u32 2147483647, %v11116_v50  ;;  %vm3887_vm14 = vmor %vm3885_vm0, %vm3886_vm13 }
 0x682   :  { %v11494_v5 = vpop.eup %8514  ;;  %vm3735_vm6 = vweird.f32 %v11116_v50  ;;  %v3741_v35 = vand.u32 2147483648, %v11116_v50  ;;  %v3836_v61 = vmul.f32 %v11370_v4, %v11302_v21  ;;  %v3844_v18 = vand.u32 2147483647, %v11302_v21 }
 0x683   :  { %v11501_v12 = vpop.eup %8516  ;;  %v3888_v53 = vsel %vm3887_vm14, %v11364_v26, %v3884_v58  ;;  %v3733_v14 = vmul.f32 %v11195_v0, %v3732_v44  ;;  %vm3736_vm15 = vweird.f32 %v11195_v0  ;;  %vm3840_vm1 = vweird.f32 %v11302_v21  ;;  %v8680_v44 = vld [vmem:[%s12882_s13] sm:$0xff] }
 0x684   :  { %v11507_v48 = vpop.eup %8518  ;;  %v3893_v49 = vsel %vm11487_vm9, %v3892_v2, %v3888_v53  ;;  %v3837_v13 = vsub.f32 1.0, %v3836_v61  ;;  %vm3841_vm2 = vweird.f32 %v11370_v4  ;;  %v3846_v47 = vand.u32 2147483648, %v11302_v21  ;;  %vm3737_vm4 = vmor %vm3735_vm6, %vm3736_vm15 }
 0x685   :  { %v11513_v28 = vpop.eup %8520  ;;  %v4356_v26 = vmul.f32 %v3893_v49, %v11090_v30  ;;  %v3734_v54 = vadd.f32 %v11195_v0, %v3733_v14  ;;  %vm3740_vm3 = vcmp.eq.f32.partialorder %v3739_v34, 8.507059e+37  ;;  %v3746_v58 = vmul.f32 %v11233_v1, %v11155_v20  ;;  %vm3842_vm7 = vmor %vm3840_vm1, %vm3841_vm2 }
 0x686   :  { %v3742_v45 = vor.u32 1.1754944e-38, %v3741_v35  ;;  %v3838_v2 = vmul.f32 %v11370_v4, %v3837_v13  ;;  %vm11522_vm5 = vcmp.eq.f32.partialorder %v3844_v18, 8.507059e+37  ;;  %v3754_v61 = vand.u32 2147483647, %v11155_v20 }
 0x687   :  { %v4398_v53 = vpack.c.bf16 %v4356_v26, %v4349_v17  ;;  %v3738_v30 = vsel %vm3737_vm4, %v11195_v0, %v3734_v54  ;;  %v3747_v14 = vsub.f32 1.0, %v3746_v58  ;;  %vm3750_vm8 = vweird.f32 %v11155_v20 }
 0x688   :  { %v3743_v34 = vsel %vm3740_vm3, %v3742_v45, %v3738_v30  ;;  %v3839_v49 = vadd.f32 %v11370_v4, %v3838_v2  ;;  %v3847_v50 = vor.u32 1.1754944e-38, %v3846_v47  ;;  %v3851_v35 = vmul.f32 %v11377_v10, %v11308_v25  ;;  %v13362_v45 = vld [vmem:[#allocation83_spill] sm:$0xff] }
 0x689   :  { %5024 = vmatmul.bf16.gmra.mxu1 %v4398_v53  ;;  %v3748_v17 = vmul.f32 %v11233_v1, %v3747_v14  ;;  %vm3751_vm10 = vweird.f32 %v11233_v1  ;;  %vm11538_vm11 = vcmp.eq.f32.partialorder %v3754_v61, 8.507059e+37  ;;  %v3756_v18 = vand.u32 2147483648, %v11155_v20 }
 0x68a   :  { %v3843_v13 = vsel %vm3842_vm7, %v11370_v4, %v3839_v49  ;;  %v4346_v47 = vmul.f32 %v3743_v34, %v11032_v41  ;;  %v3852_v26 = vsub.f32 1.0, %v3851_v35  ;;  %vm3856_vm12 = vweird.f32 %v11377_v10  ;;  %vm3752_vm13 = vmor %vm3750_vm8, %vm3751_vm10  ;;  %v13363_v34 = vld [vmem:[#allocation101_spill] sm:$0xff]  ;;  %v2992_v49 = vpop.f32.mrf.mxu2  ;;  %v13364_v35 = vld [vmem:[#allocation84_spill] sm:$0xff] }
 0x68b   :  { %v3848_v21 = vsel %vm11522_vm5, %v3847_v50, %v3843_v13  ;;  %v3749_v54 = vadd.f32 %v11233_v1, %v3748_v17  ;;  %v3861_v58 = vand.u32 2147483648, %v11308_v25  ;;  %v3016_v2 = vadd.f32 %v2990_v62, %v13362_v45 }
 0x68c   :  { %v4353_v61 = vmul.f32 %v3848_v21, %v11098_v52  ;;  %v3853_v4 = vmul.f32 %v11377_v10, %v3852_v26  ;;  %v3859_v41 = vand.u32 2147483647, %v11308_v25  ;;  %v11559_v53 = vperm.slane %v8680_v44, 6 }
 0x68d   :  { %v3753_v30 = vsel %vm3752_vm13, %v11233_v1, %v3749_v54  ;;  %v3757_v14 = vor.u32 1.1754944e-38, %v3756_v18  ;;  %v3144_v62 = vadd.f32 %v13363_v34, %v3016_v2  ;;  %v3971_v52 = vmul.f32 %v11394_v23, %v11331_v43  ;;  %v13366_v2 = vld [vmem:[#allocation70_spill] sm:$0xff] }
 0x68e   :  { %v4395_v20 = vpack.c.bf16 %v4353_v61, %v4346_v47  ;;  %v3854_v50 = vadd.f32 %v11377_v10, %v3853_v4  ;;  %vm3855_vm0 = vweird.f32 %v11308_v25  ;;  %v3023_v17 = vadd.f32 %v2992_v49, %v13364_v35  ;;  %v13365_v25 = vld [vmem:[#allocation102_spill] sm:$0xff]  ;;  %v13367_v4 = vld [vmem:[#allocation71_spill] sm:$0xff] }
 0x68f   :  { %v3758_v13 = vsel %vm11538_vm11, %v3757_v14, %v3753_v30  ;;  %vm3857_vm9 = vmor %vm3855_vm0, %vm3856_vm12  ;;  %v3862_v1 = vor.u32 1.1754944e-38, %v3861_v58  ;;  %v11573_v18 = vadd.f32 %v11559_v53, %v3144_v62  ;;  %v3972_v26 = vsub.f32 1.0, %v3971_v52 }
 0x690   :  { %8522 = vrcp.f32 %v11471_v63  ;;  %4937 = vmatmul.bf16.gmra.mxu0 %v4395_v20  ;;  %v3858_v47 = vsel %vm3857_vm9, %v11377_v10, %v3854_v50  ;;  %vm3860_vm14 = vcmp.eq.f32.partialorder %v3859_v41, 8.507059e+37  ;;  %v3151_v21 = vadd.f32 %v13365_v25, %v3023_v17 }
 0x691   :  { %v11579_v54 = vadd.f32 1.0, %v11469_v6  ;;  %v3863_v0 = vsel %vm3860_vm14, %v3862_v1, %v3858_v47  ;;  %v7301_v45 = vmul.f32 -1.442695, %v11573_v18  ;;  %v3973_v58 = vmul.f32 %v11394_v23, %v3972_v26 }
 0x692   :  { %v4347_v61 = vmul.f32 %v3758_v13, %v13366_v2  ;;  %v4354_v44 = vmul.f32 %v3863_v0, %v13367_v4  ;;  %v11586_v30 = vadd.f32 %v11559_v53, %v3151_v21  ;;  %v4076_v10 = vmul.f32 %v11422_v57, %v11360_v42 }
 0x693   :  { %8524 = vrcp.f32 %v11484_v55  ;;  %v3974_v6 = vadd.f32 %v11394_v23, %v3973_v58  ;;  %vm3976_vm6 = vweird.f32 %v11394_v23  ;;  %v3981_v41 = vand.u32 2147483648, %v11331_v43 }
 0x694   :  { %v4396_v14 = vpack.c.bf16 %v4354_v44, %v4347_v61  ;;  %8526 = vpow2.f32 %v7301_v45  ;;  %v7308_v34 = vmul.f32 -1.442695, %v11586_v30  ;;  %v4077_v62 = vsub.f32 1.0, %v4076_v10 }
 0x695   :  { %vm3975_vm15 = vweird.f32 %v11331_v43  ;;  %v3979_v49 = vand.u32 2147483647, %v11331_v43  ;;  %v4086_v52 = vand.u32 2147483648, %v11360_v42  ;;  %v3986_v20 = vmul.f32 %v11399_v16, %v11337_v39 }
 0x696   :  { %v11600_v50 = vpop.eup %8522  ;;  %4966 = vmatmul.bf16.gmra.mxu2 %v4396_v14  ;;  %8528 = vpow2.f32 %v7308_v34  ;;  %vm11602_vm1 = vmor %vm3975_vm15, %vm3976_vm6  ;;  %v4078_v17 = vmul.f32 %v11422_v57, %v4077_v62  ;;  %vm4081_vm2 = vweird.f32 %v11422_v57  ;;  %v4084_v13 = vand.u32 2147483647, %v11360_v42 }
 0x697   :  { %8530 = vrcp.f32 %v11579_v54  ;;  %v11611_v43 = vadd.f32 1.0, %v11473_v29  ;;  %v3978_v1 = vsel %vm11602_vm1, %v11394_v23, %v3974_v6  ;;  %v3987_v26 = vsub.f32 1.0, %v3986_v20 }
 0x698   :  { %v11617_v47 = vadd.f32 1.0, %v11482_v36  ;;  %v3982_v25 = vor.u32 1.1754944e-38, %v3981_v41  ;;  %v4079_v21 = vadd.f32 %v11422_v57, %v4078_v17  ;;  %vm4080_vm3 = vweird.f32 %v11360_v42 }
 0x699   :  { %v11621_v0 = vpop.eup %8524  ;;  %vm3980_vm4 = vcmp.eq.f32.partialorder %v3979_v49, 8.507059e+37  ;;  %vm4082_vm5 = vmor %vm4080_vm3, %vm4081_vm2  ;;  %v4087_v45 = vor.u32 1.1754944e-38, %v4086_v52  ;;  %v3988_v29 = vmul.f32 %v11399_v16, %v3987_v26  ;;  %v4091_v58 = vmul.f32 %v11429_v3, %v11367_v51  ;;  %v11690_v49 = vpop.f32.mrf.mxu2 }
 0x69a   :  { %v8527_v23 = vpop.eup %8526  ;;  %v3983_v2 = vsel %vm3980_vm4, %v3982_v25, %v3978_v1  ;;  %v4083_v36 = vsel %vm4082_vm5, %v11422_v57, %v4079_v21  ;;  %vm4085_vm8 = vcmp.eq.f32.partialorder %v4084_v13, 8.507059e+37  ;;  %vm3991_vm7 = vweird.f32 %v11399_v16  ;;  %v13373_v1 = vld [vmem:[#allocation79_spill] sm:$0xff] }
 0x69b   :  { %v4088_v61 = vsel %vm4085_vm8, %v4087_v45, %v4083_v36  ;;  %v3989_v42 = vadd.f32 %v11399_v16, %v3988_v29  ;;  %v3996_v4 = vand.u32 2147483648, %v11337_v39  ;;  %v4092_v44 = vsub.f32 1.0, %v4091_v58  ;;  %v8102_v58 = vld [vmem:[#allocation4 + $0x1b8] sm:$0xff] }
 0x69c   :  { %v8529_v10 = vpop.eup %8528  ;;  %8532 = vrcp.f32 %v11611_v43  ;;  %v11632_v6 = vadd.f32 1.0, %v11494_v5  ;;  %vm3990_vm10 = vweird.f32 %v11337_v39  ;;  %v3994_v41 = vand.u32 2147483647, %v11337_v39  ;;  %5040 = vmatpush.bf16.msra.mxu0 %v8102_v58 }
 0x69d   :  { %v11636_v57 = vpop.eup %8530  ;;  %v11638_v14 = vadd.f32 1.0, %v8527_v23  ;;  %v11640_v34 = vadd.f32 1.0, %v8529_v10  ;;  %v4369_v62 = vmul.f32 %v4088_v61, %v11258_v7  ;;  %vm11643_vm11 = vmor %vm3990_vm10, %vm3991_vm7  ;;  %v4093_v52 = vmul.f32 %v11429_v3, %v4092_v44  ;;  %v13374_v23 = vld [vmem:[#allocation45_spill] sm:$0xff] }
 0x69e   :  { %v11649_v5 = vadd.f32 1.0, %v11501_v12  ;;  %v4362_v20 = vmul.f32 %v3983_v2, %v11242_v11  ;;  %v3993_v39 = vsel %vm11643_vm11, %v11399_v16, %v3989_v42  ;;  %vm4096_vm12 = vweird.f32 %v11429_v3  ;;  %v13372_v11 = vld [vmem:[#allocation41_spill] sm:$0xff]  ;;  %v13375_v2 = vld [vmem:[#allocation51_spill] sm:$0xff] }
 0x69f   :  { %8534 = vrcp.f32 %v11640_v34  ;;  %v3997_v7 = vor.u32 1.1754944e-38, %v3996_v4  ;;  %vm4095_vm13 = vweird.f32 %v11367_v51  ;;  %v4099_v35 = vand.u32 2147483647, %v11367_v51 }
 0x6a0   :  { %v4404_v17 = vpack.c.bf16 %v4369_v62, %v4362_v20  ;;  %vm3995_vm0 = vcmp.eq.f32.partialorder %v3994_v41, 8.507059e+37  ;;  %v4094_v12 = vadd.f32 %v11429_v3, %v4093_v52  ;;  %v4101_v13 = vand.u32 2147483648, %v11367_v51  ;;  %vm4097_vm9 = vmor %vm4095_vm13, %vm4096_vm12 }
 0x6a1   :  { %v11663_v26 = vadd.f32 %v13373_v1, %v13372_v11  ;;  %8536 = vrcp.f32 %v11638_v14  ;;  %v3998_v16 = vsel %vm3995_vm0, %v3997_v7, %v3993_v39  ;;  %v3941_v25 = vmul.f32 %v11409_v60, %v11342_v9  ;;  %v8100_v1 = vld [vmem:[#allocation4 + $0x1a8] sm:$0xff] }
 0x6a2   :  { %v11668_v21 = vpop.eup %8532  ;;  %8538 = vrcp.f32 %v11617_v47  ;;  %v11672_v45 = vadd.f32 1.0, %v11507_v48  ;;  %5000 = vmatmul.bf16.gmra.mxu3 %v4404_v17  ;;  %v4098_v51 = vsel %vm4097_vm9, %v11429_v3, %v4094_v12  ;;  %v4102_v29 = vor.u32 1.1754944e-38, %v4101_v13  ;;  %v8101_v3 = vld [vmem:[#allocation4 + $0x1b0] sm:$0xff] }
 0x6a3   :  { %v11677_v36 = vadd.f32 %v13375_v2, %v13374_v23  ;;  %8540 = vrcp.f32 %v11632_v6  ;;  %vm4100_vm14 = vcmp.eq.f32.partialorder %v4099_v35, 8.507059e+37  ;;  %v3942_v61 = vsub.f32 1.0, %v3941_v25  ;;  %5041 = vmatpush.bf16.msra.mxu0 %v8101_v3 }
 0x6a4   :  { %8542 = vrcp.f32 %v11649_v5  ;;  %v4103_v42 = vsel %vm4100_vm14, %v4102_v29, %v4098_v51  ;;  %v4363_v4 = vmul.f32 %v3998_v16, %v11248_v37  ;;  %v4046_v48 = vmul.f32 %v11434_v38, %v11373_v22 }
 0x6a5   :  { %v11684_v44 = vpop.eup %8534  ;;  %v4370_v10 = vmul.f32 %v4103_v42, %v11261_v24  ;;  %v3943_v41 = vmul.f32 %v11409_v60, %v3942_v61  ;;  %vm3946_vm6 = vweird.f32 %v11409_v60  ;;  %v3951_v62 = vand.u32 2147483648, %v11342_v9 }
 0x6a6   :  { %8544 = vrcp.f32 %v11672_v45  ;;  %vm3945_vm15 = vweird.f32 %v11342_v9  ;;  %v3949_v37 = vand.u32 2147483647, %v11342_v9  ;;  %v4047_v52 = vsub.f32 1.0, %v4046_v48 }
 0x6a7   :  { %v11695_v20 = vpop.eup %8536  ;;  %v3686_v24 = vmul.f32 %v11684_v44, %v11640_v34  ;;  %v4405_v39 = vpack.c.bf16 %v4370_v10, %v4363_v4  ;;  %v3944_v7 = vadd.f32 %v11409_v60, %v3943_v41  ;;  %vm4051_vm1 = vweird.f32 %v11434_v38  ;;  %vm11703_vm2 = vmor %vm3945_vm15, %vm3946_vm6  ;;  %5042 = vmatpush.bf16.msra.mxu0 %v8100_v1 }
 0x6a8   :  { %v11701_v35 = vpop.eup %8538  ;;  %v4048_v12 = vmul.f32 %v11434_v38, %v4047_v52  ;;  %v4054_v9 = vand.u32 2147483647, %v11373_v22  ;;  %v4056_v13 = vand.u32 2147483648, %v11373_v22  ;;  %v3956_v11 = vmul.f32 %v11417_v27, %v11349_v40 }
 0x6a9   :  { %v11712_v16 = vpop.eup %8540  ;;  %v3589_v25 = vand.u32 2147483647, %v11638_v14  ;;  %v3591_v51 = vand.u32 2147483648, %v11638_v14  ;;  %5029 = vmatmul.bf16.gmra.mxu1 %v4405_v39  ;;  %v3948_v29 = vsel %vm11703_vm2, %v11409_v60, %v3944_v7  ;;  %v3952_v58 = vor.u32 1.1754944e-38, %v3951_v62 }
 0x6aa   :  { %v11719_v23 = vpop.eup %8542  ;;  %v3581_v2 = vmul.f32 %v11695_v20, %v11638_v14  ;;  %vm3950_vm3 = vcmp.eq.f32.partialorder %v3949_v37, 8.507059e+37  ;;  %v4049_v61 = vadd.f32 %v11434_v38, %v4048_v12  ;;  %vm4050_vm4 = vweird.f32 %v11373_v22  ;;  %v8099_v37 = vld [vmem:[#allocation4 + $0x1a0] sm:$0xff] }
 0x6ab   :  { %v3687_v42 = vsub.f32 1.0, %v3686_v24  ;;  %v3953_v4 = vsel %vm3950_vm3, %v3952_v58, %v3948_v29  ;;  %vm4052_vm5 = vmor %vm4050_vm4, %vm4051_vm1  ;;  %v4057_v48 = vor.u32 1.1754944e-38, %v4056_v13  ;;  %v3957_v3 = vsub.f32 1.0, %v3956_v11  ;;  %v2997_v11 = vpop.f32.mrf.mxu2  ;;  %5043 = vmatpush.bf16.msra.mxu0 %v8099_v37 }
 0x6ac   :  { %v11727_v10 = vpop.eup %8544  ;;  %v3694_v60 = vand.u32 2147483647, %v11640_v34  ;;  %v4053_v41 = vsel %vm4052_vm5, %v11434_v38, %v4049_v61  ;;  %vm4055_vm8 = vcmp.eq.f32.partialorder %v4054_v9, 8.507059e+37  ;;  %v3964_v62 = vand.u32 2147483647, %v11349_v40 }
 0x6ad   :  { %v4058_v52 = vsel %vm4055_vm8, %v4057_v48, %v4053_v41  ;;  %v3958_v22 = vmul.f32 %v11417_v27, %v3957_v3  ;;  %vm3961_vm7 = vweird.f32 %v11417_v27  ;;  %v3966_v24 = vand.u32 2147483648, %v11349_v40  ;;  %v13378_v3 = vld [vmem:[#allocation111_spill] sm:$0xff] }
 0x6ae   :  { %v3696_v39 = vand.u32 2147483648, %v11640_v34  ;;  %v4360_v7 = vmul.f32 %v3953_v4, %v11251_v8  ;;  %v4367_v17 = vmul.f32 %v4058_v52, %v11270_v46  ;;  %v4061_v38 = vmul.f32 %v11513_v28, %v11454_v32  ;;  %v13380_v52 = vld [vmem:[#allocation72_spill] sm:$0xff] }
 0x6af   :  { %v3582_v12 = vsub.f32 1.0, %v3581_v2  ;;  %v3688_v9 = vmul.f32 %v11684_v44, %v3687_v42  ;;  %v3959_v13 = vadd.f32 %v11417_v27, %v3958_v22  ;;  %vm3960_vm10 = vweird.f32 %v11349_v40 }
 0x6b0   :  { %v4402_v1 = vpack.c.bf16 %v4367_v17, %v4360_v7  ;;  %vm3962_vm11 = vmor %vm3960_vm10, %vm3961_vm7  ;;  %vm3965_vm12 = vcmp.eq.f32.partialorder %v3964_v62, 8.507059e+37  ;;  %v3967_v29 = vor.u32 1.1754944e-38, %v3966_v24  ;;  %v4062_v58 = vsub.f32 1.0, %v4061_v38 }
 0x6b1   :  { %v3963_v8 = vsel %vm3962_vm11, %v11417_v27, %v3959_v13  ;;  %v4069_v46 = vand.u32 2147483647, %v11454_v32  ;;  %v4071_v61 = vand.u32 2147483648, %v11454_v32  ;;  %v3030_v2 = vadd.f32 %v11690_v49, %v11328_v33  ;;  %v13379_v49 = vld [vmem:[#allocation112_spill] sm:$0xff] }
 0x6b2   :  { %4942 = vmatmul.bf16.gmra.mxu0 %v4402_v1  ;;  %v3968_v42 = vsel %vm3965_vm12, %v3967_v29, %v3963_v8  ;;  %v4063_v40 = vmul.f32 %v11513_v28, %v4062_v58  ;;  %vm4066_vm13 = vweird.f32 %v11513_v28  ;;  %v3037_v4 = vadd.f32 %v2997_v11, %v11446_v15  ;;  %v13381_v1 = vld [vmem:[#allocation73_spill] sm:$0xff] }
 0x6b3   :  { %v11752_v48 = vmul.f32 %v11695_v20, %v3582_v12  ;;  %v11755_v27 = vadd.f32 %v11684_v44, %v3688_v9  ;;  %vm4065_vm0 = vweird.f32 %v11454_v32  ;;  %v3158_v41 = vadd.f32 %v13378_v3, %v3030_v2 }
 0x6b4   :  { %v4064_v33 = vadd.f32 %v11513_v28, %v4063_v40  ;;  %vm4070_vm9 = vcmp.eq.f32.partialorder %v4069_v46, 8.507059e+37  ;;  %v3165_v62 = vadd.f32 %v13379_v49, %v3037_v4  ;;  %v4181_v37 = vmul.f32 %v11600_v50, %v11471_v63  ;;  %vm4067_vm14 = vmor %vm4065_vm0, %vm4066_vm13  ;;  %v11785_v40 = vpop.f32.mrf.mxu2 }
 0x6b5   :  { %v4072_v15 = vor.u32 1.1754944e-38, %v4071_v61  ;;  %v4361_v22 = vmul.f32 %v3968_v42, %v13380_v52  ;;  %v11765_v24 = vadd.f32 %v11559_v53, %v3158_v41  ;;  %vm4186_vm6 = vweird.f32 %v11600_v50 }
 0x6b6   :  { %v4068_v32 = vsel %vm4067_vm14, %v11513_v28, %v4064_v33  ;;  %v11770_v7 = vadd.f32 %v11559_v53, %v3165_v62  ;;  %v4182_v17 = vsub.f32 1.0, %v4181_v37  ;;  %v4286_v38 = vmul.f32 %v11701_v35, %v11617_v47 }
 0x6b7   :  { %v4073_v12 = vsel %vm4070_vm9, %v4072_v15, %v4068_v32  ;;  %v7315_v9 = vmul.f32 -1.442695, %v11765_v24  ;;  %v4189_v13 = vand.u32 2147483647, %v11471_v63  ;;  %v4191_v11 = vand.u32 2147483648, %v11471_v63  ;;  %v13382_v32 = vld [vmem:[#allocation74_spill] sm:$0xff] }
 0x6b8   :  { %v4368_v29 = vmul.f32 %v4073_v12, %v13381_v1  ;;  %v7322_v58 = vmul.f32 -1.442695, %v11770_v7  ;;  %v4183_v28 = vmul.f32 %v11600_v50, %v4182_v17  ;;  %v4287_v8 = vsub.f32 1.0, %v4286_v38 }
 0x6b9   :  { %8546 = vpow2.f32 %v7315_v9  ;;  %vm4185_vm15 = vweird.f32 %v11471_v63  ;;  %vm4291_vm1 = vweird.f32 %v11701_v35  ;;  %v4294_v46 = vand.u32 2147483647, %v11617_v47 }
 0x6ba   :  { %v4403_v61 = vpack.c.bf16 %v4368_v29, %v4361_v22  ;;  %8548 = vpow2.f32 %v7322_v58  ;;  %v4184_v2 = vadd.f32 %v11600_v50, %v4183_v28  ;;  %v4288_v42 = vmul.f32 %v11701_v35, %v4287_v8  ;;  %vm4187_vm2 = vmor %vm4185_vm15, %vm4186_vm6  ;;  %v8098_v58 = vld [vmem:[#allocation4 + $0x198] sm:$0xff] }
 0x6bb   :  { %vm4190_vm3 = vcmp.eq.f32.partialorder %v4189_v13, 8.507059e+37  ;;  %v4192_v4 = vor.u32 1.1754944e-38, %v4191_v11  ;;  %v4296_v3 = vand.u32 2147483648, %v11617_v47  ;;  %v4196_v63 = vmul.f32 %v11621_v0, %v11484_v55  ;;  %v13383_v11 = vld [vmem:[#allocation76_spill] sm:$0xff]  ;;  %5044 = vmatpush.bf16.msra.mxu0 %v8098_v58 }
 0x6bc   :  { %4971 = vmatmul.bf16.gmra.mxu2 %v4403_v61  ;;  %v4188_v41 = vsel %vm4187_vm2, %v11600_v50, %v4184_v2  ;;  %v4289_v33 = vadd.f32 %v11701_v35, %v4288_v42  ;;  %vm4290_vm4 = vweird.f32 %v11617_v47  ;;  %vm4295_vm5 = vcmp.eq.f32.partialorder %v4294_v46, 8.507059e+37  ;;  %v11814_v2 = vpop.f32.mrf.mxu3 }
 0x6bd   :  { %v4193_v49 = vsel %vm4190_vm3, %v4192_v4, %v4188_v41  ;;  %vm4292_vm8 = vmor %vm4290_vm4, %vm4291_vm1  ;;  %v4297_v62 = vor.u32 1.1754944e-38, %v4296_v3  ;;  %v4197_v37 = vsub.f32 1.0, %v4196_v63  ;;  %v4206_v15 = vand.u32 2147483648, %v11484_v55  ;;  %v8097_v63 = vld [vmem:[#allocation4 + $0x190] sm:$0xff]  ;;  %v11824_v41 = vpop.f32.mrf.mxu2 }
 0x6be   :  { %v4293_v52 = vsel %vm4292_vm8, %v11701_v35, %v4289_v33  ;;  %vm4200_vm7 = vweird.f32 %v11484_v55  ;;  %vm4201_vm10 = vweird.f32 %v11621_v0  ;;  %v4301_v50 = vmul.f32 %v11712_v16, %v11632_v6 }
 0x6bf   :  { %v8547_v22 = vpop.eup %8546  ;;  %v4298_v47 = vsel %vm4295_vm5, %v4297_v62, %v4293_v52  ;;  %v4376_v17 = vmul.f32 %v4193_v49, %v13382_v32  ;;  %v4198_v38 = vmul.f32 %v11621_v0, %v4197_v37  ;;  %v4204_v12 = vand.u32 2147483647, %v11484_v55  ;;  %vm4202_vm11 = vmor %vm4200_vm7, %vm4201_vm10  ;;  %5045 = vmatpush.bf16.msra.mxu0 %v8097_v63  ;;  %v13384_v32 = vld [vmem:[#allocation75_spill] sm:$0xff] }
 0x6c0   :  { %v8549_v9 = vpop.eup %8548  ;;  %v11806_v13 = vadd.f32 1.0, %v8547_v22  ;;  %v4383_v35 = vmul.f32 %v4298_v47, %v13383_v11  ;;  %v4207_v1 = vor.u32 1.1754944e-38, %v4206_v15  ;;  %v4302_v29 = vsub.f32 1.0, %v4301_v50  ;;  %v8096_v22 = vld [vmem:[#allocation4 + $0x188] sm:$0xff] }
 0x6c1   :  { %v11809_v28 = vadd.f32 1.0, %v8549_v9  ;;  %v4199_v8 = vadd.f32 %v11621_v0, %v4198_v38  ;;  %v4309_v46 = vand.u32 2147483647, %v11632_v6  ;;  %v4311_v61 = vand.u32 2147483648, %v11632_v6  ;;  %v13385_v38 = vld [vmem:[#allocation18_spill] sm:$0xff] }
 0x6c2   :  { %v4411_v42 = vpack.c.bf16 %v4383_v35, %v4376_v17  ;;  %v4303_v4 = vmul.f32 %v11712_v16, %v4302_v29  ;;  %vm4306_vm12 = vweird.f32 %v11712_v16  ;;  %v4151_v3 = vmul.f32 %v11636_v57, %v11579_v54 }
 0x6c3   :  { %8550 = vrcp.f32 %v11806_v13  ;;  %v4203_v33 = vsel %vm4202_vm11, %v11621_v0, %v4199_v8  ;;  %vm4205_vm13 = vcmp.eq.f32.partialorder %v4204_v12, 8.507059e+37  ;;  %vm4305_vm0 = vweird.f32 %v11632_v6  ;;  %5046 = vmatpush.bf16.msra.mxu0 %v8096_v22 }
 0x6c4   :  { %8552 = vrcp.f32 %v11809_v28  ;;  %5005 = vmatmul.bf16.gmra.mxu3 %v4411_v42  ;;  %v4208_v55 = vsel %vm4205_vm13, %v4207_v1, %v4203_v33  ;;  %v4304_v49 = vadd.f32 %v11712_v16, %v4303_v4  ;;  %v4152_v62 = vsub.f32 1.0, %v4151_v3  ;;  %vm4307_vm9 = vmor %vm4305_vm0, %vm4306_vm12  ;;  %v11854_v8 = vpop.f32.mrf.mxu3  ;;  %v8095_v3 = vld [vmem:[#allocation4 + $0x180] sm:$0xff] }
 0x6c5   :  { %vm4310_vm14 = vcmp.eq.f32.partialorder %v4309_v46, 8.507059e+37  ;;  %v4312_v37 = vor.u32 1.1754944e-38, %v4311_v61  ;;  %v4159_v15 = vand.u32 2147483647, %v11579_v54  ;;  %v4161_v52 = vand.u32 2147483648, %v11579_v54  ;;  %v3005_v63 = vpop.f32.mrf.mxu2 }
 0x6c6   :  { %v4308_v50 = vsel %vm4307_vm9, %v11712_v16, %v4304_v49  ;;  %v4153_v0 = vmul.f32 %v11636_v57, %v4152_v62  ;;  %vm4156_vm6 = vweird.f32 %v11636_v57  ;;  %v4256_v6 = vmul.f32 %v11719_v23, %v11649_v5  ;;  %v11867_v49 = vpop.f32.mrf.mxu1 }
 0x6c7   :  { %v4313_v47 = vsel %vm4310_vm14, %v4312_v37, %v4308_v50  ;;  %v4377_v17 = vmul.f32 %v4208_v55, %v13384_v32  ;;  %vm4155_vm15 = vweird.f32 %v11579_v54  ;;  %vm4260_vm1 = vweird.f32 %v11649_v5  ;;  %5047 = vmatpush.bf16.msra.mxu0 %v8095_v3 }
 0x6c8   :  { %v4384_v12 = vmul.f32 %v4313_v47, %v13385_v38  ;;  %v4154_v16 = vadd.f32 %v11636_v57, %v4153_v0  ;;  %v4257_v9 = vsub.f32 1.0, %v4256_v6  ;;  %v4264_v11 = vand.u32 2147483647, %v11649_v5  ;;  %vm11847_vm3 = vmor %vm4155_vm15, %vm4156_vm6 }
 0x6c9   :  { %v11844_v35 = vpop.eup %8550  ;;  %vm3691_vm2 = vweird.f32 %v11684_v44  ;;  %vm4160_vm4 = vcmp.eq.f32.partialorder %v4159_v15, 8.507059e+37  ;;  %v4162_v29 = vor.u32 1.1754944e-38, %v4161_v52  ;;  %v4266_v54 = vand.u32 2147483648, %v11649_v5  ;;  %v13388_v52 = vld [vmem:[#allocation19_spill] sm:$0xff] }
 0x6ca   :  { %v4166_v58 = vmul.f32 %v11668_v21, %v11611_v43  ;;  %v11856_v46 = vpop.eup %8552  ;;  %v4412_v61 = vpack.c.bf16 %v4384_v12, %v4377_v17  ;;  %v4158_v42 = vsel %vm11847_vm3, %v11636_v57, %v4154_v16  ;;  %v4258_v4 = vmul.f32 %v11719_v23, %v4257_v9 }
 0x6cb   :  { %vm4261_vm5 = vweird.f32 %v11719_v23  ;;  %vm3586_vm8 = vweird.f32 %v11695_v20  ;;  %vm3690_vm7 = vweird.f32 %v11640_v34  ;;  %v4163_v33 = vsel %vm4160_vm4, %v4162_v29, %v4158_v42 }
 0x6cc   :  { %v4167_v55 = vsub.f32 1.0, %v4166_v58  ;;  %vm4170_vm10 = vweird.f32 %v11611_v43  ;;  %vm4171_vm11 = vweird.f32 %v11668_v21  ;;  %5034 = vmatmul.bf16.gmra.mxu1 %v4412_v61  ;;  %v4259_v57 = vadd.f32 %v11719_v23, %v4258_v4  ;;  %vm4262_vm0 = vmor %vm4260_vm1, %vm4261_vm5  ;;  %v13390_v58 = vld [vmem:[#allocation114_spill] sm:$0xff] }
 0x6cd   :  { %vm4265_vm12 = vcmp.eq.f32.partialorder %v4264_v11, 8.507059e+37  ;;  %v4176_v62 = vand.u32 2147483648, %v11611_v43  ;;  %v4271_v37 = vmul.f32 %v11727_v10, %v11672_v45  ;;  %vm3585_vm13 = vweird.f32 %v11638_v14  ;;  %vm4172_vm14 = vmor %vm4170_vm10, %vm4171_vm11  ;;  %v3007_v42 = vpop.f32.mrf.mxu2 }
 0x6ce   :  { %v4267_v15 = vor.u32 1.1754944e-38, %v4266_v54  ;;  %v4374_v50 = vmul.f32 %v4163_v33, %v13388_v52  ;;  %v4168_v0 = vmul.f32 %v11668_v21, %v4167_v55  ;;  %v4174_v6 = vand.u32 2147483647, %v11611_v43  ;;  %vm11915_vm3 = vmor %vm3690_vm7, %vm3691_vm2  ;;  %v13393_v55 = vld [vmem:[#allocation58_spill] sm:$0xff]  ;;  %v13397_v52 = vld [vmem:[#allocation116_spill] sm:$0xff] }
 0x6cf   :  { %v4263_v22 = vsel %vm4262_vm0, %v11719_v23, %v4259_v57  ;;  %v4177_v47 = vor.u32 1.1754944e-38, %v4176_v62  ;;  %v4272_v32 = vsub.f32 1.0, %v4271_v37  ;;  %vm4276_vm9 = vweird.f32 %v11727_v10  ;;  %v11930_v37 = vpop.f32.mrf.mxu1  ;;  %vm11936_vm2 = vmor %vm3585_vm13, %vm3586_vm8 }
 0x6d0   :  { %v4268_v17 = vsel %vm4265_vm12, %v4267_v15, %v4263_v22  ;;  %v4169_v38 = vadd.f32 %v11668_v21, %v4168_v0  ;;  %v4281_v5 = vand.u32 2147483648, %v11672_v45  ;;  %v3044_v12 = vadd.f32 %v11785_v40, %v11463_v31  ;;  %v13389_v31 = vld [vmem:[#allocation113_spill] sm:$0xff] }
 0x6d1   :  { %v4381_v16 = vmul.f32 %v4268_v17, %v11420_v19  ;;  %v4273_v23 = vmul.f32 %v11727_v10, %v4272_v32  ;;  %v4279_v9 = vand.u32 2147483647, %v11672_v45  ;;  %v3051_v11 = vadd.f32 %v11824_v41, %v11467_v56  ;;  %v11899_v19 = vpop.f32.mrf.mxu3 }
 0x6d2   :  { %v4173_v1 = vsel %vm4172_vm14, %v11668_v21, %v4169_v38  ;;  %vm4175_vm6 = vcmp.eq.f32.partialorder %v4174_v6, 8.507059e+37  ;;  %vm4275_vm15 = vweird.f32 %v11672_v45  ;;  %v3172_v40 = vadd.f32 %v13389_v31, %v3044_v12 }
 0x6d3   :  { %v4409_v29 = vpack.c.bf16 %v4381_v16, %v4374_v50  ;;  %v4178_v54 = vsel %vm4175_vm6, %v4177_v47, %v4173_v1  ;;  %v4274_v43 = vadd.f32 %v11727_v10, %v4273_v23  ;;  %v3179_v61 = vadd.f32 %v13390_v58, %v3051_v11  ;;  %vm4277_vm1 = vmor %vm4275_vm15, %vm4276_vm9 }
 0x6d4   :  { %v3584_v4 = vadd.f32 %v11695_v20, %v11752_v48  ;;  %v4282_v56 = vor.u32 1.1754944e-38, %v4281_v5  ;;  %v11908_v21 = vadd.f32 %v11559_v53, %v3172_v40  ;;  %v3058_v45 = vadd.f32 %v3005_v63, %v11663_v26 }
 0x6d5   :  { %4947 = vmatmul.bf16.gmra.mxu0 %v4409_v29  ;;  %v4278_v48 = vsel %vm4277_vm1, %v11727_v10, %v4274_v43  ;;  %vm4280_vm4 = vcmp.eq.f32.partialorder %v4279_v9, 8.507059e+37  ;;  %v11921_v3 = vadd.f32 %v11559_v53, %v3179_v61  ;;  %v3065_v33 = vadd.f32 %v3007_v42, %v11677_v36 }
 0x6d6   :  { %v3693_v26 = vsel %vm11915_vm3, %v11684_v44, %v11755_v27  ;;  %v4283_v63 = vsel %vm4280_vm4, %v4282_v56, %v4278_v48  ;;  %v4375_v57 = vmul.f32 %v4178_v54, %v13393_v55  ;;  %v7329_v62 = vmul.f32 -1.442695, %v11908_v21  ;;  %v13396_v44 = vld [vmem:[#allocation115_spill] sm:$0xff] }
 0x6d7   :  { %v4382_v36 = vmul.f32 %v4283_v63, %v11425_v59  ;;  %v7336_v15 = vmul.f32 -1.442695, %v11921_v3  ;;  %v3186_v27 = vadd.f32 %v13396_v44, %v3058_v45  ;;  %v3193_v50 = vadd.f32 %v13397_v52, %v3065_v33 }
 0x6d8   :  { %v3588_v0 = vsel %vm11936_vm2, %v11695_v20, %v3584_v4  ;;  %vm3695_vm5 = vcmp.eq.f32.partialorder %v3694_v60, 8.507059e+37  ;;  %v3697_v6 = vor.u32 1.1754944e-38, %v3696_v39  ;;  %8554 = vpow2.f32 %v7329_v62 }
 0x6d9   :  { %v4410_v22 = vpack.c.bf16 %v4382_v36, %v4375_v57  ;;  %8556 = vpow2.f32 %v7336_v15  ;;  %v11952_v59 = vadd.f32 %v11559_v53, %v3193_v50  ;;  %v3791_v47 = vmul.f32 %v11844_v35, %v11806_v13  ;;  %v11960_v60 = vpop.f32.mrf.mxu3  ;;  %v12017_v15 = vld [vmem:[%s12884_s15] ss:$0 sm:$0xff] }
 0x6da   :  { %v3592_v32 = vor.u32 1.1754944e-38, %v3591_v51  ;;  %v3698_v17 = vsel %vm3695_vm5, %v3697_v6, %v3693_v26  ;;  %v3896_v20 = vmul.f32 %v11856_v46, %v11809_v28  ;;  %vm3590_vm8 = vcmp.eq.f32.partialorder %v3589_v25, 8.507059e+37 }
 0x6db   :  { %4976 = vmatmul.bf16.gmra.mxu2 %v4410_v22  ;;  %v11965_v34 = vadd.f32 %v11559_v53, %v3186_v27  ;;  %v7350_v38 = vmul.f32 -1.442695, %v11952_v59  ;;  %v4343_v12 = vmul.f32 %v3698_v17, %v11586_v30  ;;  %v3792_v51 = vsub.f32 1.0, %v3791_v47  ;;  %v11976_v53 = vpop.f32.mrf.mxu1 }
 0x6dc   :  { %v3593_v39 = vsel %vm3590_vm8, %v3592_v32, %v3588_v0  ;;  %v3897_v5 = vsub.f32 1.0, %v3896_v20  ;;  %vm3901_vm7 = vweird.f32 %v11856_v46  ;;  %v3906_v29 = vand.u32 2147483648, %v11809_v28 }
 0x6dd   :  { %v4336_v9 = vmul.f32 %v3593_v39, %v11573_v18  ;;  %v7343_v14 = vmul.f32 -1.442695, %v11965_v34  ;;  %8558 = vpow2.f32 %v7350_v38  ;;  %v3793_v30 = vmul.f32 %v11844_v35, %v3792_v51 }
 0x6de   :  { %v8555_v16 = vpop.eup %8554  ;;  %v3898_v25 = vmul.f32 %v11856_v46, %v3897_v5  ;;  %vm3796_vm10 = vweird.f32 %v11844_v35  ;;  %vm3900_vm11 = vweird.f32 %v11809_v28  ;;  %v3904_v43 = vand.u32 2147483647, %v11809_v28  ;;  %v4933_v5 = vpop.f32.mrf.mxu0 }
 0x6df   :  { %v8557_v23 = vpop.eup %8556  ;;  %v11970_v11 = vadd.f32 1.0, %v8555_v16  ;;  %v4392_v31 = vpack.c.bf16 %v4343_v12, %v4336_v9  ;;  %v3794_v54 = vadd.f32 %v11844_v35, %v3793_v30  ;;  %v3801_v61 = vand.u32 2147483648, %v11806_v13  ;;  %vm11989_vm12 = vmor %vm3900_vm11, %vm3901_vm7 }
 0x6e0   :  { %v11974_v1 = vadd.f32 1.0, %v8557_v23  ;;  %v3899_v18 = vadd.f32 %v11856_v46, %v3898_v25  ;;  %vm3795_vm13 = vweird.f32 %v11806_v13  ;;  %v3799_v56 = vand.u32 2147483647, %v11806_v13 }
 0x6e1   :  { %8560 = vrcp.f32 %v11970_v11  ;;  %v4885_v40 = vpop.f32.mrf.mxu3  ;;  %vm12000_vm0 = vmor %vm3795_vm13, %vm3796_vm10  ;;  %v3907_v48 = vor.u32 1.1754944e-38, %v3906_v29  ;;  %vm3905_vm9 = vcmp.eq.f32.partialorder %v3904_v43, 8.507059e+37  ;;  %v3802_v57 = vor.u32 1.1754944e-38, %v3801_v61 }
 0x6e2   :  { %8562 = vrcp.f32 %v11974_v1  ;;  %v3903_v45 = vsel %vm11989_vm12, %v11856_v46, %v3899_v18  ;;  %v3798_v26 = vsel %vm12000_vm0, %v11844_v35, %v3794_v54  ;;  %vm3800_vm14 = vcmp.eq.f32.partialorder %v3799_v56, 8.507059e+37 }
 0x6e3   :  { %8564 = vpow2.f32 %v7343_v14  ;;  %v8559_v58 = vpop.eup %8558  ;;  %v12012_v46 = vpop.f32.mrf.mxu1  ;;  %v3908_v62 = vsel %vm3905_vm9, %v3907_v48, %v3903_v45  ;;  %v3803_v44 = vsel %vm3800_vm14, %v3802_v57, %v3798_v26  ;;  %v4876_v6 = vadd.f32 %v12017_v15, %v11814_v2 }
 0x6e4   :  { %v12010_v55 = vadd.f32 1.0, %v8559_v58  ;;  %v4357_v27 = vmul.f32 %v3908_v62, %v11770_v7  ;;  %v4350_v50 = vmul.f32 %v3803_v44, %v11765_v24  ;;  %v4116_v39 = vand.u32 2147483648, %v11974_v1 }
 0x6e5   :  { %5048 = vmatmul.bf16.vlgmr.msra.gmra.mxu0 %v4392_v31  ;;  %v4905_v38 = vadd.f32 %v11867_v49, %v4876_v6  ;;  %vm4110_vm1 = vweird.f32 %v11974_v1  ;;  %v4114_v2 = vand.u32 2147483647, %v11974_v1  ;;  %v4886_v16 = vadd.f32 %v12017_v15, %v4885_v40 }
 0x6e6   :  { %8566 = vrcp.f32 %v12010_v55  ;;  %v4399_v22 = vpack.c.bf16 %v4357_v27, %v4350_v50  ;;  %v4962_v12 = vpop.f32.mrf.mxu2  ;;  %v4011_v23 = vand.u32 2147483648, %v11970_v11  ;;  %vm4005_vm4 = vweird.f32 %v11970_v11 }
 0x6e7   :  { %v11993_v4 = vpop.eup %8560  ;;  %v4934_v9 = vadd.f32 %v4933_v5, %v4905_v38  ;;  %v4009_v49 = vand.u32 2147483647, %v11970_v11  ;;  %vm4115_vm5 = vcmp.eq.f32.partialorder %v4114_v2, 8.507059e+37  ;;  %v4326_v57 = vand.u32 2147483648, %v12010_v55 }
 0x6e8   :  { %v8563_v41 = vpop.eup %8562  ;;  %v4001_v63 = vmul.f32 %v11993_v4, %v11970_v11  ;;  %vm4006_vm15 = vweird.f32 %v11993_v4  ;;  %v4012_v18 = vor.u32 1.1754944e-38, %v4011_v23  ;;  %vm4320_vm11 = vweird.f32 %v12010_v55 }
 0x6e9   :  { %v8565_v33 = vpop.eup %8564  ;;  %v4106_v13 = vmul.f32 %v8563_v41, %v11974_v1  ;;  %v4887_v10 = vpop.f32.mrf.mxu3  ;;  %vm4111_vm6 = vweird.f32 %v8563_v41  ;;  %vm4007_vm2 = vmor %vm4005_vm4, %vm4006_vm15  ;;  %v4117_v1 = vor.u32 1.1754944e-38, %v4116_v39  ;;  %v4963_v31 = vadd.f32 %v4962_v12, %v4934_v9 }
 0x6ea   :  { %v12019_v35 = vadd.f32 1.0, %v8565_v33  ;;  %v4002_v52 = vsub.f32 1.0, %v4001_v63  ;;  %vm4112_vm3 = vmor %vm4110_vm1, %vm4111_vm6  ;;  %vm4010_vm8 = vcmp.eq.f32.partialorder %v4009_v49, 8.507059e+37  ;;  %v4888_v56 = vadd.f32 %v12017_v15, %v4887_v10 }
 0x6eb   :  { %v4107_v36 = vsub.f32 1.0, %v4106_v13  ;;  %v4914_v7 = vpop.f32.mrf.mxu1  ;;  %v4881_v50 = vadd.f32 %v12017_v15, %v11899_v19 }
 0x6ec   :  { %8568 = vrcp.f32 %v12019_v35  ;;  %v4003_v47 = vmul.f32 %v11993_v4, %v4002_v52  ;;  %v12028_v20 = vpop.eup %8566  ;;  %v4915_v43 = vadd.f32 %v4914_v7, %v4886_v16  ;;  %vm4215_vm13 = vweird.f32 %v12019_v35 }
 0x6ed   :  { %v4108_v0 = vmul.f32 %v8563_v41, %v4107_v36  ;;  %v4316_v25 = vmul.f32 %v12028_v20, %v12010_v55  ;;  %vm4321_vm7 = vweird.f32 %v12028_v20  ;;  %v4221_v36 = vand.u32 2147483648, %v12019_v35 }
 0x6ee   :  { %v4004_v24 = vadd.f32 %v11993_v4, %v4003_v47  ;;  %vm4322_vm12 = vmor %vm4320_vm11, %vm4321_vm7  ;;  %v4219_v44 = vand.u32 2147483647, %v12019_v35  ;;  %v4327_v52 = vor.u32 1.1754944e-38, %v4326_v57  ;;  %v4910_v7 = vadd.f32 %v11976_v53, %v4881_v50  ;;  %v4964_v9 = vpop.f32.mrf.mxu2 }
 0x6ef   :  { %v4109_v17 = vadd.f32 %v8563_v41, %v4108_v0  ;;  %v4317_v58 = vsub.f32 1.0, %v4316_v25 }
 0x6f0   :  { %v4008_v30 = vsel %vm4007_vm2, %v11993_v4, %v4004_v24  ;;  %vm4220_vm14 = vcmp.eq.f32.partialorder %v4219_v44, 8.507059e+37 }
 0x6f1   :  { %v4890_v32 = vpop.f32.mrf.mxu3  ;;  %v4113_v14 = vsel %vm4112_vm3, %v8563_v41, %v4109_v17  ;;  %v4013_v11 = vsel %vm4010_vm8, %v4012_v18, %v4008_v30  ;;  %v4318_v4 = vmul.f32 %v12028_v20, %v4317_v58 }
 0x6f2   :  { %v8569_v51 = vpop.eup %8568  ;;  %v4118_v29 = vsel %vm4115_vm5, %v4117_v1, %v4113_v14  ;;  %v4364_v41 = vmul.f32 %v4013_v11, %v11908_v21  ;;  %v4324_v21 = vand.u32 2147483647, %v12010_v55  ;;  %v4891_v10 = vadd.f32 %v12017_v15, %v4890_v32 }
 0x6f3   :  { %v4211_v40 = vmul.f32 %v8569_v51, %v12019_v35  ;;  %v4371_v61 = vmul.f32 %v4118_v29, %v11921_v3  ;;  %v4916_v45 = vpop.f32.mrf.mxu1  ;;  %v4319_v63 = vadd.f32 %v12028_v20, %v4318_v4  ;;  %v4935_v3 = vpop.f32.mrf.mxu0  ;;  %vm4216_vm10 = vweird.f32 %v8569_v51 }
 0x6f4   :  { %v4917_v26 = vadd.f32 %v4916_v45, %v4888_v56  ;;  %vm4217_vm0 = vmor %vm4215_vm13, %vm4216_vm10  ;;  %vm4325_vm9 = vcmp.eq.f32.partialorder %v4324_v21, 8.507059e+37  ;;  %v4222_v55 = vor.u32 1.1754944e-38, %v4221_v36  ;;  %v4883_v56 = vadd.f32 %v12017_v15, %v11960_v60 }
 0x6f5   :  { %5053 = vmatmul.bf16.gmra.mxu0 %v4399_v22  ;;  %v4212_v42 = vsub.f32 1.0, %v4211_v40  ;;  %v4406_v28 = vpack.c.bf16 %v4371_v61, %v4364_v41  ;;  %v4323_v27 = vsel %vm4322_vm12, %v12028_v20, %v4319_v63 }
 0x6f6   :  { %v4328_v22 = vsel %vm4325_vm9, %v4327_v52, %v4323_v27 }
 0x6f7   :  { %v4213_v48 = vmul.f32 %v8569_v51, %v4212_v42  ;;  %v4385_v17 = vmul.f32 %v4328_v22, %v11952_v59  ;;  %v4878_v42 = vadd.f32 %v12017_v15, %v11854_v8 }
 0x6f9   :  { %v12045_v54 = vpop.f32.mrf.mxu3  ;;  %v4214_v62 = vadd.f32 %v8569_v51, %v4213_v48  ;;  %v4907_v41 = vadd.f32 %v11930_v37, %v4878_v42 }
 0x6fb   :  { %v4919_v0 = vpop.f32.mrf.mxu1  ;;  %v4218_v6 = vsel %vm4217_vm0, %v8569_v51, %v4214_v62  ;;  %v4936_v4 = vadd.f32 %v4935_v3, %v4907_v41 }
 0x6fc   :  { %v4920_v47 = vadd.f32 %v4919_v0, %v4891_v10  ;;  %v4223_v32 = vsel %vm4220_vm14, %v4222_v55, %v4218_v6 }
 0x6fd   :  { %v4378_v20 = vmul.f32 %v4223_v32, %v11965_v34  ;;  %v4965_v63 = vadd.f32 %v4964_v9, %v4936_v4 }
 0x6ff   :  { %v4413_v38 = vpack.c.bf16 %v4385_v17, %v4378_v20 }
 0x701   :  { %v4991_v33 = vpop.f32.mrf.mxu3 }
 0x702   :  { %v4992_v13 = vadd.f32 %v4991_v33, %v4963_v31 }
 0x703   :  { %v12066_v24 = vpop.f32.mrf.mxu1 }
 0x705   :  { %5058 = vmatmul.bf16.gmra.mxu0 %v4406_v28  ;;  %v4912_v28 = vadd.f32 %v12012_v46, %v4883_v56 }
 0x709   :  { %v4993_v14 = vpop.f32.mrf.mxu3 }
 0x70a   :  { %v4994_v10 = vadd.f32 %v4993_v14, %v4965_v63 }
 0x70b   :  { %v5020_v19 = vpop.f32.mrf.mxu1 }
 0x70c   :  { %v5021_v2 = vadd.f32 %v5020_v19, %v4992_v13 }
 0x70d   :  { %v4938_v35 = vpop.f32.mrf.mxu0 }
 0x70e   :  { %v4939_v39 = vadd.f32 %v4938_v35, %v4910_v7  ;;  %v4893_v35 = vadd.f32 %v12017_v15, %v12045_v54 }
 0x710   :  { %v4922_v9 = vadd.f32 %v12066_v24, %v4893_v35 }
 0x711   :  { %v4996_v1 = vpop.f32.mrf.mxu3 }
 0x713   :  { %v5022_v25 = vpop.f32.mrf.mxu1 }
 0x714   :  { %v5023_v50 = vadd.f32 %v5022_v25, %v4994_v10 }
 0x715   :  { %5063 = vmatmul.bf16.gmra.mxu0 %v4413_v38  ;;  %v4940_v5 = vpop.f32.mrf.mxu0 }
 0x716   :  { %v4941_v13 = vadd.f32 %v4940_v5, %v4912_v28 }
 0x719   :  { %v4967_v34 = vpop.f32.mrf.mxu2  ;;  %v4998_v58 = vpop.f32.mrf.mxu3 }
 0x71a   :  { %v4968_v57 = vadd.f32 %v4967_v34, %v4939_v39 }
 0x71b   :  { %v5025_v40 = vpop.f32.mrf.mxu1 }
 0x71c   :  { %v4997_v36 = vadd.f32 %v4996_v1, %v4968_v57 }
 0x71e   :  { %v5026_v0 = vadd.f32 %v5025_v40, %v4997_v36 }
 0x721   :  { %v4969_v18 = vpop.f32.mrf.mxu2 }
 0x722   :  { %v4970_v62 = vadd.f32 %v4969_v18, %v4941_v13 }
 0x723   :  { %v5027_v11 = vpop.f32.mrf.mxu1 }
 0x724   :  { %v4999_v44 = vadd.f32 %v4998_v58, %v4970_v62 }
 0x725   :  { %v5001_v45 = vpop.f32.mrf.mxu3 }
 0x726   :  { %v5028_v55 = vadd.f32 %v5027_v11, %v4999_v44 }
 0x72b   :  { %v5030_v48 = vpop.f32.mrf.mxu1 }
 0x72d   :  { %v5003_v8 = vpop.f32.mrf.mxu3 }
 0x72f   :  { %v4943_v12 = vpop.f32.mrf.mxu0 }
 0x730   :  { %v4944_v51 = vadd.f32 %v4943_v12, %v4915_v43 }
 0x733   :  { %v5032_v37 = vpop.f32.mrf.mxu1 }
 0x737   :  { %v4945_v16 = vpop.f32.mrf.mxu0 }
 0x738   :  { %v4946_v23 = vadd.f32 %v4945_v16, %v4917_v26 }
 0x73f   :  { %v4972_v43 = vpop.f32.mrf.mxu2 }
 0x740   :  { %v4973_v21 = vadd.f32 %v4972_v43, %v4944_v51 }
 0x742   :  { %v5002_v60 = vadd.f32 %v5001_v45, %v4973_v21 }
 0x747   :  { %v4974_v33 = vpop.f32.mrf.mxu2  ;;  %v5006_v19 = vpop.f32.mrf.mxu3 }
 0x748   :  { %v4975_v27 = vadd.f32 %v4974_v33, %v4946_v23 }
 0x749   :  { %v5035_v54 = vpop.f32.mrf.mxu1 }
 0x74a   :  { %v5004_v46 = vadd.f32 %v5003_v8, %v4975_v27 }
 0x74c   :  { %v5033_v38 = vadd.f32 %v5032_v37, %v5004_v46 }
 0x74f   :  { %v5008_v24 = vpop.f32.mrf.mxu3 }
 0x751   :  { %v5037_v45 = vpop.f32.mrf.mxu1 }
 0x752   :  { %v4948_v49 = vpop.f32.mrf.mxu0 }
 0x753   :  { %v4949_v59 = vadd.f32 %v4948_v49, %v4920_v47  ;;  %v5031_v47 = vadd.f32 %v5030_v48, %v5002_v60 }
 0x75a   :  { %v12068_v53 = vpop.f32.mrf.mxu0 }
 0x75e   :  { %v4977_v3 = vpop.f32.mrf.mxu2 }
 0x75f   :  { %v4978_v20 = vadd.f32 %v4977_v3, %v4949_v59  ;;  %v4951_v59 = vadd.f32 %v12068_v53, %v4922_v9 }
 0x761   :  { %v5007_v23 = vadd.f32 %v5006_v19, %v4978_v20 }
 0x762   :  { %v5049_v31 = vpop.f32.mrf.mxu0 }
 0x763   :  { %v12070_v30 = vadd.f32 %v5049_v31, %v5021_v2  ;;  %v5036_v25 = vadd.f32 %v5035_v54, %v5007_v23 }
 0x765   :  { %v7575_v17 = vmul.f32 -1.442695, %v12070_v30 }
 0x766   :  { %v4979_v49 = vpop.f32.mrf.mxu2 }
 0x767   :  { %8570 = vpow2.f32 %v7575_v17  ;;  %v4980_v14 = vadd.f32 %v4979_v49, %v4951_v59 }
 0x769   :  { %v5009_v58 = vadd.f32 %v5008_v24, %v4980_v14 }
 0x76a   :  { %v5051_v29 = vpop.f32.mrf.mxu0 }
 0x76b   :  { %v12078_v6 = vadd.f32 %v5051_v29, %v5023_v50  ;;  %v5038_v28 = vadd.f32 %v5037_v45, %v5009_v58 }
 0x76d   :  { %v7576_v39 = vmul.f32 -1.442695, %v12078_v6  ;;  %v8571_v34 = vpop.eup %8570 }
 0x76e   :  { %v12100_v11 = vadd.f32 1.0, %v8571_v34 }
 0x76f   :  { %8572 = vpow2.f32 %v7576_v39 }
 0x772   :  { %v5054_v61 = vpop.f32.mrf.mxu0 }
 0x773   :  { %v12080_v22 = vadd.f32 %v5054_v61, %v5026_v0 }
 0x775   :  { %v7577_v2 = vmul.f32 -1.442695, %v12080_v22  ;;  %v8573_v31 = vpop.eup %8572 }
 0x776   :  { %v12103_v53 = vadd.f32 1.0, %v8573_v31 }
 0x777   :  { %8574 = vpow2.f32 %v7577_v2 }
 0x778   :  { %vm5121_vm9 = vweird.f32 %v12103_v53 }
 0x77a   :  { %v5056_v26 = vpop.f32.mrf.mxu0 }
 0x77b   :  { %v12082_v32 = vadd.f32 %v5056_v26, %v5028_v55 }
 0x77d   :  { %v7578_v12 = vmul.f32 -1.442695, %v12082_v32  ;;  %v8575_v18 = vpop.eup %8574 }
 0x77e   :  { %v12105_v56 = vadd.f32 1.0, %v8575_v18 }
 0x77f   :  { %8576 = vpow2.f32 %v7578_v12 }
 0x780   :  { %vm5136_vm7 = vweird.f32 %v12105_v56 }
 0x782   :  { %v5059_v52 = vpop.f32.mrf.mxu0 }
 0x783   :  { %v12085_v7 = vadd.f32 %v5059_v52, %v5031_v47 }
 0x785   :  { %v7579_v16 = vmul.f32 -1.442695, %v12085_v7  ;;  %v8577_v29 = vpop.eup %8576 }
 0x786   :  { %v12107_v41 = vadd.f32 1.0, %v8577_v29 }
 0x787   :  { %8578 = vpow2.f32 %v7579_v16 }
 0x788   :  { %v5155_v9 = vand.u32 2147483647, %v12107_v41  ;;  %vm5151_vm3 = vweird.f32 %v12107_v41 }
 0x78a   :  { %v5061_v5 = vpop.f32.mrf.mxu0 }
 0x78b   :  { %v12092_v51 = vadd.f32 %v5061_v5, %v5033_v38 }
 0x78d   :  { %v7580_v15 = vmul.f32 -1.442695, %v12092_v51  ;;  %v8579_v61 = vpop.eup %8578 }
 0x78e   :  { %v12110_v4 = vadd.f32 1.0, %v8579_v61 }
 0x78f   :  { %8580 = vpow2.f32 %v7580_v15 }
 0x790   :  { %vm5166_vm15 = vweird.f32 %v12110_v4 }
 0x792   :  { %v5064_v1 = vpop.f32.mrf.mxu0 }
 0x793   :  { %v12098_v40 = vadd.f32 %v5064_v1, %v5036_v25  ;;  %v5170_v25 = vand.u32 2147483647, %v12110_v4 }
 0x795   :  { %v7581_v43 = vmul.f32 -1.442695, %v12098_v40  ;;  %v8581_v42 = vpop.eup %8580 }
 0x796   :  { %v12113_v48 = vadd.f32 1.0, %v8581_v42 }
 0x797   :  { %8582 = vpow2.f32 %v7581_v43 }
 0x798   :  { %8584 = vrcp.f32 %v12100_v11  ;;  %vm5181_vm12 = vweird.f32 %v12113_v48  ;;  %v5185_v61 = vand.u32 2147483647, %v12113_v48  ;;  %v5187_v42 = vand.u32 2147483648, %v12113_v48 }
 0x799   :  { %8586 = vrcp.f32 %v12103_v53 }
 0x79a   :  { %v5066_v33 = vpop.f32.mrf.mxu0  ;;  %8588 = vrcp.f32 %v12105_v56 }
 0x79b   :  { %v12116_v26 = vadd.f32 %v5066_v33, %v5038_v28  ;;  %8590 = vrcp.f32 %v12107_v41 }
 0x79c   :  { %8592 = vrcp.f32 %v12110_v4 }
 0x79d   :  { %v8583_v63 = vpop.eup %8582  ;;  %v7582_v13 = vmul.f32 -1.442695, %v12116_v26  ;;  %8594 = vrcp.f32 %v12113_v48 }
 0x79e   :  { %v12122_v57 = vadd.f32 1.0, %v8583_v63  ;;  %v12124_v62 = vpop.eup %8584 }
 0x79f   :  { %8596 = vpow2.f32 %v7582_v13  ;;  %v12126_v21 = vpop.eup %8586  ;;  %v5102_v52 = vmul.f32 %v12124_v62, %v12100_v11  ;;  %vm5107_vm0 = vweird.f32 %v12124_v62 }
 0x7a0   :  { %8598 = vrcp.f32 %v12122_v57  ;;  %v12129_v10 = vpop.eup %8588  ;;  %v5117_v50 = vmul.f32 %v12126_v21, %v12103_v53  ;;  %vm5196_vm5 = vweird.f32 %v12122_v57  ;;  %v5200_v31 = vand.u32 2147483647, %v12122_v57 }
 0x7a1   :  { %v12131_v36 = vpop.eup %8590  ;;  %v5132_v3 = vmul.f32 %v12129_v10, %v12105_v56  ;;  %v5103_v35 = vsub.f32 1.0, %v5102_v52  ;;  %vm5137_vm1 = vweird.f32 %v12129_v10  ;;  %v5202_v18 = vand.u32 2147483648, %v12122_v57 }
 0x7a2   :  { %v12133_v8 = vpop.eup %8592  ;;  %v5147_v55 = vmul.f32 %v12131_v36, %v12107_v41  ;;  %v5118_v20 = vsub.f32 1.0, %v5117_v50  ;;  %vm5152_vm6 = vweird.f32 %v12131_v36  ;;  %vm5122_vm8 = vweird.f32 %v12126_v21 }
 0x7a3   :  { %v12135_v44 = vpop.eup %8594  ;;  %v5162_v47 = vmul.f32 %v12133_v8, %v12110_v4  ;;  %v5133_v39 = vsub.f32 1.0, %v5132_v3  ;;  %v12158_v16 = vmul.f32 %v12124_v62, %v5103_v35  ;;  %vm5167_vm11 = vweird.f32 %v12133_v8 }
 0x7a4   :  { %v5177_v0 = vmul.f32 %v12135_v44, %v12113_v48  ;;  %v5148_v19 = vsub.f32 1.0, %v5147_v55  ;;  %v5119_v23 = vmul.f32 %v12126_v21, %v5118_v20  ;;  %vm5182_vm4 = vweird.f32 %v12135_v44  ;;  %v8104_v20 = vld [vmem:[%s12885_s16 + $0x4] sm:$0xf0] }
 0x7a5   :  { %v8597_v27 = vpop.eup %8596  ;;  %v5163_v2 = vsub.f32 1.0, %v5162_v47  ;;  %v5134_v15 = vmul.f32 %v12129_v10, %v5133_v39  ;;  %vm12198_vm14 = vmor %vm5181_vm12, %vm5182_vm4  ;;  %vm5201_vm4 = vcmp.eq.f32.partialorder %v5200_v31, 8.507059e+37  ;;  %v5140_v35 = vand.u32 2147483647, %v12105_v56 }
 0x7a6   :  { %v12137_v60 = vpop.eup %8598  ;;  %v12143_v37 = vadd.f32 1.0, %v8597_v27  ;;  %v5178_v38 = vsub.f32 1.0, %v5177_v0  ;;  %v5149_v59 = vmul.f32 %v12131_v36, %v5148_v19  ;;  %v5203_v27 = vor.u32 1.1754944e-38, %v5202_v18 }
 0x7a7   :  { %v5192_v46 = vmul.f32 %v12137_v60, %v12122_v57  ;;  %v5164_v14 = vmul.f32 %v12133_v8, %v5163_v2  ;;  %vm5197_vm2 = vweird.f32 %v12137_v60  ;;  %v5172_v57 = vand.u32 2147483648, %v12110_v4 }
 0x7a8   :  { %8600 = vrcp.f32 %v12143_v37  ;;  %v5179_v54 = vmul.f32 %v12135_v44, %v5178_v38  ;;  %v5217_v24 = vand.u32 2147483648, %v12143_v37  ;;  %v5215_v43 = vand.u32 2147483647, %v12143_v37  ;;  %vm12189_vm13 = vmor %vm5196_vm5, %vm5197_vm2 }
 0x7a9   :  { %v5193_v17 = vsub.f32 1.0, %v5192_v46  ;;  %v5165_v28 = vadd.f32 %v12133_v8, %v5164_v14  ;;  %vm5211_vm2 = vweird.f32 %v12143_v37  ;;  %v5150_v13 = vadd.f32 %v12131_v36, %v5149_v59 }
 0x7aa   :  { %v5180_v29 = vadd.f32 %v12135_v44, %v5179_v54  ;;  %v5218_v52 = vor.u32 1.1754944e-38, %v5217_v24  ;;  %vm5216_vm12 = vcmp.eq.f32.partialorder %v5215_v43, 8.507059e+37  ;;  %v5188_v0 = vor.u32 1.1754944e-38, %v5187_v42  ;;  %v7713_v24 = vld [vmem:[%s12885_s16 + $0x70] sm:$0xf] }
 0x7ab   :  { %v5194_v5 = vmul.f32 %v12137_v60, %v5193_v17  ;;  %v5135_v47 = vadd.f32 %v12129_v10, %v5134_v15  ;;  %v5142_v4 = vand.u32 2147483648, %v12105_v56  ;;  %v5173_v39 = vor.u32 1.1754944e-38, %v5172_v57  ;;  %v8116_v42 = vld [vmem:[%s12885_s16 + $0x64] sm:$0xf0] }
 0x7ac   :  { %v5184_v50 = vsel %vm12198_vm14, %v12135_v44, %v5180_v29  ;;  %v5120_v19 = vadd.f32 %v12126_v21, %v5119_v23  ;;  %v5125_v2 = vand.u32 2147483647, %v12103_v53  ;;  %v5112_v56 = vand.u32 2147483648, %v12100_v11 }
 0x7ad   :  { %v5195_v34 = vadd.f32 %v12137_v60, %v5194_v5  ;;  %v5127_v5 = vand.u32 2147483648, %v12103_v53  ;;  %vm5141_vm14 = vcmp.eq.f32.partialorder %v5140_v35, 8.507059e+37  ;;  %v13414_v14 = vlaneseq }
 0x7ae   :  { %v8601_v12 = vpop.eup %8600 }
 0x7af   :  { %v5207_v49 = vmul.f32 %v8601_v12, %v12143_v37  ;;  %vm5212_vm10 = vweird.f32 %v8601_v12  ;;  %v5199_v48 = vsel %vm12189_vm13, %v12137_v60, %v5195_v34  ;;  %v5157_v60 = vand.u32 2147483648, %v12107_v41  ;;  %vm12217_vm13 = vmor %vm5166_vm15, %vm5167_vm11  ;;  %v8195_v34 = vld [vmem:[%s13415_s14] ss:$0 sm:$0xff] }
 0x7b0   :  { %vm5213_vm5 = vmor %vm5211_vm2, %vm5212_vm10  ;;  %v5204_v46 = vsel %vm5201_vm4, %v5203_v27, %v5199_v48  ;;  %v5169_v44 = vsel %vm12217_vm13, %v12133_v8, %v5165_v28  ;;  %vm5186_vm10 = vcmp.eq.f32.partialorder %v5185_v61, 8.507059e+37  ;;  %vm5171_vm11 = vcmp.eq.f32.partialorder %v5170_v25, 8.507059e+37  ;;  %v7705_v61 = vld [vmem:[%s12885_s16 + $0x60] sm:$0xf]  ;;  %v8114_v28 = vld [vmem:[%s12885_s16 + $0x54] sm:$0xf0] }
 0x7b1   :  { %v5208_v1 = vsub.f32 1.0, %v5207_v49  ;;  %vm12232_vm15 = vmor %vm5151_vm3, %vm5152_vm6  ;;  %v5189_v38 = vsel %vm5186_vm10, %v5188_v0, %v5184_v50  ;;  %v5227_v8 = vmul.f32 %v5204_v46, %v12098_v40  ;;  %v5158_v23 = vor.u32 1.1754944e-38, %v5157_v60  ;;  %v8110_v50 = vld [vmem:[%s12885_s16 + $0x34] sm:$0xf0]  ;;  %v7673_v37 = vld [vmem:[%s12885_s16 + $0x20] sm:$0xf] }
 0x7b2   :  { %vm12247_vm6 = vmor %vm5136_vm7, %vm5137_vm1  ;;  %v5174_v15 = vsel %vm5171_vm11, %v5173_v39, %v5169_v44  ;;  %vm5156_vm3 = vcmp.eq.f32.partialorder %v5155_v9, 8.507059e+37  ;;  %v5226_v54 = vmul.f32 %v5189_v38, %v12092_v51  ;;  %vm5106_vm1 = vweird.f32 %v12100_v11  ;;  %v8108_v0 = vld [vmem:[%s12885_s16 + $0x24] sm:$0xf0]  ;;  %v8106_v44 = vld [vmem:[%s12885_s16 + $0x14] sm:$0xf0] }
 0x7b3   :  { %v5209_v58 = vmul.f32 %v8601_v12, %v5208_v1  ;;  %v5139_v40 = vsel %vm12247_vm6, %v12129_v10, %v5135_v47  ;;  %vm12265_vm7 = vmor %vm5121_vm9, %vm5122_vm8  ;;  %v5143_v49 = vor.u32 1.1754944e-38, %v5142_v4  ;;  %v5110_v41 = vand.u32 2147483647, %v12100_v11  ;;  %v7665_v47 = vld [vmem:[%s12885_s16 + $0x10] sm:$0xf]  ;;  %v6038_v38 = vld [vmem:[%s13417_s3] sm:$0xff] }
 0x7b4   :  { %v5124_v51 = vsel %vm12265_vm7, %v12126_v21, %v5120_v19  ;;  %v5225_v9 = vmul.f32 %v5174_v15, %v12085_v7  ;;  %vm5108_vm2 = vmor %vm5106_vm1, %vm5107_vm0  ;;  %v5128_v53 = vor.u32 1.1754944e-38, %v5127_v5  ;;  %v5230_v25 = vshrl.u32 %v13414_v14, 7  ;;  %v7657_v4 = vld [vmem:[%s12885_s16] sm:$0xf]  ;;  %v13421_v5 = vld [vmem:[#allocation9_spill] sm:$0xff]  ;;  %v6019_v14 = vpop.permute.xlu0 %6018 }
 0x7b5   :  { %v5210_v63 = vadd.f32 %v8601_v12, %v5209_v58  ;;  %v5144_v59 = vsel %vm5141_vm14, %v5143_v49, %v5139_v40  ;;  %vm5126_vm8 = vcmp.eq.f32.partialorder %v5125_v2, 8.507059e+37  ;;  %v5113_v1 = vor.u32 1.1754944e-38, %v5112_v56  ;;  %v13418_v19 = vld [vmem:[#allocation12_spill] sm:$0xff]  ;;  %v13420_v2 = vld [vmem:[#allocation10_spill] sm:$0xff]  ;;  %v8134_v15 = vld [vmem:[%s12885_s16 + $0xf4] sm:$0xf0]  ;;  %v6016_v40 = vpop.permute.xlu2 %6015 }
 0x7b6   :  { %v5129_v7 = vsel %vm5126_vm8, %v5128_v53, %v5124_v51  ;;  %vm5111_vm9 = vcmp.eq.f32.partialorder %v5110_v41, 8.507059e+37  ;;  %v5223_v31 = vmul.f32 %v5144_v59, %v12080_v22  ;;  %vm5236_vm0 = vcmp.eq.s32.totalorder %v5230_v25, %v8195_v34  ;;  %v8132_v56 = vld [vmem:[%s12885_s16 + $0xe4] sm:$0xf0]  ;;  %v13422_v49 = vld [vmem:[#allocation8_spill] sm:$0xff]  ;;  %v8130_v41 = vld [vmem:[%s12885_s16 + $0xd4] sm:$0xf0] }
 0x7b7   :  { %v5214_v3 = vsel %vm5213_vm5, %v8601_v12, %v5210_v63  ;;  %v5222_v29 = vmul.f32 %v5129_v7, %v12078_v6  ;;  %v13416_v58 = vmov 0.0   ;;  %vm5248_vm5 = vcmask 523264   ;;  %v7689_v63 = vld [vmem:[%s12885_s16 + $0x40] sm:$0xf]  ;;  %v8128_v59 = vld [vmem:[%s12885_s16 + $0xc4] sm:$0xf0]  ;;  %v6022_v7 = vpop.permute.xlu1 %6021 }
 0x7b8   :  { %v5219_v55 = vsel %vm5216_vm12, %v5218_v52, %v5214_v3  ;;  %v7583_v43 = vsel %vm5236_vm0, 1.0, %v13416_v58  ;;  %v5231_v45 = vadd.s32 8, %v5230_v25  ;;  %v7706_v6 = vor.u32 %v8116_v42, %v7705_v61  ;;  %v7681_v52 = vld [vmem:[%s12885_s16 + $0x30] sm:$0xf]  ;;  %v7625_v53 = vld [vmem:[%s12885_s16 + $0xc0] sm:$0xf] }
 0x7b9   :  { %v5228_v17 = vmul.f32 %v5219_v55, %v12116_v26  ;;  %v5154_v26 = vsel %vm12232_vm15, %v12131_v36, %v5150_v13  ;;  %v5105_v36 = vadd.f32 %v12124_v62, %v12158_v16  ;;  %v8112_v13 = vld [vmem:[%s12885_s16 + $0x44] sm:$0xf0]  ;;  %v5232_v57 = vadd.s32 16, %v5230_v25  ;;  %v8122_v42 = vld [vmem:[%s12885_s16 + $0x94] sm:$0xf0] }
 0x7ba   :  { %v5159_v10 = vsel %vm5156_vm3, %v5158_v23, %v5154_v26  ;;  %vm5237_vm4 = vcmp.eq.s32.totalorder %v5231_v45, %v8195_v34  ;;  %v7690_v27 = vor.u32 %v8112_v13, %v7689_v63  ;;  %v7682_v60 = vor.u32 %v8110_v50, %v7681_v52  ;;  %v13419_v26 = vld [vmem:[#allocation11_spill] sm:$0xff]  ;;  %v7649_v23 = vld [vmem:[%s12885_s16 + $0xf0] sm:$0xf]  ;;  %v8131_v45 = vld [vmem:[%s12885_s16 + $0xe4] sm:$0xf] }
 0x7bb   :  { %5269 = vmatpush.msra.mxu2 %v5228_v17  ;;  %v5109_v11 = vsel %vm5108_vm2, %v12124_v62, %v5105_v36  ;;  %v5224_v21 = vmul.f32 %v5159_v10, %v12082_v32  ;;  %v8118_v62 = vld [vmem:[%s12885_s16 + $0x74] sm:$0xf0]  ;;  %v7584_v33 = vsel %vm5237_vm4, 1.0, %v13416_v58  ;;  %vm5238_vm12 = vcmp.eq.s32.totalorder %v5232_v57, %v8195_v34  ;;  %v7641_v36 = vld [vmem:[%s12885_s16 + $0xe0] sm:$0xf] }
 0x7bc   :  { %v5114_v18 = vsel %vm5111_vm9, %v5113_v1, %v5109_v11  ;;  %v7714_v22 = vor.u32 %v8118_v62, %v7713_v24  ;;  %v7585_v3 = vsel %vm5238_vm12, 1.0, %v13416_v58  ;;  %v5233_v46 = vadd.s32 24, %v5230_v25  ;;  %v7633_v10 = vld [vmem:[%s12885_s16 + $0xd0] sm:$0xf]  ;;  %v8126_v11 = vld [vmem:[%s12885_s16 + $0xb4] sm:$0xf0] }
 0x7bd   :  { %5270 = vmatpush.msra.mxu2 %v5227_v8  ;;  %v5221_v32 = vmul.f32 %v5114_v18, %v12070_v30  ;;  %v7697_v30 = vld [vmem:[%s12885_s16 + $0x50] sm:$0xf]  ;;  %v7674_v55 = vor.u32 %v8108_v0, %v7673_v37  ;;  %v7666_v35 = vor.u32 %v8106_v44, %v7665_v47  ;;  %v7658_v39 = vor.u32 %v8104_v20, %v7657_v4  ;;  %v6025_v18 = vpop.permute.xlu0 %6024  ;;  %v8133_v62 = vld [vmem:[%s12885_s16 + $0xf4] sm:$0xf]  ;;  %v7593_v13 = vld [vmem:[%s12885_s16 + $0x80] sm:$0xf] }
 0x7be   :  { %v7698_v48 = vor.u32 %v8114_v28, %v7697_v30  ;;  %vm5239_vm13 = vcmp.eq.s32.totalorder %v5233_v46, %v8195_v34  ;;  %v12346_v8 = vpack.c.bf16 %v13419_v26, %v13418_v19  ;;  %v12351_v12 = vpack.c.bf16 %v13421_v5, %v13420_v2  ;;  %v7617_v34 = vld [vmem:[%s12885_s16 + $0xb0] sm:$0xf]  ;;  %v8120_v57 = vld [vmem:[%s12885_s16 + $0x84] sm:$0xf0]  ;;  %v8127_v52 = vld [vmem:[%s12885_s16 + $0xc4] sm:$0xf] }
 0x7bf   :  { %5271 = vmatpush.msra.mxu2 %v5226_v54  ;;  %v7586_v17 = vsel %vm5239_vm13, 1.0, %v13416_v58  ;;  %v7650_v54 = vor.u32 %v8134_v15, %v7649_v23  ;;  %v7642_v16 = vor.u32 %v8132_v56, %v7641_v36  ;;  %vm6026_vm10 = vcmp.eq.s32.totalorder %v13422_v49, %v6016_v40  ;;  %v7627_v50 = vld [vmem:[%s12885_s16 + $0xc8] sm:$0xf0]  ;;  %v8125_v46 = vld [vmem:[%s12885_s16 + $0xb4] sm:$0xf] }
 0x7c0   :  { %vm6040_vm15 = vcmask 64512   ;;  %v12374_v51 = vsel %vm6026_vm10, 1.0, %v13416_v58  ;;  %v7626_v25 = vor.u32 %v8128_v59, %v7625_v53  ;;  %vm6027_vm11 = vcmp.eq.s32.totalorder %v13422_v49, %v6019_v14  ;;  %v8115_v44 = vld [vmem:[%s12885_s16 + $0x64] sm:$0xf]  ;;  %v7699_v20 = vld [vmem:[%s12885_s16 + $0x58] sm:$0xf0] }
 0x7c1   :  { %5272 = vmatpush.msra.mxu2 %v5225_v9  ;;  %5406 = vmatpush.bf16.msrb.mxu3 %v7650_v54  ;;  %v7634_v9 = vor.u32 %v8130_v41, %v7633_v10  ;;  %v7618_v1 = vor.u32 %v8126_v11, %v7617_v34  ;;  %vm6028_vm6 = vcmp.eq.s32.totalorder %v13422_v49, %v6022_v7  ;;  %v8121_v36 = vld [vmem:[%s12885_s16 + $0x94] sm:$0xf]  ;;  %v7603_v40 = vld [vmem:[%s12885_s16 + $0x98] sm:$0xf0]  ;;  %v8111_v56 = vld [vmem:[%s12885_s16 + $0x44] sm:$0xf] }
 0x7c2   :  { %vm6029_vm3 = vcmp.eq.s32.totalorder %v13422_v49, %v6025_v18  ;;  %v7630_v37 = vor.u32 %v8127_v52, %v7627_v50  ;;  %v7606_v54 = vor.u32 %v8121_v36, %v7603_v40  ;;  %v8119_v10 = vld [vmem:[%s12885_s16 + $0x84] sm:$0xf]  ;;  %v7595_v41 = vld [vmem:[%s12885_s16 + $0x88] sm:$0xf0]  ;;  %v7683_v53 = vld [vmem:[%s12885_s16 + $0x38] sm:$0xf0] }
 0x7c3   :  { %5273 = vmatpush.msra.mxu2 %v5224_v21  ;;  %v12392_v21 = vsel %vm6027_vm11, 1.0, %v13416_v58  ;;  %v12404_v24 = vsel %vm6029_vm3, 1.0, %v13416_v58  ;;  %v7598_v59 = vor.u32 %v8119_v10, %v7595_v41  ;;  %v8107_v34 = vld [vmem:[%s12885_s16 + $0x24] sm:$0xf]  ;;  %v7675_v11 = vld [vmem:[%s12885_s16 + $0x28] sm:$0xf0] }
 0x7c4   :  { %v8105_v7 = vld [vmem:[%s12885_s16 + $0x14] sm:$0xf]  ;;  %v7667_v18 = vld [vmem:[%s12885_s16 + $0x18] sm:$0xf0]  ;;  %v8136_v40 = vld [vmem:[%s12887_s18 + $0x8] sm:$0xff] }
 0x7c5   :  { %5274 = vmatpush.msra.mxu2 %v5223_v31  ;;  %5407 = vmatpush.bf16.msrb.mxu3 %v7642_v16  ;;  %v12398_v31 = vsel %vm6028_vm6, 1.0, %v13416_v58  ;;  %v8124_v58 = vld [vmem:[%s12885_s16 + $0xa4] sm:$0xf0]  ;;  %v7691_v16 = vld [vmem:[%s12885_s16 + $0x48] sm:$0xf0]  ;;  %v8135_v41 = vld [vmem:[%s12887_s18] sm:$0xff] }
 0x7c6   :  { %v7694_v49 = vor.u32 %v8111_v56, %v7691_v16 }
 0x7c7   :  { %5275 = vmatpush.msra.mxu2 %v5222_v29  ;;  %v7651_v29 = vld [vmem:[%s12885_s16 + $0xf8] sm:$0xf0] }
 0x7c9   :  { %5276 = vmatpush.msra.mxu2 %v5221_v32  ;;  %5408 = vmatpush.bf16.msrb.mxu3 %v7634_v9  ;;  %v7654_v32 = vor.u32 %v8133_v62, %v7651_v29  ;;  %v8109_v9 = vld [vmem:[%s12885_s16 + $0x34] sm:$0xf]  ;;  %v7670_v62 = vor.u32 %v8105_v7, %v7667_v18 }
 0x7ca   :  { %7587 = vmatmul.msk.f32.vlgmr.msra.gmra.mxu2 %vm5248_vm5, %v7583_v43  ;;  %v7609_v43 = vld [vmem:[%s12885_s16 + $0xa0] sm:$0xf]  ;;  %v7686_v14 = vor.u32 %v8109_v9, %v7683_v53 }
 0x7cb   :  { %5524 = vmatpush.bf16.msrb.mxu2 %v7714_v22  ;;  %v7601_v22 = vld [vmem:[%s12885_s16 + $0x90] sm:$0xf]  ;;  %v7610_v61 = vor.u32 %v8124_v58, %v7609_v43  ;;  %5425 = vmatpush.bf16.msra.mxu1 %v7654_v32  ;;  %v8103_v32 = vld [vmem:[%s12885_s16 + $0x4] sm:$0xf]  ;;  %v7659_v43 = vld [vmem:[%s12885_s16 + $0x8] sm:$0xf0] }
 0x7cc   :  { %v7602_v30 = vor.u32 %v8122_v42, %v7601_v22  ;;  %v7662_v22 = vor.u32 %v8103_v32, %v7659_v43 }
 0x7cd   :  { %5409 = vmatpush.bf16.msrb.mxu3 %v7626_v25 }
 0x7cf   :  { %5525 = vmatpush.bf16.msrb.mxu2 %v7706_v6  ;;  %v7643_v6 = vld [vmem:[%s12885_s16 + $0xe8] sm:$0xf0] }
 0x7d0   :  { %v7646_v28 = vor.u32 %v8131_v45, %v7643_v6  ;;  %v6039_v6 = vld [vmem:[%s13417_s3 + $0x8] sm:$0xff] }
 0x7d1   :  { %5410 = vmatpush.bf16.msrb.mxu3 %v7618_v1  ;;  %v7678_v1 = vor.u32 %v8107_v34, %v7675_v11 }
 0x7d2   :  { %7588 = vmatmul.msk.f32.gmra.mxu2 %vm5248_vm5, %v7584_v33  ;;  %5426 = vmatpush.bf16.msra.mxu1 %v7646_v28  ;;  %v8129_v33 = vld [vmem:[%s12885_s16 + $0xd4] sm:$0xf]  ;;  %v5562_v28 = vld [vmem:[%s12886_s17] sm:$0x3] }
 0x7d3   :  { %5526 = vmatpush.bf16.msrb.mxu2 %v7698_v48  ;;  %v7635_v48 = vld [vmem:[%s12885_s16 + $0xd8] sm:$0xf0] }
 0x7d4   :  { %v7638_v63 = vor.u32 %v8129_v33, %v7635_v48 }
 0x7d5   :  { %5411 = vmatpush.bf16.msrb.mxu3 %v7610_v61 }
 0x7d6   :  { %5427 = vmatpush.bf16.msra.mxu1 %v7638_v63 }
 0x7d7   :  { %5527 = vmatpush.bf16.msrb.mxu2 %v7690_v27  ;;  %v7594_v27 = vor.u32 %v8120_v57, %v7593_v13  ;;  %v8140_v57 = vld [vmem:[%s12887_s18 + $0x28] sm:$0xff] }
 0x7d9   :  { %5412 = vmatpush.bf16.msrb.mxu3 %v7602_v30 }
 0x7da   :  { %7589 = vmatmul.msk.f32.gmra.mxu2 %vm5248_vm5, %v7585_v3  ;;  %v8117_v3 = vld [vmem:[%s12885_s16 + $0x74] sm:$0xf]  ;;  %5428 = vmatpush.bf16.msra.mxu1 %v7630_v37 }
 0x7db   :  { %5528 = vmatpush.bf16.msrb.mxu2 %v7682_v60  ;;  %v7715_v60 = vld [vmem:[%s12885_s16 + $0x78] sm:$0xf0] }
 0x7dc   :  { %v7718_v0 = vor.u32 %v8117_v3, %v7715_v60  ;;  %v8139_v3 = vld [vmem:[%s12887_s18 + $0x20] sm:$0xff] }
 0x7dd   :  { %5413 = vmatpush.bf16.msrb.mxu3 %v7594_v27 }
 0x7df   :  { %5529 = vmatpush.bf16.msrb.mxu2 %v7674_v55  ;;  %v7619_v55 = vld [vmem:[%s12885_s16 + $0xb8] sm:$0xf0] }
 0x7e0   :  { %v7622_v47 = vor.u32 %v8125_v46, %v7619_v55  ;;  %v8138_v55 = vld [vmem:[%s12887_s18 + $0x18] sm:$0xff] }
 0x7e1   :  { %5543 = vmatpush.bf16.msra.mxu3 %v7718_v0 }
 0x7e2   :  { %7590 = vmatmul.msk.f32.gmra.mxu2 %vm5248_vm5, %v7586_v17  ;;  %v7707_v17 = vld [vmem:[%s12885_s16 + $0x68] sm:$0xf0]  ;;  %5429 = vmatpush.bf16.msra.mxu1 %v7622_v47 }
 0x7e3   :  { %5530 = vmatpush.bf16.msrb.mxu2 %v7666_v35  ;;  %v8113_v35 = vld [vmem:[%s12885_s16 + $0x54] sm:$0xf]  ;;  %v7710_v4 = vor.u32 %v8115_v44, %v7707_v17 }
 0x7e4   :  { %v7702_v23 = vor.u32 %v8113_v35, %v7699_v20  ;;  %v8137_v35 = vld [vmem:[%s12887_s18 + $0x10] sm:$0xff] }
 0x7e5   :  { %5544 = vmatpush.bf16.msra.mxu3 %v7710_v4 }
 0x7e7   :  { %5531 = vmatpush.bf16.msrb.mxu2 %v7658_v39  ;;  %v8123_v39 = vld [vmem:[%s12885_s16 + $0xa4] sm:$0xf] }
 0x7e9   :  { %5545 = vmatpush.bf16.msra.mxu3 %v7702_v23 }
 0x7ea   :  { %5532 = vmatmul.bf16.vlgmr.msrb.gmra.mxu2 %v12346_v8 }
 0x7eb   :  { %6068 = vmatpush.msra.mxu2 %v6038_v38  ;;  %v7611_v38 = vld [vmem:[%s12885_s16 + $0xa8] sm:$0xf0] }
 0x7ec   :  { %v7614_v15 = vor.u32 %v8123_v39, %v7611_v38 }
 0x7ed   :  { %5546 = vmatpush.bf16.msra.mxu3 %v7694_v49 }
 0x7ee   :  { %5430 = vmatpush.bf16.msra.mxu1 %v7614_v15 }
 0x7f1   :  { %5547 = vmatpush.bf16.msra.mxu3 %v7686_v14 }
 0x7f2   :  { %5431 = vmatpush.bf16.msra.mxu1 %v7606_v54 }
 0x7f5   :  { %5548 = vmatpush.bf16.msra.mxu3 %v7678_v1 }
 0x7f6   :  { %5432 = vmatpush.bf16.msra.mxu1 %v7598_v59  ;;  %v12576_v59 = vperm.slane %v5562_v28, 1 }
 0x7f9   :  { %5549 = vmatpush.bf16.msra.mxu3 %v7670_v62  ;;  %v8150_v62 = vld [vmem:[%s12887_s18 + $0x78] sm:$0xff] }
 0x7fa   :  { %5537 = vmatmul.bf16.gmra.mxu2 %v12351_v12  ;;  %5891 = vmatpush.bf16.msrb.mxu1 %v8150_v62 }
 0x7fd   :  { %5550 = vmatpush.bf16.msra.mxu3 %v7662_v22 }
 0x80a   :  { %7795 = vmatmul.msk.f32.vlgmr.msra.gmra.mxu2 %vm6040_vm15, %v12374_v51 }
 0x812   :  { %7796 = vmatmul.msk.f32.gmra.mxu2 %vm6040_vm15, %v12392_v21 }
 0x81a   :  { %7797 = vmatmul.msk.f32.gmra.mxu2 %vm6040_vm15, %v12398_v31 }
 0x822   :  { %7798 = vmatmul.msk.f32.gmra.mxu2 %vm6040_vm15, %v12404_v24 }
 0x84d   :  { %v5278_v25 = vpop.f32.mrf.mxu2 }
 0x855   :  { %v5281_v29 = vpop.f32.mrf.mxu2 }
 0x856   :  { %v5308_v58 = vpack.c.bf16 %v5281_v29, %v5278_v25 }
 0x858   :  { %5414 = vmatmul.bf16.vlgmr.msrb.gmra.mxu3 %v5308_v58  ;;  %5433 = vmatmul.bf16.vlgmr.msra.gmra.mxu1 %v5308_v58 }
 0x859   :  { %6097 = vmatpush.msrb.mxu3 %v6039_v6 }
 0x85d   :  { %v5284_v61 = vpop.f32.mrf.mxu2 }
 0x865   :  { %v5287_v42 = vpop.f32.mrf.mxu2 }
 0x866   :  { %v5309_v45 = vpack.c.bf16 %v5287_v42, %v5284_v61 }
 0x868   :  { %5419 = vmatmul.bf16.gmra.mxu3 %v5309_v45  ;;  %5438 = vmatmul.bf16.gmra.mxu1 %v5309_v45 }
 0x86d   :  { %v5533_v30 = vpop.f32.mrf.mxu2 }
 0x878   :  { %5551 = vmatmul.bf16.vlgmr.msra.gmra.mxu3 %v12346_v8  ;;  %v5564_v8 = vperm.slane %v5562_v28, 0 }
 0x888   :  { %5556 = vmatmul.bf16.gmra.mxu3 %v12351_v12 }
 0x898   :  { %7799 = vmatmul.msk.f32.vlgmr.msrb.gmra.mxu3 %vm6040_vm15, %v12374_v51  ;;  %v8142_v51 = vld [vmem:[%s12887_s18 + $0x38] sm:$0xff] }
 0x899   :  { %5872 = vmatpush.bf16.msrb.mxu0 %v8142_v51 }
 0x8a0   :  { %7800 = vmatmul.msk.f32.gmra.mxu3 %vm6040_vm15, %v12392_v21  ;;  %v5535_v21 = vpop.f32.mrf.mxu2 }
 0x8a8   :  { %7801 = vmatmul.msk.f32.gmra.mxu3 %vm6040_vm15, %v12398_v31  ;;  %v5538_v60 = vpop.f32.mrf.mxu2 }
 0x8b0   :  { %7802 = vmatmul.msk.f32.gmra.mxu3 %vm6040_vm15, %v12404_v24  ;;  %v8141_v24 = vld [vmem:[%s12887_s18 + $0x30] sm:$0xff]  ;;  %v5540_v38 = vpop.f32.mrf.mxu2 }
 0x8b1   :  { %5873 = vmatpush.bf16.msrb.mxu0 %v8141_v24 }
 0x8b5   :  { %5874 = vmatpush.bf16.msrb.mxu0 %v8140_v57 }
 0x8b9   :  { %5875 = vmatpush.bf16.msrb.mxu0 %v8139_v3 }
 0x8bd   :  { %5876 = vmatpush.bf16.msrb.mxu0 %v8138_v55 }
 0x8c1   :  { %5877 = vmatpush.bf16.msrb.mxu0 %v8137_v35 }
 0x8c5   :  { %5878 = vmatpush.bf16.msrb.mxu0 %v8136_v40  ;;  %v8146_v40 = vld [vmem:[%s12887_s18 + $0x58] sm:$0xff] }
 0x8c9   :  { %5879 = vmatpush.bf16.msrb.mxu0 %v8135_v41 }
 0x8d5   :  { %v5434_v54 = vpop.f32.mrf.mxu1 }
 0x8db   :  { %v5415_v33 = vpop.f32.mrf.mxu3 }
 0x8dc   :  { %v5534_v12 = vadd.f32 %v5533_v30, %v5415_v33 }
 0x8dd   :  { %v5436_v45 = vpop.f32.mrf.mxu1 }
 0x8de   :  { %v12541_v48 = vadd.f32 %v5564_v8, %v5534_v12 }
 0x8e0   :  { %v7719_v31 = vmul.f32 -1.442695, %v12541_v48 }
 0x8e2   :  { %8602 = vpow2.f32 %v7719_v31 }
 0x8e3   :  { %v5417_v63 = vpop.f32.mrf.mxu3 }
 0x8e4   :  { %v5536_v13 = vadd.f32 %v5535_v21, %v5417_v63 }
 0x8e5   :  { %v5439_v35 = vpop.f32.mrf.mxu1 }
 0x8e6   :  { %v12550_v27 = vadd.f32 %v5564_v8, %v5536_v13 }
 0x8e8   :  { %v8603_v52 = vpop.eup %8602  ;;  %v7721_v50 = vmul.f32 -1.442695, %v12550_v27 }
 0x8e9   :  { %v5600_v37 = vadd.f32 1.0, %v8603_v52 }
 0x8ea   :  { %8604 = vpow2.f32 %v7721_v50 }
 0x8eb   :  { %8606 = vrcp.f32 %v5600_v37  ;;  %v5420_v0 = vpop.f32.mrf.mxu3  ;;  %v5619_v34 = vand.u32 2147483648, %v5600_v37  ;;  %vm5613_vm7 = vweird.f32 %v5600_v37  ;;  %v5617_v1 = vand.u32 2147483647, %v5600_v37 }
 0x8ec   :  { %v5539_v46 = vadd.f32 %v5538_v60, %v5420_v0  ;;  %v8148_v60 = vld [vmem:[%s12887_s18 + $0x68] sm:$0xff] }
 0x8ed   :  { %v5620_v42 = vor.u32 1.1754944e-38, %v5619_v34  ;;  %vm5618_vm8 = vcmp.eq.f32.partialorder %v5617_v1, 8.507059e+37 }
 0x8ee   :  { %v12559_v47 = vadd.f32 %v5564_v8, %v5539_v46 }
 0x8f0   :  { %v8605_v44 = vpop.eup %8604  ;;  %v7723_v17 = vmul.f32 -1.442695, %v12559_v47 }
 0x8f1   :  { %v8607_v4 = vpop.eup %8606  ;;  %v5602_v20 = vadd.f32 1.0, %v8605_v44 }
 0x8f2   :  { %v5609_v39 = vmul.f32 %v8607_v4, %v5600_v37  ;;  %8608 = vpow2.f32 %v7723_v17  ;;  %vm5614_vm1 = vweird.f32 %v8607_v4 }
 0x8f3   :  { %8610 = vrcp.f32 %v5602_v20  ;;  %v5422_v23 = vpop.f32.mrf.mxu3  ;;  %vm12582_vm14 = vmor %vm5613_vm7, %vm5614_vm1  ;;  %v5647_v32 = vand.u32 2147483647, %v5602_v20  ;;  %v5649_v43 = vand.u32 2147483648, %v5602_v20  ;;  %vm5643_vm9 = vweird.f32 %v5602_v20 }
 0x8f4   :  { %v5610_v15 = vsub.f32 1.0, %v5609_v39  ;;  %v5541_v36 = vadd.f32 %v5540_v38, %v5422_v23 }
 0x8f5   :  { %v5650_v51 = vor.u32 1.1754944e-38, %v5649_v43  ;;  %vm5648_vm5 = vcmp.eq.f32.partialorder %v5647_v32, 8.507059e+37 }
 0x8f6   :  { %v5611_v56 = vmul.f32 %v8607_v4, %v5610_v15  ;;  %v12568_v16 = vadd.f32 %v5564_v8, %v5541_v36  ;;  %v8149_v8 = vld [vmem:[%s12887_s18 + $0x70] sm:$0xff] }
 0x8f7   :  { %5892 = vmatpush.bf16.msrb.mxu1 %v8149_v8 }
 0x8f8   :  { %v8609_v49 = vpop.eup %8608  ;;  %v7725_v10 = vmul.f32 -1.442695, %v12568_v16  ;;  %v5612_v14 = vadd.f32 %v8607_v4, %v5611_v56 }
 0x8f9   :  { %v8611_v9 = vpop.eup %8610  ;;  %v12574_v53 = vadd.f32 1.0, %v8609_v49 }
 0x8fa   :  { %v5639_v25 = vmul.f32 %v8611_v9, %v5602_v20  ;;  %8612 = vpow2.f32 %v7725_v10  ;;  %v5616_v58 = vsel %vm12582_vm14, %v8607_v4, %v5612_v14  ;;  %vm5644_vm2 = vweird.f32 %v8611_v9 }
 0x8fb   :  { %8614 = vrcp.f32 %v12574_v53  ;;  %v5552_v11 = vpop.f32.mrf.mxu3  ;;  %v5621_v12 = vsel %vm5618_vm8, %v5620_v42, %v5616_v58  ;;  %vm5645_vm0 = vmor %vm5643_vm9, %vm5644_vm2  ;;  %5893 = vmatpush.bf16.msrb.mxu1 %v8148_v60  ;;  %v5679_v39 = vand.u32 2147483648, %v12574_v53  ;;  %vm5673_vm12 = vweird.f32 %v12574_v53  ;;  %v5441_v58 = vpop.f32.mrf.mxu1 }
 0x8fc   :  { %v5640_v7 = vsub.f32 1.0, %v5639_v25  ;;  %v5553_v18 = vadd.f32 %v5552_v11, %v5434_v54  ;;  %v5728_v57 = vmul.f32 %v5621_v12, %v12541_v48  ;;  %v8147_v48 = vld [vmem:[%s12887_s18 + $0x60] sm:$0xff]  ;;  %v5677_v23 = vand.u32 2147483647, %v12574_v53  ;;  %v8145_v11 = vld [vmem:[%s12887_s18 + $0x50] sm:$0xff] }
 0x8fe   :  { %v5641_v22 = vmul.f32 %v8611_v9, %v5640_v7  ;;  %v12589_v61 = vadd.f32 %v12576_v59, %v5553_v18  ;;  %vm5678_vm15 = vcmp.eq.f32.partialorder %v5677_v23, 8.507059e+37 }
 0x8ff   :  { %5894 = vmatpush.bf16.msrb.mxu1 %v8147_v48 }
 0x900   :  { %v8613_v6 = vpop.eup %8612  ;;  %v5642_v30 = vadd.f32 %v8611_v9, %v5641_v22  ;;  %v7720_v28 = vmul.f32 -1.442695, %v12589_v61 }
 0x901   :  { %v8615_v33 = vpop.eup %8614  ;;  %v5606_v21 = vadd.f32 1.0, %v8613_v6 }
 0x902   :  { %v5646_v31 = vsel %vm5645_vm0, %v8611_v9, %v5642_v30  ;;  %v5669_v24 = vmul.f32 %v8615_v33, %v12574_v53  ;;  %8616 = vpow2.f32 %v7720_v28  ;;  %vm5674_vm4 = vweird.f32 %v8615_v33  ;;  %v8144_v28 = vld [vmem:[%s12887_s18 + $0x48] sm:$0xff] }
 0x903   :  { %v5651_v63 = vsel %vm5648_vm5, %v5650_v51, %v5646_v31  ;;  %8618 = vrcp.f32 %v5606_v21  ;;  %v5554_v13 = vpop.f32.mrf.mxu3  ;;  %vm12617_vm13 = vmor %vm5673_vm12, %vm5674_vm4  ;;  %v5707_v56 = vand.u32 2147483647, %v5606_v21  ;;  %v5709_v49 = vand.u32 2147483648, %v5606_v21  ;;  %5895 = vmatpush.bf16.msrb.mxu1 %v8146_v40  ;;  %v8143_v51 = vld [vmem:[%s12887_s18 + $0x40] sm:$0xff] }
 0x904   :  { %v5730_v52 = vmul.f32 %v5651_v63, %v12550_v27  ;;  %v5670_v50 = vsub.f32 1.0, %v5669_v24  ;;  %v5555_v3 = vadd.f32 %v5554_v13, %v5436_v45  ;;  %v5680_v53 = vor.u32 1.1754944e-38, %v5679_v39 }
 0x905   :  { %vm5703_vm11 = vweird.f32 %v5606_v21  ;;  %v5710_v18 = vor.u32 1.1754944e-38, %v5709_v49  ;;  %vm5708_vm3 = vcmp.eq.f32.partialorder %v5707_v56, 8.507059e+37 }
 0x906   :  { %v5736_v37 = vpack.c.bf16 %v5730_v52, %v5728_v57  ;;  %v5671_v0 = vmul.f32 %v8615_v33, %v5670_v50  ;;  %v12602_v46 = vadd.f32 %v12576_v59, %v5555_v3 }
 0x907   :  { %5896 = vmatpush.bf16.msrb.mxu1 %v8145_v11 }
 0x908   :  { %v8617_v55 = vpop.eup %8616  ;;  %v7722_v44 = vmul.f32 -1.442695, %v12602_v46  ;;  %5880 = vmatmul.bf16.vlgmr.msrb.gmra.mxu0 %v5736_v37  ;;  %v5672_v4 = vadd.f32 %v8615_v33, %v5671_v0 }
 0x909   :  { %v8619_v27 = vpop.eup %8618  ;;  %v12608_v17 = vadd.f32 1.0, %v8617_v55 }
 0x90a   :  { %v5699_v20 = vmul.f32 %v8619_v27, %v5606_v21  ;;  %8620 = vpow2.f32 %v7722_v44  ;;  %v5676_v10 = vsel %vm12617_vm13, %v8615_v33, %v5672_v4  ;;  %vm5704_vm10 = vweird.f32 %v8619_v27 }
 0x90b   :  { %8622 = vrcp.f32 %v12608_v17  ;;  %v5557_v38 = vpop.f32.mrf.mxu3  ;;  %v5681_v7 = vsel %vm5678_vm15, %v5680_v53, %v5676_v10  ;;  %vm5705_vm6 = vmor %vm5703_vm11, %vm5704_vm10  ;;  %5897 = vmatpush.bf16.msrb.mxu1 %v8144_v28  ;;  %vm5628_vm7 = vweird.f32 %v12608_v17  ;;  %v5632_v13 = vand.u32 2147483647, %v12608_v17 }
 0x90c   :  { %v5700_v15 = vsub.f32 1.0, %v5699_v20  ;;  %v5558_v36 = vadd.f32 %v5557_v38, %v5439_v35  ;;  %v5732_v42 = vmul.f32 %v5681_v7, %v12559_v47 }
 0x90d   :  { %vm5633_vm8 = vcmp.eq.f32.partialorder %v5632_v13, 8.507059e+37 }
 0x90e   :  { %v5701_v41 = vmul.f32 %v8619_v27, %v5700_v15  ;;  %v12624_v9 = vadd.f32 %v12576_v59, %v5558_v36 }
 0x90f   :  { %5898 = vmatpush.bf16.msrb.mxu1 %v8143_v51 }
 0x910   :  { %v8621_v14 = vpop.eup %8620  ;;  %v5702_v25 = vadd.f32 %v8619_v27, %v5701_v41  ;;  %v7724_v34 = vmul.f32 -1.442695, %v12624_v9 }
 0x911   :  { %v8623_v1 = vpop.eup %8622  ;;  %v5603_v62 = vadd.f32 1.0, %v8621_v14 }
 0x912   :  { %v5706_v29 = vsel %vm5705_vm6, %v8619_v27, %v5702_v25  ;;  %v5624_v32 = vmul.f32 %v8623_v1, %v12608_v17  ;;  %8624 = vpow2.f32 %v7724_v34  ;;  %vm5629_vm1 = vweird.f32 %v8623_v1 }
 0x913   :  { %v5711_v43 = vsel %vm5708_vm3, %v5710_v18, %v5706_v29  ;;  %8626 = vrcp.f32 %v5603_v62  ;;  %v5559_v22 = vpop.f32.mrf.mxu3  ;;  %vm5630_vm14 = vmor %vm5628_vm7, %vm5629_vm1  ;;  %v5664_v52 = vand.u32 2147483648, %v5603_v62  ;;  %v5662_v60 = vand.u32 2147483647, %v5603_v62 }
 0x914   :  { %v5734_v45 = vmul.f32 %v5711_v43, %v12568_v16  ;;  %v5625_v6 = vsub.f32 1.0, %v5624_v32  ;;  %v5560_v30 = vadd.f32 %v5559_v22, %v5441_v58  ;;  %vm5658_vm9 = vweird.f32 %v5603_v62  ;;  %v8681_v43 = vld [vmem:[%s12985_s8] sm:$0xff]  ;;  %v8682_v22 = vld [vmem:[%s12985_s8 + $0x8] sm:$0xff] }
 0x915   :  { %v5665_v27 = vor.u32 1.1754944e-38, %v5664_v52  ;;  %vm5663_vm5 = vcmp.eq.f32.partialorder %v5662_v60, 8.507059e+37  ;;  %v5914_v58 = vmul.f32 %v8681_v43, %v8681_v43 }
 0x916   :  { %v5626_v8 = vmul.f32 %v8623_v1, %v5625_v6  ;;  %v12637_v33 = vadd.f32 %v12576_v59, %v5560_v30  ;;  %v5738_v12 = vpack.c.bf16 %v5734_v45, %v5732_v42  ;;  %v5634_v59 = vand.u32 2147483648, %v12608_v17  ;;  %v8196_v30 = vld [vmem:[%s12888_s19] ss:$0 sm:$0xff] }
 0x917   :  { %5918 = vadd.xlane.f32.xlu2 %v5914_v58  ;;  %v5915_v42 = vmul.f32 %v8682_v22, %v8682_v22 }
 0x918   :  { %v8625_v21 = vpop.eup %8624  ;;  %v7726_v47 = vmul.f32 -1.442695, %v12637_v33  ;;  %5885 = vmatmul.bf16.gmra.mxu0 %v5738_v12  ;;  %v5627_v24 = vadd.f32 %v8623_v1, %v5626_v8  ;;  %v5635_v37 = vor.u32 1.1754944e-38, %v5634_v59  ;;  %v8684_v59 = vld [vmem:[%s12985_s8 + $0x18] sm:$0xff] }
 0x919   :  { %v8627_v16 = vpop.eup %8626  ;;  %v5605_v31 = vadd.f32 1.0, %v8625_v21  ;;  %5920 = vadd.xlane.f32.xlu1 %v5915_v42  ;;  %v5917_v13 = vmul.f32 %v8684_v59, %v8684_v59 }
 0x91a   :  { %v5654_v63 = vmul.f32 %v8627_v16, %v5603_v62  ;;  %8628 = vpow2.f32 %v7726_v47  ;;  %v5631_v50 = vsel %vm5630_vm14, %v8623_v1, %v5627_v24  ;;  %vm5659_vm2 = vweird.f32 %v8627_v16 }
 0x91b   :  { %8630 = vrcp.f32 %v5605_v31  ;;  %v5636_v48 = vsel %vm5633_vm8, %v5635_v37, %v5631_v50  ;;  %vm5660_vm0 = vmor %vm5658_vm9, %vm5659_vm2  ;;  %v5694_v49 = vand.u32 2147483648, %v5605_v31  ;;  %vm5688_vm12 = vweird.f32 %v5605_v31 }
 0x91c   :  { %v5655_v57 = vsub.f32 1.0, %v5654_v63  ;;  %v5729_v39 = vmul.f32 %v5636_v48, %v12589_v61  ;;  %v5692_v10 = vand.u32 2147483647, %v5605_v31 }
 0x91d   :  { %v5695_v34 = vor.u32 1.1754944e-38, %v5694_v49 }
 0x91e   :  { %v5656_v3 = vmul.f32 %v8627_v16, %v5655_v57  ;;  %vm5693_vm15 = vcmp.eq.f32.partialorder %v5692_v10, 8.507059e+37 }
 0x920   :  { %v8629_v0 = vpop.eup %8628  ;;  %v5657_v55 = vadd.f32 %v8627_v16, %v5656_v3 }
 0x921   :  { %v8631_v44 = vpop.eup %8630  ;;  %v5607_v35 = vadd.f32 1.0, %v8629_v0 }
 0x922   :  { %v5661_v4 = vsel %vm5660_vm0, %v8627_v16, %v5657_v55  ;;  %v5684_v17 = vmul.f32 %v8631_v44, %v5605_v31  ;;  %vm5689_vm4 = vweird.f32 %v8631_v44 }
 0x923   :  { %v5666_v20 = vsel %vm5663_vm5, %v5665_v27, %v5661_v4  ;;  %8632 = vrcp.f32 %v5607_v35  ;;  %vm5690_vm13 = vmor %vm5688_vm12, %vm5689_vm4  ;;  %v5724_v53 = vand.u32 2147483648, %v5607_v35  ;;  %v5722_v61 = vand.u32 2147483647, %v5607_v35 }
 0x924   :  { %v5731_v38 = vmul.f32 %v5666_v20, %v12602_v46  ;;  %v5685_v23 = vsub.f32 1.0, %v5684_v17  ;;  %vm5718_vm11 = vweird.f32 %v5607_v35  ;;  %v8158_v17 = vld [vmem:[%s12889_s20 + $0x38] sm:$0xff]  ;;  %v8157_v20 = vld [vmem:[%s12889_s20 + $0x30] sm:$0xff] }
 0x925   :  { %v5725_v1 = vor.u32 1.1754944e-38, %v5724_v53  ;;  %vm5723_vm3 = vcmp.eq.f32.partialorder %v5722_v61, 8.507059e+37  ;;  %6193 = vmatpush.bf16.msra.mxu0 %v8158_v17  ;;  %v8154_v61 = vld [vmem:[%s12889_s20 + $0x18] sm:$0xff] }
 0x926   :  { %v5737_v15 = vpack.c.bf16 %v5731_v38, %v5729_v39  ;;  %v5686_v36 = vmul.f32 %v8631_v44, %v5685_v23 }
 0x928   :  { %5899 = vmatmul.bf16.vlgmr.msrb.gmra.mxu1 %v5737_v15  ;;  %v5687_v54 = vadd.f32 %v8631_v44, %v5686_v36  ;;  %v8156_v36 = vld [vmem:[%s12889_s20 + $0x28] sm:$0xff] }
 0x929   :  { %v8633_v40 = vpop.eup %8632  ;;  %6194 = vmatpush.bf16.msra.mxu0 %v8157_v20 }
 0x92a   :  { %v5714_v56 = vmul.f32 %v8633_v40, %v5607_v35  ;;  %v5691_v14 = vsel %vm5690_vm13, %v8631_v44, %v5687_v54  ;;  %vm5719_vm10 = vweird.f32 %v8633_v40 }
 0x92b   :  { %v5696_v11 = vsel %vm5693_vm15, %v5695_v34, %v5691_v14  ;;  %vm5720_vm6 = vmor %vm5718_vm11, %vm5719_vm10 }
 0x92c   :  { %v5715_v41 = vsub.f32 1.0, %v5714_v56  ;;  %v5733_v62 = vmul.f32 %v5696_v11, %v12624_v9  ;;  %v8683_v9 = vld [vmem:[%s12985_s8 + $0x10] sm:$0xff]  ;;  %v8155_v56 = vld [vmem:[%s12889_s20 + $0x20] sm:$0xff] }
 0x92d   :  { %v5916_v45 = vmul.f32 %v8683_v9, %v8683_v9  ;;  %6195 = vmatpush.bf16.msra.mxu0 %v8156_v36 }
 0x92e   :  { %v5716_v25 = vmul.f32 %v8633_v40, %v5715_v41 }
 0x92f   :  { %5922 = vadd.xlane.f32.xlu1 %v5916_v45 }
 0x930   :  { %v5717_v46 = vadd.f32 %v8633_v40, %v5716_v25 }
 0x931   :  { %6196 = vmatpush.bf16.msra.mxu0 %v8155_v56 }
 0x932   :  { %v5721_v7 = vsel %vm5720_vm6, %v8633_v40, %v5717_v46 }
 0x933   :  { %v5726_v18 = vsel %vm5723_vm3, %v5725_v1, %v5721_v7 }
 0x934   :  { %v5735_v29 = vmul.f32 %v5726_v18, %v12637_v33 }
 0x935   :  { %6197 = vmatpush.bf16.msra.mxu0 %v8154_v61 }
 0x936   :  { %v5739_v32 = vpack.c.bf16 %v5735_v29, %v5733_v62  ;;  %v8153_v62 = vld [vmem:[%s12889_s20 + $0x10] sm:$0xff] }
 0x938   :  { %5904 = vmatmul.bf16.gmra.mxu1 %v5739_v32 }
 0x939   :  { %6198 = vmatpush.bf16.msra.mxu0 %v8153_v62 }
 0x985   :  { %v5881_v6 = vpop.f32.mrf.mxu0 }
 0x986   :  { %v5882_v28 = vadd.f32 %v8196_v30, %v5881_v6  ;;  %v8152_v6 = vld [vmem:[%s12889_s20 + $0x8] sm:$0xff] }
 0x987   :  { %6199 = vmatpush.bf16.msra.mxu0 %v8152_v6 }
 0x98a   :  { %v5919_v27 = vpop.xlane.xlu2 %5918 }
 0x98d   :  { %v5883_v8 = vpop.f32.mrf.mxu0 }
 0x98e   :  { %v5884_v47 = vadd.f32 %v8196_v30, %v5883_v8 }
 0x995   :  { %v5886_v24 = vpop.f32.mrf.mxu0 }
 0x996   :  { %v5887_v57 = vadd.f32 %v8196_v30, %v5886_v24 }
 0x99d   :  { %v5888_v60 = vpop.f32.mrf.mxu0 }
 0x99e   :  { %v5889_v37 = vadd.f32 %v8196_v30, %v5888_v60  ;;  %v6070_v30 = vpop.f32.mrf.mxu2 }
 0x9a5   :  { %v5900_v33 = vpop.f32.mrf.mxu1 }
 0x9a6   :  { %v5901_v12 = vadd.f32 %v5900_v33, %v5882_v28 }
 0x9a8   :  { %v12663_v51 = vadd.f32 %v5901_v12, %v13418_v19 }
 0x9aa   :  { %v5926_v21 = vmul.f32 %v12663_v51, %v12663_v51 }
 0x9ac   :  { %5930 = vadd.xlane.f32.xlu0 %v5926_v21 }
 0x9ad   :  { %v5902_v16 = vpop.f32.mrf.mxu1 }
 0x9ae   :  { %v5903_v31 = vadd.f32 %v5902_v16, %v5884_v47  ;;  %v8151_v47 = vld [vmem:[%s12889_s20] sm:$0xff] }
 0x9af   :  { %6200 = vmatpush.bf16.msra.mxu0 %v8151_v47 }
 0x9b0   :  { %v12668_v63 = vadd.f32 %v5903_v31, %v13419_v26 }
 0x9b2   :  { %v5927_v19 = vmul.f32 %v12668_v63, %v12668_v63 }
 0x9b4   :  { %5932 = vadd.xlane.f32.xlu2 %v5927_v19  ;;  %5924 = vadd.xlane.f32.xlu0 %v5917_v13  ;;  %v6099_v19 = vpop.f32.mrf.mxu3 }
 0x9b5   :  { %v5905_v52 = vpop.f32.mrf.mxu1 }
 0x9b6   :  { %v5906_v50 = vadd.f32 %v5905_v52, %v5887_v57 }
 0x9b8   :  { %v12676_v3 = vadd.f32 %v5906_v50, %v13420_v2  ;;  %v5921_v2 = vpop.xlane.xlu1 %5920 }
 0x9ba   :  { %v5928_v26 = vmul.f32 %v12676_v3, %v12676_v3 }
 0x9bc   :  { %5934 = vadd.xlane.f32.xlu2 %v5928_v26 }
 0x9bd   :  { %v5907_v0 = vpop.f32.mrf.mxu1 }
 0x9be   :  { %v5908_v55 = vadd.f32 %v5907_v0, %v5889_v37  ;;  %v6073_v0 = vpop.f32.mrf.mxu2 }
 0x9bf   :  { %v6112_v36 = vadd.f32 1.0, %v6073_v0 }
 0x9c0   :  { %v12681_v44 = vadd.f32 %v5908_v55, %v13421_v5  ;;  %v5923_v54 = vpop.xlane.xlu1 %5922 }
 0x9c2   :  { %v5929_v48 = vmul.f32 %v12681_v44, %v12681_v44 }
 0x9c4   :  { %5936 = vadd.xlane.f32.xlu1 %v5929_v48 }
 0xa1f   :  { %v5931_v35 = vpop.xlane.xlu0 %5930 }
 0xa20   :  { %v5938_v4 = vadd.f32 %v5931_v35, %v5919_v27 }
 0xa22   :  { %8634 = vrsqrt.f32 %v5938_v4  ;;  %vm5949_vm1 = vcmp.eq.f32.partialorder %v5938_v4, inf  ;;  %v5952_v11 = vand.u32 2147483648, %v5938_v4  ;;  %vm5951_vm7 = vcmp.eq.f32.partialorder %v5938_v4, 0.0 }
 0xa27   :  { %v5933_v5 = vpop.xlane.xlu2 %5932  ;;  %v5925_v18 = vpop.xlane.xlu0 %5924 }
 0xa28   :  { %v8635_v39 = vpop.eup %8634  ;;  %v5939_v38 = vadd.f32 %v5933_v5, %v5921_v2 }
 0xa29   :  { %v5943_v23 = vmul.f32 %v8635_v39, %v5938_v4 }
 0xa2a   :  { %8636 = vrsqrt.f32 %v5939_v38  ;;  %vm5961_vm14 = vcmp.eq.f32.partialorder %v5939_v38, inf  ;;  %v5964_v33 = vand.u32 2147483648, %v5939_v38  ;;  %vm5963_vm2 = vcmp.eq.f32.partialorder %v5939_v38, 0.0 }
 0xa2b   :  { %v5944_v15 = vmul.f32 %v8635_v39, %v5943_v23 }
 0xa2d   :  { %v5945_v40 = vmul.f32 0.5, %v5944_v15  ;;  %v6102_v15 = vpop.f32.mrf.mxu3 }
 0xa2f   :  { %v5946_v49 = vsub.f32 1.5, %v5945_v40  ;;  %v5935_v10 = vpop.xlane.xlu2 %5934 }
 0xa30   :  { %v8637_v41 = vpop.eup %8636  ;;  %v5940_v53 = vadd.f32 %v5935_v10, %v5923_v54 }
 0xa31   :  { %v5947_v14 = vmul.f32 %v8635_v39, %v5946_v49  ;;  %v5955_v25 = vmul.f32 %v8637_v41, %v5939_v38  ;;  %v6111_v39 = vadd.f32 1.0, %v6070_v30 }
 0xa32   :  { %8638 = vrsqrt.f32 %v5940_v53  ;;  %vm5973_vm8 = vcmp.eq.f32.partialorder %v5940_v53, inf  ;;  %v5976_v55 = vand.u32 2147483648, %v5940_v53  ;;  %vm5975_vm9 = vcmp.eq.f32.partialorder %v5940_v53, 0.0 }
 0xa33   :  { %v5948_v34 = vmul.f32 %v5947_v14, %v5938_v4  ;;  %v5956_v46 = vmul.f32 %v8637_v41, %v5955_v25 }
 0xa35   :  { %v5950_v1 = vsel %vm5949_vm1, %v5938_v4, %v5948_v34  ;;  %v5957_v7 = vmul.f32 0.5, %v5956_v46 }
 0xa36   :  { %v5953_v29 = vsel %vm5951_vm7, %v5952_v11, %v5950_v1  ;;  %v6105_v1 = vpop.f32.mrf.mxu3 }
 0xa37   :  { %v5990_v32 = vmax.f32 %v5953_v29, 1e-15  ;;  %v5958_v43 = vsub.f32 1.5, %v5957_v7  ;;  %v5937_v58 = vpop.xlane.xlu1 %5936 }
 0xa38   :  { %v8639_v22 = vpop.eup %8638  ;;  %v12703_v42 = vadd.f32 %v5937_v58, %v5925_v18 }
 0xa39   :  { %v5959_v9 = vmul.f32 %v8637_v41, %v5958_v43  ;;  %v5967_v45 = vmul.f32 %v8639_v22, %v5940_v53  ;;  %8640 = vtanh.f32 %v5990_v32  ;;  %v6076_v41 = vpop.f32.mrf.mxu2 }
 0xa3a   :  { %8642 = vrsqrt.f32 %v12703_v42  ;;  %vm5985_vm0 = vcmp.eq.f32.partialorder %v12703_v42, inf  ;;  %v5988_v49 = vand.u32 2147483648, %v12703_v42  ;;  %vm5987_vm5 = vcmp.eq.f32.partialorder %v12703_v42, 0.0 }
 0xa3b   :  { %v5960_v28 = vmul.f32 %v5959_v9, %v5939_v38  ;;  %v5968_v8 = vmul.f32 %v8639_v22, %v5967_v45  ;;  %8644 = vrcp.f32 %v5990_v32  ;;  %v6113_v32 = vadd.f32 1.0, %v6076_v41 }
 0xa3d   :  { %v5962_v12 = vsel %vm5961_vm14, %v5939_v38, %v5960_v28  ;;  %v5969_v21 = vmul.f32 0.5, %v5968_v8  ;;  %v8197_v8 = vld [vmem:[%s12890_s21] ss:$0 sm:$0xff] }
 0xa3e   :  { %v5965_v16 = vsel %vm5963_vm2, %v5964_v33, %v5962_v12  ;;  %v6108_v45 = vpop.f32.mrf.mxu3 }
 0xa3f   :  { %v8641_v31 = vpop.eup %8640  ;;  %v5991_v24 = vmax.f32 %v5965_v16, 1e-15  ;;  %v5970_v59 = vsub.f32 1.5, %v5969_v21 }
 0xa40   :  { %v8643_v13 = vpop.eup %8642 }
 0xa41   :  { %v8645_v57 = vpop.eup %8644  ;;  %v5971_v52 = vmul.f32 %v8639_v22, %v5970_v59  ;;  %v5979_v50 = vmul.f32 %v8643_v13, %v12703_v42  ;;  %8646 = vtanh.f32 %v5991_v24  ;;  %v6079_v29 = vpop.f32.mrf.mxu2 }
 0xa42   :  { %8648 = vrcp.f32 %v5991_v24  ;;  %v6002_v37 = vmul.f32 %v8645_v57, %v8641_v31  ;;  %v6114_v58 = vadd.f32 1.0, %v6079_v29 }
 0xa43   :  { %v5972_v60 = vmul.f32 %v5971_v52, %v5940_v53  ;;  %v5980_v26 = vmul.f32 %v8643_v13, %v5979_v50 }
 0xa44   :  { %v6006_v17 = vmul.f32 %v6002_v37, %v12663_v51 }
 0xa45   :  { %v5981_v48 = vmul.f32 0.5, %v5980_v26  ;;  %v5974_v27 = vsel %vm5973_vm8, %v5940_v53, %v5972_v60 }
 0xa46   :  { %v5977_v35 = vsel %vm5975_vm9, %v5976_v55, %v5974_v27  ;;  %v6115_v56 = vmul.f32 %v6111_v39, %v6006_v17 }
 0xa47   :  { %v8647_v4 = vpop.eup %8646  ;;  %v5982_v2 = vsub.f32 1.5, %v5981_v48  ;;  %v5992_v20 = vmax.f32 %v5977_v35, 1e-15 }
 0xa48   :  { %v8649_v5 = vpop.eup %8648  ;;  %v6119_v25 = vadd.f32 %v6115_v56, %v6099_v19 }
 0xa49   :  { %v5983_v38 = vmul.f32 %v8643_v13, %v5982_v2  ;;  %v6003_v23 = vmul.f32 %v8649_v5, %v8647_v4  ;;  %8650 = vtanh.f32 %v5992_v20 }
 0xa4a   :  { %8652 = vrcp.f32 %v5992_v20 }
 0xa4b   :  { %v5984_v40 = vmul.f32 %v5983_v38, %v12703_v42  ;;  %v6007_v54 = vmul.f32 %v6003_v23, %v12668_v63 }
 0xa4d   :  { %v6116_v10 = vmul.f32 %v6112_v36, %v6007_v54  ;;  %v5986_v51 = vsel %vm5985_vm0, %v12703_v42, %v5984_v40 }
 0xa4e   :  { %v5989_v53 = vsel %vm5987_vm5, %v5988_v49, %v5986_v51 }
 0xa4f   :  { %v8651_v14 = vpop.eup %8650  ;;  %v6120_v61 = vadd.f32 %v6116_v10, %v6102_v15  ;;  %v5993_v34 = vmax.f32 %v5989_v53, 1e-15 }
 0xa50   :  { %v8653_v46 = vpop.eup %8652 }
 0xa51   :  { %v6123_v11 = vpack.c.bf16 %v6120_v61, %v6119_v25  ;;  %8654 = vtanh.f32 %v5993_v34  ;;  %v6004_v63 = vmul.f32 %v8653_v46, %v8651_v14 }
 0xa52   :  { %8656 = vrcp.f32 %v5993_v34 }
 0xa53   :  { %6201 = vmatmul.bf16.vlgmr.msra.gmra.mxu0 %v6123_v11  ;;  %v6008_v18 = vmul.f32 %v6004_v63, %v12676_v3 }
 0xa55   :  { %v6117_v42 = vmul.f32 %v6113_v32, %v6008_v18 }
 0xa57   :  { %v8655_v7 = vpop.eup %8654  ;;  %v6121_v6 = vadd.f32 %v6117_v42, %v6105_v1 }
 0xa58   :  { %v8657_v62 = vpop.eup %8656 }
 0xa59   :  { %v6005_v43 = vmul.f32 %v8657_v62, %v8655_v7 }
 0xa5b   :  { %v6009_v22 = vmul.f32 %v6005_v43, %v12681_v44 }
 0xa5d   :  { %v6118_v9 = vmul.f32 %v6114_v58, %v6009_v22 }
 0xa5f   :  { %v6122_v30 = vadd.f32 %v6118_v9, %v6108_v45 }
 0xa61   :  { %v6124_v28 = vpack.c.bf16 %v6122_v30, %v6121_v6 }
 0xa63   :  { %6206 = vmatmul.bf16.gmra.mxu0 %v6124_v28 }
 0xad0   :  { %v6202_v33 = vpop.f32.mrf.mxu0 }
 0xad1   :  { %v12725_v3 = vadd.f32 %v8197_v8, %v6202_v33 }
 0xad3   :  { %v7835_v12 = vmul.f32 -1.442695, %v12725_v3 }
 0xad5   :  { %8658 = vpow2.f32 %v7835_v12 }
 0xad8   :  { %v6204_v21 = vpop.f32.mrf.mxu0 }
 0xad9   :  { %v12728_v47 = vadd.f32 %v8197_v8, %v6204_v21 }
 0xadb   :  { %v7836_v44 = vmul.f32 -1.442695, %v12728_v47  ;;  %v8659_v16 = vpop.eup %8658 }
 0xadc   :  { %v6224_v31 = vadd.f32 1.0, %v8659_v16 }
 0xadd   :  { %8660 = vpow2.f32 %v7836_v44 }
 0xade   :  { %8662 = vrcp.f32 %v6224_v31  ;;  %vm6233_vm15 = vweird.f32 %v6224_v31  ;;  %v6237_v49 = vand.u32 2147483647, %v6224_v31  ;;  %v6239_v10 = vand.u32 2147483648, %v6224_v31 }
 0xae0   :  { %v6207_v24 = vpop.f32.mrf.mxu0  ;;  %v6240_v7 = vor.u32 1.1754944e-38, %v6239_v10  ;;  %vm6238_vm14 = vcmp.eq.f32.partialorder %v6237_v49, 8.507059e+37 }
 0xae1   :  { %v12731_v59 = vadd.f32 %v8197_v8, %v6207_v24 }
 0xae3   :  { %v8661_v13 = vpop.eup %8660  ;;  %v7837_v19 = vmul.f32 -1.442695, %v12731_v59 }
 0xae4   :  { %v6225_v57 = vadd.f32 1.0, %v8661_v13  ;;  %v8663_v60 = vpop.eup %8662 }
 0xae5   :  { %8664 = vpow2.f32 %v7837_v19  ;;  %v6229_v48 = vmul.f32 %v8663_v60, %v6224_v31  ;;  %vm6234_vm12 = vweird.f32 %v8663_v60 }
 0xae6   :  { %8666 = vrcp.f32 %v6225_v57  ;;  %vm6248_vm13 = vweird.f32 %v6225_v57  ;;  %v6254_v36 = vand.u32 2147483648, %v6225_v57  ;;  %v6252_v54 = vand.u32 2147483647, %v6225_v57  ;;  %vm12741_vm6 = vmor %vm6233_vm15, %vm6234_vm12 }
 0xae7   :  { %v6230_v4 = vsub.f32 1.0, %v6229_v48 }
 0xae8   :  { %v6209_v52 = vpop.f32.mrf.mxu0  ;;  %v6255_v46 = vor.u32 1.1754944e-38, %v6254_v36  ;;  %vm6253_vm7 = vcmp.eq.f32.partialorder %v6252_v54, 8.507059e+37 }
 0xae9   :  { %v12734_v50 = vadd.f32 %v8197_v8, %v6209_v52  ;;  %v6231_v39 = vmul.f32 %v8663_v60, %v6230_v4 }
 0xaeb   :  { %v8665_v26 = vpop.eup %8664  ;;  %v7838_v37 = vmul.f32 -1.442695, %v12734_v50  ;;  %v6232_v40 = vadd.f32 %v8663_v60, %v6231_v39 }
 0xaec   :  { %v8667_v0 = vpop.eup %8666  ;;  %v6226_v55 = vadd.f32 1.0, %v8665_v26 }
 0xaed   :  { %v6244_v27 = vmul.f32 %v8667_v0, %v6225_v57  ;;  %8668 = vpow2.f32 %v7838_v37  ;;  %vm6249_vm4 = vweird.f32 %v8667_v0  ;;  %v6236_v11 = vsel %vm12741_vm6, %v8663_v60, %v6232_v40 }
 0xaee   :  { %8670 = vrcp.f32 %v6226_v55  ;;  %vm12737_vm11 = vmor %vm6248_vm13, %vm6249_vm4  ;;  %v6269_v41 = vand.u32 2147483648, %v6226_v55  ;;  %vm6263_vm3 = vweird.f32 %v6226_v55  ;;  %v6267_v61 = vand.u32 2147483647, %v6226_v55 }
 0xaef   :  { %v6245_v35 = vsub.f32 1.0, %v6244_v27  ;;  %v6241_v32 = vsel %vm6238_vm14, %v6240_v7, %v6236_v11  ;;  %v8166_v7 = vld [vmem:[%s12893_s24 + $0x38] sm:$0xff] }
 0xaf0   :  { %v6270_v62 = vor.u32 1.1754944e-38, %v6269_v41  ;;  %vm6268_vm2 = vcmp.eq.f32.partialorder %v6267_v61, 8.507059e+37  ;;  %v6288_v45 = vmul.f32 %v6241_v32, %v12725_v3  ;;  %6465 = vmatpush.bf16.msra.mxu1 %v8166_v7 }
 0xaf1   :  { %v6246_v17 = vmul.f32 %v8667_v0, %v6245_v35 }
 0xaf3   :  { %v8669_v2 = vpop.eup %8668  ;;  %v6247_v23 = vadd.f32 %v8667_v0, %v6246_v17 }
 0xaf4   :  { %v8671_v20 = vpop.eup %8670  ;;  %v6227_v5 = vadd.f32 1.0, %v8669_v2 }
 0xaf5   :  { %v6259_v38 = vmul.f32 %v8671_v20, %v6226_v55  ;;  %vm6264_vm10 = vweird.f32 %v8671_v20  ;;  %v6251_v14 = vsel %vm12737_vm11, %v8667_v0, %v6247_v23 }
 0xaf6   :  { %8672 = vrcp.f32 %v6227_v5  ;;  %vm6265_vm1 = vmor %vm6263_vm3, %vm6264_vm10  ;;  %v6256_v18 = vsel %vm6253_vm7, %v6255_v46, %v6251_v14  ;;  %v6284_v58 = vand.u32 2147483648, %v6227_v5  ;;  %v6282_v9 = vand.u32 2147483647, %v6227_v5 }
 0xaf7   :  { %v6260_v15 = vsub.f32 1.0, %v6259_v38  ;;  %v6289_v22 = vmul.f32 %v6256_v18, %v12728_v47  ;;  %vm6278_vm9 = vweird.f32 %v6227_v5  ;;  %v8745_v47 = vmov 4096.0   ;;  %v8165_v18 = vld [vmem:[%s12893_s24 + $0x30] sm:$0xff] }
 0xaf8   :  { %v6285_v28 = vor.u32 1.1754944e-38, %v6284_v58  ;;  %vm6283_vm5 = vcmp.eq.f32.partialorder %v6282_v9, 8.507059e+37  ;;  %8674 = vrcp.f32 %v8745_v47  ;;  %6466 = vmatpush.bf16.msra.mxu1 %v8165_v18  ;;  %v8161_v58 = vld [vmem:[%s12893_s24 + $0x10] sm:$0xff] }
 0xaf9   :  { %v6261_v56 = vmul.f32 %v8671_v20, %v6260_v15  ;;  %v6292_v8 = vadd.f32 %v6289_v22, %v6288_v45  ;;  %v6498_v47 = vld [vmem:[%s12895_s26 + $0x70] sm:$0xff] }
 0xafb   :  { %v6262_v25 = vadd.f32 %v8671_v20, %v6261_v56 }
 0xafc   :  { %v8673_v34 = vpop.eup %8672 }
 0xafd   :  { %v6266_v63 = vsel %vm6265_vm1, %v8671_v20, %v6262_v25  ;;  %v6274_v1 = vmul.f32 %v8673_v34, %v6227_v5  ;;  %vm6279_vm8 = vweird.f32 %v8673_v34 }
 0xafe   :  { %v6271_v43 = vsel %vm6268_vm2, %v6270_v62, %v6266_v63  ;;  %vm6280_vm0 = vmor %vm6278_vm9, %vm6279_vm8  ;;  %v8675_v31 = vpop.eup %8674  ;;  %v8164_v62 = vld [vmem:[%s12893_s24 + $0x28] sm:$0xff] }
 0xaff   :  { %v6275_v29 = vsub.f32 1.0, %v6274_v1  ;;  %v6290_v6 = vmul.f32 %v6271_v43, %v12731_v59  ;;  %v6305_v24 = vmul.f32 4096.0, %v8675_v31  ;;  %vm6309_vm4 = vweird.f32 %v8675_v31  ;;  %6467 = vmatpush.bf16.msra.mxu1 %v8164_v62  ;;  %v8162_v43 = vld [vmem:[%s12893_s24 + $0x18] sm:$0xff] }
 0xb01   :  { %v6276_v42 = vmul.f32 %v8673_v34, %v6275_v29  ;;  %v6293_v44 = vadd.f32 %v6292_v8, %v6290_v6  ;;  %v6306_v3 = vsub.f32 1.0, %v6305_v24  ;;  %v8163_v29 = vld [vmem:[%s12893_s24 + $0x20] sm:$0xff] }
 0xb02   :  { %v6496_v24 = vld [vmem:[%s12895_s26 + $0x60] sm:$0xff] }
 0xb03   :  { %v6277_v30 = vadd.f32 %v8673_v34, %v6276_v42  ;;  %v6307_v57 = vmul.f32 %v8675_v31, %v6306_v3  ;;  %6468 = vmatpush.bf16.msra.mxu1 %v8163_v29  ;;  %v8198_v3 = vld [vmem:[%s12891_s22] ss:$0 sm:$0xff] }
 0xb05   :  { %v6281_v33 = vsel %vm6280_vm0, %v8673_v34, %v6277_v30  ;;  %v6308_v26 = vadd.f32 %v8675_v31, %v6307_v57 }
 0xb06   :  { %v6286_v12 = vsel %vm6283_vm5, %v6285_v28, %v6281_v33 }
 0xb07   :  { %v6291_v21 = vmul.f32 %v6286_v12, %v12734_v50  ;;  %v6310_v55 = vsel %vm6309_vm4, %v8675_v31, %v6308_v26  ;;  %6469 = vmatpush.bf16.msra.mxu1 %v8162_v43  ;;  %v6497_v31 = vld [vmem:[%s12895_s26 + $0x68] sm:$0xff] }
 0xb09   :  { %v6294_v16 = vadd.f32 %v6293_v44, %v6291_v21  ;;  %v8159_v44 = vld [vmem:[%s12893_s24] sm:$0xff] }
 0xb0b   :  { %6295 = vadd.xlane.f32.xlu0 %v6294_v16  ;;  %6470 = vmatpush.bf16.msra.mxu1 %v8161_v58  ;;  %v6499_v16 = vld [vmem:[%s12895_s26 + $0x78] sm:$0xff] }
 0xb0c   :  { %6504 = vmatpush.msrb.mxu2 %v6499_v16 }
 0xb0e   :  { %6505 = vmatpush.msrb.mxu2 %v6498_v47 }
 0xb10   :  { %6506 = vmatpush.msrb.mxu2 %v6497_v31 }
 0xb12   :  { %6507 = vmatpush.msrb.mxu2 %v6496_v24 }
 0xb7e   :  { %v6296_v13 = vpop.xlane.xlu0 %6295 }
 0xb7f   :  { %v6297_v59 = vrot.slane %v6296_v13, 4 }
 0xb81   :  { %v6298_v19 = vadd.f32 %v6297_v59, %v6296_v13  ;;  %v6495_v13 = vld [vmem:[%s12895_s26 + $0x58] sm:$0xff] }
 0xb82   :  { %6508 = vmatpush.msrb.mxu2 %v6495_v13 }
 0xb83   :  { %v6299_v52 = vrot.slane %v6298_v19, 2 }
 0xb85   :  { %v6300_v60 = vadd.f32 %v6299_v52, %v6298_v19  ;;  %v8199_v52 = vld [vmem:[%s12892_s23] ss:$0 sm:$0xff] }
 0xb87   :  { %v6301_v37 = vrot.slane %v6300_v60, 1 }
 0xb89   :  { %v6302_v0 = vadd.f32 %v6301_v37, %v6300_v60  ;;  %v6494_v60 = vld [vmem:[%s12895_s26 + $0x50] sm:$0xff] }
 0xb8a   :  { %6509 = vmatpush.msrb.mxu2 %v6494_v60 }
 0xb8b   :  { %8171 = vpush %v6302_v0  ;;  %v6493_v0 = vld [vmem:[%s12895_s26 + $0x48] sm:$0xff] }
 0xb8c   :  { %8173 = vpush %v6310_v55  ;;  %6510 = vmatpush.msrb.mxu2 %v6493_v0 }
 0xbbc   :  { %s8172_s21 = spop %8171 }
 0xbbd   :  { %s8174_s16 = spop %8173 }
 0xbbe   :  { %s6312_s3 = smul.f32 %s8174_s16, %s8172_s21 }
 0xbc0   :  { %v6313_v50 = vstv %s6312_s3 }
 0xbc1   :  { %v12753_v48 = vsub.f32 %v6288_v45, %v6313_v50  ;;  %v12755_v27 = vsub.f32 %v6289_v22, %v6313_v50  ;;  %v12757_v35 = vsub.f32 %v6290_v6, %v6313_v50  ;;  %v12759_v4 = vsub.f32 %v6291_v21, %v6313_v50  ;;  %v8160_v21 = vld [vmem:[%s12893_s24 + $0x8] sm:$0xff] }
 0xbc2   :  { %6471 = vmatpush.bf16.msra.mxu1 %v8160_v21 }
 0xbc3   :  { %v6318_v2 = vmul.f32 %v12753_v48, %v12753_v48  ;;  %v6319_v17 = vmul.f32 %v12755_v27, %v12755_v27  ;;  %v6320_v20 = vmul.f32 %v12757_v35, %v12757_v35  ;;  %v6321_v39 = vmul.f32 %v12759_v4, %v12759_v4 }
 0xbc5   :  { %v6322_v5 = vadd.f32 %v6319_v17, %v6318_v2  ;;  %v6491_v2 = vld [vmem:[%s12895_s26 + $0x38] sm:$0xff]  ;;  %v6490_v17 = vld [vmem:[%s12895_s26 + $0x30] sm:$0xff] }
 0xbc6   :  { %6472 = vmatpush.bf16.msra.mxu1 %v8159_v44 }
 0xbc7   :  { %v6323_v38 = vadd.f32 %v6322_v5, %v6320_v20 }
 0xbc9   :  { %v6324_v23 = vadd.f32 %v6323_v38, %v6321_v39  ;;  %v6489_v39 = vld [vmem:[%s12895_s26 + $0x28] sm:$0xff]  ;;  %v6488_v38 = vld [vmem:[%s12895_s26 + $0x20] sm:$0xff] }
 0xbcb   :  { %6325 = vadd.xlane.f32.xlu2 %v6324_v23 }
 0xc3e   :  { %v6326_v15 = vpop.xlane.xlu2 %6325 }
 0xc3f   :  { %v6327_v36 = vrot.slane %v6326_v15, 4 }
 0xc41   :  { %v6328_v40 = vadd.f32 %v6327_v36, %v6326_v15  ;;  %v6487_v36 = vld [vmem:[%s12895_s26 + $0x18] sm:$0xff] }
 0xc43   :  { %v6329_v54 = vrot.slane %v6328_v40, 2 }
 0xc45   :  { %v6330_v56 = vadd.f32 %v6329_v54, %v6328_v40 }
 0xc47   :  { %v6331_v49 = vrot.slane %v6330_v56, 1 }
 0xc49   :  { %v6332_v10 = vadd.f32 %v6331_v49, %v6330_v56  ;;  %v6485_v56 = vld [vmem:[%s12895_s26 + $0x8] sm:$0xff]  ;;  %v6484_v49 = vld [vmem:[%s12895_s26] sm:$0xff] }
 0xc4b   :  { %8175 = vpush %v6332_v10  ;;  %v8200_v10 = vld [vmem:[%s12894_s25] ss:$0 sm:$0xff] }
 0xc7c   :  { %s8176_s10 = spop %8175 }
 0xc7d   :  { %s6342_s0 = smul.f32 %s8176_s10, %s8174_s16 }
 0xc7f   :  { %v6343_v51 = vstv %s6342_s0 }
 0xc80   :  { %8676 = vrsqrt.f32 %v6343_v51  ;;  %vm6351_vm12 = vcmp.eq.f32.partialorder %v6343_v51, inf  ;;  %v6354_v11 = vand.u32 2147483648, %v6343_v51  ;;  %vm6353_vm13 = vcmp.eq.f32.partialorder %v6343_v51, 0.0 }
 0xc86   :  { %v8677_v41 = vpop.eup %8676 }
 0xc87   :  { %v6345_v53 = vmul.f32 %v8677_v41, %v6343_v51 }
 0xc89   :  { %v6346_v14 = vmul.f32 %v8677_v41, %v6345_v53 }
 0xc8b   :  { %v6347_v25 = vmul.f32 0.5, %v6346_v14 }
 0xc8d   :  { %v6348_v61 = vsub.f32 1.5, %v6347_v25 }
 0xc8f   :  { %v6349_v34 = vmul.f32 %v8677_v41, %v6348_v61 }
 0xc91   :  { %v6350_v46 = vmul.f32 %v6349_v34, %v6343_v51 }
 0xc93   :  { %v6352_v63 = vsel %vm6351_vm12, %v6343_v51, %v6350_v46 }
 0xc94   :  { %v6355_v1 = vsel %vm6353_vm13, %v6354_v11, %v6352_v63  ;;  %v8201_v11 = vld [vmem:[%s12896_s27] ss:$0 sm:$0xff] }
 0xc95   :  { %8177 = vpush %v6355_v1 }
 0xcc6   :  { %s8178_s9 = spop %8177 }
 0xcc7   :  { %s6357_s4 = sadd.f32 1e-05, %s8178_s9 }
 0xcc9   :  { %v6358_v32 = vstv %s6357_s4 }
 0xcca   :  { %8678 = vrcp.f32 %v6358_v32  ;;  %v6370_v45 = vand.u32 2147483648, %v6358_v32  ;;  %v6368_v30 = vand.u32 2147483647, %v6358_v32  ;;  %vm6364_vm15 = vweird.f32 %v6358_v32 }
 0xccc   :  { %v6371_v8 = vor.u32 1.1754944e-38, %v6370_v45  ;;  %vm6369_vm6 = vcmp.eq.f32.partialorder %v6368_v30, 8.507059e+37 }
 0xcd0   :  { %v8679_v22 = vpop.eup %8678 }
 0xcd1   :  { %v6360_v42 = vmul.f32 %v8679_v22, %v6358_v32  ;;  %vm6365_vm10 = vweird.f32 %v8679_v22 }
 0xcd2   :  { %vm6366_vm11 = vmor %vm6364_vm15, %vm6365_vm10 }
 0xcd3   :  { %v6361_v9 = vsub.f32 1.0, %v6360_v42 }
 0xcd5   :  { %v6362_v6 = vmul.f32 %v8679_v22, %v6361_v9 }
 0xcd7   :  { %v6363_v28 = vadd.f32 %v8679_v22, %v6362_v6 }
 0xcd9   :  { %v6367_v33 = vsel %vm6366_vm11, %v8679_v22, %v6363_v28 }
 0xcda   :  { %v6372_v12 = vsel %vm6369_vm6, %v6371_v8, %v6367_v33 }
 0xcdb   :  { %8179 = vpush %v6372_v12 }
 0xd0c   :  { %s8180_s24 = spop %8179 }
 0xd0d   :  { %v6374_v59 = vstv %s8180_s24 }
 0xd0e   :  { %v6375_v19 = vmul.f32 %v6374_v59, %v12753_v48  ;;  %v6376_v57 = vmul.f32 %v6374_v59, %v12755_v27  ;;  %v6492_v48 = vld [vmem:[%s12895_s26 + $0x40] sm:$0xff]  ;;  %v6377_v20 = vmul.f32 %v6374_v59, %v12757_v35  ;;  %v6378_v5 = vmul.f32 %v6374_v59, %v12759_v4  ;;  %v6486_v35 = vld [vmem:[%s12895_s26 + $0x10] sm:$0xff] }
 0xd0f   :  { %6511 = vmatpush.msrb.mxu2 %v6492_v48 }
 0xd10   :  { %v6383_v26 = vmul.f32 %v8198_v3, %v6375_v19  ;;  %v6384_v37 = vmul.f32 %v8198_v3, %v6376_v57  ;;  %v6385_v23 = vmul.f32 %v8198_v3, %v6377_v20  ;;  %v6386_v15 = vmul.f32 %v8198_v3, %v6378_v5 }
 0xd11   :  { %6512 = vmatpush.msrb.mxu2 %v6491_v2 }
 0xd12   :  { %v6391_v55 = vadd.f32 %v8199_v52, %v6383_v26  ;;  %v6392_v50 = vadd.f32 %v8199_v52, %v6384_v37  ;;  %v6393_v4 = vadd.f32 %v8199_v52, %v6385_v23  ;;  %v6394_v40 = vadd.f32 %v8199_v52, %v6386_v15 }
 0xd13   :  { %6513 = vmatpush.msrb.mxu2 %v6490_v17 }
 0xd14   :  { %v6395_v27 = vpack.c.bf16 %v6392_v50, %v6391_v55  ;;  %v6396_v54 = vpack.c.bf16 %v6394_v40, %v6393_v4 }
 0xd15   :  { %6514 = vmatpush.msrb.mxu2 %v6489_v39 }
 0xd16   :  { %6473 = vmatmul.bf16.vlgmr.msra.gmra.mxu1 %v6395_v27 }
 0xd17   :  { %6515 = vmatpush.msrb.mxu2 %v6488_v38 }
 0xd19   :  { %6516 = vmatpush.msrb.mxu2 %v6487_v36 }
 0xd1b   :  { %6517 = vmatpush.msrb.mxu2 %v6486_v35 }
 0xd1d   :  { %6518 = vmatpush.msrb.mxu2 %v6485_v56 }
 0xd1f   :  { %6519 = vmatpush.msrb.mxu2 %v6484_v49 }
 0xd26   :  { %6478 = vmatmul.bf16.gmra.mxu1 %v6396_v54 }
 0xd93   :  { %v6474_v51 = vpop.f32.mrf.mxu1 }
 0xd94   :  { %v6475_v41 = vadd.f32 %v8200_v10, %v6474_v51 }
 0xd96   :  { %6520 = vmatmul.f32.vlgmr.msrb.gmra.mxu2 %v6475_v41 }
 0xd9b   :  { %v6476_v53 = vpop.f32.mrf.mxu1 }
 0xd9c   :  { %v6477_v14 = vadd.f32 %v8200_v10, %v6476_v53 }
 0xd9e   :  { %6523 = vmatmul.f32.gmra.mxu2 %v6477_v14 }
 0xda3   :  { %v6479_v25 = vpop.f32.mrf.mxu1 }
 0xda4   :  { %v6480_v61 = vadd.f32 %v8200_v10, %v6479_v25 }
 0xda6   :  { %6526 = vmatmul.f32.gmra.mxu2 %v6480_v61 }
 0xdab   :  { %v6481_v34 = vpop.f32.mrf.mxu1 }
 0xdac   :  { %v6482_v46 = vadd.f32 %v8200_v10, %v6481_v34 }
 0xdae   :  { %6529 = vmatmul.f32.gmra.mxu2 %v6482_v46 }
 0xe19   :  { %v6521_v63 = vpop.f32.mrf.mxu2 }
 0xe1a   :  { %v6522_v1 = vadd.f32 %v8201_v11, %v6521_v63 }
 0xe1c   :  { %6533 = vst [vmem:[%s12897_s28] sm:$0xff] %v6522_v1 }
 0xe21   :  { %v6524_v7 = vpop.f32.mrf.mxu2 }
 0xe22   :  { %v6525_v18 = vadd.f32 %v8201_v11, %v6524_v7 }
 0xe24   :  { %6534 = vst [vmem:[%s12897_s28 + $0x8] sm:$0xff] %v6525_v18 }
 0xe29   :  { %v6527_v62 = vpop.f32.mrf.mxu2 }
 0xe2a   :  { %v6528_v29 = vadd.f32 %v8201_v11, %v6527_v62 }
 0xe2c   :  { %6535 = vst [vmem:[%s12897_s28 + $0x10] sm:$0xff] %v6528_v29 }
 0xe31   :  { %v6530_v32 = vpop.f32.mrf.mxu2 }
 0xe32   :  { %v6531_v43 = vadd.f32 %v8201_v11, %v6530_v32 }
 0xe34   :  { %6536 = vst [vmem:[%s12897_s28 + $0x18] sm:$0xff] %v6531_v43 }
 0xe35   :  { %6541 = vsyncpa [#allocation3], 1 }
 0xe36   :  { %6542 = vsyncpa [#allocation5], 1 }

</bundles_post_ra>
